<compile_context>
chip_gen: v7x
topology: tpu7x:2x2x1
jax: 0.10.0
libtpu: 0.0.40
codegen_flags: <defaults>
</compile_context>

<pallas_src>
import functools

import jax
import jax.numpy as jnp
from jax import lax
from jax.experimental import pallas as pl
from jax.experimental.pallas import tpu as pltpu

LANE = 128
SUBLANE = 8


def _round_up(x, m):
    return ((x + m - 1) // m) * m


def _largest_tile(total, cap, step):
    """Largest multiple of `step` that divides `total`, capped at `cap`."""
    best = step
    t = step
    limit = min(cap, total)
    while t <= limit:
        if total % t == 0:
            best = t
        t += step
    return best


def _vmem_capacity_bytes():
    try:
        return int(pltpu.get_tpu_info().vmem_capacity_bytes)
    except Exception:
        return 64 * 1024 * 1024      # conservative: v7x per-core VMEM


def _vmem_limit(need_bytes):
    cap = _vmem_capacity_bytes()
    return int(min(max(int(need_bytes * 1.5) + (4 << 20), 32 << 20),
                   int(cap * 0.9)))


def _choose_bt(B):
    """Batch rows per grid block; >= 2 blocks when B >= 16 (megacore split)."""
    b8 = _round_up(B, SUBLANE)
    if b8 >= 16:
        bt = min(_round_up((b8 + 1) // 2, SUBLANE), 256)
    else:
        bt = b8
    return bt, _round_up(b8, bt)


def _recurrence_vmem_bytes(tk, bt, ein, hp, eb):
    g = 4 * hp
    return (2 * tk * bt * ein * eb       # x block (double-buffered)
            + 2 * tk * bt * hp * eb      # out block (double-buffered)
            + 2 * ein * g * eb           # w_ih (resident)
            + 2 * hp * g * eb            # w_hh (resident)
            + 2 * g * 4                  # bias
            + tk * bt * g * 4            # gx VMEM scratch (f32)
            + 2 * bt * hp * 4)           # h, c state (f32)


def _choose_tk(T, bt, ein, hp, eb):
    """Time steps per grid step from a VMEM budget (generation-aware)."""
    g = 4 * hp
    budget = int(_vmem_capacity_bytes() * 0.45)
    per_tk = bt * (2 * ein * eb + 2 * hp * eb + g * 4)
    fixed = 2 * ein * g * eb + 2 * hp * g * eb + 2 * g * 4 + 2 * bt * hp * 4
    avail = max(budget - fixed, SUBLANE * per_tk)
    tk = (avail // per_tk) // SUBLANE * SUBLANE
    return int(max(SUBLANE, min(tk, 64, _round_up(T, SUBLANE))))


# ----------------------------------------------------------------------------
# Fused (input-projection + recurrence) LSTM layer kernel
# ----------------------------------------------------------------------------
def _fused_lstm_layer_kernel(x_ref, wih_ref, whh_ref, b_ref, out_ref,
                             gx_ref, h_ref, c_ref, *,
                             hp, tk, bt, batch_major_out, unroll):
    """One grid step == `tk` time steps of one LSTM layer for one batch block.

    x_ref   : (tk, bt, Ein) or (tk*bt, Ein) inputs (time-major, compute dtype)
    wih_ref : (Ein, 4*hp)   input->hidden weights (resident)
    whh_ref : (hp, 4*hp)    hidden->hidden weights (resident)
    b_ref   : (1, 4*hp)     combined bias (f32)
    out_ref : (tk, bt, hp) time-major, or (bt, tk, hp) batch-major (last layer)
    gx_ref  : (tk*bt, 4*hp) f32 VMEM scratch: hoisted input projection
    h_ref/c_ref : (bt, hp)  f32 recurrent state, persists across time blocks
    """
    ti = pl.program_id(1)

    @pl.when(ti == 0)
    def _():
        h_ref[...] = jnp.zeros_like(h_ref)
        c_ref[...] = jnp.zeros_like(c_ref)

    # Hoisted input projection: ONE (tk*bt, Ein) @ (Ein, 4*hp) MXU matmul per
    # grid step; the result never leaves VMEM (no gx HBM round trip).
    xv = x_ref[...]
    if xv.ndim == 3:
        xv = xv.reshape(tk * bt, xv.shape[-1])
    gx_ref[...] = (jnp.dot(xv, wih_ref[...],
                           preferred_element_type=jnp.float32) + b_ref[...])

    def step(k, carry):
        h = h_ref[...]
        c = c_ref[...]
        row = pl.multiple_of(k * bt, bt)
        gx = gx_ref[pl.ds(row, bt), :]                     # (bt, 4*hp), dense
        hc = h.astype(whh_ref.dtype)

        def gate(g):
            # Per-gate matmul: only one (bt, hp) gate result live at a time.
            return gx[:, g * hp:(g + 1) * hp] + jnp.dot(
                hc, whh_ref[:, g * hp:(g + 1) * hp],
                preferred_element_type=jnp.float32)

        # PyTorch LSTM gate ordering: i, f, g, o (lane-aligned, hp % 128 == 0)
        i_g = jax.nn.sigmoid(gate(0))
        f_g = jax.nn.sigmoid(gate(1))
        g_g = jnp.tanh(gate(2))
        o_g = jax.nn.sigmoid(gate(3))
        c_new = f_g * c + i_g * g_g
        h_new = o_g * jnp.tanh(c_new)
        h_ref[...] = h_new
        c_ref[...] = c_new
        if batch_major_out:
            # Last layer: write batch-major so the FC / final logits need no
            # XLA transpose of the (Tpad, Bp, Hp) activation.
            out_ref[:, pl.ds(k, 1), :] = (
                h_new.astype(out_ref.dtype)[:, None, :])
        else:
            out_ref[k] = h_new.astype(out_ref.dtype)
        return carry

    lax.fori_loop(0, tk, step, 0, unroll=unroll)


def lstm_layer_pallas(x, w_ih, w_hh, b, *, out_dtype, tk, bt,
                      batch_major_out, vmem_limit):
    """x: (Tpad, Bp, Ein) time-major -> hidden states.

    Returns (Tpad, Bp, Hp) time-major, or (Bp, Tpad, Hp) batch-major when
    `batch_major_out` (used for the final layer feeding the FC).
    """
    Tpad, Bp, ein = x.shape
    hp = w_hh.shape[0]
    g4 = 4 * hp
    n_b, n_t = Bp // bt, Tpad // tk

    if batch_major_out:
        out_shape = jax.ShapeDtypeStruct((Bp, Tpad, hp), out_dtype)
        out_spec = pl.BlockSpec((bt, tk, hp), lambda bi, ti: (bi, ti, 0))
    else:
        out_shape = jax.ShapeDtypeStruct((Tpad, Bp, hp), out_dtype)
        out_spec = pl.BlockSpec((tk, bt, hp), lambda bi, ti: (ti, bi, 0))

    if n_b == 1:
        # Single batch block: rows are contiguous, feed the block as 2D
        # (no in-kernel reshape needed at all).
        x_arg = x.reshape(Tpad * Bp, ein)                  # free reshape
        x_spec = pl.BlockSpec((tk * bt, ein), lambda bi, ti: (ti, 0))
    else:
        x_arg = x
        x_spec = pl.BlockSpec((tk, bt, ein), lambda bi, ti: (ti, bi, 0))

    # Unroll: full when the per-step state is tiny (static slice indices,
    # best LLO visibility); cap it when (bt, hp) tiles get vreg-heavy.
    state_vregs = (bt * hp + 1023) // 1024
    if state_vregs <= 16:
        unroll = True if tk <= 16 else 8
    else:
        unroll = 2

    kernel = functools.partial(_fused_lstm_layer_kernel, hp=hp, tk=tk, bt=bt,
                               batch_major_out=batch_major_out, unroll=unroll)
    return pl.pallas_call(
        kernel,
        out_shape=out_shape,
        grid_spec=pltpu.PrefetchScalarGridSpec(
            num_scalar_prefetch=0,
            grid=(n_b, n_t),                 # (batch blocks, time blocks)
            in_specs=[
                x_spec,
                pl.BlockSpec((ein, g4), lambda bi, ti: (0, 0)),
                pl.BlockSpec((hp, g4), lambda bi, ti: (0, 0)),
                pl.BlockSpec((1, g4), lambda bi, ti: (0, 0)),
            ],
            out_specs=out_spec,
            scratch_shapes=[
                pltpu.VMEM((tk * bt, g4), jnp.float32),   # hoisted gx block
                pltpu.VMEM((bt, hp), jnp.float32),        # h state
                pltpu.VMEM((bt, hp), jnp.float32),        # c state
            ],
        ),
        compiler_params=pltpu.CompilerParams(
            # batch blocks are independent (megacore on v7x); time is serial.
            dimension_semantics=("parallel", "arbitrary"),
            vmem_limit_bytes=vmem_limit),
    )(x_arg, w_ih, w_hh, b)


# ----------------------------------------------------------------------------
# Fully connected (hidden -> vocab) kernel on the flattened row axis
# ----------------------------------------------------------------------------
def _fc_kernel(h_ref, w_ref, b_ref, out_ref):
    out_ref[...] = (jnp.dot(h_ref[...], w_ref[...],
                            preferred_element_type=jnp.float32)
                    + b_ref[...]).astype(out_ref.dtype)


def fc_pallas(h_flat, w_fc, b_fc, *, rt, vt, vmem_limit):
    N, hp = h_flat.shape
    Vp = w_fc.shape[1]
    return pl.pallas_call(
        _fc_kernel,
        out_shape=jax.ShapeDtypeStruct((N, Vp), jnp.float32),
        grid_spec=pltpu.PrefetchScalarGridSpec(
            num_scalar_prefetch=0,
            grid=(N // rt, Vp // vt),
            in_specs=[
                pl.BlockSpec((rt, hp), lambda i, j: (i, 0)),
                pl.BlockSpec((hp, vt), lambda i, j: (0, j)),
                pl.BlockSpec((1, vt), lambda i, j: (0, j)),
            ],
            out_specs=pl.BlockSpec((rt, vt), lambda i, j: (i, j)),
        ),
        compiler_params=pltpu.CompilerParams(
            dimension_semantics=("parallel", "parallel"),
            vmem_limit_bytes=vmem_limit),
    )(h_flat, w_fc, b_fc)


# ----------------------------------------------------------------------------
# Parameters (logical, PyTorch-equivalent) and padded/cast kernel parameters
# ----------------------------------------------------------------------------
def init_params(key, vocab_size, embedding_dim, hidden_dim, num_layers=1):
    keys = jax.random.split(key, 2 + 4 * num_layers + 2)
    k_iter = iter(keys)
    params = {}
    params["embedding"] = jax.random.normal(
        next(k_iter), (vocab_size, embedding_dim), dtype=jnp.float32)
    bound = 1.0 / jnp.sqrt(jnp.float32(hidden_dim))
    layers = []
    for layer in range(num_layers):
        in_dim = embedding_dim if layer == 0 else hidden_dim
        w_ih = jax.random.uniform(next(k_iter), (in_dim, 4 * hidden_dim),
                                  jnp.float32, -bound, bound)
        w_hh = jax.random.uniform(next(k_iter), (hidden_dim, 4 * hidden_dim),
                                  jnp.float32, -bound, bound)
        b_ih = jax.random.uniform(next(k_iter), (1, 4 * hidden_dim),
                                  jnp.float32, -bound, bound)
        b_hh = jax.random.uniform(next(k_iter), (1, 4 * hidden_dim),
                                  jnp.float32, -bound, bound)
        layers.append({"w_ih": w_ih, "w_hh": w_hh, "b": b_ih + b_hh})
    params["lstm"] = layers
    params["w_fc"] = jax.random.uniform(next(k_iter), (hidden_dim, vocab_size),
                                        jnp.float32, -bound, bound)
    params["b_fc"] = jax.random.uniform(next(k_iter), (1, vocab_size),
                                        jnp.float32, -bound, bound)
    return params


def _pad_gate_cols(w, H, Hp):
    """(..., 4H) -> (..., 4Hp): each of the 4 gate blocks lands at g*Hp."""
    if Hp == H:
        return w
    pieces = []
    pad = [(0, 0)] * (w.ndim - 1) + [(0, Hp - H)]
    for g in range(4):
        pieces.append(jnp.pad(w[..., g * H:(g + 1) * H], pad))
    return jnp.concatenate(pieces, axis=-1)


def prepare_kernel_params(params, compute_dtype=jnp.bfloat16):
    """Pad H/V to lane multiples, lane-align gate columns, cast MXU operands.

    Padded hidden units stay exactly zero through the recurrence (zero weights
    and zero bias in the padded positions, zero initial state).
    """
    H = params["lstm"][0]["w_hh"].shape[0]
    Hp = _round_up(H, LANE)
    V = params["w_fc"].shape[1]
    Vp = _round_up(V, LANE)

    kp = {"embedding": params["embedding"]}           # f32 gather table
    layers = []
    for li, layer in enumerate(params["lstm"]):
        w_ih = _pad_gate_cols(layer["w_ih"], H, Hp)   # (in_dim, 4Hp)
        if li > 0 and Hp > H:                         # pad input rows (zeros)
            w_ih = jnp.pad(w_ih, ((0, Hp - H), (0, 0)))
        w_hh = _pad_gate_cols(layer["w_hh"], H, Hp)
        if Hp > H:
            w_hh = jnp.pad(w_hh, ((0, Hp - H), (0, 0)))
        b = _pad_gate_cols(layer["b"], H, Hp)         # (1, 4Hp), keep f32
        layers.append({
            "w_ih": w_ih.astype(compute_dtype),
            "w_hh": w_hh.astype(compute_dtype),
            "b": b.astype(jnp.float32),
        })
    kp["lstm"] = layers
    kp["w_fc"] = jnp.pad(params["w_fc"],
                         ((0, Hp - H), (0, Vp - V))).astype(compute_dtype)
    kp["b_fc"] = jnp.pad(params["b_fc"],
                         ((0, 0), (0, Vp - V))).astype(jnp.float32)
    return kp


# ----------------------------------------------------------------------------
# Forward pass
# ----------------------------------------------------------------------------
@jax.jit
def lstm_neural_net_forward(kparams, tokens):
    """tokens: int32 [B, T] -> logits float32 [B, T, vocab_size]."""
    B, T = tokens.shape
    V = kparams["embedding"].shape[0]
    E = kparams["embedding"].shape[1]
    hp = kparams["lstm"][0]["w_hh"].shape[0]
    Vp = kparams["w_fc"].shape[1]
    cdt = kparams["lstm"][0]["w_hh"].dtype
    eb = jnp.dtype(cdt).itemsize

    # Static, VMEM-budgeted tiling (smaller tk automatically on v7x).
    bt, Bp = _choose_bt(B)
    ein_max = max(E, hp)
    tk = _choose_tk(T, bt, ein_max, hp, eb)
    Tpad = _round_up(T, tk)
    rec_limit = _vmem_limit(_recurrence_vmem_bytes(tk, bt, ein_max, hp, eb))

    # Embedding lookup (glue: plain XLA gather), pad, switch to time-major.
    # TODO(synk): embedding gather could be a scalar-prefetch Pallas DMA-gather.
    emb = jnp.take(kparams["embedding"], tokens, axis=0)      # (B, T, E) f32
    x = jnp.transpose(emb, (1, 0, 2))                         # (T, B, E) small
    x = jnp.pad(x, ((0, Tpad - T), (0, Bp - B), (0, 0))).astype(cdt)

    n_layers = len(kparams["lstm"])
    for li, layer in enumerate(kparams["lstm"]):
        x = lstm_layer_pallas(
            x, layer["w_ih"], layer["w_hh"], layer["b"],
            out_dtype=cdt, tk=tk, bt=bt,
            batch_major_out=(li == n_layers - 1),
            vmem_limit=rec_limit)
        # TODO(synk): fuse consecutive LSTM layers into one kernel so the
        # (Tpad, Bp, Hp) activation stays VMEM-resident across layers.

    # Last layer output is batch-major (Bp, Tpad, Hp): flatten rows for free.
    h_flat = x.reshape(Bp * Tpad, hp)
    rt = _largest_tile(Bp * Tpad, cap=512, step=SUBLANE)
    vt = _largest_tile(Vp, cap=512, step=LANE)
    fc_need = 2 * (rt * hp + hp * vt) * eb + 2 * rt * vt * 4 + 2 * vt * 4
    logits = fc_pallas(h_flat, kparams["w_fc"], kparams["b_fc"],
                       rt=rt, vt=vt, vmem_limit=_vmem_limit(fc_need))
    return logits.reshape(Bp, Tpad, Vp)[:B, :T, :V]


# ----------------------------------------------------------------------------
# Pure-JAX reference (logical params, f32) for correctness check
# ----------------------------------------------------------------------------
def reference_forward(params, tokens):
    emb = jnp.take(params["embedding"], tokens, axis=0)       # (B, T, E)
    x = jnp.transpose(emb, (1, 0, 2))                         # (T, B, E)
    for layer in params["lstm"]:
        w_ih, w_hh, b = layer["w_ih"], layer["w_hh"], layer["b"]
        H = w_hh.shape[0]
        B = x.shape[1]

        def step(carry, x_t):
            h, c = carry
            gates = x_t @ w_ih + h @ w_hh + b
            i_g = jax.nn.sigmoid(gates[:, 0 * H:1 * H])
            f_g = jax.nn.sigmoid(gates[:, 1 * H:2 * H])
            g_g = jnp.tanh(gates[:, 2 * H:3 * H])
            o_g = jax.nn.sigmoid(gates[:, 3 * H:4 * H])
            c_new = f_g * c + i_g * g_g
            h_new = o_g * jnp.tanh(c_new)
            return (h_new, c_new), h_new

        init = (jnp.zeros((B, H), jnp.float32), jnp.zeros((B, H), jnp.float32))
        _, hs = lax.scan(step, init, x)
        x = hs                                                # (T, B, H)
    logits = x @ params["w_fc"] + params["b_fc"]              # (T, B, V)
    return jnp.transpose(logits, (1, 0, 2))


# ----------------------------------------------------------------------------
# Main
# ----------------------------------------------------------------------------
if __name__ == "__main__":
    vocab_size = 16
    embedding_dim = 8
    hidden_dim = 32
    num_layers = 2
    batch = 2
    seq_len = 8

    key = jax.random.PRNGKey(0)
    k_params, k_tokens = jax.random.split(key)
    params = init_params(k_params, vocab_size, embedding_dim, hidden_dim,
                         num_layers)
    tokens = jax.random.randint(k_tokens, (batch, seq_len), 0, vocab_size,
                                dtype=jnp.int32)

    ref = reference_forward(params, tokens)

    # 1) f32 weights: tight correctness check against the lax.scan reference.
    kp_f32 = prepare_kernel_params(params, compute_dtype=jnp.float32)
    out_f32 = jax.block_until_ready(lstm_neural_net_forward(kp_f32, tokens))
    assert out_f32.shape == (batch, seq_len, vocab_size), out_f32.shape
    assert out_f32.dtype == jnp.float32
    assert jnp.allclose(out_f32, ref, atol=1e-3, rtol=1e-3), (
        "f32 Pallas output does not match reference")

    # 2) bf16 weights/activations on the MXU (f32 state + accumulation).
    kp_bf16 = prepare_kernel_params(params, compute_dtype=jnp.bfloat16)
    out_bf16 = jax.block_until_ready(lstm_neural_net_forward(kp_bf16, tokens))
    assert out_bf16.shape == (batch, seq_len, vocab_size), out_bf16.shape
    assert out_bf16.dtype == jnp.float32
    assert bool(jnp.all(jnp.isfinite(out_bf16)))
    assert jnp.allclose(out_bf16, ref, atol=5e-2, rtol=5e-2), (
        "bf16 Pallas output deviates too far from reference")

    print("KERNEL_OK")
</pallas_src>

<mosaic_0001>
module attributes {stable_mosaic.version = 11 : i64} {
  func.func @_fc_kernel(%arg0: i32, %arg1: i32, %arg2: memref<64x128xf32, #tpu.memory_space<vmem>>, %arg3: memref<128x128xf32, #tpu.memory_space<vmem>>, %arg4: memref<1x128xf32, #tpu.memory_space<vmem>>, %arg5: memref<64x128xf32, #tpu.memory_space<vmem>>) attributes {dimension_semantics = [#tpu.dimension_semantics<parallel>, #tpu.dimension_semantics<parallel>], iteration_bounds = array<i64: 1, 1>, scalar_prefetch = 0 : i64, scratch_operands = 0 : i64, tpu.core_type = #tpu.core_type<tc>, window_params = [{transform_indices = @transform_0, window_bounds = array<i64: 64, 128>}, {transform_indices = @transform_1, window_bounds = array<i64: 128, 128>}, {transform_indices = @transform_2, window_bounds = array<i64: 1, 128>}, {transform_indices = @transform_3, window_bounds = array<i64: 64, 128>}]} {
    %c0 = arith.constant 0 : index
    %c0_0 = arith.constant 0 : index
    %0 = vector.load %arg2[%c0, %c0_0] : memref<64x128xf32, #tpu.memory_space<vmem>>, vector<64x128xf32>
    %c0_1 = arith.constant 0 : index
    %c0_2 = arith.constant 0 : index
    %1 = vector.load %arg3[%c0_1, %c0_2] : memref<128x128xf32, #tpu.memory_space<vmem>>, vector<128x128xf32>
    %cst = arith.constant dense<0.000000e+00> : vector<64x128xf32>
    %2 = tpu.matmul %0, %1, %cst {dimension_numbers = #tpu.dot_dimension_numbers<[1], [0], [0], [1], [0, 0, 1, 1], [], []>} : vector<64x128xf32>, vector<128x128xf32>, vector<64x128xf32> -> vector<64x128xf32>
    %c0_3 = arith.constant 0 : index
    %c0_4 = arith.constant 0 : index
    %3 = vector.load %arg4[%c0_3, %c0_4] : memref<1x128xf32, #tpu.memory_space<vmem>>, vector<1x128xf32>
    %4 = vector.broadcast %3 : vector<1x128xf32> to vector<64x128xf32>
    %5 = arith.addf %2, %4 : vector<64x128xf32>
    %c0_5 = arith.constant 0 : index
    %c0_6 = arith.constant 0 : index
    %6 = vector.load %arg5[%c0_5, %c0_6] : memref<64x128xf32, #tpu.memory_space<vmem>>, vector<64x128xf32>
    tpu.vector_store %arg5[%c0_5, %c0_6], %5 {strides = array<i32>} : memref<64x128xf32, #tpu.memory_space<vmem>>, vector<64x128xf32>,
    return
  }
  func.func @transform_0(%arg0: i32, %arg1: i32) -> (i32, i32) {
    %c0_i32 = arith.constant 0 : i32
    %c0_i32_0 = arith.constant 0 : i32
    return %arg0, %c0_i32 : i32, i32
  }
  func.func @transform_1(%arg0: i32, %arg1: i32) -> (i32, i32) {
    %c0_i32 = arith.constant 0 : i32
    %c0_i32_0 = arith.constant 0 : i32
    return %c0_i32, %arg1 : i32, i32
  }
  func.func @transform_2(%arg0: i32, %arg1: i32) -> (i32, i32) {
    %c0_i32 = arith.constant 0 : i32
    %c0_i32_0 = arith.constant 0 : i32
    return %c0_i32, %arg1 : i32, i32
  }
  func.func @transform_3(%arg0: i32, %arg1: i32) -> (i32, i32) {
    %c0_i32 = arith.constant 0 : i32
    return %arg0, %arg1 : i32, i32
  }
}

module attributes {stable_mosaic.version = 11 : i64} {
  func.func @_fused_lstm_layer_kernel(%arg0: i32, %arg1: i32, %arg2: memref<64x128xf32, #tpu.memory_space<vmem>>, %arg3: memref<128x512xf32, #tpu.memory_space<vmem>>, %arg4: memref<128x512xf32, #tpu.memory_space<vmem>>, %arg5: memref<1x512xf32, #tpu.memory_space<vmem>>, %arg6: memref<8x8x128xf32, #tpu.memory_space<vmem>>, %arg7: memref<64x512xf32, #tpu.memory_space<vmem>>, %arg8: memref<8x128xf32, #tpu.memory_space<vmem>>, %arg9: memref<8x128xf32, #tpu.memory_space<vmem>>) attributes {dimension_semantics = [#tpu.dimension_semantics<parallel>, #tpu.dimension_semantics<arbitrary>], iteration_bounds = array<i64: 1, 1>, scalar_prefetch = 0 : i64, scratch_operands = 3 : i64, tpu.core_type = #tpu.core_type<tc>, window_params = [{transform_indices = @transform_0, window_bounds = array<i64: 64, 128>}, {pipeline_mode = #tpu.pipeline_mode<synchronous>, transform_indices = @transform_1, window_bounds = array<i64: 128, 512>}, {pipeline_mode = #tpu.pipeline_mode<synchronous>, transform_indices = @transform_2, window_bounds = array<i64: 128, 512>}, {pipeline_mode = #tpu.pipeline_mode<synchronous>, transform_indices = @transform_3, window_bounds = array<i64: 1, 512>}, {transform_indices = @transform_4, window_bounds = array<i64: 8, 8, 128>}]} {
    %c0_i32 = arith.constant 0 : i32
    %0 = arith.cmpi eq, %arg1, %c0_i32 : i32
    %1 = arith.extui %0 : i1 to i32
    %c0_i32_0 = arith.constant 0 : i32
    %2 = arith.cmpi ne, %1, %c0_i32_0 : i32
    scf.if %2 {
      %cst_222 = arith.constant 0.000000e+00 : f32
      %394 = vector.broadcast %cst_222 : f32 to vector<8x128xf32>
      %c0_223 = arith.constant 0 : index
      %c0_224 = arith.constant 0 : index
      %395 = vector.load %arg8[%c0_223, %c0_224] : memref<8x128xf32, #tpu.memory_space<vmem>>, vector<8x128xf32>
      tpu.vector_store %arg8[%c0_223, %c0_224], %394 {strides = array<i32>} : memref<8x128xf32, #tpu.memory_space<vmem>>, vector<8x128xf32>,
      %cst_225 = arith.constant 0.000000e+00 : f32
      %396 = vector.broadcast %cst_225 : f32 to vector<8x128xf32>
      %c0_226 = arith.constant 0 : index
      %c0_227 = arith.constant 0 : index
      %397 = vector.load %arg9[%c0_226, %c0_227] : memref<8x128xf32, #tpu.memory_space<vmem>>, vector<8x128xf32>
      tpu.vector_store %arg9[%c0_226, %c0_227], %396 {strides = array<i32>} : memref<8x128xf32, #tpu.memory_space<vmem>>, vector<8x128xf32>,
    } else {
    }
    %c0 = arith.constant 0 : index
    %c0_1 = arith.constant 0 : index
    %3 = vector.load %arg2[%c0, %c0_1] : memref<64x128xf32, #tpu.memory_space<vmem>>, vector<64x128xf32>
    %c0_2 = arith.constant 0 : index
    %c0_3 = arith.constant 0 : index
    %4 = vector.load %arg3[%c0_2, %c0_3] : memref<128x512xf32, #tpu.memory_space<vmem>>, vector<128x512xf32>
    %cst = arith.constant dense<0.000000e+00> : vector<64x512xf32>
    %5 = tpu.matmul %3, %4, %cst {dimension_numbers = #tpu.dot_dimension_numbers<[1], [0], [0], [1], [0, 0, 1, 1], [], []>} : vector<64x128xf32>, vector<128x512xf32>, vector<64x512xf32> -> vector<64x512xf32>
    %c0_4 = arith.constant 0 : index
    %c0_5 = arith.constant 0 : index
    %6 = vector.load %arg5[%c0_4, %c0_5] : memref<1x512xf32, #tpu.memory_space<vmem>>, vector<1x512xf32>
    %7 = vector.broadcast %6 : vector<1x512xf32> to vector<64x512xf32>
    %8 = arith.addf %5, %7 : vector<64x512xf32>
    %c0_6 = arith.constant 0 : index
    %c0_7 = arith.constant 0 : index
    %9 = vector.load %arg7[%c0_6, %c0_7] : memref<64x512xf32, #tpu.memory_space<vmem>>, vector<64x512xf32>
    tpu.vector_store %arg7[%c0_6, %c0_7], %8 {strides = array<i32>} : memref<64x512xf32, #tpu.memory_space<vmem>>, vector<64x512xf32>,
    %c0_i32_8 = arith.constant 0 : i32
    %c0_9 = arith.constant 0 : index
    %c0_10 = arith.constant 0 : index
    %10 = vector.load %arg8[%c0_9, %c0_10] : memref<8x128xf32, #tpu.memory_space<vmem>>, vector<8x128xf32>
    %c0_11 = arith.constant 0 : index
    %c0_12 = arith.constant 0 : index
    %11 = vector.load %arg9[%c0_11, %c0_12] : memref<8x128xf32, #tpu.memory_space<vmem>>, vector<8x128xf32>
    %c8_i32 = arith.constant 8 : i32
    %12 = arith.muli %c0_i32_8, %c8_i32 : i32
    %13 = tpu.assume_multiple %12, 8 : i32
    %14 = arith.index_cast %13 : i32 to index
    %c0_13 = arith.constant 0 : index
    %15 = vector.load %arg7[%14, %c0_13] : memref<64x512xf32, #tpu.memory_space<vmem>>, vector<8x512xf32>
    %16 = vector.extract_strided_slice %15 {offsets = [0, 0], sizes = [8, 128], strides = [1, 1]} : vector<8x512xf32> to vector<8x128xf32>
    %c0_14 = arith.constant 0 : index
    %c0_15 = arith.constant 0 : index
    %17 = vector.load %arg4[%c0_14, %c0_15] : memref<128x512xf32, #tpu.memory_space<vmem>>, vector<128x128xf32>
    %cst_16 = arith.constant dense<0.000000e+00> : vector<8x128xf32>
    %18 = tpu.matmul %10, %17, %cst_16 {dimension_numbers = #tpu.dot_dimension_numbers<[1], [0], [0], [1], [0, 0, 1, 1], [], []>} : vector<8x128xf32>, vector<128x128xf32>, vector<8x128xf32> -> vector<8x128xf32>
    %19 = arith.addf %16, %18 : vector<8x128xf32>
    %20 = arith.negf %19 : vector<8x128xf32>
    %21 = math.exp %20 : vector<8x128xf32>
    %cst_17 = arith.constant 1.000000e+00 : f32
    %22 = vector.broadcast %cst_17 : f32 to vector<8x128xf32>
    %23 = arith.addf %22, %21 : vector<8x128xf32>
    %24 = arith.divf %22, %23 : vector<8x128xf32>
    %25 = vector.extract_strided_slice %15 {offsets = [0, 128], sizes = [8, 128], strides = [1, 1]} : vector<8x512xf32> to vector<8x128xf32>
    %c0_18 = arith.constant 0 : index
    %c128 = arith.constant 128 : index
    %26 = vector.load %arg4[%c0_18, %c128] : memref<128x512xf32, #tpu.memory_space<vmem>>, vector<128x128xf32>
    %cst_19 = arith.constant dense<0.000000e+00> : vector<8x128xf32>
    %27 = tpu.matmul %10, %26, %cst_19 {dimension_numbers = #tpu.dot_dimension_numbers<[1], [0], [0], [1], [0, 0, 1, 1], [], []>} : vector<8x128xf32>, vector<128x128xf32>, vector<8x128xf32> -> vector<8x128xf32>
    %28 = arith.addf %25, %27 : vector<8x128xf32>
    %29 = arith.negf %28 : vector<8x128xf32>
    %30 = math.exp %29 : vector<8x128xf32>
    %cst_20 = arith.constant 1.000000e+00 : f32
    %31 = vector.broadcast %cst_20 : f32 to vector<8x128xf32>
    %32 = arith.addf %31, %30 : vector<8x128xf32>
    %33 = arith.divf %31, %32 : vector<8x128xf32>
    %34 = vector.extract_strided_slice %15 {offsets = [0, 256], sizes = [8, 128], strides = [1, 1]} : vector<8x512xf32> to vector<8x128xf32>
    %c0_21 = arith.constant 0 : index
    %c256 = arith.constant 256 : index
    %35 = vector.load %arg4[%c0_21, %c256] : memref<128x512xf32, #tpu.memory_space<vmem>>, vector<128x128xf32>
    %cst_22 = arith.constant dense<0.000000e+00> : vector<8x128xf32>
    %36 = tpu.matmul %10, %35, %cst_22 {dimension_numbers = #tpu.dot_dimension_numbers<[1], [0], [0], [1], [0, 0, 1, 1], [], []>} : vector<8x128xf32>, vector<128x128xf32>, vector<8x128xf32> -> vector<8x128xf32>
    %37 = arith.addf %34, %36 : vector<8x128xf32>
    %38 = math.tanh %37 : vector<8x128xf32>
    %39 = vector.extract_strided_slice %15 {offsets = [0, 384], sizes = [8, 128], strides = [1, 1]} : vector<8x512xf32> to vector<8x128xf32>
    %c0_23 = arith.constant 0 : index
    %c384 = arith.constant 384 : index
    %40 = vector.load %arg4[%c0_23, %c384] : memref<128x512xf32, #tpu.memory_space<vmem>>, vector<128x128xf32>
    %cst_24 = arith.constant dense<0.000000e+00> : vector<8x128xf32>
    %41 = tpu.matmul %10, %40, %cst_24 {dimension_numbers = #tpu.dot_dimension_numbers<[1], [0], [0], [1], [0, 0, 1, 1], [], []>} : vector<8x128xf32>, vector<128x128xf32>, vector<8x128xf32> -> vector<8x128xf32>
    %42 = arith.addf %39, %41 : vector<8x128xf32>
    %43 = arith.negf %42 : vector<8x128xf32>
    %44 = math.exp %43 : vector<8x128xf32>
    %cst_25 = arith.constant 1.000000e+00 : f32
    %45 = vector.broadcast %cst_25 : f32 to vector<8x128xf32>
    %46 = arith.addf %45, %44 : vector<8x128xf32>
    %47 = arith.divf %45, %46 : vector<8x128xf32>
    %48 = arith.mulf %33, %11 : vector<8x128xf32>
    %49 = arith.mulf %24, %38 : vector<8x128xf32>
    %50 = arith.addf %48, %49 : vector<8x128xf32>
    %51 = math.tanh %50 : vector<8x128xf32>
    %52 = arith.mulf %47, %51 : vector<8x128xf32>
    %c0_26 = arith.constant 0 : index
    %c0_27 = arith.constant 0 : index
    %53 = vector.load %arg8[%c0_26, %c0_27] : memref<8x128xf32, #tpu.memory_space<vmem>>, vector<8x128xf32>
    tpu.vector_store %arg8[%c0_26, %c0_27], %52 {strides = array<i32>} : memref<8x128xf32, #tpu.memory_space<vmem>>, vector<8x128xf32>,
    %c0_28 = arith.constant 0 : index
    %c0_29 = arith.constant 0 : index
    %54 = vector.load %arg9[%c0_28, %c0_29] : memref<8x128xf32, #tpu.memory_space<vmem>>, vector<8x128xf32>
    tpu.vector_store %arg9[%c0_28, %c0_29], %50 {strides = array<i32>} : memref<8x128xf32, #tpu.memory_space<vmem>>, vector<8x128xf32>,
    %55 = vector.shape_cast %52 : vector<8x128xf32> to vector<8x1x128xf32>
    %c0_30 = arith.constant 0 : index
    %56 = arith.index_cast %c0_i32_8 : i32 to index
    %c0_31 = arith.constant 0 : index
    %57 = vector.load %arg6[%c0_30, %56, %c0_31] : memref<8x8x128xf32, #tpu.memory_space<vmem>>, vector<8x1x128xf32>
    tpu.vector_store %arg6[%c0_30, %56, %c0_31], %55 {strides = array<i32>} : memref<8x8x128xf32, #tpu.memory_space<vmem>>, vector<8x1x128xf32>,
    %c1_i32 = arith.constant 1 : i32
    %c0_32 = arith.constant 0 : index
    %c0_33 = arith.constant 0 : index
    %58 = vector.load %arg8[%c0_32, %c0_33] : memref<8x128xf32, #tpu.memory_space<vmem>>, vector<8x128xf32>
    %c0_34 = arith.constant 0 : index
    %c0_35 = arith.constant 0 : index
    %59 = vector.load %arg9[%c0_34, %c0_35] : memref<8x128xf32, #tpu.memory_space<vmem>>, vector<8x128xf32>
    %c8_i32_36 = arith.constant 8 : i32
    %60 = arith.muli %c1_i32, %c8_i32_36 : i32
    %61 = tpu.assume_multiple %60, 8 : i32
    %62 = arith.index_cast %61 : i32 to index
    %c0_37 = arith.constant 0 : index
    %63 = vector.load %arg7[%62, %c0_37] : memref<64x512xf32, #tpu.memory_space<vmem>>, vector<8x512xf32>
    %64 = vector.extract_strided_slice %63 {offsets = [0, 0], sizes = [8, 128], strides = [1, 1]} : vector<8x512xf32> to vector<8x128xf32>
    %c0_38 = arith.constant 0 : index
    %c0_39 = arith.constant 0 : index
    %65 = vector.load %arg4[%c0_38, %c0_39] : memref<128x512xf32, #tpu.memory_space<vmem>>, vector<128x128xf32>
    %cst_40 = arith.constant dense<0.000000e+00> : vector<8x128xf32>
    %66 = tpu.matmul %58, %65, %cst_40 {dimension_numbers = #tpu.dot_dimension_numbers<[1], [0], [0], [1], [0, 0, 1, 1], [], []>} : vector<8x128xf32>, vector<128x128xf32>, vector<8x128xf32> -> vector<8x128xf32>
    %67 = arith.addf %64, %66 : vector<8x128xf32>
    %68 = arith.negf %67 : vector<8x128xf32>
    %69 = math.exp %68 : vector<8x128xf32>
    %cst_41 = arith.constant 1.000000e+00 : f32
    %70 = vector.broadcast %cst_41 : f32 to vector<8x128xf32>
    %71 = arith.addf %70, %69 : vector<8x128xf32>
    %72 = arith.divf %70, %71 : vector<8x128xf32>
    %73 = vector.extract_strided_slice %63 {offsets = [0, 128], sizes = [8, 128], strides = [1, 1]} : vector<8x512xf32> to vector<8x128xf32>
    %c0_42 = arith.constant 0 : index
    %c128_43 = arith.constant 128 : index
    %74 = vector.load %arg4[%c0_42, %c128_43] : memref<128x512xf32, #tpu.memory_space<vmem>>, vector<128x128xf32>
    %cst_44 = arith.constant dense<0.000000e+00> : vector<8x128xf32>
    %75 = tpu.matmul %58, %74, %cst_44 {dimension_numbers = #tpu.dot_dimension_numbers<[1], [0], [0], [1], [0, 0, 1, 1], [], []>} : vector<8x128xf32>, vector<128x128xf32>, vector<8x128xf32> -> vector<8x128xf32>
    %76 = arith.addf %73, %75 : vector<8x128xf32>
    %77 = arith.negf %76 : vector<8x128xf32>
    %78 = math.exp %77 : vector<8x128xf32>
    %cst_45 = arith.constant 1.000000e+00 : f32
    %79 = vector.broadcast %cst_45 : f32 to vector<8x128xf32>
    %80 = arith.addf %79, %78 : vector<8x128xf32>
    %81 = arith.divf %79, %80 : vector<8x128xf32>
    %82 = vector.extract_strided_slice %63 {offsets = [0, 256], sizes = [8, 128], strides = [1, 1]} : vector<8x512xf32> to vector<8x128xf32>
    %c0_46 = arith.constant 0 : index
    %c256_47 = arith.constant 256 : index
    %83 = vector.load %arg4[%c0_46, %c256_47] : memref<128x512xf32, #tpu.memory_space<vmem>>, vector<128x128xf32>
    %cst_48 = arith.constant dense<0.000000e+00> : vector<8x128xf32>
    %84 = tpu.matmul %58, %83, %cst_48 {dimension_numbers = #tpu.dot_dimension_numbers<[1], [0], [0], [1], [0, 0, 1, 1], [], []>} : vector<8x128xf32>, vector<128x128xf32>, vector<8x128xf32> -> vector<8x128xf32>
    %85 = arith.addf %82, %84 : vector<8x128xf32>
    %86 = math.tanh %85 : vector<8x128xf32>
    %87 = vector.extract_strided_slice %63 {offsets = [0, 384], sizes = [8, 128], strides = [1, 1]} : vector<8x512xf32> to vector<8x128xf32>
    %c0_49 = arith.constant 0 : index
    %c384_50 = arith.constant 384 : index
    %88 = vector.load %arg4[%c0_49, %c384_50] : memref<128x512xf32, #tpu.memory_space<vmem>>, vector<128x128xf32>
    %cst_51 = arith.constant dense<0.000000e+00> : vector<8x128xf32>
    %89 = tpu.matmul %58, %88, %cst_51 {dimension_numbers = #tpu.dot_dimension_numbers<[1], [0], [0], [1], [0, 0, 1, 1], [], []>} : vector<8x128xf32>, vector<128x128xf32>, vector<8x128xf32> -> vector<8x128xf32>
    %90 = arith.addf %87, %89 : vector<8x128xf32>
    %91 = arith.negf %90 : vector<8x128xf32>
    %92 = math.exp %91 : vector<8x128xf32>
    %cst_52 = arith.constant 1.000000e+00 : f32
    %93 = vector.broadcast %cst_52 : f32 to vector<8x128xf32>
    %94 = arith.addf %93, %92 : vector<8x128xf32>
    %95 = arith.divf %93, %94 : vector<8x128xf32>
    %96 = arith.mulf %81, %59 : vector<8x128xf32>
    %97 = arith.mulf %72, %86 : vector<8x128xf32>
    %98 = arith.addf %96, %97 : vector<8x128xf32>
    %99 = math.tanh %98 : vector<8x128xf32>
    %100 = arith.mulf %95, %99 : vector<8x128xf32>
    %c0_53 = arith.constant 0 : index
    %c0_54 = arith.constant 0 : index
    %101 = vector.load %arg8[%c0_53, %c0_54] : memref<8x128xf32, #tpu.memory_space<vmem>>, vector<8x128xf32>
    tpu.vector_store %arg8[%c0_53, %c0_54], %100 {strides = array<i32>} : memref<8x128xf32, #tpu.memory_space<vmem>>, vector<8x128xf32>,
    %c0_55 = arith.constant 0 : index
    %c0_56 = arith.constant 0 : index
    %102 = vector.load %arg9[%c0_55, %c0_56] : memref<8x128xf32, #tpu.memory_space<vmem>>, vector<8x128xf32>
    tpu.vector_store %arg9[%c0_55, %c0_56], %98 {strides = array<i32>} : memref<8x128xf32, #tpu.memory_space<vmem>>, vector<8x128xf32>,
    %103 = vector.shape_cast %100 : vector<8x128xf32> to vector<8x1x128xf32>
    %c0_57 = arith.constant 0 : index
    %104 = arith.index_cast %c1_i32 : i32 to index
    %c0_58 = arith.constant 0 : index
    %105 = vector.load %arg6[%c0_57, %104, %c0_58] : memref<8x8x128xf32, #tpu.memory_space<vmem>>, vector<8x1x128xf32>
    tpu.vector_store %arg6[%c0_57, %104, %c0_58], %103 {strides = array<i32>} : memref<8x8x128xf32, #tpu.memory_space<vmem>>, vector<8x1x128xf32>,
    %c2_i32 = arith.constant 2 : i32
    %c0_59 = arith.constant 0 : index
    %c0_60 = arith.constant 0 : index
    %106 = vector.load %arg8[%c0_59, %c0_60] : memref<8x128xf32, #tpu.memory_space<vmem>>, vector<8x128xf32>
    %c0_61 = arith.constant 0 : index
    %c0_62 = arith.constant 0 : index
    %107 = vector.load %arg9[%c0_61, %c0_62] : memref<8x128xf32, #tpu.memory_space<vmem>>, vector<8x128xf32>
    %c8_i32_63 = arith.constant 8 : i32
    %108 = arith.muli %c2_i32, %c8_i32_63 : i32
    %109 = tpu.assume_multiple %108, 8 : i32
    %110 = arith.index_cast %109 : i32 to index
    %c0_64 = arith.constant 0 : index
    %111 = vector.load %arg7[%110, %c0_64] : memref<64x512xf32, #tpu.memory_space<vmem>>, vector<8x512xf32>
    %112 = vector.extract_strided_slice %111 {offsets = [0, 0], sizes = [8, 128], strides = [1, 1]} : vector<8x512xf32> to vector<8x128xf32>
    %c0_65 = arith.constant 0 : index
    %c0_66 = arith.constant 0 : index
    %113 = vector.load %arg4[%c0_65, %c0_66] : memref<128x512xf32, #tpu.memory_space<vmem>>, vector<128x128xf32>
    %cst_67 = arith.constant dense<0.000000e+00> : vector<8x128xf32>
    %114 = tpu.matmul %106, %113, %cst_67 {dimension_numbers = #tpu.dot_dimension_numbers<[1], [0], [0], [1], [0, 0, 1, 1], [], []>} : vector<8x128xf32>, vector<128x128xf32>, vector<8x128xf32> -> vector<8x128xf32>
    %115 = arith.addf %112, %114 : vector<8x128xf32>
    %116 = arith.negf %115 : vector<8x128xf32>
    %117 = math.exp %116 : vector<8x128xf32>
    %cst_68 = arith.constant 1.000000e+00 : f32
    %118 = vector.broadcast %cst_68 : f32 to vector<8x128xf32>
    %119 = arith.addf %118, %117 : vector<8x128xf32>
    %120 = arith.divf %118, %119 : vector<8x128xf32>
    %121 = vector.extract_strided_slice %111 {offsets = [0, 128], sizes = [8, 128], strides = [1, 1]} : vector<8x512xf32> to vector<8x128xf32>
    %c0_69 = arith.constant 0 : index
    %c128_70 = arith.constant 128 : index
    %122 = vector.load %arg4[%c0_69, %c128_70] : memref<128x512xf32, #tpu.memory_space<vmem>>, vector<128x128xf32>
    %cst_71 = arith.constant dense<0.000000e+00> : vector<8x128xf32>
    %123 = tpu.matmul %106, %122, %cst_71 {dimension_numbers = #tpu.dot_dimension_numbers<[1], [0], [0], [1], [0, 0, 1, 1], [], []>} : vector<8x128xf32>, vector<128x128xf32>, vector<8x128xf32> -> vector<8x128xf32>
    %124 = arith.addf %121, %123 : vector<8x128xf32>
    %125 = arith.negf %124 : vector<8x128xf32>
    %126 = math.exp %125 : vector<8x128xf32>
    %cst_72 = arith.constant 1.000000e+00 : f32
    %127 = vector.broadcast %cst_72 : f32 to vector<8x128xf32>
    %128 = arith.addf %127, %126 : vector<8x128xf32>
    %129 = arith.divf %127, %128 : vector<8x128xf32>
    %130 = vector.extract_strided_slice %111 {offsets = [0, 256], sizes = [8, 128], strides = [1, 1]} : vector<8x512xf32> to vector<8x128xf32>
    %c0_73 = arith.constant 0 : index
    %c256_74 = arith.constant 256 : index
    %131 = vector.load %arg4[%c0_73, %c256_74] : memref<128x512xf32, #tpu.memory_space<vmem>>, vector<128x128xf32>
    %cst_75 = arith.constant dense<0.000000e+00> : vector<8x128xf32>
    %132 = tpu.matmul %106, %131, %cst_75 {dimension_numbers = #tpu.dot_dimension_numbers<[1], [0], [0], [1], [0, 0, 1, 1], [], []>} : vector<8x128xf32>, vector<128x128xf32>, vector<8x128xf32> -> vector<8x128xf32>
    %133 = arith.addf %130, %132 : vector<8x128xf32>
    %134 = math.tanh %133 : vector<8x128xf32>
    %135 = vector.extract_strided_slice %111 {offsets = [0, 384], sizes = [8, 128], strides = [1, 1]} : vector<8x512xf32> to vector<8x128xf32>
    %c0_76 = arith.constant 0 : index
    %c384_77 = arith.constant 384 : index
    %136 = vector.load %arg4[%c0_76, %c384_77] : memref<128x512xf32, #tpu.memory_space<vmem>>, vector<128x128xf32>
    %cst_78 = arith.constant dense<0.000000e+00> : vector<8x128xf32>
    %137 = tpu.matmul %106, %136, %cst_78 {dimension_numbers = #tpu.dot_dimension_numbers<[1], [0], [0], [1], [0, 0, 1, 1], [], []>} : vector<8x128xf32>, vector<128x128xf32>, vector<8x128xf32> -> vector<8x128xf32>
    %138 = arith.addf %135, %137 : vector<8x128xf32>
    %139 = arith.negf %138 : vector<8x128xf32>
    %140 = math.exp %139 : vector<8x128xf32>
    %cst_79 = arith.constant 1.000000e+00 : f32
    %141 = vector.broadcast %cst_79 : f32 to vector<8x128xf32>
    %142 = arith.addf %141, %140 : vector<8x128xf32>
    %143 = arith.divf %141, %142 : vector<8x128xf32>
    %144 = arith.mulf %129, %107 : vector<8x128xf32>
    %145 = arith.mulf %120, %134 : vector<8x128xf32>
    %146 = arith.addf %144, %145 : vector<8x128xf32>
    %147 = math.tanh %146 : vector<8x128xf32>
    %148 = arith.mulf %143, %147 : vector<8x128xf32>
    %c0_80 = arith.constant 0 : index
    %c0_81 = arith.constant 0 : index
    %149 = vector.load %arg8[%c0_80, %c0_81] : memref<8x128xf32, #tpu.memory_space<vmem>>, vector<8x128xf32>
    tpu.vector_store %arg8[%c0_80, %c0_81], %148 {strides = array<i32>} : memref<8x128xf32, #tpu.memory_space<vmem>>, vector<8x128xf32>,
    %c0_82 = arith.constant 0 : index
    %c0_83 = arith.constant 0 : index
    %150 = vector.load %arg9[%c0_82, %c0_83] : memref<8x128xf32, #tpu.memory_space<vmem>>, vector<8x128xf32>
    tpu.vector_store %arg9[%c0_82, %c0_83], %146 {strides = array<i32>} : memref<8x128xf32, #tpu.memory_space<vmem>>, vector<8x128xf32>,
    %151 = vector.shape_cast %148 : vector<8x128xf32> to vector<8x1x128xf32>
    %c0_84 = arith.constant 0 : index
    %152 = arith.index_cast %c2_i32 : i32 to index
    %c0_85 = arith.constant 0 : index
    %153 = vector.load %arg6[%c0_84, %152, %c0_85] : memref<8x8x128xf32, #tpu.memory_space<vmem>>, vector<8x1x128xf32>
    tpu.vector_store %arg6[%c0_84, %152, %c0_85], %151 {strides = array<i32>} : memref<8x8x128xf32, #tpu.memory_space<vmem>>, vector<8x1x128xf32>,
    %c3_i32 = arith.constant 3 : i32
    %c0_86 = arith.constant 0 : index
    %c0_87 = arith.constant 0 : index
    %154 = vector.load %arg8[%c0_86, %c0_87] : memref<8x128xf32, #tpu.memory_space<vmem>>, vector<8x128xf32>
    %c0_88 = arith.constant 0 : index
    %c0_89 = arith.constant 0 : index
    %155 = vector.load %arg9[%c0_88, %c0_89] : memref<8x128xf32, #tpu.memory_space<vmem>>, vector<8x128xf32>
    %c8_i32_90 = arith.constant 8 : i32
    %156 = arith.muli %c3_i32, %c8_i32_90 : i32
    %157 = tpu.assume_multiple %156, 8 : i32
    %158 = arith.index_cast %157 : i32 to index
    %c0_91 = arith.constant 0 : index
    %159 = vector.load %arg7[%158, %c0_91] : memref<64x512xf32, #tpu.memory_space<vmem>>, vector<8x512xf32>
    %160 = vector.extract_strided_slice %159 {offsets = [0, 0], sizes = [8, 128], strides = [1, 1]} : vector<8x512xf32> to vector<8x128xf32>
    %c0_92 = arith.constant 0 : index
    %c0_93 = arith.constant 0 : index
    %161 = vector.load %arg4[%c0_92, %c0_93] : memref<128x512xf32, #tpu.memory_space<vmem>>, vector<128x128xf32>
    %cst_94 = arith.constant dense<0.000000e+00> : vector<8x128xf32>
    %162 = tpu.matmul %154, %161, %cst_94 {dimension_numbers = #tpu.dot_dimension_numbers<[1], [0], [0], [1], [0, 0, 1, 1], [], []>} : vector<8x128xf32>, vector<128x128xf32>, vector<8x128xf32> -> vector<8x128xf32>
    %163 = arith.addf %160, %162 : vector<8x128xf32>
    %164 = arith.negf %163 : vector<8x128xf32>
    %165 = math.exp %164 : vector<8x128xf32>
    %cst_95 = arith.constant 1.000000e+00 : f32
    %166 = vector.broadcast %cst_95 : f32 to vector<8x128xf32>
    %167 = arith.addf %166, %165 : vector<8x128xf32>
    %168 = arith.divf %166, %167 : vector<8x128xf32>
    %169 = vector.extract_strided_slice %159 {offsets = [0, 128], sizes = [8, 128], strides = [1, 1]} : vector<8x512xf32> to vector<8x128xf32>
    %c0_96 = arith.constant 0 : index
    %c128_97 = arith.constant 128 : index
    %170 = vector.load %arg4[%c0_96, %c128_97] : memref<128x512xf32, #tpu.memory_space<vmem>>, vector<128x128xf32>
    %cst_98 = arith.constant dense<0.000000e+00> : vector<8x128xf32>
    %171 = tpu.matmul %154, %170, %cst_98 {dimension_numbers = #tpu.dot_dimension_numbers<[1], [0], [0], [1], [0, 0, 1, 1], [], []>} : vector<8x128xf32>, vector<128x128xf32>, vector<8x128xf32> -> vector<8x128xf32>
    %172 = arith.addf %169, %171 : vector<8x128xf32>
    %173 = arith.negf %172 : vector<8x128xf32>
    %174 = math.exp %173 : vector<8x128xf32>
    %cst_99 = arith.constant 1.000000e+00 : f32
    %175 = vector.broadcast %cst_99 : f32 to vector<8x128xf32>
    %176 = arith.addf %175, %174 : vector<8x128xf32>
    %177 = arith.divf %175, %176 : vector<8x128xf32>
    %178 = vector.extract_strided_slice %159 {offsets = [0, 256], sizes = [8, 128], strides = [1, 1]} : vector<8x512xf32> to vector<8x128xf32>
    %c0_100 = arith.constant 0 : index
    %c256_101 = arith.constant 256 : index
    %179 = vector.load %arg4[%c0_100, %c256_101] : memref<128x512xf32, #tpu.memory_space<vmem>>, vector<128x128xf32>
    %cst_102 = arith.constant dense<0.000000e+00> : vector<8x128xf32>
    %180 = tpu.matmul %154, %179, %cst_102 {dimension_numbers = #tpu.dot_dimension_numbers<[1], [0], [0], [1], [0, 0, 1, 1], [], []>} : vector<8x128xf32>, vector<128x128xf32>, vector<8x128xf32> -> vector<8x128xf32>
    %181 = arith.addf %178, %180 : vector<8x128xf32>
    %182 = math.tanh %181 : vector<8x128xf32>
    %183 = vector.extract_strided_slice %159 {offsets = [0, 384], sizes = [8, 128], strides = [1, 1]} : vector<8x512xf32> to vector<8x128xf32>
    %c0_103 = arith.constant 0 : index
    %c384_104 = arith.constant 384 : index
    %184 = vector.load %arg4[%c0_103, %c384_104] : memref<128x512xf32, #tpu.memory_space<vmem>>, vector<128x128xf32>
    %cst_105 = arith.constant dense<0.000000e+00> : vector<8x128xf32>
    %185 = tpu.matmul %154, %184, %cst_105 {dimension_numbers = #tpu.dot_dimension_numbers<[1], [0], [0], [1], [0, 0, 1, 1], [], []>} : vector<8x128xf32>, vector<128x128xf32>, vector<8x128xf32> -> vector<8x128xf32>
    %186 = arith.addf %183, %185 : vector<8x128xf32>
    %187 = arith.negf %186 : vector<8x128xf32>
    %188 = math.exp %187 : vector<8x128xf32>
    %cst_106 = arith.constant 1.000000e+00 : f32
    %189 = vector.broadcast %cst_106 : f32 to vector<8x128xf32>
    %190 = arith.addf %189, %188 : vector<8x128xf32>
    %191 = arith.divf %189, %190 : vector<8x128xf32>
    %192 = arith.mulf %177, %155 : vector<8x128xf32>
    %193 = arith.mulf %168, %182 : vector<8x128xf32>
    %194 = arith.addf %192, %193 : vector<8x128xf32>
    %195 = math.tanh %194 : vector<8x128xf32>
    %196 = arith.mulf %191, %195 : vector<8x128xf32>
    %c0_107 = arith.constant 0 : index
    %c0_108 = arith.constant 0 : index
    %197 = vector.load %arg8[%c0_107, %c0_108] : memref<8x128xf32, #tpu.memory_space<vmem>>, vector<8x128xf32>
    tpu.vector_store %arg8[%c0_107, %c0_108], %196 {strides = array<i32>} : memref<8x128xf32, #tpu.memory_space<vmem>>, vector<8x128xf32>,
    %c0_109 = arith.constant 0 : index
    %c0_110 = arith.constant 0 : index
    %198 = vector.load %arg9[%c0_109, %c0_110] : memref<8x128xf32, #tpu.memory_space<vmem>>, vector<8x128xf32>
    tpu.vector_store %arg9[%c0_109, %c0_110], %194 {strides = array<i32>} : memref<8x128xf32, #tpu.memory_space<vmem>>, vector<8x128xf32>,
    %199 = vector.shape_cast %196 : vector<8x128xf32> to vector<8x1x128xf32>
    %c0_111 = arith.constant 0 : index
    %200 = arith.index_cast %c3_i32 : i32 to index
    %c0_112 = arith.constant 0 : index
    %201 = vector.load %arg6[%c0_111, %200, %c0_112] : memref<8x8x128xf32, #tpu.memory_space<vmem>>, vector<8x1x128xf32>
    tpu.vector_store %arg6[%c0_111, %200, %c0_112], %199 {strides = array<i32>} : memref<8x8x128xf32, #tpu.memory_space<vmem>>, vector<8x1x128xf32>,
    %c4_i32 = arith.constant 4 : i32
    %c0_113 = arith.constant 0 : index
    %c0_114 = arith.constant 0 : index
    %202 = vector.load %arg8[%c0_113, %c0_114] : memref<8x128xf32, #tpu.memory_space<vmem>>, vector<8x128xf32>
    %c0_115 = arith.constant 0 : index
    %c0_116 = arith.constant 0 : index
    %203 = vector.load %arg9[%c0_115, %c0_116] : memref<8x128xf32, #tpu.memory_space<vmem>>, vector<8x128xf32>
    %c8_i32_117 = arith.constant 8 : i32
    %204 = arith.muli %c4_i32, %c8_i32_117 : i32
    %205 = tpu.assume_multiple %204, 8 : i32
    %206 = arith.index_cast %205 : i32 to index
    %c0_118 = arith.constant 0 : index
    %207 = vector.load %arg7[%206, %c0_118] : memref<64x512xf32, #tpu.memory_space<vmem>>, vector<8x512xf32>
    %208 = vector.extract_strided_slice %207 {offsets = [0, 0], sizes = [8, 128], strides = [1, 1]} : vector<8x512xf32> to vector<8x128xf32>
    %c0_119 = arith.constant 0 : index
    %c0_120 = arith.constant 0 : index
    %209 = vector.load %arg4[%c0_119, %c0_120] : memref<128x512xf32, #tpu.memory_space<vmem>>, vector<128x128xf32>
    %cst_121 = arith.constant dense<0.000000e+00> : vector<8x128xf32>
    %210 = tpu.matmul %202, %209, %cst_121 {dimension_numbers = #tpu.dot_dimension_numbers<[1], [0], [0], [1], [0, 0, 1, 1], [], []>} : vector<8x128xf32>, vector<128x128xf32>, vector<8x128xf32> -> vector<8x128xf32>
    %211 = arith.addf %208, %210 : vector<8x128xf32>
    %212 = arith.negf %211 : vector<8x128xf32>
    %213 = math.exp %212 : vector<8x128xf32>
    %cst_122 = arith.constant 1.000000e+00 : f32
    %214 = vector.broadcast %cst_122 : f32 to vector<8x128xf32>
    %215 = arith.addf %214, %213 : vector<8x128xf32>
    %216 = arith.divf %214, %215 : vector<8x128xf32>
    %217 = vector.extract_strided_slice %207 {offsets = [0, 128], sizes = [8, 128], strides = [1, 1]} : vector<8x512xf32> to vector<8x128xf32>
    %c0_123 = arith.constant 0 : index
    %c128_124 = arith.constant 128 : index
    %218 = vector.load %arg4[%c0_123, %c128_124] : memref<128x512xf32, #tpu.memory_space<vmem>>, vector<128x128xf32>
    %cst_125 = arith.constant dense<0.000000e+00> : vector<8x128xf32>
    %219 = tpu.matmul %202, %218, %cst_125 {dimension_numbers = #tpu.dot_dimension_numbers<[1], [0], [0], [1], [0, 0, 1, 1], [], []>} : vector<8x128xf32>, vector<128x128xf32>, vector<8x128xf32> -> vector<8x128xf32>
    %220 = arith.addf %217, %219 : vector<8x128xf32>
    %221 = arith.negf %220 : vector<8x128xf32>
    %222 = math.exp %221 : vector<8x128xf32>
    %cst_126 = arith.constant 1.000000e+00 : f32
    %223 = vector.broadcast %cst_126 : f32 to vector<8x128xf32>
    %224 = arith.addf %223, %222 : vector<8x128xf32>
    %225 = arith.divf %223, %224 : vector<8x128xf32>
    %226 = vector.extract_strided_slice %207 {offsets = [0, 256], sizes = [8, 128], strides = [1, 1]} : vector<8x512xf32> to vector<8x128xf32>
    %c0_127 = arith.constant 0 : index
    %c256_128 = arith.constant 256 : index
    %227 = vector.load %arg4[%c0_127, %c256_128] : memref<128x512xf32, #tpu.memory_space<vmem>>, vector<128x128xf32>
    %cst_129 = arith.constant dense<0.000000e+00> : vector<8x128xf32>
    %228 = tpu.matmul %202, %227, %cst_129 {dimension_numbers = #tpu.dot_dimension_numbers<[1], [0], [0], [1], [0, 0, 1, 1], [], []>} : vector<8x128xf32>, vector<128x128xf32>, vector<8x128xf32> -> vector<8x128xf32>
    %229 = arith.addf %226, %228 : vector<8x128xf32>
    %230 = math.tanh %229 : vector<8x128xf32>
    %231 = vector.extract_strided_slice %207 {offsets = [0, 384], sizes = [8, 128], strides = [1, 1]} : vector<8x512xf32> to vector<8x128xf32>
    %c0_130 = arith.constant 0 : index
    %c384_131 = arith.constant 384 : index
    %232 = vector.load %arg4[%c0_130, %c384_131] : memref<128x512xf32, #tpu.memory_space<vmem>>, vector<128x128xf32>
    %cst_132 = arith.constant dense<0.000000e+00> : vector<8x128xf32>
    %233 = tpu.matmul %202, %232, %cst_132 {dimension_numbers = #tpu.dot_dimension_numbers<[1], [0], [0], [1], [0, 0, 1, 1], [], []>} : vector<8x128xf32>, vector<128x128xf32>, vector<8x128xf32> -> vector<8x128xf32>
    %234 = arith.addf %231, %233 : vector<8x128xf32>
    %235 = arith.negf %234 : vector<8x128xf32>
    %236 = math.exp %235 : vector<8x128xf32>
    %cst_133 = arith.constant 1.000000e+00 : f32
    %237 = vector.broadcast %cst_133 : f32 to vector<8x128xf32>
    %238 = arith.addf %237, %236 : vector<8x128xf32>
    %239 = arith.divf %237, %238 : vector<8x128xf32>
    %240 = arith.mulf %225, %203 : vector<8x128xf32>
    %241 = arith.mulf %216, %230 : vector<8x128xf32>
    %242 = arith.addf %240, %241 : vector<8x128xf32>
    %243 = math.tanh %242 : vector<8x128xf32>
    %244 = arith.mulf %239, %243 : vector<8x128xf32>
    %c0_134 = arith.constant 0 : index
    %c0_135 = arith.constant 0 : index
    %245 = vector.load %arg8[%c0_134, %c0_135] : memref<8x128xf32, #tpu.memory_space<vmem>>, vector<8x128xf32>
    tpu.vector_store %arg8[%c0_134, %c0_135], %244 {strides = array<i32>} : memref<8x128xf32, #tpu.memory_space<vmem>>, vector<8x128xf32>,
    %c0_136 = arith.constant 0 : index
    %c0_137 = arith.constant 0 : index
    %246 = vector.load %arg9[%c0_136, %c0_137] : memref<8x128xf32, #tpu.memory_space<vmem>>, vector<8x128xf32>
    tpu.vector_store %arg9[%c0_136, %c0_137], %242 {strides = array<i32>} : memref<8x128xf32, #tpu.memory_space<vmem>>, vector<8x128xf32>,
    %247 = vector.shape_cast %244 : vector<8x128xf32> to vector<8x1x128xf32>
    %c0_138 = arith.constant 0 : index
    %248 = arith.index_cast %c4_i32 : i32 to index
    %c0_139 = arith.constant 0 : index
    %249 = vector.load %arg6[%c0_138, %248, %c0_139] : memref<8x8x128xf32, #tpu.memory_space<vmem>>, vector<8x1x128xf32>
    tpu.vector_store %arg6[%c0_138, %248, %c0_139], %247 {strides = array<i32>} : memref<8x8x128xf32, #tpu.memory_space<vmem>>, vector<8x1x128xf32>,
    %c5_i32 = arith.constant 5 : i32
    %c0_140 = arith.constant 0 : index
    %c0_141 = arith.constant 0 : index
    %250 = vector.load %arg8[%c0_140, %c0_141] : memref<8x128xf32, #tpu.memory_space<vmem>>, vector<8x128xf32>
    %c0_142 = arith.constant 0 : index
    %c0_143 = arith.constant 0 : index
    %251 = vector.load %arg9[%c0_142, %c0_143] : memref<8x128xf32, #tpu.memory_space<vmem>>, vector<8x128xf32>
    %c8_i32_144 = arith.constant 8 : i32
    %252 = arith.muli %c5_i32, %c8_i32_144 : i32
    %253 = tpu.assume_multiple %252, 8 : i32
    %254 = arith.index_cast %253 : i32 to index
    %c0_145 = arith.constant 0 : index
    %255 = vector.load %arg7[%254, %c0_145] : memref<64x512xf32, #tpu.memory_space<vmem>>, vector<8x512xf32>
    %256 = vector.extract_strided_slice %255 {offsets = [0, 0], sizes = [8, 128], strides = [1, 1]} : vector<8x512xf32> to vector<8x128xf32>
    %c0_146 = arith.constant 0 : index
    %c0_147 = arith.constant 0 : index
    %257 = vector.load %arg4[%c0_146, %c0_147] : memref<128x512xf32, #tpu.memory_space<vmem>>, vector<128x128xf32>
    %cst_148 = arith.constant dense<0.000000e+00> : vector<8x128xf32>
    %258 = tpu.matmul %250, %257, %cst_148 {dimension_numbers = #tpu.dot_dimension_numbers<[1], [0], [0], [1], [0, 0, 1, 1], [], []>} : vector<8x128xf32>, vector<128x128xf32>, vector<8x128xf32> -> vector<8x128xf32>
    %259 = arith.addf %256, %258 : vector<8x128xf32>
    %260 = arith.negf %259 : vector<8x128xf32>
    %261 = math.exp %260 : vector<8x128xf32>
    %cst_149 = arith.constant 1.000000e+00 : f32
    %262 = vector.broadcast %cst_149 : f32 to vector<8x128xf32>
    %263 = arith.addf %262, %261 : vector<8x128xf32>
    %264 = arith.divf %262, %263 : vector<8x128xf32>
    %265 = vector.extract_strided_slice %255 {offsets = [0, 128], sizes = [8, 128], strides = [1, 1]} : vector<8x512xf32> to vector<8x128xf32>
    %c0_150 = arith.constant 0 : index
    %c128_151 = arith.constant 128 : index
    %266 = vector.load %arg4[%c0_150, %c128_151] : memref<128x512xf32, #tpu.memory_space<vmem>>, vector<128x128xf32>
    %cst_152 = arith.constant dense<0.000000e+00> : vector<8x128xf32>
    %267 = tpu.matmul %250, %266, %cst_152 {dimension_numbers = #tpu.dot_dimension_numbers<[1], [0], [0], [1], [0, 0, 1, 1], [], []>} : vector<8x128xf32>, vector<128x128xf32>, vector<8x128xf32> -> vector<8x128xf32>
    %268 = arith.addf %265, %267 : vector<8x128xf32>
    %269 = arith.negf %268 : vector<8x128xf32>
    %270 = math.exp %269 : vector<8x128xf32>
    %cst_153 = arith.constant 1.000000e+00 : f32
    %271 = vector.broadcast %cst_153 : f32 to vector<8x128xf32>
    %272 = arith.addf %271, %270 : vector<8x128xf32>
    %273 = arith.divf %271, %272 : vector<8x128xf32>
    %274 = vector.extract_strided_slice %255 {offsets = [0, 256], sizes = [8, 128], strides = [1, 1]} : vector<8x512xf32> to vector<8x128xf32>
    %c0_154 = arith.constant 0 : index
    %c256_155 = arith.constant 256 : index
    %275 = vector.load %arg4[%c0_154, %c256_155] : memref<128x512xf32, #tpu.memory_space<vmem>>, vector<128x128xf32>
    %cst_156 = arith.constant dense<0.000000e+00> : vector<8x128xf32>
    %276 = tpu.matmul %250, %275, %cst_156 {dimension_numbers = #tpu.dot_dimension_numbers<[1], [0], [0], [1], [0, 0, 1, 1], [], []>} : vector<8x128xf32>, vector<128x128xf32>, vector<8x128xf32> -> vector<8x128xf32>
    %277 = arith.addf %274, %276 : vector<8x128xf32>
    %278 = math.tanh %277 : vector<8x128xf32>
    %279 = vector.extract_strided_slice %255 {offsets = [0, 384], sizes = [8, 128], strides = [1, 1]} : vector<8x512xf32> to vector<8x128xf32>
    %c0_157 = arith.constant 0 : index
    %c384_158 = arith.constant 384 : index
    %280 = vector.load %arg4[%c0_157, %c384_158] : memref<128x512xf32, #tpu.memory_space<vmem>>, vector<128x128xf32>
    %cst_159 = arith.constant dense<0.000000e+00> : vector<8x128xf32>
    %281 = tpu.matmul %250, %280, %cst_159 {dimension_numbers = #tpu.dot_dimension_numbers<[1], [0], [0], [1], [0, 0, 1, 1], [], []>} : vector<8x128xf32>, vector<128x128xf32>, vector<8x128xf32> -> vector<8x128xf32>
    %282 = arith.addf %279, %281 : vector<8x128xf32>
    %283 = arith.negf %282 : vector<8x128xf32>
    %284 = math.exp %283 : vector<8x128xf32>
    %cst_160 = arith.constant 1.000000e+00 : f32
    %285 = vector.broadcast %cst_160 : f32 to vector<8x128xf32>
    %286 = arith.addf %285, %284 : vector<8x128xf32>
    %287 = arith.divf %285, %286 : vector<8x128xf32>
    %288 = arith.mulf %273, %251 : vector<8x128xf32>
    %289 = arith.mulf %264, %278 : vector<8x128xf32>
    %290 = arith.addf %288, %289 : vector<8x128xf32>
    %291 = math.tanh %290 : vector<8x128xf32>
    %292 = arith.mulf %287, %291 : vector<8x128xf32>
    %c0_161 = arith.constant 0 : index
    %c0_162 = arith.constant 0 : index
    %293 = vector.load %arg8[%c0_161, %c0_162] : memref<8x128xf32, #tpu.memory_space<vmem>>, vector<8x128xf32>
    tpu.vector_store %arg8[%c0_161, %c0_162], %292 {strides = array<i32>} : memref<8x128xf32, #tpu.memory_space<vmem>>, vector<8x128xf32>,
    %c0_163 = arith.constant 0 : index
    %c0_164 = arith.constant 0 : index
    %294 = vector.load %arg9[%c0_163, %c0_164] : memref<8x128xf32, #tpu.memory_space<vmem>>, vector<8x128xf32>
    tpu.vector_store %arg9[%c0_163, %c0_164], %290 {strides = array<i32>} : memref<8x128xf32, #tpu.memory_space<vmem>>, vector<8x128xf32>,
    %295 = vector.shape_cast %292 : vector<8x128xf32> to vector<8x1x128xf32>
    %c0_165 = arith.constant 0 : index
    %296 = arith.index_cast %c5_i32 : i32 to index
    %c0_166 = arith.constant 0 : index
    %297 = vector.load %arg6[%c0_165, %296, %c0_166] : memref<8x8x128xf32, #tpu.memory_space<vmem>>, vector<8x1x128xf32>
    tpu.vector_store %arg6[%c0_165, %296, %c0_166], %295 {strides = array<i32>} : memref<8x8x128xf32, #tpu.memory_space<vmem>>, vector<8x1x128xf32>,
    %c6_i32 = arith.constant 6 : i32
    %c0_167 = arith.constant 0 : index
    %c0_168 = arith.constant 0 : index
    %298 = vector.load %arg8[%c0_167, %c0_168] : memref<8x128xf32, #tpu.memory_space<vmem>>, vector<8x128xf32>
    %c0_169 = arith.constant 0 : index
    %c0_170 = arith.constant 0 : index
    %299 = vector.load %arg9[%c0_169, %c0_170] : memref<8x128xf32, #tpu.memory_space<vmem>>, vector<8x128xf32>
    %c8_i32_171 = arith.constant 8 : i32
    %300 = arith.muli %c6_i32, %c8_i32_171 : i32
    %301 = tpu.assume_multiple %300, 8 : i32
    %302 = arith.index_cast %301 : i32 to index
    %c0_172 = arith.constant 0 : index
    %303 = vector.load %arg7[%302, %c0_172] : memref<64x512xf32, #tpu.memory_space<vmem>>, vector<8x512xf32>
    %304 = vector.extract_strided_slice %303 {offsets = [0, 0], sizes = [8, 128], strides = [1, 1]} : vector<8x512xf32> to vector<8x128xf32>
    %c0_173 = arith.constant 0 : index
    %c0_174 = arith.constant 0 : index
    %305 = vector.load %arg4[%c0_173, %c0_174] : memref<128x512xf32, #tpu.memory_space<vmem>>, vector<128x128xf32>
    %cst_175 = arith.constant dense<0.000000e+00> : vector<8x128xf32>
    %306 = tpu.matmul %298, %305, %cst_175 {dimension_numbers = #tpu.dot_dimension_numbers<[1], [0], [0], [1], [0, 0, 1, 1], [], []>} : vector<8x128xf32>, vector<128x128xf32>, vector<8x128xf32> -> vector<8x128xf32>
    %307 = arith.addf %304, %306 : vector<8x128xf32>
    %308 = arith.negf %307 : vector<8x128xf32>
    %309 = math.exp %308 : vector<8x128xf32>
    %cst_176 = arith.constant 1.000000e+00 : f32
    %310 = vector.broadcast %cst_176 : f32 to vector<8x128xf32>
    %311 = arith.addf %310, %309 : vector<8x128xf32>
    %312 = arith.divf %310, %311 : vector<8x128xf32>
    %313 = vector.extract_strided_slice %303 {offsets = [0, 128], sizes = [8, 128], strides = [1, 1]} : vector<8x512xf32> to vector<8x128xf32>
    %c0_177 = arith.constant 0 : index
    %c128_178 = arith.constant 128 : index
    %314 = vector.load %arg4[%c0_177, %c128_178] : memref<128x512xf32, #tpu.memory_space<vmem>>, vector<128x128xf32>
    %cst_179 = arith.constant dense<0.000000e+00> : vector<8x128xf32>
    %315 = tpu.matmul %298, %314, %cst_179 {dimension_numbers = #tpu.dot_dimension_numbers<[1], [0], [0], [1], [0, 0, 1, 1], [], []>} : vector<8x128xf32>, vector<128x128xf32>, vector<8x128xf32> -> vector<8x128xf32>
    %316 = arith.addf %313, %315 : vector<8x128xf32>
    %317 = arith.negf %316 : vector<8x128xf32>
    %318 = math.exp %317 : vector<8x128xf32>
    %cst_180 = arith.constant 1.000000e+00 : f32
    %319 = vector.broadcast %cst_180 : f32 to vector<8x128xf32>
    %320 = arith.addf %319, %318 : vector<8x128xf32>
    %321 = arith.divf %319, %320 : vector<8x128xf32>
    %322 = vector.extract_strided_slice %303 {offsets = [0, 256], sizes = [8, 128], strides = [1, 1]} : vector<8x512xf32> to vector<8x128xf32>
    %c0_181 = arith.constant 0 : index
    %c256_182 = arith.constant 256 : index
    %323 = vector.load %arg4[%c0_181, %c256_182] : memref<128x512xf32, #tpu.memory_space<vmem>>, vector<128x128xf32>
    %cst_183 = arith.constant dense<0.000000e+00> : vector<8x128xf32>
    %324 = tpu.matmul %298, %323, %cst_183 {dimension_numbers = #tpu.dot_dimension_numbers<[1], [0], [0], [1], [0, 0, 1, 1], [], []>} : vector<8x128xf32>, vector<128x128xf32>, vector<8x128xf32> -> vector<8x128xf32>
    %325 = arith.addf %322, %324 : vector<8x128xf32>
    %326 = math.tanh %325 : vector<8x128xf32>
    %327 = vector.extract_strided_slice %303 {offsets = [0, 384], sizes = [8, 128], strides = [1, 1]} : vector<8x512xf32> to vector<8x128xf32>
    %c0_184 = arith.constant 0 : index
    %c384_185 = arith.constant 384 : index
    %328 = vector.load %arg4[%c0_184, %c384_185] : memref<128x512xf32, #tpu.memory_space<vmem>>, vector<128x128xf32>
    %cst_186 = arith.constant dense<0.000000e+00> : vector<8x128xf32>
    %329 = tpu.matmul %298, %328, %cst_186 {dimension_numbers = #tpu.dot_dimension_numbers<[1], [0], [0], [1], [0, 0, 1, 1], [], []>} : vector<8x128xf32>, vector<128x128xf32>, vector<8x128xf32> -> vector<8x128xf32>
    %330 = arith.addf %327, %329 : vector<8x128xf32>
    %331 = arith.negf %330 : vector<8x128xf32>
    %332 = math.exp %331 : vector<8x128xf32>
    %cst_187 = arith.constant 1.000000e+00 : f32
    %333 = vector.broadcast %cst_187 : f32 to vector<8x128xf32>
    %334 = arith.addf %333, %332 : vector<8x128xf32>
    %335 = arith.divf %333, %334 : vector<8x128xf32>
    %336 = arith.mulf %321, %299 : vector<8x128xf32>
    %337 = arith.mulf %312, %326 : vector<8x128xf32>
    %338 = arith.addf %336, %337 : vector<8x128xf32>
    %339 = math.tanh %338 : vector<8x128xf32>
    %340 = arith.mulf %335, %339 : vector<8x128xf32>
    %c0_188 = arith.constant 0 : index
    %c0_189 = arith.constant 0 : index
    %341 = vector.load %arg8[%c0_188, %c0_189] : memref<8x128xf32, #tpu.memory_space<vmem>>, vector<8x128xf32>
    tpu.vector_store %arg8[%c0_188, %c0_189], %340 {strides = array<i32>} : memref<8x128xf32, #tpu.memory_space<vmem>>, vector<8x128xf32>,
    %c0_190 = arith.constant 0 : index
    %c0_191 = arith.constant 0 : index
    %342 = vector.load %arg9[%c0_190, %c0_191] : memref<8x128xf32, #tpu.memory_space<vmem>>, vector<8x128xf32>
    tpu.vector_store %arg9[%c0_190, %c0_191], %338 {strides = array<i32>} : memref<8x128xf32, #tpu.memory_space<vmem>>, vector<8x128xf32>,
    %343 = vector.shape_cast %340 : vector<8x128xf32> to vector<8x1x128xf32>
    %c0_192 = arith.constant 0 : index
    %344 = arith.index_cast %c6_i32 : i32 to index
    %c0_193 = arith.constant 0 : index
    %345 = vector.load %arg6[%c0_192, %344, %c0_193] : memref<8x8x128xf32, #tpu.memory_space<vmem>>, vector<8x1x128xf32>
    tpu.vector_store %arg6[%c0_192, %344, %c0_193], %343 {strides = array<i32>} : memref<8x8x128xf32, #tpu.memory_space<vmem>>, vector<8x1x128xf32>,
    %c7_i32 = arith.constant 7 : i32
    %c0_194 = arith.constant 0 : index
    %c0_195 = arith.constant 0 : index
    %346 = vector.load %arg8[%c0_194, %c0_195] : memref<8x128xf32, #tpu.memory_space<vmem>>, vector<8x128xf32>
    %c0_196 = arith.constant 0 : index
    %c0_197 = arith.constant 0 : index
    %347 = vector.load %arg9[%c0_196, %c0_197] : memref<8x128xf32, #tpu.memory_space<vmem>>, vector<8x128xf32>
    %c8_i32_198 = arith.constant 8 : i32
    %348 = arith.muli %c7_i32, %c8_i32_198 : i32
    %349 = tpu.assume_multiple %348, 8 : i32
    %350 = arith.index_cast %349 : i32 to index
    %c0_199 = arith.constant 0 : index
    %351 = vector.load %arg7[%350, %c0_199] : memref<64x512xf32, #tpu.memory_space<vmem>>, vector<8x512xf32>
    %352 = vector.extract_strided_slice %351 {offsets = [0, 0], sizes = [8, 128], strides = [1, 1]} : vector<8x512xf32> to vector<8x128xf32>
    %c0_200 = arith.constant 0 : index
    %c0_201 = arith.constant 0 : index
    %353 = vector.load %arg4[%c0_200, %c0_201] : memref<128x512xf32, #tpu.memory_space<vmem>>, vector<128x128xf32>
    %cst_202 = arith.constant dense<0.000000e+00> : vector<8x128xf32>
    %354 = tpu.matmul %346, %353, %cst_202 {dimension_numbers = #tpu.dot_dimension_numbers<[1], [0], [0], [1], [0, 0, 1, 1], [], []>} : vector<8x128xf32>, vector<128x128xf32>, vector<8x128xf32> -> vector<8x128xf32>
    %355 = arith.addf %352, %354 : vector<8x128xf32>
    %356 = arith.negf %355 : vector<8x128xf32>
    %357 = math.exp %356 : vector<8x128xf32>
    %cst_203 = arith.constant 1.000000e+00 : f32
    %358 = vector.broadcast %cst_203 : f32 to vector<8x128xf32>
    %359 = arith.addf %358, %357 : vector<8x128xf32>
    %360 = arith.divf %358, %359 : vector<8x128xf32>
    %361 = vector.extract_strided_slice %351 {offsets = [0, 128], sizes = [8, 128], strides = [1, 1]} : vector<8x512xf32> to vector<8x128xf32>
    %c0_204 = arith.constant 0 : index
    %c128_205 = arith.constant 128 : index
    %362 = vector.load %arg4[%c0_204, %c128_205] : memref<128x512xf32, #tpu.memory_space<vmem>>, vector<128x128xf32>
    %cst_206 = arith.constant dense<0.000000e+00> : vector<8x128xf32>
    %363 = tpu.matmul %346, %362, %cst_206 {dimension_numbers = #tpu.dot_dimension_numbers<[1], [0], [0], [1], [0, 0, 1, 1], [], []>} : vector<8x128xf32>, vector<128x128xf32>, vector<8x128xf32> -> vector<8x128xf32>
    %364 = arith.addf %361, %363 : vector<8x128xf32>
    %365 = arith.negf %364 : vector<8x128xf32>
    %366 = math.exp %365 : vector<8x128xf32>
    %cst_207 = arith.constant 1.000000e+00 : f32
    %367 = vector.broadcast %cst_207 : f32 to vector<8x128xf32>
    %368 = arith.addf %367, %366 : vector<8x128xf32>
    %369 = arith.divf %367, %368 : vector<8x128xf32>
    %370 = vector.extract_strided_slice %351 {offsets = [0, 256], sizes = [8, 128], strides = [1, 1]} : vector<8x512xf32> to vector<8x128xf32>
    %c0_208 = arith.constant 0 : index
    %c256_209 = arith.constant 256 : index
    %371 = vector.load %arg4[%c0_208, %c256_209] : memref<128x512xf32, #tpu.memory_space<vmem>>, vector<128x128xf32>
    %cst_210 = arith.constant dense<0.000000e+00> : vector<8x128xf32>
    %372 = tpu.matmul %346, %371, %cst_210 {dimension_numbers = #tpu.dot_dimension_numbers<[1], [0], [0], [1], [0, 0, 1, 1], [], []>} : vector<8x128xf32>, vector<128x128xf32>, vector<8x128xf32> -> vector<8x128xf32>
    %373 = arith.addf %370, %372 : vector<8x128xf32>
    %374 = math.tanh %373 : vector<8x128xf32>
    %375 = vector.extract_strided_slice %351 {offsets = [0, 384], sizes = [8, 128], strides = [1, 1]} : vector<8x512xf32> to vector<8x128xf32>
    %c0_211 = arith.constant 0 : index
    %c384_212 = arith.constant 384 : index
    %376 = vector.load %arg4[%c0_211, %c384_212] : memref<128x512xf32, #tpu.memory_space<vmem>>, vector<128x128xf32>
    %cst_213 = arith.constant dense<0.000000e+00> : vector<8x128xf32>
    %377 = tpu.matmul %346, %376, %cst_213 {dimension_numbers = #tpu.dot_dimension_numbers<[1], [0], [0], [1], [0, 0, 1, 1], [], []>} : vector<8x128xf32>, vector<128x128xf32>, vector<8x128xf32> -> vector<8x128xf32>
    %378 = arith.addf %375, %377 : vector<8x128xf32>
    %379 = arith.negf %378 : vector<8x128xf32>
    %380 = math.exp %379 : vector<8x128xf32>
    %cst_214 = arith.constant 1.000000e+00 : f32
    %381 = vector.broadcast %cst_214 : f32 to vector<8x128xf32>
    %382 = arith.addf %381, %380 : vector<8x128xf32>
    %383 = arith.divf %381, %382 : vector<8x128xf32>
    %384 = arith.mulf %369, %347 : vector<8x128xf32>
    %385 = arith.mulf %360, %374 : vector<8x128xf32>
    %386 = arith.addf %384, %385 : vector<8x128xf32>
    %387 = math.tanh %386 : vector<8x128xf32>
    %388 = arith.mulf %383, %387 : vector<8x128xf32>
    %c0_215 = arith.constant 0 : index
    %c0_216 = arith.constant 0 : index
    %389 = vector.load %arg8[%c0_215, %c0_216] : memref<8x128xf32, #tpu.memory_space<vmem>>, vector<8x128xf32>
    tpu.vector_store %arg8[%c0_215, %c0_216], %388 {strides = array<i32>} : memref<8x128xf32, #tpu.memory_space<vmem>>, vector<8x128xf32>,
    %c0_217 = arith.constant 0 : index
    %c0_218 = arith.constant 0 : index
    %390 = vector.load %arg9[%c0_217, %c0_218] : memref<8x128xf32, #tpu.memory_space<vmem>>, vector<8x128xf32>
    tpu.vector_store %arg9[%c0_217, %c0_218], %386 {strides = array<i32>} : memref<8x128xf32, #tpu.memory_space<vmem>>, vector<8x128xf32>,
    %391 = vector.shape_cast %388 : vector<8x128xf32> to vector<8x1x128xf32>
    %c0_219 = arith.constant 0 : index
    %392 = arith.index_cast %c7_i32 : i32 to index
    %c0_220 = arith.constant 0 : index
    %393 = vector.load %arg6[%c0_219, %392, %c0_220] : memref<8x8x128xf32, #tpu.memory_space<vmem>>, vector<8x1x128xf32>
    tpu.vector_store %arg6[%c0_219, %392, %c0_220], %391 {strides = array<i32>} : memref<8x8x128xf32, #tpu.memory_space<vmem>>, vector<8x1x128xf32>,
    %c8_i32_221 = arith.constant 8 : i32
    return
  }
  func.func @transform_0(%arg0: i32, %arg1: i32) -> (i32, i32) {
    %c0_i32 = arith.constant 0 : i32
    %c0_i32_0 = arith.constant 0 : i32
    return %arg1, %c0_i32 : i32, i32
  }
  func.func @transform_1(%arg0: i32, %arg1: i32) -> (i32, i32) {
    %c0_i32 = arith.constant 0 : i32
    %c0_i32_0 = arith.constant 0 : i32
    %c0_i32_1 = arith.constant 0 : i32
    return %c0_i32, %c0_i32_0 : i32, i32
  }
  func.func @transform_2(%arg0: i32, %arg1: i32) -> (i32, i32) {
    %c0_i32 = arith.constant 0 : i32
    %c0_i32_0 = arith.constant 0 : i32
    %c0_i32_1 = arith.constant 0 : i32
    return %c0_i32, %c0_i32_0 : i32, i32
  }
  func.func @transform_3(%arg0: i32, %arg1: i32) -> (i32, i32) {
    %c0_i32 = arith.constant 0 : i32
    %c0_i32_0 = arith.constant 0 : i32
    %c0_i32_1 = arith.constant 0 : i32
    return %c0_i32, %c0_i32_0 : i32, i32
  }
  func.func @transform_4(%arg0: i32, %arg1: i32) -> (i32, i32, i32) {
    %c0_i32 = arith.constant 0 : i32
    %c0_i32_0 = arith.constant 0 : i32
    return %arg0, %arg1, %c0_i32 : i32, i32, i32
  }
}

module attributes {stable_mosaic.version = 11 : i64} {
  func.func @_fused_lstm_layer_kernel(%arg0: i32, %arg1: i32, %arg2: memref<64x8xf32, #tpu.memory_space<vmem>>, %arg3: memref<8x512xf32, #tpu.memory_space<vmem>>, %arg4: memref<128x512xf32, #tpu.memory_space<vmem>>, %arg5: memref<1x512xf32, #tpu.memory_space<vmem>>, %arg6: memref<8x8x128xf32, #tpu.memory_space<vmem>>, %arg7: memref<64x512xf32, #tpu.memory_space<vmem>>, %arg8: memref<8x128xf32, #tpu.memory_space<vmem>>, %arg9: memref<8x128xf32, #tpu.memory_space<vmem>>) attributes {dimension_semantics = [#tpu.dimension_semantics<parallel>, #tpu.dimension_semantics<arbitrary>], iteration_bounds = array<i64: 1, 1>, scalar_prefetch = 0 : i64, scratch_operands = 3 : i64, tpu.core_type = #tpu.core_type<tc>, window_params = [{transform_indices = @transform_0, window_bounds = array<i64: 64, 8>}, {pipeline_mode = #tpu.pipeline_mode<synchronous>, transform_indices = @transform_1, window_bounds = array<i64: 8, 512>}, {pipeline_mode = #tpu.pipeline_mode<synchronous>, transform_indices = @transform_2, window_bounds = array<i64: 128, 512>}, {pipeline_mode = #tpu.pipeline_mode<synchronous>, transform_indices = @transform_3, window_bounds = array<i64: 1, 512>}, {transform_indices = @transform_4, window_bounds = array<i64: 8, 8, 128>}]} {
    %c0_i32 = arith.constant 0 : i32
    %0 = arith.cmpi eq, %arg1, %c0_i32 : i32
    %1 = arith.extui %0 : i1 to i32
    %c0_i32_0 = arith.constant 0 : i32
    %2 = arith.cmpi ne, %1, %c0_i32_0 : i32
    scf.if %2 {
      %cst_222 = arith.constant 0.000000e+00 : f32
      %402 = vector.broadcast %cst_222 : f32 to vector<8x128xf32>
      %c0_223 = arith.constant 0 : index
      %c0_224 = arith.constant 0 : index
      %403 = vector.load %arg8[%c0_223, %c0_224] : memref<8x128xf32, #tpu.memory_space<vmem>>, vector<8x128xf32>
      tpu.vector_store %arg8[%c0_223, %c0_224], %402 {strides = array<i32>} : memref<8x128xf32, #tpu.memory_space<vmem>>, vector<8x128xf32>,
      %cst_225 = arith.constant 0.000000e+00 : f32
      %404 = vector.broadcast %cst_225 : f32 to vector<8x128xf32>
      %c0_226 = arith.constant 0 : index
      %c0_227 = arith.constant 0 : index
      %405 = vector.load %arg9[%c0_226, %c0_227] : memref<8x128xf32, #tpu.memory_space<vmem>>, vector<8x128xf32>
      tpu.vector_store %arg9[%c0_226, %c0_227], %404 {strides = array<i32>} : memref<8x128xf32, #tpu.memory_space<vmem>>, vector<8x128xf32>,
    } else {
    }
    %c0 = arith.constant 0 : index
    %c0_1 = arith.constant 0 : index
    %3 = vector.load %arg2[%c0, %c0_1] : memref<64x8xf32, #tpu.memory_space<vmem>>, vector<64x8xf32>
    %c0_2 = arith.constant 0 : index
    %c0_3 = arith.constant 0 : index
    %4 = vector.load %arg3[%c0_2, %c0_3] : memref<8x512xf32, #tpu.memory_space<vmem>>, vector<8x512xf32>
    %cst = arith.constant dense<0.000000e+00> : vector<64x512xf32>
    %5 = tpu.matmul %3, %4, %cst {dimension_numbers = #tpu.dot_dimension_numbers<[1], [0], [0], [1], [0, 0, 1, 1], [], []>} : vector<64x8xf32>, vector<8x512xf32>, vector<64x512xf32> -> vector<64x512xf32>
    %c0_4 = arith.constant 0 : index
    %c0_5 = arith.constant 0 : index
    %6 = vector.load %arg5[%c0_4, %c0_5] : memref<1x512xf32, #tpu.memory_space<vmem>>, vector<1x512xf32>
    %7 = vector.broadcast %6 : vector<1x512xf32> to vector<64x512xf32>
    %8 = arith.addf %5, %7 : vector<64x512xf32>
    %c0_6 = arith.constant 0 : index
    %c0_7 = arith.constant 0 : index
    %9 = vector.load %arg7[%c0_6, %c0_7] : memref<64x512xf32, #tpu.memory_space<vmem>>, vector<64x512xf32>
    tpu.vector_store %arg7[%c0_6, %c0_7], %8 {strides = array<i32>} : memref<64x512xf32, #tpu.memory_space<vmem>>, vector<64x512xf32>,
    %c0_i32_8 = arith.constant 0 : i32
    %c0_9 = arith.constant 0 : index
    %c0_10 = arith.constant 0 : index
    %10 = vector.load %arg8[%c0_9, %c0_10] : memref<8x128xf32, #tpu.memory_space<vmem>>, vector<8x128xf32>
    %c0_11 = arith.constant 0 : index
    %c0_12 = arith.constant 0 : index
    %11 = vector.load %arg9[%c0_11, %c0_12] : memref<8x128xf32, #tpu.memory_space<vmem>>, vector<8x128xf32>
    %c8_i32 = arith.constant 8 : i32
    %12 = arith.muli %c0_i32_8, %c8_i32 : i32
    %13 = tpu.assume_multiple %12, 8 : i32
    %14 = arith.index_cast %13 : i32 to index
    %c0_13 = arith.constant 0 : index
    %15 = vector.load %arg7[%14, %c0_13] : memref<64x512xf32, #tpu.memory_space<vmem>>, vector<8x512xf32>
    %16 = vector.extract_strided_slice %15 {offsets = [0, 0], sizes = [8, 128], strides = [1, 1]} : vector<8x512xf32> to vector<8x128xf32>
    %c0_14 = arith.constant 0 : index
    %c0_15 = arith.constant 0 : index
    %17 = vector.load %arg4[%c0_14, %c0_15] : memref<128x512xf32, #tpu.memory_space<vmem>>, vector<128x128xf32>
    %cst_16 = arith.constant dense<0.000000e+00> : vector<8x128xf32>
    %18 = tpu.matmul %10, %17, %cst_16 {dimension_numbers = #tpu.dot_dimension_numbers<[1], [0], [0], [1], [0, 0, 1, 1], [], []>} : vector<8x128xf32>, vector<128x128xf32>, vector<8x128xf32> -> vector<8x128xf32>
    %19 = arith.addf %16, %18 : vector<8x128xf32>
    %20 = arith.negf %19 : vector<8x128xf32>
    %21 = math.exp %20 : vector<8x128xf32>
    %cst_17 = arith.constant 1.000000e+00 : f32
    %22 = vector.broadcast %cst_17 : f32 to vector<8x128xf32>
    %23 = arith.addf %22, %21 : vector<8x128xf32>
    %24 = arith.divf %22, %23 : vector<8x128xf32>
    %25 = vector.extract_strided_slice %15 {offsets = [0, 128], sizes = [8, 128], strides = [1, 1]} : vector<8x512xf32> to vector<8x128xf32>
    %c0_18 = arith.constant 0 : index
    %c128 = arith.constant 128 : index
    %26 = vector.load %arg4[%c0_18, %c128] : memref<128x512xf32, #tpu.memory_space<vmem>>, vector<128x128xf32>
    %cst_19 = arith.constant dense<0.000000e+00> : vector<8x128xf32>
    %27 = tpu.matmul %10, %26, %cst_19 {dimension_numbers = #tpu.dot_dimension_numbers<[1], [0], [0], [1], [0, 0, 1, 1], [], []>} : vector<8x128xf32>, vector<128x128xf32>, vector<8x128xf32> -> vector<8x128xf32>
    %28 = arith.addf %25, %27 : vector<8x128xf32>
    %29 = arith.negf %28 : vector<8x128xf32>
    %30 = math.exp %29 : vector<8x128xf32>
    %cst_20 = arith.constant 1.000000e+00 : f32
    %31 = vector.broadcast %cst_20 : f32 to vector<8x128xf32>
    %32 = arith.addf %31, %30 : vector<8x128xf32>
    %33 = arith.divf %31, %32 : vector<8x128xf32>
    %34 = vector.extract_strided_slice %15 {offsets = [0, 256], sizes = [8, 128], strides = [1, 1]} : vector<8x512xf32> to vector<8x128xf32>
    %c0_21 = arith.constant 0 : index
    %c256 = arith.constant 256 : index
    %35 = vector.load %arg4[%c0_21, %c256] : memref<128x512xf32, #tpu.memory_space<vmem>>, vector<128x128xf32>
    %cst_22 = arith.constant dense<0.000000e+00> : vector<8x128xf32>
    %36 = tpu.matmul %10, %35, %cst_22 {dimension_numbers = #tpu.dot_dimension_numbers<[1], [0], [0], [1], [0, 0, 1, 1], [], []>} : vector<8x128xf32>, vector<128x128xf32>, vector<8x128xf32> -> vector<8x128xf32>
    %37 = arith.addf %34, %36 : vector<8x128xf32>
    %38 = math.tanh %37 : vector<8x128xf32>
    %39 = vector.extract_strided_slice %15 {offsets = [0, 384], sizes = [8, 128], strides = [1, 1]} : vector<8x512xf32> to vector<8x128xf32>
    %c0_23 = arith.constant 0 : index
    %c384 = arith.constant 384 : index
    %40 = vector.load %arg4[%c0_23, %c384] : memref<128x512xf32, #tpu.memory_space<vmem>>, vector<128x128xf32>
    %cst_24 = arith.constant dense<0.000000e+00> : vector<8x128xf32>
    %41 = tpu.matmul %10, %40, %cst_24 {dimension_numbers = #tpu.dot_dimension_numbers<[1], [0], [0], [1], [0, 0, 1, 1], [], []>} : vector<8x128xf32>, vector<128x128xf32>, vector<8x128xf32> -> vector<8x128xf32>
    %42 = arith.addf %39, %41 : vector<8x128xf32>
    %43 = arith.negf %42 : vector<8x128xf32>
    %44 = math.exp %43 : vector<8x128xf32>
    %cst_25 = arith.constant 1.000000e+00 : f32
    %45 = vector.broadcast %cst_25 : f32 to vector<8x128xf32>
    %46 = arith.addf %45, %44 : vector<8x128xf32>
    %47 = arith.divf %45, %46 : vector<8x128xf32>
    %48 = arith.mulf %33, %11 : vector<8x128xf32>
    %49 = arith.mulf %24, %38 : vector<8x128xf32>
    %50 = arith.addf %48, %49 : vector<8x128xf32>
    %51 = math.tanh %50 : vector<8x128xf32>
    %52 = arith.mulf %47, %51 : vector<8x128xf32>
    %c0_26 = arith.constant 0 : index
    %c0_27 = arith.constant 0 : index
    %53 = vector.load %arg8[%c0_26, %c0_27] : memref<8x128xf32, #tpu.memory_space<vmem>>, vector<8x128xf32>
    tpu.vector_store %arg8[%c0_26, %c0_27], %52 {strides = array<i32>} : memref<8x128xf32, #tpu.memory_space<vmem>>, vector<8x128xf32>,
    %c0_28 = arith.constant 0 : index
    %c0_29 = arith.constant 0 : index
    %54 = vector.load %arg9[%c0_28, %c0_29] : memref<8x128xf32, #tpu.memory_space<vmem>>, vector<8x128xf32>
    tpu.vector_store %arg9[%c0_28, %c0_29], %50 {strides = array<i32>} : memref<8x128xf32, #tpu.memory_space<vmem>>, vector<8x128xf32>,
    %55 = arith.index_cast %c0_i32_8 : i32 to index
    %c0_30 = arith.constant 0 : index
    %c0_31 = arith.constant 0 : index
    %56 = vector.load %arg6[%55, %c0_30, %c0_31] : memref<8x8x128xf32, #tpu.memory_space<vmem>>, vector<1x8x128xf32>
    %57 = vector.shape_cast %56 : vector<1x8x128xf32> to vector<8x128xf32>
    %58 = vector.shape_cast %52 : vector<8x128xf32> to vector<1x8x128xf32>
    tpu.vector_store %arg6[%55, %c0_30, %c0_31], %58 {strides = array<i32>} : memref<8x8x128xf32, #tpu.memory_space<vmem>>, vector<1x8x128xf32>,
    %c1_i32 = arith.constant 1 : i32
    %c0_32 = arith.constant 0 : index
    %c0_33 = arith.constant 0 : index
    %59 = vector.load %arg8[%c0_32, %c0_33] : memref<8x128xf32, #tpu.memory_space<vmem>>, vector<8x128xf32>
    %c0_34 = arith.constant 0 : index
    %c0_35 = arith.constant 0 : index
    %60 = vector.load %arg9[%c0_34, %c0_35] : memref<8x128xf32, #tpu.memory_space<vmem>>, vector<8x128xf32>
    %c8_i32_36 = arith.constant 8 : i32
    %61 = arith.muli %c1_i32, %c8_i32_36 : i32
    %62 = tpu.assume_multiple %61, 8 : i32
    %63 = arith.index_cast %62 : i32 to index
    %c0_37 = arith.constant 0 : index
    %64 = vector.load %arg7[%63, %c0_37] : memref<64x512xf32, #tpu.memory_space<vmem>>, vector<8x512xf32>
    %65 = vector.extract_strided_slice %64 {offsets = [0, 0], sizes = [8, 128], strides = [1, 1]} : vector<8x512xf32> to vector<8x128xf32>
    %c0_38 = arith.constant 0 : index
    %c0_39 = arith.constant 0 : index
    %66 = vector.load %arg4[%c0_38, %c0_39] : memref<128x512xf32, #tpu.memory_space<vmem>>, vector<128x128xf32>
    %cst_40 = arith.constant dense<0.000000e+00> : vector<8x128xf32>
    %67 = tpu.matmul %59, %66, %cst_40 {dimension_numbers = #tpu.dot_dimension_numbers<[1], [0], [0], [1], [0, 0, 1, 1], [], []>} : vector<8x128xf32>, vector<128x128xf32>, vector<8x128xf32> -> vector<8x128xf32>
    %68 = arith.addf %65, %67 : vector<8x128xf32>
    %69 = arith.negf %68 : vector<8x128xf32>
    %70 = math.exp %69 : vector<8x128xf32>
    %cst_41 = arith.constant 1.000000e+00 : f32
    %71 = vector.broadcast %cst_41 : f32 to vector<8x128xf32>
    %72 = arith.addf %71, %70 : vector<8x128xf32>
    %73 = arith.divf %71, %72 : vector<8x128xf32>
    %74 = vector.extract_strided_slice %64 {offsets = [0, 128], sizes = [8, 128], strides = [1, 1]} : vector<8x512xf32> to vector<8x128xf32>
    %c0_42 = arith.constant 0 : index
    %c128_43 = arith.constant 128 : index
    %75 = vector.load %arg4[%c0_42, %c128_43] : memref<128x512xf32, #tpu.memory_space<vmem>>, vector<128x128xf32>
    %cst_44 = arith.constant dense<0.000000e+00> : vector<8x128xf32>
    %76 = tpu.matmul %59, %75, %cst_44 {dimension_numbers = #tpu.dot_dimension_numbers<[1], [0], [0], [1], [0, 0, 1, 1], [], []>} : vector<8x128xf32>, vector<128x128xf32>, vector<8x128xf32> -> vector<8x128xf32>
    %77 = arith.addf %74, %76 : vector<8x128xf32>
    %78 = arith.negf %77 : vector<8x128xf32>
    %79 = math.exp %78 : vector<8x128xf32>
    %cst_45 = arith.constant 1.000000e+00 : f32
    %80 = vector.broadcast %cst_45 : f32 to vector<8x128xf32>
    %81 = arith.addf %80, %79 : vector<8x128xf32>
    %82 = arith.divf %80, %81 : vector<8x128xf32>
    %83 = vector.extract_strided_slice %64 {offsets = [0, 256], sizes = [8, 128], strides = [1, 1]} : vector<8x512xf32> to vector<8x128xf32>
    %c0_46 = arith.constant 0 : index
    %c256_47 = arith.constant 256 : index
    %84 = vector.load %arg4[%c0_46, %c256_47] : memref<128x512xf32, #tpu.memory_space<vmem>>, vector<128x128xf32>
    %cst_48 = arith.constant dense<0.000000e+00> : vector<8x128xf32>
    %85 = tpu.matmul %59, %84, %cst_48 {dimension_numbers = #tpu.dot_dimension_numbers<[1], [0], [0], [1], [0, 0, 1, 1], [], []>} : vector<8x128xf32>, vector<128x128xf32>, vector<8x128xf32> -> vector<8x128xf32>
    %86 = arith.addf %83, %85 : vector<8x128xf32>
    %87 = math.tanh %86 : vector<8x128xf32>
    %88 = vector.extract_strided_slice %64 {offsets = [0, 384], sizes = [8, 128], strides = [1, 1]} : vector<8x512xf32> to vector<8x128xf32>
    %c0_49 = arith.constant 0 : index
    %c384_50 = arith.constant 384 : index
    %89 = vector.load %arg4[%c0_49, %c384_50] : memref<128x512xf32, #tpu.memory_space<vmem>>, vector<128x128xf32>
    %cst_51 = arith.constant dense<0.000000e+00> : vector<8x128xf32>
    %90 = tpu.matmul %59, %89, %cst_51 {dimension_numbers = #tpu.dot_dimension_numbers<[1], [0], [0], [1], [0, 0, 1, 1], [], []>} : vector<8x128xf32>, vector<128x128xf32>, vector<8x128xf32> -> vector<8x128xf32>
    %91 = arith.addf %88, %90 : vector<8x128xf32>
    %92 = arith.negf %91 : vector<8x128xf32>
    %93 = math.exp %92 : vector<8x128xf32>
    %cst_52 = arith.constant 1.000000e+00 : f32
    %94 = vector.broadcast %cst_52 : f32 to vector<8x128xf32>
    %95 = arith.addf %94, %93 : vector<8x128xf32>
    %96 = arith.divf %94, %95 : vector<8x128xf32>
    %97 = arith.mulf %82, %60 : vector<8x128xf32>
    %98 = arith.mulf %73, %87 : vector<8x128xf32>
    %99 = arith.addf %97, %98 : vector<8x128xf32>
    %100 = math.tanh %99 : vector<8x128xf32>
    %101 = arith.mulf %96, %100 : vector<8x128xf32>
    %c0_53 = arith.constant 0 : index
    %c0_54 = arith.constant 0 : index
    %102 = vector.load %arg8[%c0_53, %c0_54] : memref<8x128xf32, #tpu.memory_space<vmem>>, vector<8x128xf32>
    tpu.vector_store %arg8[%c0_53, %c0_54], %101 {strides = array<i32>} : memref<8x128xf32, #tpu.memory_space<vmem>>, vector<8x128xf32>,
    %c0_55 = arith.constant 0 : index
    %c0_56 = arith.constant 0 : index
    %103 = vector.load %arg9[%c0_55, %c0_56] : memref<8x128xf32, #tpu.memory_space<vmem>>, vector<8x128xf32>
    tpu.vector_store %arg9[%c0_55, %c0_56], %99 {strides = array<i32>} : memref<8x128xf32, #tpu.memory_space<vmem>>, vector<8x128xf32>,
    %104 = arith.index_cast %c1_i32 : i32 to index
    %c0_57 = arith.constant 0 : index
    %c0_58 = arith.constant 0 : index
    %105 = vector.load %arg6[%104, %c0_57, %c0_58] : memref<8x8x128xf32, #tpu.memory_space<vmem>>, vector<1x8x128xf32>
    %106 = vector.shape_cast %105 : vector<1x8x128xf32> to vector<8x128xf32>
    %107 = vector.shape_cast %101 : vector<8x128xf32> to vector<1x8x128xf32>
    tpu.vector_store %arg6[%104, %c0_57, %c0_58], %107 {strides = array<i32>} : memref<8x8x128xf32, #tpu.memory_space<vmem>>, vector<1x8x128xf32>,
    %c2_i32 = arith.constant 2 : i32
    %c0_59 = arith.constant 0 : index
    %c0_60 = arith.constant 0 : index
    %108 = vector.load %arg8[%c0_59, %c0_60] : memref<8x128xf32, #tpu.memory_space<vmem>>, vector<8x128xf32>
    %c0_61 = arith.constant 0 : index
    %c0_62 = arith.constant 0 : index
    %109 = vector.load %arg9[%c0_61, %c0_62] : memref<8x128xf32, #tpu.memory_space<vmem>>, vector<8x128xf32>
    %c8_i32_63 = arith.constant 8 : i32
    %110 = arith.muli %c2_i32, %c8_i32_63 : i32
    %111 = tpu.assume_multiple %110, 8 : i32
    %112 = arith.index_cast %111 : i32 to index
    %c0_64 = arith.constant 0 : index
    %113 = vector.load %arg7[%112, %c0_64] : memref<64x512xf32, #tpu.memory_space<vmem>>, vector<8x512xf32>
    %114 = vector.extract_strided_slice %113 {offsets = [0, 0], sizes = [8, 128], strides = [1, 1]} : vector<8x512xf32> to vector<8x128xf32>
    %c0_65 = arith.constant 0 : index
    %c0_66 = arith.constant 0 : index
    %115 = vector.load %arg4[%c0_65, %c0_66] : memref<128x512xf32, #tpu.memory_space<vmem>>, vector<128x128xf32>
    %cst_67 = arith.constant dense<0.000000e+00> : vector<8x128xf32>
    %116 = tpu.matmul %108, %115, %cst_67 {dimension_numbers = #tpu.dot_dimension_numbers<[1], [0], [0], [1], [0, 0, 1, 1], [], []>} : vector<8x128xf32>, vector<128x128xf32>, vector<8x128xf32> -> vector<8x128xf32>
    %117 = arith.addf %114, %116 : vector<8x128xf32>
    %118 = arith.negf %117 : vector<8x128xf32>
    %119 = math.exp %118 : vector<8x128xf32>
    %cst_68 = arith.constant 1.000000e+00 : f32
    %120 = vector.broadcast %cst_68 : f32 to vector<8x128xf32>
    %121 = arith.addf %120, %119 : vector<8x128xf32>
    %122 = arith.divf %120, %121 : vector<8x128xf32>
    %123 = vector.extract_strided_slice %113 {offsets = [0, 128], sizes = [8, 128], strides = [1, 1]} : vector<8x512xf32> to vector<8x128xf32>
    %c0_69 = arith.constant 0 : index
    %c128_70 = arith.constant 128 : index
    %124 = vector.load %arg4[%c0_69, %c128_70] : memref<128x512xf32, #tpu.memory_space<vmem>>, vector<128x128xf32>
    %cst_71 = arith.constant dense<0.000000e+00> : vector<8x128xf32>
    %125 = tpu.matmul %108, %124, %cst_71 {dimension_numbers = #tpu.dot_dimension_numbers<[1], [0], [0], [1], [0, 0, 1, 1], [], []>} : vector<8x128xf32>, vector<128x128xf32>, vector<8x128xf32> -> vector<8x128xf32>
    %126 = arith.addf %123, %125 : vector<8x128xf32>
    %127 = arith.negf %126 : vector<8x128xf32>
    %128 = math.exp %127 : vector<8x128xf32>
    %cst_72 = arith.constant 1.000000e+00 : f32
    %129 = vector.broadcast %cst_72 : f32 to vector<8x128xf32>
    %130 = arith.addf %129, %128 : vector<8x128xf32>
    %131 = arith.divf %129, %130 : vector<8x128xf32>
    %132 = vector.extract_strided_slice %113 {offsets = [0, 256], sizes = [8, 128], strides = [1, 1]} : vector<8x512xf32> to vector<8x128xf32>
    %c0_73 = arith.constant 0 : index
    %c256_74 = arith.constant 256 : index
    %133 = vector.load %arg4[%c0_73, %c256_74] : memref<128x512xf32, #tpu.memory_space<vmem>>, vector<128x128xf32>
    %cst_75 = arith.constant dense<0.000000e+00> : vector<8x128xf32>
    %134 = tpu.matmul %108, %133, %cst_75 {dimension_numbers = #tpu.dot_dimension_numbers<[1], [0], [0], [1], [0, 0, 1, 1], [], []>} : vector<8x128xf32>, vector<128x128xf32>, vector<8x128xf32> -> vector<8x128xf32>
    %135 = arith.addf %132, %134 : vector<8x128xf32>
    %136 = math.tanh %135 : vector<8x128xf32>
    %137 = vector.extract_strided_slice %113 {offsets = [0, 384], sizes = [8, 128], strides = [1, 1]} : vector<8x512xf32> to vector<8x128xf32>
    %c0_76 = arith.constant 0 : index
    %c384_77 = arith.constant 384 : index
    %138 = vector.load %arg4[%c0_76, %c384_77] : memref<128x512xf32, #tpu.memory_space<vmem>>, vector<128x128xf32>
    %cst_78 = arith.constant dense<0.000000e+00> : vector<8x128xf32>
    %139 = tpu.matmul %108, %138, %cst_78 {dimension_numbers = #tpu.dot_dimension_numbers<[1], [0], [0], [1], [0, 0, 1, 1], [], []>} : vector<8x128xf32>, vector<128x128xf32>, vector<8x128xf32> -> vector<8x128xf32>
    %140 = arith.addf %137, %139 : vector<8x128xf32>
    %141 = arith.negf %140 : vector<8x128xf32>
    %142 = math.exp %141 : vector<8x128xf32>
    %cst_79 = arith.constant 1.000000e+00 : f32
    %143 = vector.broadcast %cst_79 : f32 to vector<8x128xf32>
    %144 = arith.addf %143, %142 : vector<8x128xf32>
    %145 = arith.divf %143, %144 : vector<8x128xf32>
    %146 = arith.mulf %131, %109 : vector<8x128xf32>
    %147 = arith.mulf %122, %136 : vector<8x128xf32>
    %148 = arith.addf %146, %147 : vector<8x128xf32>
    %149 = math.tanh %148 : vector<8x128xf32>
    %150 = arith.mulf %145, %149 : vector<8x128xf32>
    %c0_80 = arith.constant 0 : index
    %c0_81 = arith.constant 0 : index
    %151 = vector.load %arg8[%c0_80, %c0_81] : memref<8x128xf32, #tpu.memory_space<vmem>>, vector<8x128xf32>
    tpu.vector_store %arg8[%c0_80, %c0_81], %150 {strides = array<i32>} : memref<8x128xf32, #tpu.memory_space<vmem>>, vector<8x128xf32>,
    %c0_82 = arith.constant 0 : index
    %c0_83 = arith.constant 0 : index
    %152 = vector.load %arg9[%c0_82, %c0_83] : memref<8x128xf32, #tpu.memory_space<vmem>>, vector<8x128xf32>
    tpu.vector_store %arg9[%c0_82, %c0_83], %148 {strides = array<i32>} : memref<8x128xf32, #tpu.memory_space<vmem>>, vector<8x128xf32>,
    %153 = arith.index_cast %c2_i32 : i32 to index
    %c0_84 = arith.constant 0 : index
    %c0_85 = arith.constant 0 : index
    %154 = vector.load %arg6[%153, %c0_84, %c0_85] : memref<8x8x128xf32, #tpu.memory_space<vmem>>, vector<1x8x128xf32>
    %155 = vector.shape_cast %154 : vector<1x8x128xf32> to vector<8x128xf32>
    %156 = vector.shape_cast %150 : vector<8x128xf32> to vector<1x8x128xf32>
    tpu.vector_store %arg6[%153, %c0_84, %c0_85], %156 {strides = array<i32>} : memref<8x8x128xf32, #tpu.memory_space<vmem>>, vector<1x8x128xf32>,
    %c3_i32 = arith.constant 3 : i32
    %c0_86 = arith.constant 0 : index
    %c0_87 = arith.constant 0 : index
    %157 = vector.load %arg8[%c0_86, %c0_87] : memref<8x128xf32, #tpu.memory_space<vmem>>, vector<8x128xf32>
    %c0_88 = arith.constant 0 : index
    %c0_89 = arith.constant 0 : index
    %158 = vector.load %arg9[%c0_88, %c0_89] : memref<8x128xf32, #tpu.memory_space<vmem>>, vector<8x128xf32>
    %c8_i32_90 = arith.constant 8 : i32
    %159 = arith.muli %c3_i32, %c8_i32_90 : i32
    %160 = tpu.assume_multiple %159, 8 : i32
    %161 = arith.index_cast %160 : i32 to index
    %c0_91 = arith.constant 0 : index
    %162 = vector.load %arg7[%161, %c0_91] : memref<64x512xf32, #tpu.memory_space<vmem>>, vector<8x512xf32>
    %163 = vector.extract_strided_slice %162 {offsets = [0, 0], sizes = [8, 128], strides = [1, 1]} : vector<8x512xf32> to vector<8x128xf32>
    %c0_92 = arith.constant 0 : index
    %c0_93 = arith.constant 0 : index
    %164 = vector.load %arg4[%c0_92, %c0_93] : memref<128x512xf32, #tpu.memory_space<vmem>>, vector<128x128xf32>
    %cst_94 = arith.constant dense<0.000000e+00> : vector<8x128xf32>
    %165 = tpu.matmul %157, %164, %cst_94 {dimension_numbers = #tpu.dot_dimension_numbers<[1], [0], [0], [1], [0, 0, 1, 1], [], []>} : vector<8x128xf32>, vector<128x128xf32>, vector<8x128xf32> -> vector<8x128xf32>
    %166 = arith.addf %163, %165 : vector<8x128xf32>
    %167 = arith.negf %166 : vector<8x128xf32>
    %168 = math.exp %167 : vector<8x128xf32>
    %cst_95 = arith.constant 1.000000e+00 : f32
    %169 = vector.broadcast %cst_95 : f32 to vector<8x128xf32>
    %170 = arith.addf %169, %168 : vector<8x128xf32>
    %171 = arith.divf %169, %170 : vector<8x128xf32>
    %172 = vector.extract_strided_slice %162 {offsets = [0, 128], sizes = [8, 128], strides = [1, 1]} : vector<8x512xf32> to vector<8x128xf32>
    %c0_96 = arith.constant 0 : index
    %c128_97 = arith.constant 128 : index
    %173 = vector.load %arg4[%c0_96, %c128_97] : memref<128x512xf32, #tpu.memory_space<vmem>>, vector<128x128xf32>
    %cst_98 = arith.constant dense<0.000000e+00> : vector<8x128xf32>
    %174 = tpu.matmul %157, %173, %cst_98 {dimension_numbers = #tpu.dot_dimension_numbers<[1], [0], [0], [1], [0, 0, 1, 1], [], []>} : vector<8x128xf32>, vector<128x128xf32>, vector<8x128xf32> -> vector<8x128xf32>
    %175 = arith.addf %172, %174 : vector<8x128xf32>
    %176 = arith.negf %175 : vector<8x128xf32>
    %177 = math.exp %176 : vector<8x128xf32>
    %cst_99 = arith.constant 1.000000e+00 : f32
    %178 = vector.broadcast %cst_99 : f32 to vector<8x128xf32>
    %179 = arith.addf %178, %177 : vector<8x128xf32>
    %180 = arith.divf %178, %179 : vector<8x128xf32>
    %181 = vector.extract_strided_slice %162 {offsets = [0, 256], sizes = [8, 128], strides = [1, 1]} : vector<8x512xf32> to vector<8x128xf32>
    %c0_100 = arith.constant 0 : index
    %c256_101 = arith.constant 256 : index
    %182 = vector.load %arg4[%c0_100, %c256_101] : memref<128x512xf32, #tpu.memory_space<vmem>>, vector<128x128xf32>
    %cst_102 = arith.constant dense<0.000000e+00> : vector<8x128xf32>
    %183 = tpu.matmul %157, %182, %cst_102 {dimension_numbers = #tpu.dot_dimension_numbers<[1], [0], [0], [1], [0, 0, 1, 1], [], []>} : vector<8x128xf32>, vector<128x128xf32>, vector<8x128xf32> -> vector<8x128xf32>
    %184 = arith.addf %181, %183 : vector<8x128xf32>
    %185 = math.tanh %184 : vector<8x128xf32>
    %186 = vector.extract_strided_slice %162 {offsets = [0, 384], sizes = [8, 128], strides = [1, 1]} : vector<8x512xf32> to vector<8x128xf32>
    %c0_103 = arith.constant 0 : index
    %c384_104 = arith.constant 384 : index
    %187 = vector.load %arg4[%c0_103, %c384_104] : memref<128x512xf32, #tpu.memory_space<vmem>>, vector<128x128xf32>
    %cst_105 = arith.constant dense<0.000000e+00> : vector<8x128xf32>
    %188 = tpu.matmul %157, %187, %cst_105 {dimension_numbers = #tpu.dot_dimension_numbers<[1], [0], [0], [1], [0, 0, 1, 1], [], []>} : vector<8x128xf32>, vector<128x128xf32>, vector<8x128xf32> -> vector<8x128xf32>
    %189 = arith.addf %186, %188 : vector<8x128xf32>
    %190 = arith.negf %189 : vector<8x128xf32>
    %191 = math.exp %190 : vector<8x128xf32>
    %cst_106 = arith.constant 1.000000e+00 : f32
    %192 = vector.broadcast %cst_106 : f32 to vector<8x128xf32>
    %193 = arith.addf %192, %191 : vector<8x128xf32>
    %194 = arith.divf %192, %193 : vector<8x128xf32>
    %195 = arith.mulf %180, %158 : vector<8x128xf32>
    %196 = arith.mulf %171, %185 : vector<8x128xf32>
    %197 = arith.addf %195, %196 : vector<8x128xf32>
    %198 = math.tanh %197 : vector<8x128xf32>
    %199 = arith.mulf %194, %198 : vector<8x128xf32>
    %c0_107 = arith.constant 0 : index
    %c0_108 = arith.constant 0 : index
    %200 = vector.load %arg8[%c0_107, %c0_108] : memref<8x128xf32, #tpu.memory_space<vmem>>, vector<8x128xf32>
    tpu.vector_store %arg8[%c0_107, %c0_108], %199 {strides = array<i32>} : memref<8x128xf32, #tpu.memory_space<vmem>>, vector<8x128xf32>,
    %c0_109 = arith.constant 0 : index
    %c0_110 = arith.constant 0 : index
    %201 = vector.load %arg9[%c0_109, %c0_110] : memref<8x128xf32, #tpu.memory_space<vmem>>, vector<8x128xf32>
    tpu.vector_store %arg9[%c0_109, %c0_110], %197 {strides = array<i32>} : memref<8x128xf32, #tpu.memory_space<vmem>>, vector<8x128xf32>,
    %202 = arith.index_cast %c3_i32 : i32 to index
    %c0_111 = arith.constant 0 : index
    %c0_112 = arith.constant 0 : index
    %203 = vector.load %arg6[%202, %c0_111, %c0_112] : memref<8x8x128xf32, #tpu.memory_space<vmem>>, vector<1x8x128xf32>
    %204 = vector.shape_cast %203 : vector<1x8x128xf32> to vector<8x128xf32>
    %205 = vector.shape_cast %199 : vector<8x128xf32> to vector<1x8x128xf32>
    tpu.vector_store %arg6[%202, %c0_111, %c0_112], %205 {strides = array<i32>} : memref<8x8x128xf32, #tpu.memory_space<vmem>>, vector<1x8x128xf32>,
    %c4_i32 = arith.constant 4 : i32
    %c0_113 = arith.constant 0 : index
    %c0_114 = arith.constant 0 : index
    %206 = vector.load %arg8[%c0_113, %c0_114] : memref<8x128xf32, #tpu.memory_space<vmem>>, vector<8x128xf32>
    %c0_115 = arith.constant 0 : index
    %c0_116 = arith.constant 0 : index
    %207 = vector.load %arg9[%c0_115, %c0_116] : memref<8x128xf32, #tpu.memory_space<vmem>>, vector<8x128xf32>
    %c8_i32_117 = arith.constant 8 : i32
    %208 = arith.muli %c4_i32, %c8_i32_117 : i32
    %209 = tpu.assume_multiple %208, 8 : i32
    %210 = arith.index_cast %209 : i32 to index
    %c0_118 = arith.constant 0 : index
    %211 = vector.load %arg7[%210, %c0_118] : memref<64x512xf32, #tpu.memory_space<vmem>>, vector<8x512xf32>
    %212 = vector.extract_strided_slice %211 {offsets = [0, 0], sizes = [8, 128], strides = [1, 1]} : vector<8x512xf32> to vector<8x128xf32>
    %c0_119 = arith.constant 0 : index
    %c0_120 = arith.constant 0 : index
    %213 = vector.load %arg4[%c0_119, %c0_120] : memref<128x512xf32, #tpu.memory_space<vmem>>, vector<128x128xf32>
    %cst_121 = arith.constant dense<0.000000e+00> : vector<8x128xf32>
    %214 = tpu.matmul %206, %213, %cst_121 {dimension_numbers = #tpu.dot_dimension_numbers<[1], [0], [0], [1], [0, 0, 1, 1], [], []>} : vector<8x128xf32>, vector<128x128xf32>, vector<8x128xf32> -> vector<8x128xf32>
    %215 = arith.addf %212, %214 : vector<8x128xf32>
    %216 = arith.negf %215 : vector<8x128xf32>
    %217 = math.exp %216 : vector<8x128xf32>
    %cst_122 = arith.constant 1.000000e+00 : f32
    %218 = vector.broadcast %cst_122 : f32 to vector<8x128xf32>
    %219 = arith.addf %218, %217 : vector<8x128xf32>
    %220 = arith.divf %218, %219 : vector<8x128xf32>
    %221 = vector.extract_strided_slice %211 {offsets = [0, 128], sizes = [8, 128], strides = [1, 1]} : vector<8x512xf32> to vector<8x128xf32>
    %c0_123 = arith.constant 0 : index
    %c128_124 = arith.constant 128 : index
    %222 = vector.load %arg4[%c0_123, %c128_124] : memref<128x512xf32, #tpu.memory_space<vmem>>, vector<128x128xf32>
    %cst_125 = arith.constant dense<0.000000e+00> : vector<8x128xf32>
    %223 = tpu.matmul %206, %222, %cst_125 {dimension_numbers = #tpu.dot_dimension_numbers<[1], [0], [0], [1], [0, 0, 1, 1], [], []>} : vector<8x128xf32>, vector<128x128xf32>, vector<8x128xf32> -> vector<8x128xf32>
    %224 = arith.addf %221, %223 : vector<8x128xf32>
    %225 = arith.negf %224 : vector<8x128xf32>
    %226 = math.exp %225 : vector<8x128xf32>
    %cst_126 = arith.constant 1.000000e+00 : f32
    %227 = vector.broadcast %cst_126 : f32 to vector<8x128xf32>
    %228 = arith.addf %227, %226 : vector<8x128xf32>
    %229 = arith.divf %227, %228 : vector<8x128xf32>
    %230 = vector.extract_strided_slice %211 {offsets = [0, 256], sizes = [8, 128], strides = [1, 1]} : vector<8x512xf32> to vector<8x128xf32>
    %c0_127 = arith.constant 0 : index
    %c256_128 = arith.constant 256 : index
    %231 = vector.load %arg4[%c0_127, %c256_128] : memref<128x512xf32, #tpu.memory_space<vmem>>, vector<128x128xf32>
    %cst_129 = arith.constant dense<0.000000e+00> : vector<8x128xf32>
    %232 = tpu.matmul %206, %231, %cst_129 {dimension_numbers = #tpu.dot_dimension_numbers<[1], [0], [0], [1], [0, 0, 1, 1], [], []>} : vector<8x128xf32>, vector<128x128xf32>, vector<8x128xf32> -> vector<8x128xf32>
    %233 = arith.addf %230, %232 : vector<8x128xf32>
    %234 = math.tanh %233 : vector<8x128xf32>
    %235 = vector.extract_strided_slice %211 {offsets = [0, 384], sizes = [8, 128], strides = [1, 1]} : vector<8x512xf32> to vector<8x128xf32>
    %c0_130 = arith.constant 0 : index
    %c384_131 = arith.constant 384 : index
    %236 = vector.load %arg4[%c0_130, %c384_131] : memref<128x512xf32, #tpu.memory_space<vmem>>, vector<128x128xf32>
    %cst_132 = arith.constant dense<0.000000e+00> : vector<8x128xf32>
    %237 = tpu.matmul %206, %236, %cst_132 {dimension_numbers = #tpu.dot_dimension_numbers<[1], [0], [0], [1], [0, 0, 1, 1], [], []>} : vector<8x128xf32>, vector<128x128xf32>, vector<8x128xf32> -> vector<8x128xf32>
    %238 = arith.addf %235, %237 : vector<8x128xf32>
    %239 = arith.negf %238 : vector<8x128xf32>
    %240 = math.exp %239 : vector<8x128xf32>
    %cst_133 = arith.constant 1.000000e+00 : f32
    %241 = vector.broadcast %cst_133 : f32 to vector<8x128xf32>
    %242 = arith.addf %241, %240 : vector<8x128xf32>
    %243 = arith.divf %241, %242 : vector<8x128xf32>
    %244 = arith.mulf %229, %207 : vector<8x128xf32>
    %245 = arith.mulf %220, %234 : vector<8x128xf32>
    %246 = arith.addf %244, %245 : vector<8x128xf32>
    %247 = math.tanh %246 : vector<8x128xf32>
    %248 = arith.mulf %243, %247 : vector<8x128xf32>
    %c0_134 = arith.constant 0 : index
    %c0_135 = arith.constant 0 : index
    %249 = vector.load %arg8[%c0_134, %c0_135] : memref<8x128xf32, #tpu.memory_space<vmem>>, vector<8x128xf32>
    tpu.vector_store %arg8[%c0_134, %c0_135], %248 {strides = array<i32>} : memref<8x128xf32, #tpu.memory_space<vmem>>, vector<8x128xf32>,
    %c0_136 = arith.constant 0 : index
    %c0_137 = arith.constant 0 : index
    %250 = vector.load %arg9[%c0_136, %c0_137] : memref<8x128xf32, #tpu.memory_space<vmem>>, vector<8x128xf32>
    tpu.vector_store %arg9[%c0_136, %c0_137], %246 {strides = array<i32>} : memref<8x128xf32, #tpu.memory_space<vmem>>, vector<8x128xf32>,
    %251 = arith.index_cast %c4_i32 : i32 to index
    %c0_138 = arith.constant 0 : index
    %c0_139 = arith.constant 0 : index
    %252 = vector.load %arg6[%251, %c0_138, %c0_139] : memref<8x8x128xf32, #tpu.memory_space<vmem>>, vector<1x8x128xf32>
    %253 = vector.shape_cast %252 : vector<1x8x128xf32> to vector<8x128xf32>
    %254 = vector.shape_cast %248 : vector<8x128xf32> to vector<1x8x128xf32>
    tpu.vector_store %arg6[%251, %c0_138, %c0_139], %254 {strides = array<i32>} : memref<8x8x128xf32, #tpu.memory_space<vmem>>, vector<1x8x128xf32>,
    %c5_i32 = arith.constant 5 : i32
    %c0_140 = arith.constant 0 : index
    %c0_141 = arith.constant 0 : index
    %255 = vector.load %arg8[%c0_140, %c0_141] : memref<8x128xf32, #tpu.memory_space<vmem>>, vector<8x128xf32>
    %c0_142 = arith.constant 0 : index
    %c0_143 = arith.constant 0 : index
    %256 = vector.load %arg9[%c0_142, %c0_143] : memref<8x128xf32, #tpu.memory_space<vmem>>, vector<8x128xf32>
    %c8_i32_144 = arith.constant 8 : i32
    %257 = arith.muli %c5_i32, %c8_i32_144 : i32
    %258 = tpu.assume_multiple %257, 8 : i32
    %259 = arith.index_cast %258 : i32 to index
    %c0_145 = arith.constant 0 : index
    %260 = vector.load %arg7[%259, %c0_145] : memref<64x512xf32, #tpu.memory_space<vmem>>, vector<8x512xf32>
    %261 = vector.extract_strided_slice %260 {offsets = [0, 0], sizes = [8, 128], strides = [1, 1]} : vector<8x512xf32> to vector<8x128xf32>
    %c0_146 = arith.constant 0 : index
    %c0_147 = arith.constant 0 : index
    %262 = vector.load %arg4[%c0_146, %c0_147] : memref<128x512xf32, #tpu.memory_space<vmem>>, vector<128x128xf32>
    %cst_148 = arith.constant dense<0.000000e+00> : vector<8x128xf32>
    %263 = tpu.matmul %255, %262, %cst_148 {dimension_numbers = #tpu.dot_dimension_numbers<[1], [0], [0], [1], [0, 0, 1, 1], [], []>} : vector<8x128xf32>, vector<128x128xf32>, vector<8x128xf32> -> vector<8x128xf32>
    %264 = arith.addf %261, %263 : vector<8x128xf32>
    %265 = arith.negf %264 : vector<8x128xf32>
    %266 = math.exp %265 : vector<8x128xf32>
    %cst_149 = arith.constant 1.000000e+00 : f32
    %267 = vector.broadcast %cst_149 : f32 to vector<8x128xf32>
    %268 = arith.addf %267, %266 : vector<8x128xf32>
    %269 = arith.divf %267, %268 : vector<8x128xf32>
    %270 = vector.extract_strided_slice %260 {offsets = [0, 128], sizes = [8, 128], strides = [1, 1]} : vector<8x512xf32> to vector<8x128xf32>
    %c0_150 = arith.constant 0 : index
    %c128_151 = arith.constant 128 : index
    %271 = vector.load %arg4[%c0_150, %c128_151] : memref<128x512xf32, #tpu.memory_space<vmem>>, vector<128x128xf32>
    %cst_152 = arith.constant dense<0.000000e+00> : vector<8x128xf32>
    %272 = tpu.matmul %255, %271, %cst_152 {dimension_numbers = #tpu.dot_dimension_numbers<[1], [0], [0], [1], [0, 0, 1, 1], [], []>} : vector<8x128xf32>, vector<128x128xf32>, vector<8x128xf32> -> vector<8x128xf32>
    %273 = arith.addf %270, %272 : vector<8x128xf32>
    %274 = arith.negf %273 : vector<8x128xf32>
    %275 = math.exp %274 : vector<8x128xf32>
    %cst_153 = arith.constant 1.000000e+00 : f32
    %276 = vector.broadcast %cst_153 : f32 to vector<8x128xf32>
    %277 = arith.addf %276, %275 : vector<8x128xf32>
    %278 = arith.divf %276, %277 : vector<8x128xf32>
    %279 = vector.extract_strided_slice %260 {offsets = [0, 256], sizes = [8, 128], strides = [1, 1]} : vector<8x512xf32> to vector<8x128xf32>
    %c0_154 = arith.constant 0 : index
    %c256_155 = arith.constant 256 : index
    %280 = vector.load %arg4[%c0_154, %c256_155] : memref<128x512xf32, #tpu.memory_space<vmem>>, vector<128x128xf32>
    %cst_156 = arith.constant dense<0.000000e+00> : vector<8x128xf32>
    %281 = tpu.matmul %255, %280, %cst_156 {dimension_numbers = #tpu.dot_dimension_numbers<[1], [0], [0], [1], [0, 0, 1, 1], [], []>} : vector<8x128xf32>, vector<128x128xf32>, vector<8x128xf32> -> vector<8x128xf32>
    %282 = arith.addf %279, %281 : vector<8x128xf32>
    %283 = math.tanh %282 : vector<8x128xf32>
    %284 = vector.extract_strided_slice %260 {offsets = [0, 384], sizes = [8, 128], strides = [1, 1]} : vector<8x512xf32> to vector<8x128xf32>
    %c0_157 = arith.constant 0 : index
    %c384_158 = arith.constant 384 : index
    %285 = vector.load %arg4[%c0_157, %c384_158] : memref<128x512xf32, #tpu.memory_space<vmem>>, vector<128x128xf32>
    %cst_159 = arith.constant dense<0.000000e+00> : vector<8x128xf32>
    %286 = tpu.matmul %255, %285, %cst_159 {dimension_numbers = #tpu.dot_dimension_numbers<[1], [0], [0], [1], [0, 0, 1, 1], [], []>} : vector<8x128xf32>, vector<128x128xf32>, vector<8x128xf32> -> vector<8x128xf32>
    %287 = arith.addf %284, %286 : vector<8x128xf32>
    %288 = arith.negf %287 : vector<8x128xf32>
    %289 = math.exp %288 : vector<8x128xf32>
    %cst_160 = arith.constant 1.000000e+00 : f32
    %290 = vector.broadcast %cst_160 : f32 to vector<8x128xf32>
    %291 = arith.addf %290, %289 : vector<8x128xf32>
    %292 = arith.divf %290, %291 : vector<8x128xf32>
    %293 = arith.mulf %278, %256 : vector<8x128xf32>
    %294 = arith.mulf %269, %283 : vector<8x128xf32>
    %295 = arith.addf %293, %294 : vector<8x128xf32>
    %296 = math.tanh %295 : vector<8x128xf32>
    %297 = arith.mulf %292, %296 : vector<8x128xf32>
    %c0_161 = arith.constant 0 : index
    %c0_162 = arith.constant 0 : index
    %298 = vector.load %arg8[%c0_161, %c0_162] : memref<8x128xf32, #tpu.memory_space<vmem>>, vector<8x128xf32>
    tpu.vector_store %arg8[%c0_161, %c0_162], %297 {strides = array<i32>} : memref<8x128xf32, #tpu.memory_space<vmem>>, vector<8x128xf32>,
    %c0_163 = arith.constant 0 : index
    %c0_164 = arith.constant 0 : index
    %299 = vector.load %arg9[%c0_163, %c0_164] : memref<8x128xf32, #tpu.memory_space<vmem>>, vector<8x128xf32>
    tpu.vector_store %arg9[%c0_163, %c0_164], %295 {strides = array<i32>} : memref<8x128xf32, #tpu.memory_space<vmem>>, vector<8x128xf32>,
    %300 = arith.index_cast %c5_i32 : i32 to index
    %c0_165 = arith.constant 0 : index
    %c0_166 = arith.constant 0 : index
    %301 = vector.load %arg6[%300, %c0_165, %c0_166] : memref<8x8x128xf32, #tpu.memory_space<vmem>>, vector<1x8x128xf32>
    %302 = vector.shape_cast %301 : vector<1x8x128xf32> to vector<8x128xf32>
    %303 = vector.shape_cast %297 : vector<8x128xf32> to vector<1x8x128xf32>
    tpu.vector_store %arg6[%300, %c0_165, %c0_166], %303 {strides = array<i32>} : memref<8x8x128xf32, #tpu.memory_space<vmem>>, vector<1x8x128xf32>,
    %c6_i32 = arith.constant 6 : i32
    %c0_167 = arith.constant 0 : index
    %c0_168 = arith.constant 0 : index
    %304 = vector.load %arg8[%c0_167, %c0_168] : memref<8x128xf32, #tpu.memory_space<vmem>>, vector<8x128xf32>
    %c0_169 = arith.constant 0 : index
    %c0_170 = arith.constant 0 : index
    %305 = vector.load %arg9[%c0_169, %c0_170] : memref<8x128xf32, #tpu.memory_space<vmem>>, vector<8x128xf32>
    %c8_i32_171 = arith.constant 8 : i32
    %306 = arith.muli %c6_i32, %c8_i32_171 : i32
    %307 = tpu.assume_multiple %306, 8 : i32
    %308 = arith.index_cast %307 : i32 to index
    %c0_172 = arith.constant 0 : index
    %309 = vector.load %arg7[%308, %c0_172] : memref<64x512xf32, #tpu.memory_space<vmem>>, vector<8x512xf32>
    %310 = vector.extract_strided_slice %309 {offsets = [0, 0], sizes = [8, 128], strides = [1, 1]} : vector<8x512xf32> to vector<8x128xf32>
    %c0_173 = arith.constant 0 : index
    %c0_174 = arith.constant 0 : index
    %311 = vector.load %arg4[%c0_173, %c0_174] : memref<128x512xf32, #tpu.memory_space<vmem>>, vector<128x128xf32>
    %cst_175 = arith.constant dense<0.000000e+00> : vector<8x128xf32>
    %312 = tpu.matmul %304, %311, %cst_175 {dimension_numbers = #tpu.dot_dimension_numbers<[1], [0], [0], [1], [0, 0, 1, 1], [], []>} : vector<8x128xf32>, vector<128x128xf32>, vector<8x128xf32> -> vector<8x128xf32>
    %313 = arith.addf %310, %312 : vector<8x128xf32>
    %314 = arith.negf %313 : vector<8x128xf32>
    %315 = math.exp %314 : vector<8x128xf32>
    %cst_176 = arith.constant 1.000000e+00 : f32
    %316 = vector.broadcast %cst_176 : f32 to vector<8x128xf32>
    %317 = arith.addf %316, %315 : vector<8x128xf32>
    %318 = arith.divf %316, %317 : vector<8x128xf32>
    %319 = vector.extract_strided_slice %309 {offsets = [0, 128], sizes = [8, 128], strides = [1, 1]} : vector<8x512xf32> to vector<8x128xf32>
    %c0_177 = arith.constant 0 : index
    %c128_178 = arith.constant 128 : index
    %320 = vector.load %arg4[%c0_177, %c128_178] : memref<128x512xf32, #tpu.memory_space<vmem>>, vector<128x128xf32>
    %cst_179 = arith.constant dense<0.000000e+00> : vector<8x128xf32>
    %321 = tpu.matmul %304, %320, %cst_179 {dimension_numbers = #tpu.dot_dimension_numbers<[1], [0], [0], [1], [0, 0, 1, 1], [], []>} : vector<8x128xf32>, vector<128x128xf32>, vector<8x128xf32> -> vector<8x128xf32>
    %322 = arith.addf %319, %321 : vector<8x128xf32>
    %323 = arith.negf %322 : vector<8x128xf32>
    %324 = math.exp %323 : vector<8x128xf32>
    %cst_180 = arith.constant 1.000000e+00 : f32
    %325 = vector.broadcast %cst_180 : f32 to vector<8x128xf32>
    %326 = arith.addf %325, %324 : vector<8x128xf32>
    %327 = arith.divf %325, %326 : vector<8x128xf32>
    %328 = vector.extract_strided_slice %309 {offsets = [0, 256], sizes = [8, 128], strides = [1, 1]} : vector<8x512xf32> to vector<8x128xf32>
    %c0_181 = arith.constant 0 : index
    %c256_182 = arith.constant 256 : index
    %329 = vector.load %arg4[%c0_181, %c256_182] : memref<128x512xf32, #tpu.memory_space<vmem>>, vector<128x128xf32>
    %cst_183 = arith.constant dense<0.000000e+00> : vector<8x128xf32>
    %330 = tpu.matmul %304, %329, %cst_183 {dimension_numbers = #tpu.dot_dimension_numbers<[1], [0], [0], [1], [0, 0, 1, 1], [], []>} : vector<8x128xf32>, vector<128x128xf32>, vector<8x128xf32> -> vector<8x128xf32>
    %331 = arith.addf %328, %330 : vector<8x128xf32>
    %332 = math.tanh %331 : vector<8x128xf32>
    %333 = vector.extract_strided_slice %309 {offsets = [0, 384], sizes = [8, 128], strides = [1, 1]} : vector<8x512xf32> to vector<8x128xf32>
    %c0_184 = arith.constant 0 : index
    %c384_185 = arith.constant 384 : index
    %334 = vector.load %arg4[%c0_184, %c384_185] : memref<128x512xf32, #tpu.memory_space<vmem>>, vector<128x128xf32>
    %cst_186 = arith.constant dense<0.000000e+00> : vector<8x128xf32>
    %335 = tpu.matmul %304, %334, %cst_186 {dimension_numbers = #tpu.dot_dimension_numbers<[1], [0], [0], [1], [0, 0, 1, 1], [], []>} : vector<8x128xf32>, vector<128x128xf32>, vector<8x128xf32> -> vector<8x128xf32>
    %336 = arith.addf %333, %335 : vector<8x128xf32>
    %337 = arith.negf %336 : vector<8x128xf32>
    %338 = math.exp %337 : vector<8x128xf32>
    %cst_187 = arith.constant 1.000000e+00 : f32
    %339 = vector.broadcast %cst_187 : f32 to vector<8x128xf32>
    %340 = arith.addf %339, %338 : vector<8x128xf32>
    %341 = arith.divf %339, %340 : vector<8x128xf32>
    %342 = arith.mulf %327, %305 : vector<8x128xf32>
    %343 = arith.mulf %318, %332 : vector<8x128xf32>
    %344 = arith.addf %342, %343 : vector<8x128xf32>
    %345 = math.tanh %344 : vector<8x128xf32>
    %346 = arith.mulf %341, %345 : vector<8x128xf32>
    %c0_188 = arith.constant 0 : index
    %c0_189 = arith.constant 0 : index
    %347 = vector.load %arg8[%c0_188, %c0_189] : memref<8x128xf32, #tpu.memory_space<vmem>>, vector<8x128xf32>
    tpu.vector_store %arg8[%c0_188, %c0_189], %346 {strides = array<i32>} : memref<8x128xf32, #tpu.memory_space<vmem>>, vector<8x128xf32>,
    %c0_190 = arith.constant 0 : index
    %c0_191 = arith.constant 0 : index
    %348 = vector.load %arg9[%c0_190, %c0_191] : memref<8x128xf32, #tpu.memory_space<vmem>>, vector<8x128xf32>
    tpu.vector_store %arg9[%c0_190, %c0_191], %344 {strides = array<i32>} : memref<8x128xf32, #tpu.memory_space<vmem>>, vector<8x128xf32>,
    %349 = arith.index_cast %c6_i32 : i32 to index
    %c0_192 = arith.constant 0 : index
    %c0_193 = arith.constant 0 : index
    %350 = vector.load %arg6[%349, %c0_192, %c0_193] : memref<8x8x128xf32, #tpu.memory_space<vmem>>, vector<1x8x128xf32>
    %351 = vector.shape_cast %350 : vector<1x8x128xf32> to vector<8x128xf32>
    %352 = vector.shape_cast %346 : vector<8x128xf32> to vector<1x8x128xf32>
    tpu.vector_store %arg6[%349, %c0_192, %c0_193], %352 {strides = array<i32>} : memref<8x8x128xf32, #tpu.memory_space<vmem>>, vector<1x8x128xf32>,
    %c7_i32 = arith.constant 7 : i32
    %c0_194 = arith.constant 0 : index
    %c0_195 = arith.constant 0 : index
    %353 = vector.load %arg8[%c0_194, %c0_195] : memref<8x128xf32, #tpu.memory_space<vmem>>, vector<8x128xf32>
    %c0_196 = arith.constant 0 : index
    %c0_197 = arith.constant 0 : index
    %354 = vector.load %arg9[%c0_196, %c0_197] : memref<8x128xf32, #tpu.memory_space<vmem>>, vector<8x128xf32>
    %c8_i32_198 = arith.constant 8 : i32
    %355 = arith.muli %c7_i32, %c8_i32_198 : i32
    %356 = tpu.assume_multiple %355, 8 : i32
    %357 = arith.index_cast %356 : i32 to index
    %c0_199 = arith.constant 0 : index
    %358 = vector.load %arg7[%357, %c0_199] : memref<64x512xf32, #tpu.memory_space<vmem>>, vector<8x512xf32>
    %359 = vector.extract_strided_slice %358 {offsets = [0, 0], sizes = [8, 128], strides = [1, 1]} : vector<8x512xf32> to vector<8x128xf32>
    %c0_200 = arith.constant 0 : index
    %c0_201 = arith.constant 0 : index
    %360 = vector.load %arg4[%c0_200, %c0_201] : memref<128x512xf32, #tpu.memory_space<vmem>>, vector<128x128xf32>
    %cst_202 = arith.constant dense<0.000000e+00> : vector<8x128xf32>
    %361 = tpu.matmul %353, %360, %cst_202 {dimension_numbers = #tpu.dot_dimension_numbers<[1], [0], [0], [1], [0, 0, 1, 1], [], []>} : vector<8x128xf32>, vector<128x128xf32>, vector<8x128xf32> -> vector<8x128xf32>
    %362 = arith.addf %359, %361 : vector<8x128xf32>
    %363 = arith.negf %362 : vector<8x128xf32>
    %364 = math.exp %363 : vector<8x128xf32>
    %cst_203 = arith.constant 1.000000e+00 : f32
    %365 = vector.broadcast %cst_203 : f32 to vector<8x128xf32>
    %366 = arith.addf %365, %364 : vector<8x128xf32>
    %367 = arith.divf %365, %366 : vector<8x128xf32>
    %368 = vector.extract_strided_slice %358 {offsets = [0, 128], sizes = [8, 128], strides = [1, 1]} : vector<8x512xf32> to vector<8x128xf32>
    %c0_204 = arith.constant 0 : index
    %c128_205 = arith.constant 128 : index
    %369 = vector.load %arg4[%c0_204, %c128_205] : memref<128x512xf32, #tpu.memory_space<vmem>>, vector<128x128xf32>
    %cst_206 = arith.constant dense<0.000000e+00> : vector<8x128xf32>
    %370 = tpu.matmul %353, %369, %cst_206 {dimension_numbers = #tpu.dot_dimension_numbers<[1], [0], [0], [1], [0, 0, 1, 1], [], []>} : vector<8x128xf32>, vector<128x128xf32>, vector<8x128xf32> -> vector<8x128xf32>
    %371 = arith.addf %368, %370 : vector<8x128xf32>
    %372 = arith.negf %371 : vector<8x128xf32>
    %373 = math.exp %372 : vector<8x128xf32>
    %cst_207 = arith.constant 1.000000e+00 : f32
    %374 = vector.broadcast %cst_207 : f32 to vector<8x128xf32>
    %375 = arith.addf %374, %373 : vector<8x128xf32>
    %376 = arith.divf %374, %375 : vector<8x128xf32>
    %377 = vector.extract_strided_slice %358 {offsets = [0, 256], sizes = [8, 128], strides = [1, 1]} : vector<8x512xf32> to vector<8x128xf32>
    %c0_208 = arith.constant 0 : index
    %c256_209 = arith.constant 256 : index
    %378 = vector.load %arg4[%c0_208, %c256_209] : memref<128x512xf32, #tpu.memory_space<vmem>>, vector<128x128xf32>
    %cst_210 = arith.constant dense<0.000000e+00> : vector<8x128xf32>
    %379 = tpu.matmul %353, %378, %cst_210 {dimension_numbers = #tpu.dot_dimension_numbers<[1], [0], [0], [1], [0, 0, 1, 1], [], []>} : vector<8x128xf32>, vector<128x128xf32>, vector<8x128xf32> -> vector<8x128xf32>
    %380 = arith.addf %377, %379 : vector<8x128xf32>
    %381 = math.tanh %380 : vector<8x128xf32>
    %382 = vector.extract_strided_slice %358 {offsets = [0, 384], sizes = [8, 128], strides = [1, 1]} : vector<8x512xf32> to vector<8x128xf32>
    %c0_211 = arith.constant 0 : index
    %c384_212 = arith.constant 384 : index
    %383 = vector.load %arg4[%c0_211, %c384_212] : memref<128x512xf32, #tpu.memory_space<vmem>>, vector<128x128xf32>
    %cst_213 = arith.constant dense<0.000000e+00> : vector<8x128xf32>
    %384 = tpu.matmul %353, %383, %cst_213 {dimension_numbers = #tpu.dot_dimension_numbers<[1], [0], [0], [1], [0, 0, 1, 1], [], []>} : vector<8x128xf32>, vector<128x128xf32>, vector<8x128xf32> -> vector<8x128xf32>
    %385 = arith.addf %382, %384 : vector<8x128xf32>
    %386 = arith.negf %385 : vector<8x128xf32>
    %387 = math.exp %386 : vector<8x128xf32>
    %cst_214 = arith.constant 1.000000e+00 : f32
    %388 = vector.broadcast %cst_214 : f32 to vector<8x128xf32>
    %389 = arith.addf %388, %387 : vector<8x128xf32>
    %390 = arith.divf %388, %389 : vector<8x128xf32>
    %391 = arith.mulf %376, %354 : vector<8x128xf32>
    %392 = arith.mulf %367, %381 : vector<8x128xf32>
    %393 = arith.addf %391, %392 : vector<8x128xf32>
    %394 = math.tanh %393 : vector<8x128xf32>
    %395 = arith.mulf %390, %394 : vector<8x128xf32>
    %c0_215 = arith.constant 0 : index
    %c0_216 = arith.constant 0 : index
    %396 = vector.load %arg8[%c0_215, %c0_216] : memref<8x128xf32, #tpu.memory_space<vmem>>, vector<8x128xf32>
    tpu.vector_store %arg8[%c0_215, %c0_216], %395 {strides = array<i32>} : memref<8x128xf32, #tpu.memory_space<vmem>>, vector<8x128xf32>,
    %c0_217 = arith.constant 0 : index
    %c0_218 = arith.constant 0 : index
    %397 = vector.load %arg9[%c0_217, %c0_218] : memref<8x128xf32, #tpu.memory_space<vmem>>, vector<8x128xf32>
    tpu.vector_store %arg9[%c0_217, %c0_218], %393 {strides = array<i32>} : memref<8x128xf32, #tpu.memory_space<vmem>>, vector<8x128xf32>,
    %398 = arith.index_cast %c7_i32 : i32 to index
    %c0_219 = arith.constant 0 : index
    %c0_220 = arith.constant 0 : index
    %399 = vector.load %arg6[%398, %c0_219, %c0_220] : memref<8x8x128xf32, #tpu.memory_space<vmem>>, vector<1x8x128xf32>
    %400 = vector.shape_cast %399 : vector<1x8x128xf32> to vector<8x128xf32>
    %401 = vector.shape_cast %395 : vector<8x128xf32> to vector<1x8x128xf32>
    tpu.vector_store %arg6[%398, %c0_219, %c0_220], %401 {strides = array<i32>} : memref<8x8x128xf32, #tpu.memory_space<vmem>>, vector<1x8x128xf32>,
    %c8_i32_221 = arith.constant 8 : i32
    return
  }
  func.func @transform_0(%arg0: i32, %arg1: i32) -> (i32, i32) {
    %c0_i32 = arith.constant 0 : i32
    %c0_i32_0 = arith.constant 0 : i32
    return %arg1, %c0_i32 : i32, i32
  }
  func.func @transform_1(%arg0: i32, %arg1: i32) -> (i32, i32) {
    %c0_i32 = arith.constant 0 : i32
    %c0_i32_0 = arith.constant 0 : i32
    %c0_i32_1 = arith.constant 0 : i32
    return %c0_i32, %c0_i32_0 : i32, i32
  }
  func.func @transform_2(%arg0: i32, %arg1: i32) -> (i32, i32) {
    %c0_i32 = arith.constant 0 : i32
    %c0_i32_0 = arith.constant 0 : i32
    %c0_i32_1 = arith.constant 0 : i32
    return %c0_i32, %c0_i32_0 : i32, i32
  }
  func.func @transform_3(%arg0: i32, %arg1: i32) -> (i32, i32) {
    %c0_i32 = arith.constant 0 : i32
    %c0_i32_0 = arith.constant 0 : i32
    %c0_i32_1 = arith.constant 0 : i32
    return %c0_i32, %c0_i32_0 : i32, i32
  }
  func.func @transform_4(%arg0: i32, %arg1: i32) -> (i32, i32, i32) {
    %c0_i32 = arith.constant 0 : i32
    %c0_i32_0 = arith.constant 0 : i32
    return %arg1, %arg0, %c0_i32 : i32, i32, i32
  }
}

</mosaic_0001>

<bundles_post_ra>
// kernel: lstm_neural_net_forward.5
= control target key start
LH: loop header
LB: loop body
LE: loop exit
PB: predicated region body
PF: predicated region fallthrough
CT: control target
= control target key end

     0   :  { %s398_s1 = inlined_call_operand.vmem [shape: f32[128,128], index: 1, kind: input, shape index: {}]   ;;  %s399_s0 = inlined_call_operand.vmem [shape: f32[64,128], index: 0, kind: input, shape index: {}]   ;;  %s400_s2 = inlined_call_operand.vmem [shape: f32[1,128], index: 2, kind: input, shape index: {}]   ;;  %s401_s3 = inlined_call_operand.vmem [shape: f32[64,128], index: 3, kind: output, shape index: {}]  }
   0x1   :  { %v22_v0 = vld [vmem:[%s398_s1] sm:$0xff]  ;;  %v23_v1 = vld [vmem:[%s398_s1 + $0x8] sm:$0xff]  ;;  %v24_v2 = vld [vmem:[%s398_s1 + $0x10] sm:$0xff] }
   0x2   :  { %v231_v3 = vpack.c.bf16 %v23_v1, %v22_v0  ;;  %v25_v4 = vld [vmem:[%s398_s1 + $0x18] sm:$0xff]  ;;  %v26_v6 = vld [vmem:[%s398_s1 + $0x20] sm:$0xff]  ;;  %v27_v7 = vld [vmem:[%s398_s1 + $0x28] sm:$0xff] }
   0x3   :  { %v235_v5 = vpack.c.bf16 %v25_v4, %v24_v2  ;;  %v239_v8 = vpack.c.bf16 %v27_v7, %v26_v6  ;;  %v14_v9 = vld [vmem:[%s399_s0] sm:$0xff]  ;;  %v28_v11 = vld [vmem:[%s398_s1 + $0x30] sm:$0xff]  ;;  %v29_v12 = vld [vmem:[%s398_s1 + $0x38] sm:$0xff] }
   0x4   :  { %232 = vmatprep.subr.bf16.mxu0 %v231_v3  ;;  %263 = vmatprep.subr.bf16.mxu1 %v231_v3  ;;  %v18_v10 = vld [vmem:[%s399_s0 + $0x20] sm:$0xff]  ;;  %v243_v13 = vpack.c.bf16 %v29_v12, %v28_v11  ;;  %v31_v15 = vld [vmem:[%s398_s1 + $0x48] sm:$0xff]  ;;  %v32_v17 = vld [vmem:[%s398_s1 + $0x50] sm:$0xff] }
   0x5   :  { %234 = vmatpush3.bf16.msra.mxu0 %v231_v3  ;;  %271 = vmatpush3.bf16.msra.mxu1 %v231_v3  ;;  %v30_v14 = vld [vmem:[%s398_s1 + $0x40] sm:$0xff]  ;;  %v33_v18 = vld [vmem:[%s398_s1 + $0x58] sm:$0xff]  ;;  %v35_v21 = vld [vmem:[%s398_s1 + $0x68] sm:$0xff] }
   0x6   :  { %236 = vmatprep.subr.bf16.mxu0 %v235_v5  ;;  %264 = vmatprep.subr.bf16.mxu1 %v235_v5  ;;  %v247_v16 = vpack.c.bf16 %v31_v15, %v30_v14  ;;  %v251_v19 = vpack.c.bf16 %v33_v18, %v32_v17  ;;  %v34_v20 = vld [vmem:[%s398_s1 + $0x60] sm:$0xff]  ;;  %v36_v23 = vld [vmem:[%s398_s1 + $0x70] sm:$0xff]  ;;  %v37_v24 = vld [vmem:[%s398_s1 + $0x78] sm:$0xff] }
   0x7   :  { %219 = vmatprep.mubr.f32.mxu0 %v14_v9  ;;  %225 = vmatprep.mubr.f32.mxu1 %v18_v10  ;;  %v255_v22 = vpack.c.bf16 %v35_v21, %v34_v20  ;;  %v259_v25 = vpack.c.bf16 %v37_v24, %v36_v23  ;;  %v15_v26 = vld [vmem:[%s399_s0 + $0x8] sm:$0xff]  ;;  %v16_v28 = vld [vmem:[%s399_s0 + $0x10] sm:$0xff]  ;;  %v17_v30 = vld [vmem:[%s399_s0 + $0x18] sm:$0xff] }
   0x8   :  { %v19_v27 = vld [vmem:[%s399_s0 + $0x28] sm:$0xff]  ;;  %v20_v29 = vld [vmem:[%s399_s0 + $0x30] sm:$0xff]  ;;  %v21_v31 = vld [vmem:[%s399_s0 + $0x38] sm:$0xff] }
   0x9   :  { %238 = vmatpush3.bf16.msra.mxu0 %v235_v5  ;;  %272 = vmatpush3.bf16.msra.mxu1 %v235_v5  ;;  %v162_v32 = vld [vmem:[%s400_s2] ss:$0 sm:$0xff] }
   0xa   :  { %240 = vmatprep.subr.bf16.mxu0 %v239_v8  ;;  %265 = vmatprep.subr.bf16.mxu1 %v239_v8 }
   0xd   :  { %242 = vmatpush3.bf16.msra.mxu0 %v239_v8  ;;  %273 = vmatpush3.bf16.msra.mxu1 %v239_v8 }
   0xe   :  { %244 = vmatprep.subr.bf16.mxu0 %v243_v13  ;;  %266 = vmatprep.subr.bf16.mxu1 %v243_v13 }
  0x11   :  { %246 = vmatpush3.bf16.msra.mxu0 %v243_v13  ;;  %274 = vmatpush3.bf16.msra.mxu1 %v243_v13 }
  0x12   :  { %248 = vmatprep.subr.bf16.mxu0 %v247_v16  ;;  %267 = vmatprep.subr.bf16.mxu1 %v247_v16 }
  0x15   :  { %250 = vmatpush3.bf16.msra.mxu0 %v247_v16  ;;  %275 = vmatpush3.bf16.msra.mxu1 %v247_v16 }
  0x16   :  { %252 = vmatprep.subr.bf16.mxu0 %v251_v19  ;;  %268 = vmatprep.subr.bf16.mxu1 %v251_v19 }
  0x19   :  { %254 = vmatpush3.bf16.msra.mxu0 %v251_v19  ;;  %276 = vmatpush3.bf16.msra.mxu1 %v251_v19 }
  0x1a   :  { %256 = vmatprep.subr.bf16.mxu0 %v255_v22  ;;  %269 = vmatprep.subr.bf16.mxu1 %v255_v22 }
  0x1d   :  { %258 = vmatpush3.bf16.msra.mxu0 %v255_v22  ;;  %277 = vmatpush3.bf16.msra.mxu1 %v255_v22 }
  0x1e   :  { %260 = vmatprep.subr.bf16.mxu0 %v259_v25  ;;  %270 = vmatprep.subr.bf16.mxu1 %v259_v25 }
  0x21   :  { %262 = vmatpush3.bf16.msra.mxu0 %v259_v25  ;;  %278 = vmatpush3.bf16.msra.mxu1 %v259_v25 }
  0x24   :  { %220 = vmatmul.mubr.f32.vlgmr.msra.gmra.mrb[0].mxu0 %v15_v26  ;;  %226 = vmatmul.mubr.f32.vlgmr.msra.gmra.mrb[0].mxu1 %v19_v27 }
  0x25   :  { %222 = vmatprep.mubr.f32.mxu0 %v16_v28  ;;  %228 = vmatprep.mubr.f32.mxu1 %v20_v29 }
  0x28   :  { %223 = vmatmul.mubr.f32.gmra.mrb[2].mxu0 %v17_v30  ;;  %229 = vmatmul.mubr.f32.gmra.mrb[2].mxu1 %v21_v31 }
  0xf7   :  { %v221_v33 = vpop.f32.mrb[0].mxu0  ;;  %v227_v34 = vpop.f32.mrb[0].mxu1 }
  0xf8   :  { %v117_v35 = vadd.f32 %v221_v33, %v162_v32  ;;  %v137_v36 = vadd.f32 %v227_v34, %v162_v32  ;;  %v111_v37 = vpop.f32.mrb[1].mxu0  ;;  %v131_v38 = vpop.f32.mrb[1].mxu1 }
  0xf9   :  { %v112_v39 = vadd.f32 %v162_v32, %v111_v37  ;;  %v132_v40 = vadd.f32 %v162_v32, %v131_v38 }
  0xfa   :  { %151 = vst [vmem:[%s401_s3 + $0x8] sm:$0xff] %v117_v35  ;;  %155 = vst [vmem:[%s401_s3 + $0x28] sm:$0xff] %v137_v36 }
  0xfb   :  { %150 = vst [vmem:[%s401_s3] sm:$0xff] %v112_v39  ;;  %154 = vst [vmem:[%s401_s3 + $0x20] sm:$0xff] %v132_v40  ;;  %v224_v41 = vpop.f32.mrb[2].mxu0  ;;  %v230_v42 = vpop.f32.mrb[2].mxu1 }
  0xfc   :  { %v127_v43 = vadd.f32 %v224_v41, %v162_v32  ;;  %v147_v44 = vadd.f32 %v230_v42, %v162_v32  ;;  %v121_v45 = vpop.f32.mrb[3].mxu0  ;;  %v141_v46 = vpop.f32.mrb[3].mxu1 }
  0xfd   :  { %v122_v47 = vadd.f32 %v162_v32, %v121_v45  ;;  %v142_v48 = vadd.f32 %v162_v32, %v141_v46 }
  0xfe   :  { %153 = vst [vmem:[%s401_s3 + $0x18] sm:$0xff] %v127_v43  ;;  %157 = vst [vmem:[%s401_s3 + $0x38] sm:$0xff] %v147_v44 }
  0xff   :  { %152 = vst [vmem:[%s401_s3 + $0x10] sm:$0xff] %v122_v47  ;;  %156 = vst [vmem:[%s401_s3 + $0x30] sm:$0xff] %v142_v48 }

// kernel: lstm_neural_net_forward.3
= control target key start
LH: loop header
LB: loop body
LE: loop exit
PB: predicated region body
PF: predicated region fallthrough
CT: control target
= control target key end

     0   :  { %9 = vsyncpa [#allocation6], 0  ;;  %s6082_s15 = smov [#allocation5]   ;;  %s7150_s0 = inlined_call_operand.vmem [shape: f32[64,8], index: 0, kind: input, shape index: {}]   ;;  %s7151_s1 = inlined_call_operand.vmem [shape: f32[8,512], index: 1, kind: input, shape index: {}]   ;;  %s7152_s2 = inlined_call_operand.hbm [shape: f32[128,512], index: 2, kind: input, shape index: {}]   ;;  %s7153_s3 = inlined_call_operand.vmem [shape: f32[1,512], index: 3, kind: input, shape index: {}]   ;;  %s7154_s4 = inlined_call_operand.vmem [shape: f32[8,8,128], index: 4, kind: output, shape index: {}]  }
   0x1   :  { %s19_s16 = sshll.u32 %s6082_s15, 4  ;;  %s6058_s19 = scalar_lea.hbm %s7152_s2, 8192  ;;  %s20_s16 = int_to_ptr.vmem [resolvable:$true] %s19_s16 }
   0x2   :  { %p6059_p0 = scmp.ne.s32.totalorder %s7152_s2, %s6058_s19  ;;  %p6062_p1 = scmp.lt.u32.totalorder %s6058_s19, %s7152_s2 }
   0x4   :  { %p6064_p2 = pnand %p6062_p1, %p6059_p0 }
   0x6   :  { %6067 = shalt.err (!%p6064_p2)
}
   0x7   :  { %s6068_s24 = scalar_lea.vmem %s20_s16, 8192  ;;  %p6073_p4 = scmp.lt.s32.totalorder %s20_s16, %s20_s16 }
   0x8   :  { %p6069_p3 = scmp.ne.s32.totalorder %s20_s16, %s6068_s24  ;;  %p6074_p5 = scmp.lt.s32.totalorder %s6068_s24, %s6068_s24 }
   0xa   :  { %p6075_p6 = por %p6074_p5, %p6073_p4 }
   0xc   :  { %p6076_p7 = pnand %p6075_p6, %p6069_p3 }
   0xe   :  { %6079 = shalt.err (!%p6076_p7)
}
   0xf   :  { %s6083_s25 = smov 512   ;;  %s6084_s26 = smov 32  }
  0x10   :  { %25 = dma.hbm_to_vmem [thread:$0]  %s7152_s2, 8192, %s20_s16, [#allocation6], %s6083_s25, %s6083_s25, %s6084_s26  }
  0x11   :  { %6080 = dma.done.wait [#allocation6], 8192  }
  0x12   :  { %6081 = vsyncadd [#allocation6], 4294959104  ;;  %v7155_v0 = vmov 0.0   ;;  %v46_v1 = vld [vmem:[%s7151_s1 + $0x8] sm:$0xff]  ;;  %v48_v2 = vld [vmem:[%s7151_s1 + $0x18] sm:$0xff]  ;;  %vm71_vm0 = vcmask 64512  }
  0x13   :  { %160 = vmatprep.mubr.f32.mxu0 %v7155_v0  ;;  %273 = vmatprep.mubr.f32.mxu1 %v7155_v0  ;;  %v45_v3 = vld [vmem:[%s7151_s1] sm:$0xff]  ;;  %v47_v4 = vld [vmem:[%s7151_s1 + $0x10] sm:$0xff]  ;;  %v456_v8 = vld [vmem:[#allocation5 + $0x8] sm:$0xff]  ;;  %v7157_v14 = vmov 0.0|0.0   ;;  %vm6087_vm1 = vmmov 0  }
  0x14   :  { %96 = vmatprep.subr.mxu0 %v46_v1  ;;  %209 = vmatprep.subr.mxu1 %v48_v2  ;;  %v37_v5 = vld [vmem:[%s7150_s0] sm:$0xff]  ;;  %v457_v9 = vld [vmem:[#allocation5 + $0x28] sm:$0xff]  ;;  %v39_v24 = vld [vmem:[%s7150_s0 + $0x10] sm:$0xff] }
  0x15   :  { %v363_v6 = vld [vmem:[#allocation5] sm:$0xff]  ;;  %97 = vmatpush1.msra.mxu0 %v45_v3  ;;  %210 = vmatpush1.msra.mxu1 %v47_v4  ;;  %v6146_v11 = vpack.c.bf16 %v457_v9, %v456_v8  ;;  %v38_v15 = vld [vmem:[%s7150_s0 + $0x8] sm:$0xff]  ;;  %v40_v31 = vld [vmem:[%s7150_s0 + $0x18] sm:$0xff] }
  0x16   :  { %v364_v7 = vld [vmem:[#allocation5 + $0x20] sm:$0xff]  ;;  %3445 = vmatmul.mubr.msk.f32.vlgmr.msra.gmra.mrb[0].mxu0 %vm71_vm0, %v37_v5  ;;  %3453 = vmatmul.mubr.msk.f32.vlgmr.msra.gmra.mrb[0].mxu1 %vm71_vm0, %v37_v5  ;;  %v458_v16 = vld [vmem:[#allocation5 + $0x48] sm:$0xff]  ;;  %v43_v52 = vld [vmem:[%s7150_s0 + $0x30] sm:$0xff] }
  0x17   :  { %v6144_v10 = vpack.c.bf16 %v364_v7, %v363_v6  ;;  %v365_v12 = vld [vmem:[#allocation5 + $0x40] sm:$0xff]  ;;  %5156 = vmatprep.subr.bf16.mxu0 %v7157_v14  ;;  %5180 = vmatprep.subr.bf16.mxu1 %v7157_v14  ;;  %v459_v17 = vld [vmem:[#allocation5 + $0x68] sm:$0xff]  ;;  %v44_v59 = vld [vmem:[%s7150_s0 + $0x38] sm:$0xff] }
  0x18   :  { %v366_v13 = vld [vmem:[#allocation5 + $0x60] sm:$0xff]  ;;  %5182 = vmatpush3.bf16.msra.mxu1 %v6146_v11  ;;  %v6157_v19 = vpack.c.bf16 %v459_v17, %v458_v16  ;;  %166 = vmatprep.mubr.f32.mxu0 %v7155_v0  ;;  %v460_v22 = vld [vmem:[#allocation5 + $0x88] sm:$0xff]  ;;  %v549_v62 = vld [vmem:[#allocation5 + $0x10] sm:$0xff] }
  0x19   :  { %5158 = vmatpush3.bf16.msra.mxu0 %v6144_v10  ;;  %v6155_v18 = vpack.c.bf16 %v366_v13, %v365_v12  ;;  %v367_v20 = vld [vmem:[#allocation5 + $0x80] sm:$0xff]  ;;  %279 = vmatprep.mubr.f32.mxu1 %v7155_v0  ;;  %v461_v23 = vld [vmem:[#allocation5 + $0xa8] sm:$0xff]  ;;  %v550_v63 = vld [vmem:[#allocation5 + $0x30] sm:$0xff] }
  0x1a   :  { %v368_v21 = vld [vmem:[#allocation5 + $0xa0] sm:$0xff]  ;;  %3446 = vmatmul.mubr.msk.f32.gmra.mrb[2].mxu0 %vm71_vm0, %v38_v15  ;;  %3454 = vmatmul.mubr.msk.f32.gmra.mrb[2].mxu1 %vm71_vm0, %v38_v15  ;;  %v6172_v26 = vpack.c.bf16 %v461_v23, %v460_v22  ;;  %v462_v29 = vld [vmem:[#allocation5 + $0xc8] sm:$0xff]  ;;  %v637_v1 = vld [vmem:[#allocation5 + $0x18] sm:$0xff]  ;;  %v6257_v3 = vpack.c.bf16 %v550_v63, %v549_v62 }
  0x1b   :  { %5159 = vmatprep.subr.bf16.mxu0 %v7157_v14  ;;  %5183 = vmatprep.subr.bf16.mxu1 %v7157_v14  ;;  %v6170_v25 = vpack.c.bf16 %v368_v21, %v367_v20  ;;  %v369_v27 = vld [vmem:[#allocation5 + $0xc0] sm:$0xff]  ;;  %v463_v30 = vld [vmem:[#allocation5 + $0xe8] sm:$0xff]  ;;  %v638_v2 = vld [vmem:[#allocation5 + $0x38] sm:$0xff] }
  0x1c   :  { %5185 = vmatpush3.bf16.msra.mxu1 %v6157_v19  ;;  %172 = vmatprep.mubr.f32.mxu0 %v7155_v0  ;;  %v370_v28 = vld [vmem:[#allocation5 + $0xe0] sm:$0xff]  ;;  %v6187_v33 = vpack.c.bf16 %v463_v30, %v462_v29  ;;  %v464_v36 = vld [vmem:[#allocation5 + $0x108] sm:$0xff]  ;;  %v6259_v4 = vpack.c.bf16 %v638_v2, %v637_v1  ;;  %v551_v5 = vld [vmem:[#allocation5 + $0x50] sm:$0xff]  ;;  %v51_v1 = vlaneseq }
  0x1d   :  { %5161 = vmatpush3.bf16.msra.mxu0 %v6155_v18  ;;  %285 = vmatprep.mubr.f32.mxu1 %v7155_v0  ;;  %v6185_v32 = vpack.c.bf16 %v370_v28, %v369_v27  ;;  %v371_v34 = vld [vmem:[#allocation5 + $0x100] sm:$0xff]  ;;  %v465_v37 = vld [vmem:[#allocation5 + $0x128] sm:$0xff]  ;;  %v552_v6 = vld [vmem:[#allocation5 + $0x70] sm:$0xff] }
  0x1e   :  { %3447 = vmatmul.mubr.msk.f32.gmra.mrb[4].mxu0 %vm71_vm0, %v39_v24  ;;  %3455 = vmatmul.mubr.msk.f32.gmra.mrb[4].mxu1 %vm71_vm0, %v39_v24  ;;  %v372_v35 = vld [vmem:[#allocation5 + $0x120] sm:$0xff]  ;;  %v6202_v40 = vpack.c.bf16 %v465_v37, %v464_v36  ;;  %v466_v43 = vld [vmem:[#allocation5 + $0x148] sm:$0xff]  ;;  %v639_v7 = vld [vmem:[#allocation5 + $0x58] sm:$0xff]  ;;  %v6271_v9 = vpack.c.bf16 %v552_v6, %v551_v5  ;;  %v52_v2 = vshrl.u32 %v51_v1, 7 }
  0x1f   :  { %5162 = vmatprep.subr.bf16.mxu0 %v7157_v14  ;;  %5186 = vmatprep.subr.bf16.mxu1 %v7157_v14  ;;  %v41_v38 = vld [vmem:[%s7150_s0 + $0x20] sm:$0xff]  ;;  %v6200_v39 = vpack.c.bf16 %v372_v35, %v371_v34  ;;  %v467_v44 = vld [vmem:[#allocation5 + $0x168] sm:$0xff]  ;;  %v640_v8 = vld [vmem:[#allocation5 + $0x78] sm:$0xff] }
  0x20   :  { %5188 = vmatpush3.bf16.msra.mxu1 %v6172_v26  ;;  %178 = vmatprep.mubr.f32.mxu0 %v7155_v0  ;;  %v373_v41 = vld [vmem:[#allocation5 + $0x140] sm:$0xff]  ;;  %v42_v45 = vld [vmem:[%s7150_s0 + $0x28] sm:$0xff]  ;;  %v6217_v47 = vpack.c.bf16 %v467_v44, %v466_v43  ;;  %v6273_v12 = vpack.c.bf16 %v640_v8, %v639_v7  ;;  %v553_v13 = vld [vmem:[#allocation5 + $0x90] sm:$0xff]  ;;  %v53_v5 = vsub.s32 0, %v52_v2  ;;  %v61_v6 = vsub.s32 2, %v52_v2 }
  0x21   :  { %5164 = vmatpush3.bf16.msra.mxu0 %v6170_v25  ;;  %291 = vmatprep.mubr.f32.mxu1 %v7155_v0  ;;  %v374_v42 = vld [vmem:[#allocation5 + $0x160] sm:$0xff]  ;;  %v468_v50 = vld [vmem:[#allocation5 + $0x188] sm:$0xff]  ;;  %v554_v15 = vld [vmem:[#allocation5 + $0xb0] sm:$0xff] }
  0x22   :  { %3448 = vmatmul.mubr.msk.f32.gmra.mrb[6].mxu0 %vm71_vm0, %v40_v31  ;;  %3456 = vmatmul.mubr.msk.f32.gmra.mrb[6].mxu1 %vm71_vm0, %v40_v31  ;;  %v6215_v46 = vpack.c.bf16 %v374_v42, %v373_v41  ;;  %v375_v48 = vld [vmem:[#allocation5 + $0x180] sm:$0xff]  ;;  %v469_v51 = vld [vmem:[#allocation5 + $0x1a8] sm:$0xff]  ;;  %v641_v16 = vld [vmem:[#allocation5 + $0x98] sm:$0xff]  ;;  %v6283_v20 = vpack.c.bf16 %v554_v15, %v553_v13  ;;  %v57_v15 = vsub.s32 1, %v52_v2 }
  0x23   :  { %5165 = vmatprep.subr.bf16.mxu0 %v7157_v14  ;;  %5189 = vmatprep.subr.bf16.mxu1 %v7157_v14  ;;  %v376_v49 = vld [vmem:[#allocation5 + $0x1a0] sm:$0xff]  ;;  %v6232_v54 = vpack.c.bf16 %v469_v51, %v468_v50  ;;  %v470_v57 = vld [vmem:[#allocation5 + $0x1c8] sm:$0xff]  ;;  %v642_v17 = vld [vmem:[#allocation5 + $0xb8] sm:$0xff] }
  0x24   :  { %5191 = vmatpush3.bf16.msra.mxu1 %v6187_v33  ;;  %184 = vmatprep.mubr.f32.mxu0 %v7155_v0  ;;  %v6230_v53 = vpack.c.bf16 %v376_v49, %v375_v48  ;;  %v377_v55 = vld [vmem:[#allocation5 + $0x1c0] sm:$0xff]  ;;  %v471_v58 = vld [vmem:[#allocation5 + $0x1e8] sm:$0xff]  ;;  %v6285_v21 = vpack.c.bf16 %v642_v17, %v641_v16  ;;  %v555_v22 = vld [vmem:[#allocation5 + $0xd0] sm:$0xff]  ;;  %v65_v16 = vsub.s32 3, %v52_v2 }
  0x25   :  { %5167 = vmatpush3.bf16.msra.mxu0 %v6185_v32  ;;  %297 = vmatprep.mubr.f32.mxu1 %v7155_v0  ;;  %v378_v56 = vld [vmem:[#allocation5 + $0x1e0] sm:$0xff]  ;;  %v6247_v61 = vpack.c.bf16 %v471_v58, %v470_v57  ;;  %v556_v23 = vld [vmem:[#allocation5 + $0xf0] sm:$0xff]  ;;  %v643_v24 = vld [vmem:[#allocation5 + $0xd8] sm:$0xff] }
  0x26   :  { %3449 = vmatmul.mubr.msk.f32.gmra.mrb[8].mxu0 %vm71_vm0, %v41_v38  ;;  %3457 = vmatmul.mubr.msk.f32.gmra.mrb[8].mxu1 %vm71_vm0, %v41_v38  ;;  %v6245_v60 = vpack.c.bf16 %v378_v56, %v377_v55  ;;  %v644_v27 = vld [vmem:[#allocation5 + $0xf8] sm:$0xff]  ;;  %v6291_v28 = vpack.c.bf16 %v556_v23, %v555_v22  ;;  %v557_v30 = vld [vmem:[#allocation5 + $0x110] sm:$0xff]  ;;  %v49_v7 = vld [vmem:[%s7153_s3] sm:$0xf] }
  0x27   :  { %5168 = vmatprep.subr.bf16.mxu0 %v7157_v14  ;;  %5192 = vmatprep.subr.bf16.mxu1 %v7157_v14  ;;  %v6293_v29 = vpack.c.bf16 %v644_v27, %v643_v24  ;;  %v558_v31 = vld [vmem:[#allocation5 + $0x130] sm:$0xff]  ;;  %v645_v34 = vld [vmem:[#allocation5 + $0x118] sm:$0xff]  ;;  %v54_v23 = vrot.slane %v49_v7, %v53_v5  ;;  %v6382_v24 = vrot.slane %v49_v7, %v61_v6 }
  0x28   :  { %5194 = vmatpush3.bf16.msra.mxu1 %v6202_v40  ;;  %190 = vmatprep.mubr.f32.mxu0 %v7155_v0  ;;  %v646_v35 = vld [vmem:[#allocation5 + $0x138] sm:$0xff]  ;;  %v6299_v36 = vpack.c.bf16 %v558_v31, %v557_v30  ;;  %v559_v38 = vld [vmem:[#allocation5 + $0x150] sm:$0xff]  ;;  %v58_v27 = vrot.slane %v49_v7, %v57_v15  ;;  %v6384_v30 = vrot.slane %v49_v7, %v65_v16 }
  0x29   :  { %5170 = vmatpush3.bf16.msra.mxu0 %v6200_v39  ;;  %303 = vmatprep.mubr.f32.mxu1 %v7155_v0  ;;  %v6301_v37 = vpack.c.bf16 %v646_v35, %v645_v34  ;;  %v560_v41 = vld [vmem:[#allocation5 + $0x170] sm:$0xff]  ;;  %v647_v42 = vld [vmem:[#allocation5 + $0x158] sm:$0xff] }
  0x2a   :  { %3450 = vmatmul.mubr.msk.f32.gmra.mrb[10].mxu0 %vm71_vm0, %v42_v45  ;;  %3458 = vmatmul.mubr.msk.f32.gmra.mrb[10].mxu1 %vm71_vm0, %v42_v45  ;;  %v648_v43 = vld [vmem:[#allocation5 + $0x178] sm:$0xff]  ;;  %v6307_v44 = vpack.c.bf16 %v560_v41, %v559_v38  ;;  %v561_v48 = vld [vmem:[#allocation5 + $0x190] sm:$0xff] }
  0x2b   :  { %5171 = vmatprep.subr.bf16.mxu0 %v7157_v14  ;;  %5195 = vmatprep.subr.bf16.mxu1 %v7157_v14  ;;  %v6309_v45 = vpack.c.bf16 %v648_v43, %v647_v42  ;;  %v562_v49 = vld [vmem:[#allocation5 + $0x1b0] sm:$0xff]  ;;  %v649_v50 = vld [vmem:[#allocation5 + $0x198] sm:$0xff] }
  0x2c   :  { %5197 = vmatpush3.bf16.msra.mxu1 %v6217_v47  ;;  %196 = vmatprep.mubr.f32.mxu0 %v7155_v0  ;;  %v650_v51 = vld [vmem:[#allocation5 + $0x1b8] sm:$0xff]  ;;  %v563_v56 = vld [vmem:[#allocation5 + $0x1d0] sm:$0xff] }
  0x2d   :  { %5173 = vmatpush3.bf16.msra.mxu0 %v6215_v46  ;;  %309 = vmatprep.mubr.f32.mxu1 %v7155_v0  ;;  %v6317_v55 = vpack.c.bf16 %v650_v51, %v649_v50  ;;  %v564_v57 = vld [vmem:[#allocation5 + $0x1f0] sm:$0xff]  ;;  %v651_v58 = vld [vmem:[#allocation5 + $0x1d8] sm:$0xff] }
  0x2e   :  { %3451 = vmatmul.mubr.msk.f32.gmra.mrb[12].mxu0 %vm71_vm0, %v43_v52  ;;  %3459 = vmatmul.mubr.msk.f32.gmra.mrb[12].mxu1 %vm71_vm0, %v43_v52  ;;  %v6315_v52 = vpack.c.bf16 %v562_v49, %v561_v48  ;;  %v6323_v62 = vpack.c.bf16 %v564_v57, %v563_v56 }
  0x2f   :  { %5174 = vmatprep.subr.bf16.mxu0 %v7157_v14  ;;  %5198 = vmatprep.subr.bf16.mxu1 %v7157_v14 }
  0x30   :  { %5200 = vmatpush3.bf16.msra.mxu1 %v6232_v54  ;;  %202 = vmatprep.mubr.f32.mxu0 %v7155_v0 }
  0x31   :  { %5176 = vmatpush3.bf16.msra.mxu0 %v6230_v53  ;;  %315 = vmatprep.mubr.f32.mxu1 %v7155_v0 }
  0x32   :  { %3452 = vmatmul.mubr.msk.f32.gmra.mrb[14].mxu0 %vm71_vm0, %v44_v59  ;;  %3460 = vmatmul.mubr.msk.f32.gmra.mrb[14].mxu1 %vm71_vm0, %v44_v59  ;;  %v652_v59 = vld [vmem:[#allocation5 + $0x1f8] sm:$0xff] }
  0x33   :  { %5177 = vmatprep.subr.bf16.mxu0 %v7157_v14  ;;  %5201 = vmatprep.subr.bf16.mxu1 %v7157_v14  ;;  %v6325_v63 = vpack.c.bf16 %v652_v59, %v651_v58 }
  0x34   :  { %5203 = vmatpush3.bf16.msra.mxu1 %v6247_v61  ;;  %4068 = vmatprep.mubr.msk.f32.mxu0 %vm6087_vm1, %v7155_v0 }
  0x35   :  { %5179 = vmatpush3.bf16.msra.mxu0 %v6245_v60  ;;  %4103 = vmatprep.mubr.msk.f32.mxu1 %vm6087_vm1, %v7155_v0 }
  0x36   :  { %5204 = vmatprep.subr.bf16.mxu0 %v7157_v14  ;;  %5228 = vmatprep.subr.bf16.mxu1 %v7157_v14 }
  0x37   :  { %4104 = vmatmul.mubr.f32.vlgmr.msra.gmra.mrb[16].mxu1 %v7155_v0 }
  0x38   :  { %4069 = vmatmul.mubr.f32.vlgmr.msra.gmra.mrb[16].mxu0 %v7155_v0  ;;  %5230 = vmatpush3.bf16.msra.mxu1 %v6259_v4 }
  0x39   :  { %5206 = vmatpush3.bf16.msra.mxu0 %v6257_v3  ;;  %5231 = vmatprep.subr.bf16.mxu1 %v7157_v14 }
  0x3a   :  { %5207 = vmatprep.subr.bf16.mxu0 %v7157_v14  ;;  %4138 = vmatprep.mubr.msk.f32.mxu0 %vm6087_vm1, %v7155_v0 }
  0x3b   :  { %4173 = vmatprep.mubr.msk.f32.mxu1 %vm6087_vm1, %v7155_v0 }
  0x3c   :  { %5233 = vmatpush3.bf16.msra.mxu1 %v6273_v12 }
  0x3d   :  { %5209 = vmatpush3.bf16.msra.mxu0 %v6271_v9  ;;  %5234 = vmatprep.subr.bf16.mxu1 %v7157_v14 }
  0x3e   :  { %5210 = vmatprep.subr.bf16.mxu0 %v7157_v14 }
  0x40   :  { %5236 = vmatpush3.bf16.msra.mxu1 %v6285_v21 }
  0x41   :  { %5212 = vmatpush3.bf16.msra.mxu0 %v6283_v20  ;;  %5237 = vmatprep.subr.bf16.mxu1 %v7157_v14 }
  0x42   :  { %5213 = vmatprep.subr.bf16.mxu0 %v7157_v14 }
  0x44   :  { %5239 = vmatpush3.bf16.msra.mxu1 %v6293_v29 }
  0x45   :  { %5215 = vmatpush3.bf16.msra.mxu0 %v6291_v28  ;;  %5240 = vmatprep.subr.bf16.mxu1 %v7157_v14 }
  0x46   :  { %5216 = vmatprep.subr.bf16.mxu0 %v7157_v14 }
  0x48   :  { %5242 = vmatpush3.bf16.msra.mxu1 %v6301_v37 }
  0x49   :  { %5218 = vmatpush3.bf16.msra.mxu0 %v6299_v36  ;;  %5243 = vmatprep.subr.bf16.mxu1 %v7157_v14 }
  0x4a   :  { %5219 = vmatprep.subr.bf16.mxu0 %v7157_v14 }
  0x4c   :  { %5245 = vmatpush3.bf16.msra.mxu1 %v6309_v45 }
  0x4d   :  { %5221 = vmatpush3.bf16.msra.mxu0 %v6307_v44  ;;  %5246 = vmatprep.subr.bf16.mxu1 %v7157_v14 }
  0x4e   :  { %5222 = vmatprep.subr.bf16.mxu0 %v7157_v14 }
  0x50   :  { %5248 = vmatpush3.bf16.msra.mxu1 %v6317_v55 }
  0x51   :  { %5224 = vmatpush3.bf16.msra.mxu0 %v6315_v52  ;;  %5249 = vmatprep.subr.bf16.mxu1 %v7157_v14 }
  0x52   :  { %5225 = vmatprep.subr.bf16.mxu0 %v7157_v14 }
  0x54   :  { %5251 = vmatpush3.bf16.msra.mxu1 %v6325_v63 }
  0x55   :  { %5227 = vmatpush3.bf16.msra.mxu0 %v6323_v62  ;;  %5276 = vmatprep.subr.bf16.mxu1 %v7157_v14 }
  0x56   :  { %5252 = vmatprep.subr.bf16.mxu0 %v7157_v14 }
  0x57   :  { %4174 = vmatmul.mubr.f32.vlgmr.msra.gmra.mrb[18].mxu1 %v7155_v0 }
  0x58   :  { %4139 = vmatmul.mubr.f32.vlgmr.msra.gmra.mrb[18].mxu0 %v7155_v0  ;;  %5278 = vmatpush3.bf16.msra.mxu1 %v6146_v11 }
  0x59   :  { %5254 = vmatpush3.bf16.msra.mxu0 %v6144_v10  ;;  %5279 = vmatprep.subr.bf16.mxu1 %v7157_v14 }
  0x5a   :  { %5255 = vmatprep.subr.bf16.mxu0 %v7157_v14  ;;  %4208 = vmatprep.mubr.msk.f32.mxu0 %vm6087_vm1, %v7155_v0 }
  0x5b   :  { %4243 = vmatprep.mubr.msk.f32.mxu1 %vm6087_vm1, %v7155_v0 }
  0x5c   :  { %5281 = vmatpush3.bf16.msra.mxu1 %v6157_v19 }
  0x5d   :  { %5257 = vmatpush3.bf16.msra.mxu0 %v6155_v18  ;;  %5282 = vmatprep.subr.bf16.mxu1 %v7157_v14 }
  0x5e   :  { %5258 = vmatprep.subr.bf16.mxu0 %v7157_v14 }
  0x60   :  { %5284 = vmatpush3.bf16.msra.mxu1 %v6172_v26 }
  0x61   :  { %5260 = vmatpush3.bf16.msra.mxu0 %v6170_v25  ;;  %5285 = vmatprep.subr.bf16.mxu1 %v7157_v14 }
  0x62   :  { %5261 = vmatprep.subr.bf16.mxu0 %v7157_v14 }
  0x64   :  { %5287 = vmatpush3.bf16.msra.mxu1 %v6187_v33 }
  0x65   :  { %5263 = vmatpush3.bf16.msra.mxu0 %v6185_v32  ;;  %5288 = vmatprep.subr.bf16.mxu1 %v7157_v14 }
  0x66   :  { %5264 = vmatprep.subr.bf16.mxu0 %v7157_v14 }
  0x68   :  { %5290 = vmatpush3.bf16.msra.mxu1 %v6202_v40 }
  0x69   :  { %5266 = vmatpush3.bf16.msra.mxu0 %v6200_v39  ;;  %5291 = vmatprep.subr.bf16.mxu1 %v7157_v14 }
  0x6a   :  { %5267 = vmatprep.subr.bf16.mxu0 %v7157_v14 }
  0x6c   :  { %5293 = vmatpush3.bf16.msra.mxu1 %v6217_v47 }
  0x6d   :  { %5269 = vmatpush3.bf16.msra.mxu0 %v6215_v46  ;;  %5294 = vmatprep.subr.bf16.mxu1 %v7157_v14 }
  0x6e   :  { %5270 = vmatprep.subr.bf16.mxu0 %v7157_v14 }
  0x70   :  { %5296 = vmatpush3.bf16.msra.mxu1 %v6232_v54 }
  0x71   :  { %5272 = vmatpush3.bf16.msra.mxu0 %v6230_v53  ;;  %5297 = vmatprep.subr.bf16.mxu1 %v7157_v14 }
  0x72   :  { %5273 = vmatprep.subr.bf16.mxu0 %v7157_v14 }
  0x74   :  { %5299 = vmatpush3.bf16.msra.mxu1 %v6247_v61 }
  0x75   :  { %5275 = vmatpush3.bf16.msra.mxu0 %v6245_v60  ;;  %5324 = vmatprep.subr.bf16.mxu1 %v7157_v14 }
  0x76   :  { %5300 = vmatprep.subr.bf16.mxu0 %v7157_v14 }
  0xe9   :  { %v6374_v8 = vpop.f32.mrb[0].mxu0  ;;  %v6376_v13 = vpop.f32.mrb[0].mxu1 }
  0xea   :  { %v6378_v17 = vpop.f32.mrb[1].mxu0  ;;  %v6380_v22 = vpop.f32.mrb[1].mxu1 }
  0xed   :  { %v168_v31 = vpop.f32.mrb[2].mxu0  ;;  %v281_v34 = vpop.f32.mrb[2].mxu1 }
  0xee   :  { %v6386_v35 = vadd.f32 %v168_v31, %v54_v23  ;;  %v6389_v38 = vadd.f32 %v281_v34, %v6382_v24  ;;  %v170_v41 = vpop.f32.mrb[3].mxu0  ;;  %v283_v42 = vpop.f32.mrb[3].mxu1 }
  0xef   :  { %v6391_v43 = vadd.f32 %v170_v41, %v58_v27  ;;  %v6394_v48 = vadd.f32 %v283_v42, %v6384_v30 }
  0xf1   :  { %v174_v49 = vpop.f32.mrb[4].mxu0  ;;  %v287_v50 = vpop.f32.mrb[4].mxu1 }
  0xf2   :  { %v6396_v51 = vadd.f32 %v174_v49, %v54_v23  ;;  %v6399_v56 = vadd.f32 %v287_v50, %v6382_v24  ;;  %v176_v57 = vpop.f32.mrb[5].mxu0  ;;  %v289_v58 = vpop.f32.mrb[5].mxu1 }
  0xf3   :  { %v6401_v59 = vadd.f32 %v176_v57, %v58_v27  ;;  %v6404_v1 = vadd.f32 %v289_v58, %v6384_v30 }
  0xf5   :  { %v180_v2 = vpop.f32.mrb[6].mxu0  ;;  %v293_v5 = vpop.f32.mrb[6].mxu1 }
  0xf6   :  { %v6406_v6 = vadd.f32 %v180_v2, %v54_v23  ;;  %v6409_v7 = vadd.f32 %v293_v5, %v6382_v24  ;;  %v182_v15 = vpop.f32.mrb[7].mxu0  ;;  %v295_v16 = vpop.f32.mrb[7].mxu1 }
  0xf7   :  { %v6411_v31 = vadd.f32 %v182_v15, %v58_v27  ;;  %v6414_v34 = vadd.f32 %v295_v16, %v6384_v30 }
  0xf8   :  { %7159 = vst [vmem:[#allocation8_spill] sm:$0xff] %v6406_v6  ;;  %7160 = vst [vmem:[#allocation9_spill] sm:$0xff] %v6409_v7 }
  0xf9   :  { %7161 = vst [vmem:[#allocation10_spill] sm:$0xff] %v6411_v31  ;;  %7162 = vst [vmem:[#allocation11_spill] sm:$0xff] %v6414_v34  ;;  %v186_v41 = vpop.f32.mrb[8].mxu0  ;;  %v299_v42 = vpop.f32.mrb[8].mxu1 }
  0xfa   :  { %v6416_v49 = vadd.f32 %v186_v41, %v54_v23  ;;  %v6419_v50 = vadd.f32 %v299_v42, %v6382_v24  ;;  %v188_v57 = vpop.f32.mrb[9].mxu0  ;;  %v301_v58 = vpop.f32.mrb[9].mxu1 }
  0xfb   :  { %v6421_v2 = vadd.f32 %v188_v57, %v58_v27  ;;  %v6424_v5 = vadd.f32 %v301_v58, %v6384_v30 }
  0xfc   :  { %7163 = vst [vmem:[#allocation12_spill] sm:$0xff] %v6416_v49  ;;  %7164 = vst [vmem:[#allocation13_spill] sm:$0xff] %v6419_v50 }
  0xfd   :  { %7165 = vst [vmem:[#allocation14_spill] sm:$0xff] %v6421_v2  ;;  %7166 = vst [vmem:[#allocation15_spill] sm:$0xff] %v6424_v5  ;;  %v192_v0 = vpop.f32.mrb[10].mxu0  ;;  %v305_v15 = vpop.f32.mrb[10].mxu1 }
  0xfe   :  { %v6426_v14 = vadd.f32 %v192_v0, %v54_v23  ;;  %v6429_v16 = vadd.f32 %v305_v15, %v6382_v24  ;;  %v194_v34 = vpop.f32.mrb[11].mxu0  ;;  %v307_v41 = vpop.f32.mrb[11].mxu1 }
  0xff   :  { %v6431_v49 = vadd.f32 %v194_v34, %v58_v27  ;;  %v6434_v42 = vadd.f32 %v307_v41, %v6384_v30 }
 0x100   :  { %7167 = vst [vmem:[#allocation16_spill] sm:$0xff] %v6426_v14  ;;  %7168 = vst [vmem:[#allocation17_spill] sm:$0xff] %v6429_v16 }
 0x101   :  { %7169 = vst [vmem:[#allocation18_spill] sm:$0xff] %v6431_v49  ;;  %7170 = vst [vmem:[#allocation19_spill] sm:$0xff] %v6434_v42  ;;  %v198_v50 = vpop.f32.mrb[12].mxu0  ;;  %v311_v57 = vpop.f32.mrb[12].mxu1 }
 0x102   :  { %v6436_v2 = vadd.f32 %v198_v50, %v54_v23  ;;  %v6439_v58 = vadd.f32 %v311_v57, %v6382_v24  ;;  %v200_v5 = vpop.f32.mrb[13].mxu0  ;;  %v313_v0 = vpop.f32.mrb[13].mxu1 }
 0x103   :  { %v6441_v14 = vadd.f32 %v200_v5, %v58_v27  ;;  %v6444_v15 = vadd.f32 %v313_v0, %v6384_v30  ;;  %v163_v5 = vadd.f32 %v6374_v8, %v54_v23  ;;  %v278_v8 = vadd.f32 %v6380_v22, %v6384_v30 }
 0x104   :  { %7171 = vst [vmem:[#allocation20_spill] sm:$0xff] %v6436_v2  ;;  %7172 = vst [vmem:[#allocation21_spill] sm:$0xff] %v6439_v58  ;;  %v165_v58 = vadd.f32 %v6378_v17, %v58_v27 }
 0x105   :  { %7173 = vst [vmem:[#allocation22_spill] sm:$0xff] %v6441_v14  ;;  %7174 = vst [vmem:[#allocation23_spill] sm:$0xff] %v6444_v15  ;;  %v204_v16 = vpop.f32.mrb[14].mxu0  ;;  %v317_v34 = vpop.f32.mrb[14].mxu1 }
 0x106   :  { %v6446_v49 = vadd.f32 %v204_v16, %v54_v23  ;;  %v6449_v41 = vadd.f32 %v317_v34, %v6382_v24  ;;  %v206_v42 = vpop.f32.mrb[15].mxu0  ;;  %v319_v50 = vpop.f32.mrb[15].mxu1 }
 0x107   :  { %v6451_v2 = vadd.f32 %v206_v42, %v58_v27  ;;  %v6454_v57 = vadd.f32 %v319_v50, %v6384_v30  ;;  %v276_v50 = vadd.f32 %v6376_v13, %v6382_v24 }
 0x108   :  { %7175 = vst [vmem:[#allocation24_spill] sm:$0xff] %v6446_v49  ;;  %7176 = vst [vmem:[#allocation25_spill] sm:$0xff] %v6449_v41 }
 0x109   :  { %7177 = vst [vmem:[#allocation26_spill] sm:$0xff] %v6451_v2 }
 0x10a   :  { %v538_v15 = vpop.f32.mrb[16].mxu1 }
 0x10b   :  { %v445_v0 = vpop.f32.mrb[16].mxu0  ;;  %v542_v7 = vadd.f32 %v538_v15, %v165_v58  ;;  %v4105_v49 = vpop.f32.mrb[17].mxu1 }
 0x10c   :  { %v449_v14 = vadd.f32 %v445_v0, %v163_v5  ;;  %v4070_v16 = vpop.f32.mrb[17].mxu0 }
 0x10d   :  { %v3462_v31 = vmul.f32 -1.442695, %v542_v7 }
 0x10e   :  { %v3461_v34 = vmul.f32 -1.442695, %v449_v14 }
 0x10f   :  { %5930 = vpow2.f32 %v3462_v31 }
 0x110   :  { %5932 = vpow2.f32 %v3461_v34  ;;  %v7179_v34 = vmov 0.0  }
 0x119   :  { %v5931_v41 = vpop.eup %5930 }
 0x11a   :  { %v5933_v42 = vpop.eup %5932  ;;  %v546_v2 = vadd.f32 1.0, %v5931_v41 }
 0x11b   :  { %v453_v6 = vadd.f32 1.0, %v5933_v42 }
 0x11c   :  { %5934 = vrcp.f32 %v546_v2 }
 0x11d   :  { %5936 = vrcp.f32 %v453_v6  ;;  %v7178_v6 = vmov 0.0|0.0  }
 0x126   :  { %v5935_v31 = vpop.eup %5934 }
 0x127   :  { %v5937_v15 = vpop.eup %5936  ;;  %v730_v5 = vmul.f32 0.0, %v5935_v31  ;;  %v1615_v31 = vld [vmem:[#allocation5 + $0xa8] sm:$0xff] }
 0x12a   :  { %v719_v23 = vpop.f32.mrb[18].mxu1 }
 0x12b   :  { %v631_v17 = vpop.f32.mrb[18].mxu0  ;;  %v723_v58 = vadd.f32 %v719_v23, %v278_v8  ;;  %v4175_v7 = vpop.f32.mrb[19].mxu1 }
 0x12c   :  { %v635_v27 = vadd.f32 %v631_v17, %v276_v50  ;;  %v4140_v49 = vpop.f32.mrb[19].mxu0 }
 0x12d   :  { %v3463_v14 = vmul.f32 -1.442695, %v723_v58 }
 0x12e   :  { %5938 = vtanh.f32 %v635_v27 }
 0x12f   :  { %5940 = vpow2.f32 %v3463_v14 }
 0x138   :  { %v5939_v41 = vpop.eup %5938 }
 0x139   :  { %v731_v0 = vmul.f32 %v5939_v41, %v5937_v15  ;;  %v5941_v13 = vpop.eup %5940  ;;  %v1523_v41 = vld [vmem:[#allocation5 + $0xc0] sm:$0xff] }
 0x13a   :  { %v727_v22 = vadd.f32 1.0, %v5941_v13 }
 0x13b   :  { %v6462_v24 = vadd.f32 %v731_v0, %v730_v5  ;;  %v1524_v5 = vld [vmem:[#allocation5 + $0xe0] sm:$0xff]  ;;  %v1616_v0 = vld [vmem:[#allocation5 + $0xc8] sm:$0xff] }
 0x13c   :  { %v6615_v13 = vpack.c.bf16 %v1524_v5, %v1523_v41 }
 0x13d   :  { %5942 = vtanh.f32 %v6462_v24 }
 0x13e   :  { %5944 = vrcp.f32 %v727_v22 }
 0x147   :  { %v5943_v30 = vpop.eup %5942 }
 0x148   :  { %v5945_v2 = vpop.eup %5944 }
 0x149   :  { %v734_v16 = vmul.f32 %v5945_v2, %v5943_v30  ;;  %v1525_v30 = vld [vmem:[#allocation5 + $0x100] sm:$0xff] }
 0x14a   :  { %v1526_v2 = vld [vmem:[#allocation5 + $0x120] sm:$0xff] }
 0x14b   :  { %737 = vst [vmem:[%s7154_s4] sm:$0xff] %v734_v16  ;;  %4209 = vmatmul.mubr.f32.vlgmr.msra.gmra.mrb[20].mxu0 %v734_v16  ;;  %4244 = vmatmul.mubr.f32.vlgmr.msra.gmra.mrb[20].mxu1 %v734_v16 }
 0x14c   :  { %5302 = vmatpush3.bf16.msra.mxu0 %v6257_v3  ;;  %5326 = vmatpush3.bf16.msra.mxu1 %v6259_v4 }
 0x14d   :  { %5303 = vmatprep.subr.bf16.mxu0 %v7178_v6  ;;  %5327 = vmatprep.subr.bf16.mxu1 %v7178_v6 }
 0x14e   :  { %4278 = vmatprep.mubr.msk.f32.mxu0 %vm6087_vm1, %v7179_v34  ;;  %4313 = vmatprep.mubr.msk.f32.mxu1 %vm6087_vm1, %v7179_v34 }
 0x150   :  { %5305 = vmatpush3.bf16.msra.mxu0 %v6271_v9  ;;  %5329 = vmatpush3.bf16.msra.mxu1 %v6273_v12 }
 0x151   :  { %5306 = vmatprep.subr.bf16.mxu0 %v7178_v6  ;;  %5330 = vmatprep.subr.bf16.mxu1 %v7178_v6 }
 0x154   :  { %5308 = vmatpush3.bf16.msra.mxu0 %v6283_v20  ;;  %5332 = vmatpush3.bf16.msra.mxu1 %v6285_v21 }
 0x155   :  { %5309 = vmatprep.subr.bf16.mxu0 %v7178_v6  ;;  %5333 = vmatprep.subr.bf16.mxu1 %v7178_v6 }
 0x158   :  { %5311 = vmatpush3.bf16.msra.mxu0 %v6291_v28  ;;  %5335 = vmatpush3.bf16.msra.mxu1 %v6293_v29 }
 0x159   :  { %5312 = vmatprep.subr.bf16.mxu0 %v7178_v6  ;;  %5336 = vmatprep.subr.bf16.mxu1 %v7178_v6 }
 0x15c   :  { %5314 = vmatpush3.bf16.msra.mxu0 %v6299_v36  ;;  %5338 = vmatpush3.bf16.msra.mxu1 %v6301_v37 }
 0x15d   :  { %5315 = vmatprep.subr.bf16.mxu0 %v7178_v6  ;;  %5339 = vmatprep.subr.bf16.mxu1 %v7178_v6 }
 0x160   :  { %5317 = vmatpush3.bf16.msra.mxu0 %v6307_v44  ;;  %5341 = vmatpush3.bf16.msra.mxu1 %v6309_v45 }
 0x161   :  { %5318 = vmatprep.subr.bf16.mxu0 %v7178_v6  ;;  %5342 = vmatprep.subr.bf16.mxu1 %v7178_v6 }
 0x164   :  { %5320 = vmatpush3.bf16.msra.mxu0 %v6315_v52  ;;  %5344 = vmatpush3.bf16.msra.mxu1 %v6317_v55 }
 0x165   :  { %5321 = vmatprep.subr.bf16.mxu0 %v7178_v6  ;;  %5345 = vmatprep.subr.bf16.mxu1 %v7178_v6 }
 0x168   :  { %5323 = vmatpush3.bf16.msra.mxu0 %v6323_v62  ;;  %5347 = vmatpush3.bf16.msra.mxu1 %v6325_v63 }
 0x169   :  { %5348 = vmatprep.subr.bf16.mxu0 %v7178_v6  ;;  %5372 = vmatprep.subr.bf16.mxu1 %v7178_v6 }
 0x16b   :  { %4279 = vmatmul.mubr.f32.vlgmr.msra.gmra.mrb[22].mxu0 %v734_v16  ;;  %4314 = vmatmul.mubr.f32.vlgmr.msra.gmra.mrb[22].mxu1 %v734_v16  ;;  %v1618_v16 = vld [vmem:[#allocation5 + $0x108] sm:$0xff] }
 0x16c   :  { %5350 = vmatpush3.bf16.msra.mxu0 %v6144_v10  ;;  %5374 = vmatpush3.bf16.msra.mxu1 %v6146_v11 }
 0x16d   :  { %5351 = vmatprep.subr.bf16.mxu0 %v7178_v6  ;;  %5375 = vmatprep.subr.bf16.mxu1 %v7178_v6 }
 0x16e   :  { %4348 = vmatprep.mubr.msk.f32.mxu0 %vm6087_vm1, %v7179_v34  ;;  %4383 = vmatprep.mubr.msk.f32.mxu1 %vm6087_vm1, %v7179_v34 }
 0x170   :  { %5353 = vmatpush3.bf16.msra.mxu0 %v6155_v18  ;;  %5377 = vmatpush3.bf16.msra.mxu1 %v6157_v19 }
 0x171   :  { %5354 = vmatprep.subr.bf16.mxu0 %v7178_v6  ;;  %5378 = vmatprep.subr.bf16.mxu1 %v7178_v6 }
 0x174   :  { %5356 = vmatpush3.bf16.msra.mxu0 %v6170_v25  ;;  %5380 = vmatpush3.bf16.msra.mxu1 %v6172_v26 }
 0x175   :  { %5357 = vmatprep.subr.bf16.mxu0 %v7178_v6  ;;  %5381 = vmatprep.subr.bf16.mxu1 %v7178_v6 }
 0x178   :  { %5359 = vmatpush3.bf16.msra.mxu0 %v6185_v32  ;;  %5383 = vmatpush3.bf16.msra.mxu1 %v6187_v33 }
 0x179   :  { %5360 = vmatprep.subr.bf16.mxu0 %v7178_v6  ;;  %5384 = vmatprep.subr.bf16.mxu1 %v7178_v6 }
 0x17c   :  { %5362 = vmatpush3.bf16.msra.mxu0 %v6200_v39  ;;  %5386 = vmatpush3.bf16.msra.mxu1 %v6202_v40 }
 0x17d   :  { %5363 = vmatprep.subr.bf16.mxu0 %v7178_v6  ;;  %5387 = vmatprep.subr.bf16.mxu1 %v7178_v6 }
 0x180   :  { %5365 = vmatpush3.bf16.msra.mxu0 %v6215_v46  ;;  %5389 = vmatpush3.bf16.msra.mxu1 %v6217_v47 }
 0x181   :  { %5366 = vmatprep.subr.bf16.mxu0 %v7178_v6  ;;  %5390 = vmatprep.subr.bf16.mxu1 %v7178_v6 }
 0x184   :  { %5368 = vmatpush3.bf16.msra.mxu0 %v6230_v53  ;;  %5392 = vmatpush3.bf16.msra.mxu1 %v6232_v54 }
 0x185   :  { %5369 = vmatprep.subr.bf16.mxu0 %v7178_v6  ;;  %5393 = vmatprep.subr.bf16.mxu1 %v7178_v6 }
 0x188   :  { %5371 = vmatpush3.bf16.msra.mxu0 %v6245_v60  ;;  %5395 = vmatpush3.bf16.msra.mxu1 %v6247_v61 }
 0x189   :  { %5396 = vmatprep.subr.bf16.mxu0 %v7178_v6  ;;  %5420 = vmatprep.subr.bf16.mxu1 %v7178_v6 }
 0x21e   :  { %v829_v10 = vpop.f32.mrb[20].mxu0  ;;  %v922_v11 = vpop.f32.mrb[20].mxu1 }
 0x21f   :  { %v833_v18 = vadd.f32 %v829_v10, %v6386_v35  ;;  %v926_v19 = vadd.f32 %v922_v11, %v6391_v43  ;;  %v4210_v25 = vpop.f32.mrb[21].mxu0  ;;  %v4245_v26 = vpop.f32.mrb[21].mxu1  ;;  %v6623_v10 = vpack.c.bf16 %v1526_v2, %v1525_v30  ;;  %v1619_v11 = vld [vmem:[#allocation5 + $0x128] sm:$0xff]  ;;  %v1791_v2 = vld [vmem:[#allocation5 + $0x18] sm:$0xff] }
 0x220   :  { %v1528_v25 = vld [vmem:[#allocation5 + $0x160] sm:$0xff]  ;;  %v1620_v26 = vld [vmem:[#allocation5 + $0x148] sm:$0xff] }
 0x221   :  { %v3465_v32 = vmul.f32 -1.442695, %v926_v19  ;;  %v3464_v33 = vmul.f32 -1.442695, %v833_v18  ;;  %v6625_v18 = vpack.c.bf16 %v1619_v11, %v1618_v16  ;;  %v1527_v19 = vld [vmem:[#allocation5 + $0x140] sm:$0xff]  ;;  %v1792_v16 = vld [vmem:[#allocation5 + $0x38] sm:$0xff] }
 0x223   :  { %5946 = vpow2.f32 %v3465_v32  ;;  %v6631_v32 = vpack.c.bf16 %v1528_v25, %v1527_v19 }
 0x224   :  { %5948 = vpow2.f32 %v3464_v33  ;;  %v1621_v33 = vld [vmem:[#allocation5 + $0x168] sm:$0xff] }
 0x22d   :  { %v5947_v39 = vpop.eup %5946 }
 0x22e   :  { %v5949_v40 = vpop.eup %5948  ;;  %v930_v46 = vadd.f32 1.0, %v5947_v39  ;;  %v6633_v39 = vpack.c.bf16 %v1621_v33, %v1620_v26  ;;  %v6665_v26 = vpack.c.bf16 %v1792_v16, %v1791_v2  ;;  %v1705_v33 = vld [vmem:[#allocation5 + $0x50] sm:$0xff]  ;;  %v1805_v16 = vld [vmem:[#allocation5 + $0x1d8] sm:$0xff] }
 0x22f   :  { %v837_v47 = vadd.f32 1.0, %v5949_v40  ;;  %v1529_v40 = vld [vmem:[#allocation5 + $0x180] sm:$0xff]  ;;  %v1718_v2 = vld [vmem:[#allocation5 + $0x1f0] sm:$0xff] }
 0x230   :  { %5950 = vrcp.f32 %v930_v46  ;;  %v1530_v46 = vld [vmem:[#allocation5 + $0x1a0] sm:$0xff] }
 0x231   :  { %5952 = vrcp.f32 %v837_v47  ;;  %v1622_v47 = vld [vmem:[#allocation5 + $0x188] sm:$0xff] }
 0x23a   :  { %v5951_v50 = vpop.eup %5950 }
 0x23b   :  { %v5953_v8 = vpop.eup %5952  ;;  %v1114_v23 = vmul.f32 %v5951_v50, %v6462_v24  ;;  %v1617_v24 = vld [vmem:[#allocation5 + $0xe8] sm:$0xff] }
 0x23c   :  { %v6617_v22 = vpack.c.bf16 %v1617_v24, %v1616_v0 }
 0x23e   :  { %v1015_v53 = vpop.f32.mrb[22].mxu0  ;;  %v1103_v54 = vpop.f32.mrb[22].mxu1 }
 0x23f   :  { %v1019_v60 = vadd.f32 %v1015_v53, %v6389_v38  ;;  %v1107_v61 = vadd.f32 %v1103_v54, %v6394_v48  ;;  %v4280_v35 = vpop.f32.mrb[23].mxu0  ;;  %v4315_v42 = vpop.f32.mrb[23].mxu1  ;;  %v6636_v53 = vpack.c.bf16 %v1530_v46, %v1529_v40  ;;  %v1623_v54 = vld [vmem:[#allocation5 + $0x1a8] sm:$0xff]  ;;  %v1706_v40 = vld [vmem:[#allocation5 + $0x70] sm:$0xff]  ;;  %v1793_v46 = vld [vmem:[#allocation5 + $0x58] sm:$0xff] }
 0x240   :  { %v1532_v35 = vld [vmem:[#allocation5 + $0x1e0] sm:$0xff]  ;;  %v1624_v42 = vld [vmem:[#allocation5 + $0x1c8] sm:$0xff] }
 0x241   :  { %5954 = vtanh.f32 %v1019_v60  ;;  %v3466_v43 = vmul.f32 -1.442695, %v1107_v61  ;;  %v6640_v60 = vpack.c.bf16 %v1623_v54, %v1622_v47  ;;  %v1531_v61 = vld [vmem:[#allocation5 + $0x1c0] sm:$0xff]  ;;  %v1794_v47 = vld [vmem:[#allocation5 + $0x78] sm:$0xff]  ;;  %v6677_v54 = vpack.c.bf16 %v1706_v40, %v1705_v33 }
 0x242   :  { %v6644_v50 = vpack.c.bf16 %v1532_v35, %v1531_v61  ;;  %v6679_v61 = vpack.c.bf16 %v1794_v47, %v1793_v46  ;;  %v1707_v35 = vld [vmem:[#allocation5 + $0x90] sm:$0xff]  ;;  %v7180_v46 = vld [vmem:[#allocation8_spill] sm:$0xff] }
 0x243   :  { %5956 = vpow2.f32 %v3466_v43  ;;  %v1625_v43 = vld [vmem:[#allocation5 + $0x1e8] sm:$0xff] }
 0x24b   :  { %v5955_v17 = vpop.eup %5954 }
 0x24c   :  { %v1115_v27 = vmul.f32 %v5955_v17, %v5953_v8  ;;  %v6648_v8 = vpack.c.bf16 %v1625_v43, %v1624_v42  ;;  %v1708_v42 = vld [vmem:[#allocation5 + $0xb0] sm:$0xff]  ;;  %v1795_v43 = vld [vmem:[#allocation5 + $0x98] sm:$0xff] }
 0x24d   :  { %v5957_v58 = vpop.eup %5956 }
 0x24e   :  { %v6545_v49 = vadd.f32 %v1115_v27, %v1114_v23  ;;  %v1111_v7 = vadd.f32 1.0, %v5957_v58 }
 0x250   :  { %5958 = vtanh.f32 %v6545_v49 }
 0x251   :  { %5960 = vrcp.f32 %v1111_v7 }
 0x25a   :  { %v5959_v38 = vpop.eup %5958 }
 0x25b   :  { %v5961_v48 = vpop.eup %5960 }
 0x25c   :  { %v1118_v14 = vmul.f32 %v5961_v48, %v5959_v38 }
 0x25e   :  { %3467 = vst [vmem:[%s7154_s4 + $0x8] sm:$0xff] %v1118_v14  ;;  %4349 = vmatmul.mubr.f32.vlgmr.msra.gmra.mrb[24].mxu0 %v1118_v14  ;;  %4384 = vmatmul.mubr.f32.vlgmr.msra.gmra.mrb[24].mxu1 %v1118_v14 }
 0x25f   :  { %5398 = vmatpush3.bf16.msra.mxu0 %v6257_v3  ;;  %5422 = vmatpush3.bf16.msra.mxu1 %v6259_v4  ;;  %v1517_v3 = vld [vmem:[#allocation5] sm:$0xff] }
 0x260   :  { %5399 = vmatprep.subr.bf16.mxu0 %v7178_v6  ;;  %5423 = vmatprep.subr.bf16.mxu1 %v7178_v6  ;;  %v1518_v4 = vld [vmem:[#allocation5 + $0x20] sm:$0xff] }
 0x261   :  { %4418 = vmatprep.mubr.msk.f32.mxu0 %vm6087_vm1, %v7179_v34  ;;  %4453 = vmatprep.mubr.msk.f32.mxu1 %vm6087_vm1, %v7179_v34 }
 0x263   :  { %5401 = vmatpush3.bf16.msra.mxu0 %v6271_v9  ;;  %5425 = vmatpush3.bf16.msra.mxu1 %v6273_v12  ;;  %v1610_v9 = vld [vmem:[#allocation5 + $0x8] sm:$0xff]  ;;  %v6591_v12 = vpack.c.bf16 %v1518_v4, %v1517_v3 }
 0x264   :  { %5402 = vmatprep.subr.bf16.mxu0 %v7178_v6  ;;  %5426 = vmatprep.subr.bf16.mxu1 %v7178_v6 }
 0x267   :  { %5404 = vmatpush3.bf16.msra.mxu0 %v6283_v20  ;;  %5428 = vmatpush3.bf16.msra.mxu1 %v6285_v21  ;;  %v1611_v20 = vld [vmem:[#allocation5 + $0x28] sm:$0xff] }
 0x268   :  { %5405 = vmatprep.subr.bf16.mxu0 %v7178_v6  ;;  %5429 = vmatprep.subr.bf16.mxu1 %v7178_v6  ;;  %v6593_v21 = vpack.c.bf16 %v1611_v20, %v1610_v9 }
 0x26b   :  { %5407 = vmatpush3.bf16.msra.mxu0 %v6291_v28  ;;  %5431 = vmatpush3.bf16.msra.mxu1 %v6293_v29  ;;  %v1519_v28 = vld [vmem:[#allocation5 + $0x40] sm:$0xff] }
 0x26c   :  { %5408 = vmatprep.subr.bf16.mxu0 %v7178_v6  ;;  %5432 = vmatprep.subr.bf16.mxu1 %v7178_v6  ;;  %v1520_v29 = vld [vmem:[#allocation5 + $0x60] sm:$0xff] }
 0x26f   :  { %5410 = vmatpush3.bf16.msra.mxu0 %v6299_v36  ;;  %5434 = vmatpush3.bf16.msra.mxu1 %v6301_v37  ;;  %v1612_v36 = vld [vmem:[#allocation5 + $0x48] sm:$0xff]  ;;  %v6599_v37 = vpack.c.bf16 %v1520_v29, %v1519_v28 }
 0x270   :  { %5411 = vmatprep.subr.bf16.mxu0 %v7178_v6  ;;  %5435 = vmatprep.subr.bf16.mxu1 %v7178_v6 }
 0x273   :  { %5413 = vmatpush3.bf16.msra.mxu0 %v6307_v44  ;;  %5437 = vmatpush3.bf16.msra.mxu1 %v6309_v45  ;;  %v1613_v44 = vld [vmem:[#allocation5 + $0x68] sm:$0xff] }
 0x274   :  { %5414 = vmatprep.subr.bf16.mxu0 %v7178_v6  ;;  %5438 = vmatprep.subr.bf16.mxu1 %v7178_v6  ;;  %v6601_v45 = vpack.c.bf16 %v1613_v44, %v1612_v36 }
 0x277   :  { %5416 = vmatpush3.bf16.msra.mxu0 %v6315_v52  ;;  %5440 = vmatpush3.bf16.msra.mxu1 %v6317_v55  ;;  %v1521_v52 = vld [vmem:[#allocation5 + $0x80] sm:$0xff] }
 0x278   :  { %5417 = vmatprep.subr.bf16.mxu0 %v7178_v6  ;;  %5441 = vmatprep.subr.bf16.mxu1 %v7178_v6  ;;  %v1522_v55 = vld [vmem:[#allocation5 + $0xa0] sm:$0xff] }
 0x27b   :  { %5419 = vmatpush3.bf16.msra.mxu0 %v6323_v62  ;;  %5443 = vmatpush3.bf16.msra.mxu1 %v6325_v63  ;;  %v1614_v62 = vld [vmem:[#allocation5 + $0x88] sm:$0xff]  ;;  %v6607_v63 = vpack.c.bf16 %v1522_v55, %v1521_v52 }
 0x27c   :  { %5444 = vmatprep.subr.bf16.mxu0 %v7178_v6  ;;  %5468 = vmatprep.subr.bf16.mxu1 %v7178_v6  ;;  %v6609_v15 = vpack.c.bf16 %v1615_v31, %v1614_v62 }
 0x27e   :  { %4419 = vmatmul.mubr.f32.vlgmr.msra.gmra.mrb[26].mxu0 %v1118_v14  ;;  %4454 = vmatmul.mubr.f32.vlgmr.msra.gmra.mrb[26].mxu1 %v1118_v14 }
 0x27f   :  { %4488 = vmatprep.mubr.msk.f32.mxu0 %vm6087_vm1, %v7179_v34  ;;  %4523 = vmatprep.mubr.msk.f32.mxu1 %vm6087_vm1, %v7179_v34 }
 0x280   :  { %5446 = vmatpush3.bf16.msra.mxu0 %v6591_v12  ;;  %5470 = vmatpush3.bf16.msra.mxu1 %v6593_v21 }
 0x281   :  { %5447 = vmatprep.subr.bf16.mxu0 %v7178_v6  ;;  %5471 = vmatprep.subr.bf16.mxu1 %v7178_v6 }
 0x284   :  { %5449 = vmatpush3.bf16.msra.mxu0 %v6599_v37  ;;  %5473 = vmatpush3.bf16.msra.mxu1 %v6601_v45 }
 0x285   :  { %5450 = vmatprep.subr.bf16.mxu0 %v7178_v6  ;;  %5474 = vmatprep.subr.bf16.mxu1 %v7178_v6 }
 0x288   :  { %5452 = vmatpush3.bf16.msra.mxu0 %v6607_v63  ;;  %5476 = vmatpush3.bf16.msra.mxu1 %v6609_v15 }
 0x289   :  { %5453 = vmatprep.subr.bf16.mxu0 %v7178_v6  ;;  %5477 = vmatprep.subr.bf16.mxu1 %v7178_v6 }
 0x28c   :  { %5455 = vmatpush3.bf16.msra.mxu0 %v6615_v13  ;;  %5479 = vmatpush3.bf16.msra.mxu1 %v6617_v22 }
 0x28d   :  { %5456 = vmatprep.subr.bf16.mxu0 %v7178_v6  ;;  %5480 = vmatprep.subr.bf16.mxu1 %v7178_v6 }
 0x290   :  { %5458 = vmatpush3.bf16.msra.mxu0 %v6623_v10  ;;  %5482 = vmatpush3.bf16.msra.mxu1 %v6625_v18 }
 0x291   :  { %5459 = vmatprep.subr.bf16.mxu0 %v7178_v6  ;;  %5483 = vmatprep.subr.bf16.mxu1 %v7178_v6 }
 0x294   :  { %5461 = vmatpush3.bf16.msra.mxu0 %v6631_v32  ;;  %5485 = vmatpush3.bf16.msra.mxu1 %v6633_v39 }
 0x295   :  { %5462 = vmatprep.subr.bf16.mxu0 %v7178_v6  ;;  %5486 = vmatprep.subr.bf16.mxu1 %v7178_v6 }
 0x298   :  { %5464 = vmatpush3.bf16.msra.mxu0 %v6636_v53  ;;  %5488 = vmatpush3.bf16.msra.mxu1 %v6640_v60 }
 0x299   :  { %5465 = vmatprep.subr.bf16.mxu0 %v7178_v6  ;;  %5489 = vmatprep.subr.bf16.mxu1 %v7178_v6 }
 0x29c   :  { %5467 = vmatpush3.bf16.msra.mxu0 %v6644_v50  ;;  %5491 = vmatpush3.bf16.msra.mxu1 %v6648_v8 }
 0x29d   :  { %5492 = vmatprep.subr.bf16.mxu0 %v7178_v6  ;;  %5516 = vmatprep.subr.bf16.mxu1 %v7178_v6 }
 0x331   :  { %v1214_v17 = vpop.f32.mrb[24].mxu0  ;;  %v1307_v23 = vpop.f32.mrb[24].mxu1 }
 0x332   :  { %v1218_v27 = vadd.f32 %v1214_v17, %v6396_v51  ;;  %v1311_v58 = vadd.f32 %v1307_v23, %v6401_v59  ;;  %v4350_v7 = vpop.f32.mrb[25].mxu0  ;;  %v4385_v38 = vpop.f32.mrb[25].mxu1  ;;  %v1796_v17 = vld [vmem:[#allocation5 + $0xb8] sm:$0xff]  ;;  %v6689_v23 = vpack.c.bf16 %v1708_v42, %v1707_v35  ;;  %v7181_v35 = vld [vmem:[#allocation10_spill] sm:$0xff] }
 0x333   :  { %v1710_v7 = vld [vmem:[#allocation5 + $0xf0] sm:$0xff]  ;;  %v1797_v38 = vld [vmem:[#allocation5 + $0xd8] sm:$0xff] }
 0x334   :  { %v3469_v48 = vmul.f32 -1.442695, %v1311_v58  ;;  %v3468_v14 = vmul.f32 -1.442695, %v1218_v27  ;;  %v6691_v27 = vpack.c.bf16 %v1796_v17, %v1795_v43  ;;  %v1709_v58 = vld [vmem:[#allocation5 + $0xd0] sm:$0xff] }
 0x336   :  { %5962 = vpow2.f32 %v3469_v48  ;;  %v1798_v48 = vld [vmem:[#allocation5 + $0xf8] sm:$0xff] }
 0x337   :  { %5964 = vpow2.f32 %v3468_v14  ;;  %v6697_v14 = vpack.c.bf16 %v1710_v7, %v1709_v58 }
 0x340   :  { %v5963_v3 = vpop.eup %5962 }
 0x341   :  { %v5965_v4 = vpop.eup %5964  ;;  %v1315_v9 = vadd.f32 1.0, %v5963_v3  ;;  %v6699_v3 = vpack.c.bf16 %v1798_v48, %v1797_v38 }
 0x342   :  { %v1222_v20 = vadd.f32 1.0, %v5965_v4  ;;  %v1711_v4 = vld [vmem:[#allocation5 + $0x110] sm:$0xff] }
 0x343   :  { %5966 = vrcp.f32 %v1315_v9  ;;  %v1712_v9 = vld [vmem:[#allocation5 + $0x130] sm:$0xff] }
 0x344   :  { %5968 = vrcp.f32 %v1222_v20  ;;  %v1799_v20 = vld [vmem:[#allocation5 + $0x118] sm:$0xff] }
 0x34d   :  { %v5967_v55 = vpop.eup %5966 }
 0x34e   :  { %v5969_v62 = vpop.eup %5968  ;;  %v1499_v41 = vmul.f32 %v5967_v55, %v6545_v49 }
 0x351   :  { %v1400_v28 = vpop.f32.mrb[26].mxu0  ;;  %v1488_v29 = vpop.f32.mrb[26].mxu1 }
 0x352   :  { %v1404_v36 = vadd.f32 %v1400_v28, %v6399_v56  ;;  %v1492_v44 = vadd.f32 %v1488_v29, %v6404_v1  ;;  %v4420_v51 = vpop.f32.mrb[27].mxu0  ;;  %v4455_v52 = vpop.f32.mrb[27].mxu1  ;;  %v1703_v56 = vld [vmem:[#allocation5 + $0x10] sm:$0xff]  ;;  %v1800_v28 = vld [vmem:[#allocation5 + $0x138] sm:$0xff]  ;;  %v6705_v29 = vpack.c.bf16 %v1712_v9, %v1711_v4 }
 0x353   :  { %v1704_v1 = vld [vmem:[#allocation5 + $0x30] sm:$0xff]  ;;  %v1801_v52 = vld [vmem:[#allocation5 + $0x158] sm:$0xff] }
 0x354   :  { %5970 = vtanh.f32 %v1404_v36  ;;  %v3470_v59 = vmul.f32 -1.442695, %v1492_v44  ;;  %v6663_v25 = vpack.c.bf16 %v1704_v1, %v1703_v56  ;;  %v6707_v36 = vpack.c.bf16 %v1800_v28, %v1799_v20  ;;  %v1713_v44 = vld [vmem:[#allocation5 + $0x150] sm:$0xff] }
 0x355   :  { %v1714_v51 = vld [vmem:[#allocation5 + $0x170] sm:$0xff] }
 0x356   :  { %5972 = vpow2.f32 %v3470_v59  ;;  %v1802_v59 = vld [vmem:[#allocation5 + $0x178] sm:$0xff]  ;;  %v6713_v55 = vpack.c.bf16 %v1714_v51, %v1713_v44  ;;  %v1717_v1 = vld [vmem:[#allocation5 + $0x1d0] sm:$0xff]  ;;  %v7182_v44 = vld [vmem:[#allocation9_spill] sm:$0xff] }
 0x35e   :  { %v5971_v31 = vpop.eup %5970 }
 0x35f   :  { %v1500_v5 = vmul.f32 %v5971_v31, %v5969_v62  ;;  %v6715_v62 = vpack.c.bf16 %v1802_v59, %v1801_v52  ;;  %v1715_v31 = vld [vmem:[#allocation5 + $0x190] sm:$0xff]  ;;  %v7183_v52 = vld [vmem:[#allocation11_spill] sm:$0xff] }
 0x360   :  { %v5973_v0 = vpop.eup %5972 }
 0x361   :  { %v6660_v24 = vadd.f32 %v1500_v5, %v1499_v41  ;;  %v1496_v30 = vadd.f32 1.0, %v5973_v0  ;;  %v1716_v41 = vld [vmem:[#allocation5 + $0x1b0] sm:$0xff]  ;;  %v1803_v5 = vld [vmem:[#allocation5 + $0x198] sm:$0xff] }
 0x362   :  { %v1804_v0 = vld [vmem:[#allocation5 + $0x1b8] sm:$0xff] }
 0x363   :  { %5974 = vtanh.f32 %v6660_v24  ;;  %v6723_v56 = vpack.c.bf16 %v1804_v0, %v1803_v5 }
 0x364   :  { %5976 = vrcp.f32 %v1496_v30  ;;  %v6721_v30 = vpack.c.bf16 %v1716_v41, %v1715_v31 }
 0x36d   :  { %v5975_v11 = vpop.eup %5974 }
 0x36e   :  { %v5977_v19 = vpop.eup %5976 }
 0x36f   :  { %v6667_v49 = vmul.f32 %v5977_v19, %v5975_v11  ;;  %v1806_v11 = vld [vmem:[#allocation5 + $0x1f8] sm:$0xff]  ;;  %v6729_v19 = vpack.c.bf16 %v1718_v2, %v1717_v1 }
 0x370   :  { %v6731_v33 = vpack.c.bf16 %v1806_v11, %v1805_v16 }
 0x371   :  { %3471 = vst [vmem:[%s7154_s4 + $0x10] sm:$0xff] %v6667_v49  ;;  %4489 = vmatmul.mubr.f32.vlgmr.msra.gmra.mrb[28].mxu0 %v6667_v49  ;;  %4524 = vmatmul.mubr.f32.vlgmr.msra.gmra.mrb[28].mxu1 %v6667_v49 }
 0x372   :  { %5494 = vmatpush3.bf16.msra.mxu0 %v6663_v25  ;;  %5518 = vmatpush3.bf16.msra.mxu1 %v6665_v26 }
 0x373   :  { %5495 = vmatprep.subr.bf16.mxu0 %v7178_v6  ;;  %5519 = vmatprep.subr.bf16.mxu1 %v7178_v6 }
 0x374   :  { %4558 = vmatprep.mubr.msk.f32.mxu0 %vm6087_vm1, %v7179_v34  ;;  %4593 = vmatprep.mubr.msk.f32.mxu1 %vm6087_vm1, %v7179_v34 }
 0x376   :  { %5497 = vmatpush3.bf16.msra.mxu0 %v6677_v54  ;;  %5521 = vmatpush3.bf16.msra.mxu1 %v6679_v61 }
 0x377   :  { %5498 = vmatprep.subr.bf16.mxu0 %v7178_v6  ;;  %5522 = vmatprep.subr.bf16.mxu1 %v7178_v6 }
 0x37a   :  { %5500 = vmatpush3.bf16.msra.mxu0 %v6689_v23  ;;  %5524 = vmatpush3.bf16.msra.mxu1 %v6691_v27 }
 0x37b   :  { %5501 = vmatprep.subr.bf16.mxu0 %v7178_v6  ;;  %5525 = vmatprep.subr.bf16.mxu1 %v7178_v6 }
 0x37e   :  { %5503 = vmatpush3.bf16.msra.mxu0 %v6697_v14  ;;  %5527 = vmatpush3.bf16.msra.mxu1 %v6699_v3 }
 0x37f   :  { %5504 = vmatprep.subr.bf16.mxu0 %v7178_v6  ;;  %5528 = vmatprep.subr.bf16.mxu1 %v7178_v6 }
 0x382   :  { %5506 = vmatpush3.bf16.msra.mxu0 %v6705_v29  ;;  %5530 = vmatpush3.bf16.msra.mxu1 %v6707_v36 }
 0x383   :  { %5507 = vmatprep.subr.bf16.mxu0 %v7178_v6  ;;  %5531 = vmatprep.subr.bf16.mxu1 %v7178_v6 }
 0x386   :  { %5509 = vmatpush3.bf16.msra.mxu0 %v6713_v55  ;;  %5533 = vmatpush3.bf16.msra.mxu1 %v6715_v62 }
 0x387   :  { %5510 = vmatprep.subr.bf16.mxu0 %v7178_v6  ;;  %5534 = vmatprep.subr.bf16.mxu1 %v7178_v6 }
 0x38a   :  { %5512 = vmatpush3.bf16.msra.mxu0 %v6721_v30  ;;  %5536 = vmatpush3.bf16.msra.mxu1 %v6723_v56 }
 0x38b   :  { %5513 = vmatprep.subr.bf16.mxu0 %v7178_v6  ;;  %5537 = vmatprep.subr.bf16.mxu1 %v7178_v6 }
 0x38e   :  { %5515 = vmatpush3.bf16.msra.mxu0 %v6729_v19  ;;  %5539 = vmatpush3.bf16.msra.mxu1 %v6731_v33 }
 0x38f   :  { %5540 = vmatprep.subr.bf16.mxu0 %v7178_v6  ;;  %5564 = vmatprep.subr.bf16.mxu1 %v7178_v6 }
 0x391   :  { %4559 = vmatmul.mubr.f32.vlgmr.msra.gmra.mrb[30].mxu0 %v6667_v49  ;;  %4594 = vmatmul.mubr.f32.vlgmr.msra.gmra.mrb[30].mxu1 %v6667_v49 }
 0x392   :  { %5542 = vmatpush3.bf16.msra.mxu0 %v6591_v12  ;;  %5566 = vmatpush3.bf16.msra.mxu1 %v6593_v21 }
 0x393   :  { %5543 = vmatprep.subr.bf16.mxu0 %v7178_v6  ;;  %5567 = vmatprep.subr.bf16.mxu1 %v7178_v6 }
 0x394   :  { %4628 = vmatprep.mubr.msk.f32.mxu0 %vm6087_vm1, %v7179_v34  ;;  %4663 = vmatprep.mubr.msk.f32.mxu1 %vm6087_vm1, %v7179_v34 }
 0x396   :  { %5545 = vmatpush3.bf16.msra.mxu0 %v6599_v37  ;;  %5569 = vmatpush3.bf16.msra.mxu1 %v6601_v45 }
 0x397   :  { %5546 = vmatprep.subr.bf16.mxu0 %v7178_v6  ;;  %5570 = vmatprep.subr.bf16.mxu1 %v7178_v6 }
 0x39a   :  { %5548 = vmatpush3.bf16.msra.mxu0 %v6607_v63  ;;  %5572 = vmatpush3.bf16.msra.mxu1 %v6609_v15 }
 0x39b   :  { %5549 = vmatprep.subr.bf16.mxu0 %v7178_v6  ;;  %5573 = vmatprep.subr.bf16.mxu1 %v7178_v6 }
 0x39e   :  { %5551 = vmatpush3.bf16.msra.mxu0 %v6615_v13  ;;  %5575 = vmatpush3.bf16.msra.mxu1 %v6617_v22 }
 0x39f   :  { %5552 = vmatprep.subr.bf16.mxu0 %v7178_v6  ;;  %5576 = vmatprep.subr.bf16.mxu1 %v7178_v6 }
 0x3a2   :  { %5554 = vmatpush3.bf16.msra.mxu0 %v6623_v10  ;;  %5578 = vmatpush3.bf16.msra.mxu1 %v6625_v18 }
 0x3a3   :  { %5555 = vmatprep.subr.bf16.mxu0 %v7178_v6  ;;  %5579 = vmatprep.subr.bf16.mxu1 %v7178_v6 }
 0x3a6   :  { %5557 = vmatpush3.bf16.msra.mxu0 %v6631_v32  ;;  %5581 = vmatpush3.bf16.msra.mxu1 %v6633_v39 }
 0x3a7   :  { %5558 = vmatprep.subr.bf16.mxu0 %v7178_v6  ;;  %5582 = vmatprep.subr.bf16.mxu1 %v7178_v6 }
 0x3aa   :  { %5560 = vmatpush3.bf16.msra.mxu0 %v6636_v53  ;;  %5584 = vmatpush3.bf16.msra.mxu1 %v6640_v60 }
 0x3ab   :  { %5561 = vmatprep.subr.bf16.mxu0 %v7178_v6  ;;  %5585 = vmatprep.subr.bf16.mxu1 %v7178_v6 }
 0x3ae   :  { %5563 = vmatpush3.bf16.msra.mxu0 %v6644_v50  ;;  %5587 = vmatpush3.bf16.msra.mxu1 %v6648_v8 }
 0x3af   :  { %5588 = vmatprep.subr.bf16.mxu0 %v7178_v6  ;;  %5612 = vmatprep.subr.bf16.mxu1 %v7178_v6 }
 0x444   :  { %v1599_v49 = vpop.f32.mrb[28].mxu0  ;;  %v1692_v40 = vpop.f32.mrb[28].mxu1 }
 0x445   :  { %v1603_v47 = vadd.f32 %v1599_v49, %v7180_v46  ;;  %v1696_v42 = vadd.f32 %v1692_v40, %v7181_v35  ;;  %v4490_v43 = vpop.f32.mrb[29].mxu0  ;;  %v4525_v17 = vpop.f32.mrb[29].mxu1 }
 0x446   :  { %v7187_v17 = vld [vmem:[#allocation15_spill] sm:$0xff] }
 0x447   :  { %v3473_v58 = vmul.f32 -1.442695, %v1696_v42  ;;  %v3472_v7 = vmul.f32 -1.442695, %v1603_v47 }
 0x449   :  { %5978 = vpow2.f32 %v3473_v58 }
 0x44a   :  { %5980 = vpow2.f32 %v3472_v7 }
 0x453   :  { %v5979_v38 = vpop.eup %5978 }
 0x454   :  { %v5981_v48 = vpop.eup %5980  ;;  %v1700_v4 = vadd.f32 1.0, %v5979_v38 }
 0x455   :  { %v1607_v9 = vadd.f32 1.0, %v5981_v48 }
 0x456   :  { %5982 = vrcp.f32 %v1700_v4 }
 0x457   :  { %5984 = vrcp.f32 %v1607_v9 }
 0x460   :  { %v5983_v0 = vpop.eup %5982 }
 0x461   :  { %v5985_v1 = vpop.eup %5984  ;;  %v1884_v16 = vmul.f32 %v5983_v0, %v6660_v24  ;;  %v7186_v24 = vld [vmem:[#allocation13_spill] sm:$0xff] }
 0x462   :  { %v2770_v0 = vld [vmem:[#allocation5 + $0xa8] sm:$0xff] }
 0x464   :  { %v1785_v20 = vpop.f32.mrb[30].mxu0  ;;  %v1873_v28 = vpop.f32.mrb[30].mxu1 }
 0x465   :  { %v1789_v51 = vadd.f32 %v1785_v20, %v7182_v44  ;;  %v1877_v59 = vadd.f32 %v1873_v28, %v7183_v52  ;;  %v4560_v31 = vpop.f32.mrb[31].mxu0  ;;  %v4595_v41 = vpop.f32.mrb[31].mxu1 }
 0x467   :  { %5986 = vtanh.f32 %v1789_v51  ;;  %v3474_v5 = vmul.f32 -1.442695, %v1877_v59 }
 0x469   :  { %5988 = vpow2.f32 %v3474_v5 }
 0x471   :  { %v5987_v2 = vpop.eup %5986 }
 0x472   :  { %v1885_v11 = vmul.f32 %v5987_v2, %v5985_v1  ;;  %v2678_v2 = vld [vmem:[#allocation5 + $0xc0] sm:$0xff] }
 0x473   :  { %v5989_v49 = vpop.eup %5988 }
 0x474   :  { %v6782_v40 = vadd.f32 %v1885_v11, %v1884_v16  ;;  %v1881_v46 = vadd.f32 1.0, %v5989_v49  ;;  %v2679_v16 = vld [vmem:[#allocation5 + $0xe0] sm:$0xff]  ;;  %v2771_v11 = vld [vmem:[#allocation5 + $0xc8] sm:$0xff] }
 0x475   :  { %v6935_v49 = vpack.c.bf16 %v2679_v16, %v2678_v2 }
 0x476   :  { %5990 = vtanh.f32 %v6782_v40 }
 0x477   :  { %5992 = vrcp.f32 %v1881_v46 }
 0x480   :  { %v5991_v47 = vpop.eup %5990 }
 0x481   :  { %v5993_v35 = vpop.eup %5992 }
 0x482   :  { %v1888_v42 = vmul.f32 %v5993_v35, %v5991_v47  ;;  %v2680_v47 = vld [vmem:[#allocation5 + $0x100] sm:$0xff] }
 0x483   :  { %v2681_v35 = vld [vmem:[#allocation5 + $0x120] sm:$0xff] }
 0x484   :  { %3475 = vst [vmem:[%s7154_s4 + $0x18] sm:$0xff] %v1888_v42  ;;  %4629 = vmatmul.mubr.f32.vlgmr.msra.gmra.mrb[32].mxu0 %v1888_v42  ;;  %4664 = vmatmul.mubr.f32.vlgmr.msra.gmra.mrb[32].mxu1 %v1888_v42 }
 0x485   :  { %5590 = vmatpush3.bf16.msra.mxu0 %v6663_v25  ;;  %5614 = vmatpush3.bf16.msra.mxu1 %v6665_v26 }
 0x486   :  { %5591 = vmatprep.subr.bf16.mxu0 %v7178_v6  ;;  %5615 = vmatprep.subr.bf16.mxu1 %v7178_v6 }
 0x487   :  { %4698 = vmatprep.mubr.msk.f32.mxu0 %vm6087_vm1, %v7179_v34  ;;  %4733 = vmatprep.mubr.msk.f32.mxu1 %vm6087_vm1, %v7179_v34 }
 0x489   :  { %5593 = vmatpush3.bf16.msra.mxu0 %v6677_v54  ;;  %5617 = vmatpush3.bf16.msra.mxu1 %v6679_v61 }
 0x48a   :  { %5594 = vmatprep.subr.bf16.mxu0 %v7178_v6  ;;  %5618 = vmatprep.subr.bf16.mxu1 %v7178_v6 }
 0x48d   :  { %5596 = vmatpush3.bf16.msra.mxu0 %v6689_v23  ;;  %5620 = vmatpush3.bf16.msra.mxu1 %v6691_v27 }
 0x48e   :  { %5597 = vmatprep.subr.bf16.mxu0 %v7178_v6  ;;  %5621 = vmatprep.subr.bf16.mxu1 %v7178_v6 }
 0x491   :  { %5599 = vmatpush3.bf16.msra.mxu0 %v6697_v14  ;;  %5623 = vmatpush3.bf16.msra.mxu1 %v6699_v3 }
 0x492   :  { %5600 = vmatprep.subr.bf16.mxu0 %v7178_v6  ;;  %5624 = vmatprep.subr.bf16.mxu1 %v7178_v6 }
 0x495   :  { %5602 = vmatpush3.bf16.msra.mxu0 %v6705_v29  ;;  %5626 = vmatpush3.bf16.msra.mxu1 %v6707_v36 }
 0x496   :  { %5603 = vmatprep.subr.bf16.mxu0 %v7178_v6  ;;  %5627 = vmatprep.subr.bf16.mxu1 %v7178_v6 }
 0x499   :  { %5605 = vmatpush3.bf16.msra.mxu0 %v6713_v55  ;;  %5629 = vmatpush3.bf16.msra.mxu1 %v6715_v62 }
 0x49a   :  { %5606 = vmatprep.subr.bf16.mxu0 %v7178_v6  ;;  %5630 = vmatprep.subr.bf16.mxu1 %v7178_v6 }
 0x49d   :  { %5608 = vmatpush3.bf16.msra.mxu0 %v6721_v30  ;;  %5632 = vmatpush3.bf16.msra.mxu1 %v6723_v56 }
 0x49e   :  { %5609 = vmatprep.subr.bf16.mxu0 %v7178_v6  ;;  %5633 = vmatprep.subr.bf16.mxu1 %v7178_v6 }
 0x4a1   :  { %5611 = vmatpush3.bf16.msra.mxu0 %v6729_v19  ;;  %5635 = vmatpush3.bf16.msra.mxu1 %v6731_v33 }
 0x4a2   :  { %5636 = vmatprep.subr.bf16.mxu0 %v7178_v6  ;;  %5660 = vmatprep.subr.bf16.mxu1 %v7178_v6 }
 0x4a4   :  { %4699 = vmatmul.mubr.f32.vlgmr.msra.gmra.mrb[34].mxu0 %v1888_v42  ;;  %4734 = vmatmul.mubr.f32.vlgmr.msra.gmra.mrb[34].mxu1 %v1888_v42  ;;  %v2773_v42 = vld [vmem:[#allocation5 + $0x108] sm:$0xff] }
 0x4a5   :  { %5638 = vmatpush3.bf16.msra.mxu0 %v6591_v12  ;;  %5662 = vmatpush3.bf16.msra.mxu1 %v6593_v21 }
 0x4a6   :  { %5639 = vmatprep.subr.bf16.mxu0 %v7178_v6  ;;  %5663 = vmatprep.subr.bf16.mxu1 %v7178_v6 }
 0x4a7   :  { %4768 = vmatprep.mubr.msk.f32.mxu0 %vm6087_vm1, %v7179_v34  ;;  %4803 = vmatprep.mubr.msk.f32.mxu1 %vm6087_vm1, %v7179_v34 }
 0x4a9   :  { %5641 = vmatpush3.bf16.msra.mxu0 %v6599_v37  ;;  %5665 = vmatpush3.bf16.msra.mxu1 %v6601_v45  ;;  %v7184_v37 = vld [vmem:[#allocation12_spill] sm:$0xff] }
 0x4aa   :  { %5642 = vmatprep.subr.bf16.mxu0 %v7178_v6  ;;  %5666 = vmatprep.subr.bf16.mxu1 %v7178_v6 }
 0x4ad   :  { %5644 = vmatpush3.bf16.msra.mxu0 %v6607_v63  ;;  %5668 = vmatpush3.bf16.msra.mxu1 %v6609_v15  ;;  %v7185_v63 = vld [vmem:[#allocation14_spill] sm:$0xff] }
 0x4ae   :  { %5645 = vmatprep.subr.bf16.mxu0 %v7178_v6  ;;  %5669 = vmatprep.subr.bf16.mxu1 %v7178_v6 }
 0x4b1   :  { %5647 = vmatpush3.bf16.msra.mxu0 %v6615_v13  ;;  %5671 = vmatpush3.bf16.msra.mxu1 %v6617_v22 }
 0x4b2   :  { %5648 = vmatprep.subr.bf16.mxu0 %v7178_v6  ;;  %5672 = vmatprep.subr.bf16.mxu1 %v7178_v6 }
 0x4b5   :  { %5650 = vmatpush3.bf16.msra.mxu0 %v6623_v10  ;;  %5674 = vmatpush3.bf16.msra.mxu1 %v6625_v18 }
 0x4b6   :  { %5651 = vmatprep.subr.bf16.mxu0 %v7178_v6  ;;  %5675 = vmatprep.subr.bf16.mxu1 %v7178_v6 }
 0x4b9   :  { %5653 = vmatpush3.bf16.msra.mxu0 %v6631_v32  ;;  %5677 = vmatpush3.bf16.msra.mxu1 %v6633_v39 }
 0x4ba   :  { %5654 = vmatprep.subr.bf16.mxu0 %v7178_v6  ;;  %5678 = vmatprep.subr.bf16.mxu1 %v7178_v6 }
 0x4bd   :  { %5656 = vmatpush3.bf16.msra.mxu0 %v6636_v53  ;;  %5680 = vmatpush3.bf16.msra.mxu1 %v6640_v60 }
 0x4be   :  { %5657 = vmatprep.subr.bf16.mxu0 %v7178_v6  ;;  %5681 = vmatprep.subr.bf16.mxu1 %v7178_v6 }
 0x4c1   :  { %5659 = vmatpush3.bf16.msra.mxu0 %v6644_v50  ;;  %5683 = vmatpush3.bf16.msra.mxu1 %v6648_v8 }
 0x4c2   :  { %5684 = vmatprep.subr.bf16.mxu0 %v7178_v6  ;;  %5708 = vmatprep.subr.bf16.mxu1 %v7178_v6 }
 0x557   :  { %v1984_v12 = vpop.f32.mrb[32].mxu0  ;;  %v2077_v21 = vpop.f32.mrb[32].mxu1 }
 0x558   :  { %v1988_v45 = vadd.f32 %v1984_v12, %v7184_v37  ;;  %v2081_v15 = vadd.f32 %v2077_v21, %v7185_v63  ;;  %v4630_v13 = vpop.f32.mrb[33].mxu0  ;;  %v4665_v22 = vpop.f32.mrb[33].mxu1  ;;  %v6943_v12 = vpack.c.bf16 %v2681_v35, %v2680_v47  ;;  %v2774_v21 = vld [vmem:[#allocation5 + $0x128] sm:$0xff]  ;;  %v2683_v63 = vld [vmem:[#allocation5 + $0x160] sm:$0xff] }
 0x559   :  { %v6945_v37 = vpack.c.bf16 %v2774_v21, %v2773_v42  ;;  %v2776_v22 = vld [vmem:[#allocation5 + $0x168] sm:$0xff]  ;;  %v2858_v21 = vld [vmem:[#allocation5 + $0x10] sm:$0xff] }
 0x55a   :  { %v3477_v10 = vmul.f32 -1.442695, %v2081_v15  ;;  %v3476_v18 = vmul.f32 -1.442695, %v1988_v45  ;;  %v2682_v45 = vld [vmem:[#allocation5 + $0x140] sm:$0xff]  ;;  %v2775_v15 = vld [vmem:[#allocation5 + $0x148] sm:$0xff] }
 0x55b   :  { %v6951_v13 = vpack.c.bf16 %v2683_v63, %v2682_v45  ;;  %v2859_v45 = vld [vmem:[#allocation5 + $0x30] sm:$0xff]  ;;  %v2946_v63 = vld [vmem:[#allocation5 + $0x18] sm:$0xff] }
 0x55c   :  { %5994 = vpow2.f32 %v3477_v10  ;;  %v6953_v10 = vpack.c.bf16 %v2776_v22, %v2775_v15  ;;  %v2947_v15 = vld [vmem:[#allocation5 + $0x38] sm:$0xff] }
 0x55d   :  { %5996 = vpow2.f32 %v3476_v18  ;;  %v2684_v18 = vld [vmem:[#allocation5 + $0x180] sm:$0xff] }
 0x566   :  { %v5995_v32 = vpop.eup %5994 }
 0x567   :  { %v5997_v39 = vpop.eup %5996  ;;  %v2085_v53 = vadd.f32 1.0, %v5995_v32  ;;  %v2685_v32 = vld [vmem:[#allocation5 + $0x1a0] sm:$0xff] }
 0x568   :  { %v1992_v60 = vadd.f32 1.0, %v5997_v39  ;;  %v2777_v39 = vld [vmem:[#allocation5 + $0x188] sm:$0xff] }
 0x569   :  { %5998 = vrcp.f32 %v2085_v53  ;;  %v6956_v53 = vpack.c.bf16 %v2685_v32, %v2684_v18  ;;  %v6983_v32 = vpack.c.bf16 %v2859_v45, %v2858_v21  ;;  %v2872_v45 = vld [vmem:[#allocation5 + $0x1d0] sm:$0xff] }
 0x56a   :  { %6000 = vrcp.f32 %v1992_v60  ;;  %v2778_v60 = vld [vmem:[#allocation5 + $0x1a8] sm:$0xff] }
 0x573   :  { %v5999_v4 = vpop.eup %5998 }
 0x574   :  { %v6001_v9 = vpop.eup %6000  ;;  %v2269_v28 = vmul.f32 %v5999_v4, %v6782_v40  ;;  %v2772_v40 = vld [vmem:[#allocation5 + $0xe8] sm:$0xff]  ;;  %v7188_v4 = vld [vmem:[#allocation16_spill] sm:$0xff] }
 0x575   :  { %v6937_v46 = vpack.c.bf16 %v2772_v40, %v2771_v11 }
 0x577   :  { %v2170_v50 = vpop.f32.mrb[34].mxu0  ;;  %v2258_v8 = vpop.f32.mrb[34].mxu1 }
 0x578   :  { %v2174_v43 = vadd.f32 %v2170_v50, %v7186_v24  ;;  %v2262_v58 = vadd.f32 %v2258_v8, %v7187_v17  ;;  %v4700_v7 = vpop.f32.mrb[35].mxu0  ;;  %v4735_v38 = vpop.f32.mrb[35].mxu1  ;;  %v6960_v50 = vpack.c.bf16 %v2778_v60, %v2777_v39  ;;  %v2686_v8 = vld [vmem:[#allocation5 + $0x1c0] sm:$0xff]  ;;  %v2780_v17 = vld [vmem:[#allocation5 + $0x1e8] sm:$0xff]  ;;  %v6985_v39 = vpack.c.bf16 %v2947_v15, %v2946_v63  ;;  %v2860_v60 = vld [vmem:[#allocation5 + $0x50] sm:$0xff] }
 0x579   :  { %v2687_v24 = vld [vmem:[#allocation5 + $0x1e0] sm:$0xff]  ;;  %v2873_v63 = vld [vmem:[#allocation5 + $0x1f0] sm:$0xff]  ;;  %v2960_v15 = vld [vmem:[#allocation5 + $0x1d8] sm:$0xff] }
 0x57a   :  { %6002 = vtanh.f32 %v2174_v43  ;;  %v3478_v48 = vmul.f32 -1.442695, %v2262_v58  ;;  %v2779_v43 = vld [vmem:[#allocation5 + $0x1c8] sm:$0xff]  ;;  %v6964_v58 = vpack.c.bf16 %v2687_v24, %v2686_v8  ;;  %v2861_v8 = vld [vmem:[#allocation5 + $0x70] sm:$0xff]  ;;  %v2948_v24 = vld [vmem:[#allocation5 + $0x58] sm:$0xff] }
 0x57b   :  { %v6968_v7 = vpack.c.bf16 %v2780_v17, %v2779_v43  ;;  %v2949_v43 = vld [vmem:[#allocation5 + $0x78] sm:$0xff]  ;;  %v6997_v17 = vpack.c.bf16 %v2861_v8, %v2860_v60 }
 0x57c   :  { %6004 = vpow2.f32 %v3478_v48 }
 0x584   :  { %v6003_v20 = vpop.eup %6002 }
 0x585   :  { %v2270_v44 = vmul.f32 %v6003_v20, %v6001_v9  ;;  %v7189_v20 = vld [vmem:[#allocation18_spill] sm:$0xff] }
 0x586   :  { %v6005_v51 = vpop.eup %6004 }
 0x587   :  { %v6865_v52 = vadd.f32 %v2270_v44, %v2269_v28  ;;  %v2266_v59 = vadd.f32 1.0, %v6005_v51 }
 0x589   :  { %6006 = vtanh.f32 %v6865_v52 }
 0x58a   :  { %6008 = vrcp.f32 %v2266_v59 }
 0x593   :  { %v6007_v31 = vpop.eup %6006 }
 0x594   :  { %v6009_v41 = vpop.eup %6008 }
 0x595   :  { %v2273_v5 = vmul.f32 %v6009_v41, %v6007_v31 }
 0x597   :  { %3479 = vst [vmem:[%s7154_s4 + $0x20] sm:$0xff] %v2273_v5  ;;  %4769 = vmatmul.mubr.f32.vlgmr.msra.gmra.mrb[36].mxu0 %v2273_v5  ;;  %4804 = vmatmul.mubr.f32.vlgmr.msra.gmra.mrb[36].mxu1 %v2273_v5 }
 0x598   :  { %5686 = vmatpush3.bf16.msra.mxu0 %v6663_v25  ;;  %5710 = vmatpush3.bf16.msra.mxu1 %v6665_v26  ;;  %v2672_v25 = vld [vmem:[#allocation5] sm:$0xff] }
 0x599   :  { %5687 = vmatprep.subr.bf16.mxu0 %v7178_v6  ;;  %5711 = vmatprep.subr.bf16.mxu1 %v7178_v6  ;;  %v2673_v26 = vld [vmem:[#allocation5 + $0x20] sm:$0xff] }
 0x59a   :  { %4838 = vmatprep.mubr.msk.f32.mxu0 %vm6087_vm1, %v7179_v34  ;;  %4873 = vmatprep.mubr.msk.f32.mxu1 %vm6087_vm1, %v7179_v34 }
 0x59c   :  { %5689 = vmatpush3.bf16.msra.mxu0 %v6677_v54  ;;  %5713 = vmatpush3.bf16.msra.mxu1 %v6679_v61  ;;  %v2765_v54 = vld [vmem:[#allocation5 + $0x8] sm:$0xff]  ;;  %v6911_v61 = vpack.c.bf16 %v2673_v26, %v2672_v25 }
 0x59d   :  { %5690 = vmatprep.subr.bf16.mxu0 %v7178_v6  ;;  %5714 = vmatprep.subr.bf16.mxu1 %v7178_v6 }
 0x5a0   :  { %5692 = vmatpush3.bf16.msra.mxu0 %v6689_v23  ;;  %5716 = vmatpush3.bf16.msra.mxu1 %v6691_v27  ;;  %v2766_v23 = vld [vmem:[#allocation5 + $0x28] sm:$0xff] }
 0x5a1   :  { %5693 = vmatprep.subr.bf16.mxu0 %v7178_v6  ;;  %5717 = vmatprep.subr.bf16.mxu1 %v7178_v6  ;;  %v6913_v27 = vpack.c.bf16 %v2766_v23, %v2765_v54 }
 0x5a4   :  { %5695 = vmatpush3.bf16.msra.mxu0 %v6697_v14  ;;  %5719 = vmatpush3.bf16.msra.mxu1 %v6699_v3  ;;  %v2674_v14 = vld [vmem:[#allocation5 + $0x40] sm:$0xff] }
 0x5a5   :  { %5696 = vmatprep.subr.bf16.mxu0 %v7178_v6  ;;  %5720 = vmatprep.subr.bf16.mxu1 %v7178_v6  ;;  %v2675_v3 = vld [vmem:[#allocation5 + $0x60] sm:$0xff] }
 0x5a8   :  { %5698 = vmatpush3.bf16.msra.mxu0 %v6705_v29  ;;  %5722 = vmatpush3.bf16.msra.mxu1 %v6707_v36  ;;  %v2767_v29 = vld [vmem:[#allocation5 + $0x48] sm:$0xff]  ;;  %v6919_v36 = vpack.c.bf16 %v2675_v3, %v2674_v14 }
 0x5a9   :  { %5699 = vmatprep.subr.bf16.mxu0 %v7178_v6  ;;  %5723 = vmatprep.subr.bf16.mxu1 %v7178_v6  ;;  %v7190_v14 = vld [vmem:[#allocation17_spill] sm:$0xff] }
 0x5ac   :  { %5701 = vmatpush3.bf16.msra.mxu0 %v6713_v55  ;;  %5725 = vmatpush3.bf16.msra.mxu1 %v6715_v62  ;;  %v2768_v55 = vld [vmem:[#allocation5 + $0x68] sm:$0xff] }
 0x5ad   :  { %5702 = vmatprep.subr.bf16.mxu0 %v7178_v6  ;;  %5726 = vmatprep.subr.bf16.mxu1 %v7178_v6  ;;  %v6921_v62 = vpack.c.bf16 %v2768_v55, %v2767_v29  ;;  %v7191_v29 = vld [vmem:[#allocation19_spill] sm:$0xff] }
 0x5b0   :  { %5704 = vmatpush3.bf16.msra.mxu0 %v6721_v30  ;;  %5728 = vmatpush3.bf16.msra.mxu1 %v6723_v56  ;;  %v2676_v30 = vld [vmem:[#allocation5 + $0x80] sm:$0xff] }
 0x5b1   :  { %5705 = vmatprep.subr.bf16.mxu0 %v7178_v6  ;;  %5729 = vmatprep.subr.bf16.mxu1 %v7178_v6  ;;  %v2677_v56 = vld [vmem:[#allocation5 + $0xa0] sm:$0xff] }
 0x5b4   :  { %5707 = vmatpush3.bf16.msra.mxu0 %v6729_v19  ;;  %5731 = vmatpush3.bf16.msra.mxu1 %v6731_v33  ;;  %v2769_v19 = vld [vmem:[#allocation5 + $0x88] sm:$0xff]  ;;  %v6927_v33 = vpack.c.bf16 %v2677_v56, %v2676_v30 }
 0x5b5   :  { %5732 = vmatprep.subr.bf16.mxu0 %v7178_v6  ;;  %5756 = vmatprep.subr.bf16.mxu1 %v7178_v6  ;;  %v6929_v1 = vpack.c.bf16 %v2770_v0, %v2769_v19 }
 0x5b7   :  { %4839 = vmatmul.mubr.f32.vlgmr.msra.gmra.mrb[38].mxu0 %v2273_v5  ;;  %4874 = vmatmul.mubr.f32.vlgmr.msra.gmra.mrb[38].mxu1 %v2273_v5 }
 0x5b8   :  { %4908 = vmatprep.mubr.msk.f32.mxu0 %vm6087_vm1, %v7179_v34  ;;  %4943 = vmatprep.mubr.msk.f32.mxu1 %vm6087_vm1, %v7179_v34 }
 0x5b9   :  { %5734 = vmatpush3.bf16.msra.mxu0 %v6911_v61  ;;  %5758 = vmatpush3.bf16.msra.mxu1 %v6913_v27 }
 0x5ba   :  { %5735 = vmatprep.subr.bf16.mxu0 %v7178_v6  ;;  %5759 = vmatprep.subr.bf16.mxu1 %v7178_v6 }
 0x5bd   :  { %5737 = vmatpush3.bf16.msra.mxu0 %v6919_v36  ;;  %5761 = vmatpush3.bf16.msra.mxu1 %v6921_v62 }
 0x5be   :  { %5738 = vmatprep.subr.bf16.mxu0 %v7178_v6  ;;  %5762 = vmatprep.subr.bf16.mxu1 %v7178_v6 }
 0x5c1   :  { %5740 = vmatpush3.bf16.msra.mxu0 %v6927_v33  ;;  %5764 = vmatpush3.bf16.msra.mxu1 %v6929_v1 }
 0x5c2   :  { %5741 = vmatprep.subr.bf16.mxu0 %v7178_v6  ;;  %5765 = vmatprep.subr.bf16.mxu1 %v7178_v6 }
 0x5c5   :  { %5743 = vmatpush3.bf16.msra.mxu0 %v6935_v49  ;;  %5767 = vmatpush3.bf16.msra.mxu1 %v6937_v46 }
 0x5c6   :  { %5744 = vmatprep.subr.bf16.mxu0 %v7178_v6  ;;  %5768 = vmatprep.subr.bf16.mxu1 %v7178_v6 }
 0x5c9   :  { %5746 = vmatpush3.bf16.msra.mxu0 %v6943_v12  ;;  %5770 = vmatpush3.bf16.msra.mxu1 %v6945_v37 }
 0x5ca   :  { %5747 = vmatprep.subr.bf16.mxu0 %v7178_v6  ;;  %5771 = vmatprep.subr.bf16.mxu1 %v7178_v6 }
 0x5cd   :  { %5749 = vmatpush3.bf16.msra.mxu0 %v6951_v13  ;;  %5773 = vmatpush3.bf16.msra.mxu1 %v6953_v10 }
 0x5ce   :  { %5750 = vmatprep.subr.bf16.mxu0 %v7178_v6  ;;  %5774 = vmatprep.subr.bf16.mxu1 %v7178_v6 }
 0x5d1   :  { %5752 = vmatpush3.bf16.msra.mxu0 %v6956_v53  ;;  %5776 = vmatpush3.bf16.msra.mxu1 %v6960_v50 }
 0x5d2   :  { %5753 = vmatprep.subr.bf16.mxu0 %v7178_v6  ;;  %5777 = vmatprep.subr.bf16.mxu1 %v7178_v6 }
 0x5d5   :  { %5755 = vmatpush3.bf16.msra.mxu0 %v6964_v58  ;;  %5779 = vmatpush3.bf16.msra.mxu1 %v6968_v7 }
 0x5d6   :  { %5780 = vmatprep.subr.bf16.mxu0 %v7178_v6  ;;  %5804 = vmatprep.subr.bf16.mxu1 %v7178_v6 }
 0x66a   :  { %v2369_v38 = vpop.f32.mrb[36].mxu0  ;;  %v2462_v48 = vpop.f32.mrb[36].mxu1 }
 0x66b   :  { %v2373_v9 = vadd.f32 %v2369_v38, %v7188_v4  ;;  %v2466_v28 = vadd.f32 %v2462_v48, %v7189_v20  ;;  %v4770_v44 = vpop.f32.mrb[37].mxu0  ;;  %v4805_v51 = vpop.f32.mrb[37].mxu1  ;;  %v6999_v38 = vpack.c.bf16 %v2949_v43, %v2948_v24  ;;  %v2862_v48 = vld [vmem:[#allocation5 + $0x90] sm:$0xff]  ;;  %v2951_v20 = vld [vmem:[#allocation5 + $0xb8] sm:$0xff] }
 0x66c   :  { %v2863_v4 = vld [vmem:[#allocation5 + $0xb0] sm:$0xff]  ;;  %v7195_v24 = vld [vmem:[#allocation23_spill] sm:$0xff] }
 0x66d   :  { %v3481_v59 = vmul.f32 -1.442695, %v2466_v28  ;;  %v3480_v31 = vmul.f32 -1.442695, %v2373_v9  ;;  %v2950_v9 = vld [vmem:[#allocation5 + $0x98] sm:$0xff]  ;;  %v7009_v28 = vpack.c.bf16 %v2863_v4, %v2862_v48  ;;  %v2864_v51 = vld [vmem:[#allocation5 + $0xd0] sm:$0xff] }
 0x66e   :  { %v7011_v44 = vpack.c.bf16 %v2951_v20, %v2950_v9 }
 0x66f   :  { %6010 = vpow2.f32 %v3481_v59  ;;  %v2865_v59 = vld [vmem:[#allocation5 + $0xf0] sm:$0xff] }
 0x670   :  { %6012 = vpow2.f32 %v3480_v31  ;;  %v2952_v31 = vld [vmem:[#allocation5 + $0xd8] sm:$0xff] }
 0x679   :  { %v6011_v41 = vpop.eup %6010 }
 0x67a   :  { %v6013_v5 = vpop.eup %6012  ;;  %v2470_v25 = vadd.f32 1.0, %v6011_v41  ;;  %v2953_v41 = vld [vmem:[#allocation5 + $0xf8] sm:$0xff] }
 0x67b   :  { %v2377_v26 = vadd.f32 1.0, %v6013_v5  ;;  %v7017_v5 = vpack.c.bf16 %v2865_v59, %v2864_v51 }
 0x67c   :  { %6014 = vrcp.f32 %v2470_v25  ;;  %v7019_v25 = vpack.c.bf16 %v2953_v41, %v2952_v31 }
 0x67d   :  { %6016 = vrcp.f32 %v2377_v26  ;;  %v2866_v26 = vld [vmem:[#allocation5 + $0x110] sm:$0xff] }
 0x686   :  { %v6015_v0 = vpop.eup %6014 }
 0x687   :  { %v6017_v2 = vpop.eup %6016  ;;  %v2654_v11 = vmul.f32 %v6015_v0, %v6865_v52 }
 0x68a   :  { %v2555_v54 = vpop.f32.mrb[38].mxu0  ;;  %v2643_v23 = vpop.f32.mrb[38].mxu1 }
 0x68b   :  { %v2559_v3 = vadd.f32 %v2555_v54, %v7190_v14  ;;  %v2647_v55 = vadd.f32 %v2643_v23, %v7191_v29  ;;  %v4840_v30 = vpop.f32.mrb[39].mxu0  ;;  %v4875_v56 = vpop.f32.mrb[39].mxu1  ;;  %v2867_v54 = vld [vmem:[#allocation5 + $0x130] sm:$0xff]  ;;  %v2954_v23 = vld [vmem:[#allocation5 + $0x118] sm:$0xff] }
 0x68c   :  { %v2955_v14 = vld [vmem:[#allocation5 + $0x138] sm:$0xff]  ;;  %v2869_v30 = vld [vmem:[#allocation5 + $0x170] sm:$0xff] }
 0x68d   :  { %6018 = vtanh.f32 %v2559_v3  ;;  %v3482_v19 = vmul.f32 -1.442695, %v2647_v55  ;;  %v7025_v3 = vpack.c.bf16 %v2867_v54, %v2866_v26  ;;  %v7027_v29 = vpack.c.bf16 %v2955_v14, %v2954_v23  ;;  %v2868_v55 = vld [vmem:[#allocation5 + $0x150] sm:$0xff]  ;;  %v2956_v56 = vld [vmem:[#allocation5 + $0x158] sm:$0xff] }
 0x68e   :  { %v7033_v0 = vpack.c.bf16 %v2869_v30, %v2868_v55 }
 0x68f   :  { %6020 = vpow2.f32 %v3482_v19  ;;  %v2957_v19 = vld [vmem:[#allocation5 + $0x178] sm:$0xff] }
 0x697   :  { %v6019_v16 = vpop.eup %6018 }
 0x698   :  { %v2655_v40 = vmul.f32 %v6019_v16, %v6017_v2  ;;  %v7035_v2 = vpack.c.bf16 %v2957_v19, %v2956_v56  ;;  %v2870_v16 = vld [vmem:[#allocation5 + $0x190] sm:$0xff] }
 0x699   :  { %v6021_v47 = vpop.eup %6020 }
 0x69a   :  { %v6980_v35 = vadd.f32 %v2655_v40, %v2654_v11  ;;  %v2651_v42 = vadd.f32 1.0, %v6021_v47  ;;  %v2871_v11 = vld [vmem:[#allocation5 + $0x1b0] sm:$0xff]  ;;  %v2958_v40 = vld [vmem:[#allocation5 + $0x198] sm:$0xff] }
 0x69b   :  { %v2959_v47 = vld [vmem:[#allocation5 + $0x1b8] sm:$0xff] }
 0x69c   :  { %6022 = vtanh.f32 %v6980_v35  ;;  %v7043_v21 = vpack.c.bf16 %v2959_v47, %v2958_v40 }
 0x69d   :  { %6024 = vrcp.f32 %v2651_v42  ;;  %v7041_v42 = vpack.c.bf16 %v2871_v11, %v2870_v16 }
 0x6a6   :  { %v6023_v22 = vpop.eup %6022 }
 0x6a7   :  { %v6025_v18 = vpop.eup %6024 }
 0x6a8   :  { %v6987_v52 = vmul.f32 %v6025_v18, %v6023_v22  ;;  %v2961_v22 = vld [vmem:[#allocation5 + $0x1f8] sm:$0xff]  ;;  %v7049_v18 = vpack.c.bf16 %v2873_v63, %v2872_v45 }
 0x6a9   :  { %v7051_v60 = vpack.c.bf16 %v2961_v22, %v2960_v15 }
 0x6aa   :  { %3483 = vst [vmem:[%s7154_s4 + $0x28] sm:$0xff] %v6987_v52  ;;  %4909 = vmatmul.mubr.f32.vlgmr.msra.gmra.mrb[40].mxu0 %v6987_v52  ;;  %4944 = vmatmul.mubr.f32.vlgmr.msra.gmra.mrb[40].mxu1 %v6987_v52 }
 0x6ab   :  { %5782 = vmatpush3.bf16.msra.mxu0 %v6983_v32  ;;  %5806 = vmatpush3.bf16.msra.mxu1 %v6985_v39 }
 0x6ac   :  { %5783 = vmatprep.subr.bf16.mxu0 %v7178_v6  ;;  %5807 = vmatprep.subr.bf16.mxu1 %v7178_v6 }
 0x6ad   :  { %4978 = vmatprep.mubr.msk.f32.mxu0 %vm6087_vm1, %v7179_v34  ;;  %5013 = vmatprep.mubr.msk.f32.mxu1 %vm6087_vm1, %v7179_v34 }
 0x6af   :  { %5785 = vmatpush3.bf16.msra.mxu0 %v6997_v17  ;;  %5809 = vmatpush3.bf16.msra.mxu1 %v6999_v38 }
 0x6b0   :  { %5786 = vmatprep.subr.bf16.mxu0 %v7178_v6  ;;  %5810 = vmatprep.subr.bf16.mxu1 %v7178_v6 }
 0x6b3   :  { %5788 = vmatpush3.bf16.msra.mxu0 %v7009_v28  ;;  %5812 = vmatpush3.bf16.msra.mxu1 %v7011_v44 }
 0x6b4   :  { %5789 = vmatprep.subr.bf16.mxu0 %v7178_v6  ;;  %5813 = vmatprep.subr.bf16.mxu1 %v7178_v6 }
 0x6b7   :  { %5791 = vmatpush3.bf16.msra.mxu0 %v7017_v5  ;;  %5815 = vmatpush3.bf16.msra.mxu1 %v7019_v25 }
 0x6b8   :  { %5792 = vmatprep.subr.bf16.mxu0 %v7178_v6  ;;  %5816 = vmatprep.subr.bf16.mxu1 %v7178_v6 }
 0x6bb   :  { %5794 = vmatpush3.bf16.msra.mxu0 %v7025_v3  ;;  %5818 = vmatpush3.bf16.msra.mxu1 %v7027_v29 }
 0x6bc   :  { %5795 = vmatprep.subr.bf16.mxu0 %v7178_v6  ;;  %5819 = vmatprep.subr.bf16.mxu1 %v7178_v6 }
 0x6bf   :  { %5797 = vmatpush3.bf16.msra.mxu0 %v7033_v0  ;;  %5821 = vmatpush3.bf16.msra.mxu1 %v7035_v2 }
 0x6c0   :  { %5798 = vmatprep.subr.bf16.mxu0 %v7178_v6  ;;  %5822 = vmatprep.subr.bf16.mxu1 %v7178_v6 }
 0x6c3   :  { %5800 = vmatpush3.bf16.msra.mxu0 %v7041_v42  ;;  %5824 = vmatpush3.bf16.msra.mxu1 %v7043_v21 }
 0x6c4   :  { %5801 = vmatprep.subr.bf16.mxu0 %v7178_v6  ;;  %5825 = vmatprep.subr.bf16.mxu1 %v7178_v6 }
 0x6c7   :  { %5803 = vmatpush3.bf16.msra.mxu0 %v7049_v18  ;;  %5827 = vmatpush3.bf16.msra.mxu1 %v7051_v60 }
 0x6c8   :  { %5828 = vmatprep.subr.bf16.mxu0 %v7178_v6  ;;  %5852 = vmatprep.subr.bf16.mxu1 %v7178_v6 }
 0x6ca   :  { %4979 = vmatmul.mubr.f32.vlgmr.msra.gmra.mrb[42].mxu0 %v6987_v52  ;;  %5014 = vmatmul.mubr.f32.vlgmr.msra.gmra.mrb[42].mxu1 %v6987_v52  ;;  %v7194_v52 = vld [vmem:[#allocation21_spill] sm:$0xff] }
 0x6cb   :  { %5830 = vmatpush3.bf16.msra.mxu0 %v6911_v61  ;;  %5854 = vmatpush3.bf16.msra.mxu1 %v6913_v27 }
 0x6cc   :  { %5831 = vmatprep.subr.bf16.mxu0 %v7178_v6  ;;  %5855 = vmatprep.subr.bf16.mxu1 %v7178_v6 }
 0x6cd   :  { %5048 = vmatprep.mubr.msk.f32.mxu0 %vm6087_vm1, %v7179_v34  ;;  %5083 = vmatprep.mubr.msk.f32.mxu1 %vm6087_vm1, %v7179_v34 }
 0x6cf   :  { %5833 = vmatpush3.bf16.msra.mxu0 %v6919_v36  ;;  %5857 = vmatpush3.bf16.msra.mxu1 %v6921_v62  ;;  %v7192_v36 = vld [vmem:[#allocation20_spill] sm:$0xff] }
 0x6d0   :  { %5834 = vmatprep.subr.bf16.mxu0 %v7178_v6  ;;  %5858 = vmatprep.subr.bf16.mxu1 %v7178_v6 }
 0x6d3   :  { %5836 = vmatpush3.bf16.msra.mxu0 %v6927_v33  ;;  %5860 = vmatpush3.bf16.msra.mxu1 %v6929_v1  ;;  %v7193_v33 = vld [vmem:[#allocation22_spill] sm:$0xff] }
 0x6d4   :  { %5837 = vmatprep.subr.bf16.mxu0 %v7178_v6  ;;  %5861 = vmatprep.subr.bf16.mxu1 %v7178_v6 }
 0x6d7   :  { %5839 = vmatpush3.bf16.msra.mxu0 %v6935_v49  ;;  %5863 = vmatpush3.bf16.msra.mxu1 %v6937_v46 }
 0x6d8   :  { %5840 = vmatprep.subr.bf16.mxu0 %v7178_v6  ;;  %5864 = vmatprep.subr.bf16.mxu1 %v7178_v6 }
 0x6db   :  { %5842 = vmatpush3.bf16.msra.mxu0 %v6943_v12  ;;  %5866 = vmatpush3.bf16.msra.mxu1 %v6945_v37 }
 0x6dc   :  { %5843 = vmatprep.subr.bf16.mxu0 %v7178_v6  ;;  %5867 = vmatprep.subr.bf16.mxu1 %v7178_v6 }
 0x6df   :  { %5845 = vmatpush3.bf16.msra.mxu0 %v6951_v13  ;;  %5869 = vmatpush3.bf16.msra.mxu1 %v6953_v10 }
 0x6e0   :  { %5846 = vmatprep.subr.bf16.mxu0 %v7178_v6  ;;  %5870 = vmatprep.subr.bf16.mxu1 %v7178_v6 }
 0x6e3   :  { %5848 = vmatpush3.bf16.msra.mxu0 %v6956_v53  ;;  %5872 = vmatpush3.bf16.msra.mxu1 %v6960_v50 }
 0x6e4   :  { %5849 = vmatprep.subr.bf16.mxu0 %v7178_v6  ;;  %5873 = vmatprep.subr.bf16.mxu1 %v7178_v6 }
 0x6e7   :  { %5851 = vmatpush3.bf16.msra.mxu0 %v6964_v58  ;;  %5875 = vmatpush3.bf16.msra.mxu1 %v6968_v7 }
 0x6e8   :  { %5876 = vmatprep.subr.bf16.mxu0 %v7178_v6  ;;  %5900 = vmatprep.subr.bf16.mxu1 %v7178_v6 }
 0x77d   :  { %v2754_v61 = vpop.f32.mrb[40].mxu0  ;;  %v2847_v27 = vpop.f32.mrb[40].mxu1 }
 0x77e   :  { %v2758_v62 = vadd.f32 %v2754_v61, %v7192_v36  ;;  %v2851_v1 = vadd.f32 %v2847_v27, %v7193_v33  ;;  %v4910_v49 = vpop.f32.mrb[41].mxu0  ;;  %v4945_v46 = vpop.f32.mrb[41].mxu1 }
 0x780   :  { %v3485_v12 = vmul.f32 -1.442695, %v2851_v1  ;;  %v3484_v37 = vmul.f32 -1.442695, %v2758_v62 }
 0x782   :  { %6026 = vpow2.f32 %v3485_v12 }
 0x783   :  { %6028 = vpow2.f32 %v3484_v37 }
 0x78c   :  { %v6027_v13 = vpop.eup %6026 }
 0x78d   :  { %v6029_v10 = vpop.eup %6028  ;;  %v2855_v53 = vadd.f32 1.0, %v6027_v13 }
 0x78e   :  { %v2762_v50 = vadd.f32 1.0, %v6029_v10 }
 0x78f   :  { %6030 = vrcp.f32 %v2855_v53 }
 0x790   :  { %6032 = vrcp.f32 %v2762_v50 }
 0x799   :  { %v6031_v20 = vpop.eup %6030 }
 0x79a   :  { %v6033_v51 = vpop.eup %6032  ;;  %v3039_v31 = vmul.f32 %v6031_v20, %v6980_v35 }
 0x79d   :  { %v2940_v58 = vpop.f32.mrb[42].mxu0  ;;  %v3028_v7 = vpop.f32.mrb[42].mxu1 }
 0x79e   :  { %v2944_v8 = vadd.f32 %v2940_v58, %v7194_v52  ;;  %v3032_v43 = vadd.f32 %v3028_v7, %v7195_v24  ;;  %v4980_v48 = vpop.f32.mrb[43].mxu0  ;;  %v5015_v4 = vpop.f32.mrb[43].mxu1 }
 0x7a0   :  { %6034 = vtanh.f32 %v2944_v8  ;;  %v3486_v9 = vmul.f32 -1.442695, %v3032_v43 }
 0x7a2   :  { %6036 = vpow2.f32 %v3486_v9 }
 0x7aa   :  { %v6035_v59 = vpop.eup %6034 }
 0x7ab   :  { %v3040_v41 = vmul.f32 %v6035_v59, %v6033_v51 }
 0x7ac   :  { %v6037_v26 = vpop.eup %6036 }
 0x7ad   :  { %v7102_v54 = vadd.f32 %v3040_v41, %v3039_v31  ;;  %v3036_v23 = vadd.f32 1.0, %v6037_v26 }
 0x7af   :  { %6038 = vtanh.f32 %v7102_v54 }
 0x7b0   :  { %6040 = vrcp.f32 %v3036_v23 }
 0x7b9   :  { %v6039_v14 = vpop.eup %6038 }
 0x7ba   :  { %v6041_v55 = vpop.eup %6040 }
 0x7bb   :  { %v3043_v30 = vmul.f32 %v6041_v55, %v6039_v14 }
 0x7bd   :  { %3487 = vst [vmem:[%s7154_s4 + $0x30] sm:$0xff] %v3043_v30  ;;  %5049 = vmatmul.mubr.f32.vlgmr.msra.gmra.mrb[44].mxu0 %v3043_v30  ;;  %5084 = vmatmul.mubr.f32.vlgmr.msra.gmra.mrb[44].mxu1 %v3043_v30 }
 0x7be   :  { %5878 = vmatpush3.bf16.msra.mxu0 %v6983_v32  ;;  %5902 = vmatpush3.bf16.msra.mxu1 %v6985_v39  ;;  %v7196_v32 = vld [vmem:[#allocation24_spill] sm:$0xff] }
 0x7bf   :  { %5879 = vmatprep.subr.bf16.mxu0 %v7178_v6  ;;  %5903 = vmatprep.subr.bf16.mxu1 %v7178_v6 }
 0x7c0   :  { %5118 = vmatprep.mubr.msk.f32.mxu0 %vm6087_vm1, %v7179_v34  ;;  %5153 = vmatprep.mubr.msk.f32.mxu1 %vm6087_vm1, %v7179_v34 }
 0x7c2   :  { %5881 = vmatpush3.bf16.msra.mxu0 %v6997_v17  ;;  %5905 = vmatpush3.bf16.msra.mxu1 %v6999_v38  ;;  %v7197_v17 = vld [vmem:[#allocation26_spill] sm:$0xff] }
 0x7c3   :  { %5882 = vmatprep.subr.bf16.mxu0 %v7178_v6  ;;  %5906 = vmatprep.subr.bf16.mxu1 %v7178_v6 }
 0x7c6   :  { %5884 = vmatpush3.bf16.msra.mxu0 %v7009_v28  ;;  %5908 = vmatpush3.bf16.msra.mxu1 %v7011_v44 }
 0x7c7   :  { %5885 = vmatprep.subr.bf16.mxu0 %v7178_v6  ;;  %5909 = vmatprep.subr.bf16.mxu1 %v7178_v6 }
 0x7ca   :  { %5887 = vmatpush3.bf16.msra.mxu0 %v7017_v5  ;;  %5911 = vmatpush3.bf16.msra.mxu1 %v7019_v25 }
 0x7cb   :  { %5888 = vmatprep.subr.bf16.mxu0 %v7178_v6  ;;  %5912 = vmatprep.subr.bf16.mxu1 %v7178_v6 }
 0x7ce   :  { %5890 = vmatpush3.bf16.msra.mxu0 %v7025_v3  ;;  %5914 = vmatpush3.bf16.msra.mxu1 %v7027_v29 }
 0x7cf   :  { %5891 = vmatprep.subr.bf16.mxu0 %v7178_v6  ;;  %5915 = vmatprep.subr.bf16.mxu1 %v7178_v6 }
 0x7d2   :  { %5893 = vmatpush3.bf16.msra.mxu0 %v7033_v0  ;;  %5917 = vmatpush3.bf16.msra.mxu1 %v7035_v2  ;;  %v7198_v2 = vld [vmem:[#allocation25_spill] sm:$0xff] }
 0x7d3   :  { %5894 = vmatprep.subr.bf16.mxu0 %v7178_v6  ;;  %5918 = vmatprep.subr.bf16.mxu1 %v7178_v6 }
 0x7d6   :  { %5896 = vmatpush3.bf16.msra.mxu0 %v7041_v42  ;;  %5920 = vmatpush3.bf16.msra.mxu1 %v7043_v21 }
 0x7d7   :  { %5897 = vmatprep.subr.bf16.mxu0 %v7178_v6  ;;  %5921 = vmatprep.subr.bf16.mxu1 %v7178_v6 }
 0x7da   :  { %5899 = vmatpush3.bf16.msra.mxu0 %v7049_v18  ;;  %5923 = vmatpush3.bf16.msra.mxu1 %v7051_v60 }
 0x7dd   :  { %5119 = vmatmul.mubr.f32.vlgmr.msra.gmra.mrb[46].mxu0 %v3043_v30  ;;  %5154 = vmatmul.mubr.f32.vlgmr.msra.gmra.mrb[46].mxu1 %v3043_v30 }
 0x890   :  { %v3139_v34 = vpop.f32.mrb[44].mxu0  ;;  %v3232_v35 = vpop.f32.mrb[44].mxu1 }
 0x891   :  { %v3143_v39 = vadd.f32 %v3139_v34, %v7196_v32  ;;  %v3236_v38 = vadd.f32 %v3232_v35, %v7197_v17  ;;  %v5050_v28 = vpop.f32.mrb[45].mxu0  ;;  %v5085_v44 = vpop.f32.mrb[45].mxu1 }
 0x893   :  { %v3489_v5 = vmul.f32 -1.442695, %v3236_v38  ;;  %v3488_v25 = vmul.f32 -1.442695, %v3143_v39 }
 0x895   :  { %6042 = vpow2.f32 %v3489_v5 }
 0x896   :  { %6044 = vpow2.f32 %v3488_v25 }
 0x89f   :  { %v6043_v3 = vpop.eup %6042 }
 0x8a0   :  { %v6045_v6 = vpop.eup %6044  ;;  %v3240_v29 = vadd.f32 1.0, %v6043_v3 }
 0x8a1   :  { %v3147_v56 = vadd.f32 1.0, %v6045_v6 }
 0x8a2   :  { %6046 = vrcp.f32 %v3240_v29 }
 0x8a3   :  { %6048 = vrcp.f32 %v3147_v56 }
 0x8ac   :  { %v6047_v21 = vpop.eup %6046 }
 0x8ad   :  { %v6049_v45 = vpop.eup %6048  ;;  %v3424_v15 = vmul.f32 %v6047_v21, %v7102_v54 }
 0x8b0   :  { %v3325_v19 = vpop.f32.mrb[46].mxu0  ;;  %v3413_v0 = vpop.f32.mrb[46].mxu1 }
 0x8b1   :  { %v3329_v16 = vadd.f32 %v3325_v19, %v7198_v2  ;;  %v3417_v11 = vadd.f32 %v3413_v0, %v6454_v57  ;;  %v5120_v40 = vpop.f32.mrb[47].mxu0  ;;  %v5155_v47 = vpop.f32.mrb[47].mxu1 }
 0x8b3   :  { %6050 = vtanh.f32 %v3329_v16  ;;  %v3490_v42 = vmul.f32 -1.442695, %v3417_v11 }
 0x8b5   :  { %6052 = vpow2.f32 %v3490_v42 }
 0x8bd   :  { %v6051_v63 = vpop.eup %6050 }
 0x8be   :  { %v3425_v22 = vmul.f32 %v6051_v63, %v6049_v45 }
 0x8bf   :  { %v6053_v18 = vpop.eup %6052 }
 0x8c0   :  { %v3426_v60 = vadd.f32 %v3425_v22, %v3424_v15  ;;  %v3421_v61 = vadd.f32 1.0, %v6053_v18 }
 0x8c2   :  { %6054 = vtanh.f32 %v3426_v60 }
 0x8c3   :  { %6056 = vrcp.f32 %v3421_v61 }
 0x8cc   :  { %v6055_v27 = vpop.eup %6054 }
 0x8cd   :  { %v6057_v36 = vpop.eup %6056 }
 0x8ce   :  { %v3428_v57 = vmul.f32 %v6057_v36, %v6055_v27 }
 0x8d0   :  { %3491 = vst [vmem:[%s7154_s4 + $0x38] sm:$0xff] %v3428_v57 }
 0x8d1   :  { %3437 = vsyncpa [#allocation6], 1 }

// kernel: lstm_neural_net_forward.4
= control target key start
LH: loop header
LB: loop body
LE: loop exit
PB: predicated region body
PF: predicated region fallthrough
CT: control target
= control target key end

     0   :  { %v8690_v3 = vmov 0.0   ;;  %vm6664_vm0 = vmmov 0   ;;  %s8685_s1 = inlined_call_operand.vmem [shape: f32[128,512], index: 1, kind: input, shape index: {}]   ;;  %s8686_s2 = inlined_call_operand.vmem [shape: f32[128,512], index: 2, kind: input, shape index: {}]   ;;  %s8687_s0 = inlined_call_operand.vmem [shape: f32[64,128], index: 0, kind: input, shape index: {}]   ;;  %s8688_s3 = inlined_call_operand.vmem [shape: f32[1,512], index: 3, kind: input, shape index: {}]   ;;  %s8689_s4 = inlined_call_operand.vmem [shape: f32[8,8,128], index: 4, kind: output, shape index: {}]  }
   0x1   :  { %v32_v0 = vld [vmem:[%s8685_s1 + $0x8] sm:$0xff]  ;;  %v34_v2 = vld [vmem:[%s8685_s1 + $0x18] sm:$0xff]  ;;  %181 = vmatprep.mubr.f32.mxu0 %v8690_v3  ;;  %294 = vmatprep.mubr.f32.mxu1 %v8690_v3  ;;  %v31_v6 = vld [vmem:[%s8685_s1] sm:$0xff] }
   0x2   :  { %v36_v1 = vld [vmem:[%s8685_s1 + $0x28] sm:$0xff]  ;;  %v38_v5 = vld [vmem:[%s8685_s1 + $0x38] sm:$0xff]  ;;  %v35_v7 = vld [vmem:[%s8685_s1 + $0x20] sm:$0xff] }
   0x3   :  { %v5698_v4 = vpack.c.bf16 %v36_v1, %v32_v0  ;;  %v5730_v8 = vpack.c.bf16 %v38_v5, %v34_v2  ;;  %v5700_v9 = vpack.c.bf16 %v35_v7, %v31_v6  ;;  %v33_v10 = vld [vmem:[%s8685_s1 + $0x10] sm:$0xff]  ;;  %v40_v12 = vld [vmem:[%s8685_s1 + $0x48] sm:$0xff]  ;;  %v42_v15 = vld [vmem:[%s8685_s1 + $0x58] sm:$0xff] }
   0x4   :  { %v37_v11 = vld [vmem:[%s8685_s1 + $0x30] sm:$0xff]  ;;  %v44_v14 = vld [vmem:[%s8685_s1 + $0x68] sm:$0xff]  ;;  %v46_v16 = vld [vmem:[%s8685_s1 + $0x78] sm:$0xff] }
   0x5   :  { %5699 = vmatprep.subr.bf16.mxu0 %v5698_v4  ;;  %v5732_v13 = vpack.c.bf16 %v37_v11, %v33_v10  ;;  %5731 = vmatprep.subr.bf16.mxu1 %v5730_v8  ;;  %v5702_v17 = vpack.c.bf16 %v44_v14, %v40_v12  ;;  %v5734_v18 = vpack.c.bf16 %v46_v16, %v42_v15  ;;  %v39_v19 = vld [vmem:[%s8685_s1 + $0x40] sm:$0xff]  ;;  %v41_v21 = vld [vmem:[%s8685_s1 + $0x50] sm:$0xff]  ;;  %v48_v24 = vld [vmem:[%s8685_s1 + $0x88] sm:$0xff] }
   0x6   :  { %5701 = vmatpush1.bf16.msra.mxu0 %v5700_v9  ;;  %v43_v20 = vld [vmem:[%s8685_s1 + $0x60] sm:$0xff]  ;;  %v45_v23 = vld [vmem:[%s8685_s1 + $0x70] sm:$0xff]  ;;  %v52_v25 = vld [vmem:[%s8685_s1 + $0xa8] sm:$0xff] }
   0x7   :  { %5733 = vmatpush1.bf16.msra.mxu1 %v5732_v13  ;;  %v5704_v22 = vpack.c.bf16 %v43_v20, %v39_v19  ;;  %5703 = vmatprep.subr.bf16.mxu0 %v5702_v17  ;;  %v5736_v26 = vpack.c.bf16 %v45_v23, %v41_v21  ;;  %v5706_v27 = vpack.c.bf16 %v52_v25, %v48_v24  ;;  %v50_v28 = vld [vmem:[%s8685_s1 + $0x98] sm:$0xff]  ;;  %v47_v30 = vld [vmem:[%s8685_s1 + $0x80] sm:$0xff]  ;;  %v49_v33 = vld [vmem:[%s8685_s1 + $0x90] sm:$0xff] }
   0x8   :  { %5735 = vmatprep.subr.bf16.mxu1 %v5734_v18  ;;  %v54_v29 = vld [vmem:[%s8685_s1 + $0xb8] sm:$0xff]  ;;  %v51_v32 = vld [vmem:[%s8685_s1 + $0xa0] sm:$0xff]  ;;  %v53_v34 = vld [vmem:[%s8685_s1 + $0xb0] sm:$0xff] }
   0x9   :  { %v5738_v31 = vpack.c.bf16 %v54_v29, %v50_v28  ;;  %v5708_v35 = vpack.c.bf16 %v51_v32, %v47_v30  ;;  %v56_v36 = vld [vmem:[%s8685_s1 + $0xc8] sm:$0xff]  ;;  %v58_v38 = vld [vmem:[%s8685_s1 + $0xd8] sm:$0xff]  ;;  %v5740_v39 = vpack.c.bf16 %v53_v34, %v49_v33  ;;  %v55_v42 = vld [vmem:[%s8685_s1 + $0xc0] sm:$0xff] }
   0xa   :  { %5705 = vmatpush1.bf16.msra.mxu0 %v5704_v22  ;;  %v60_v37 = vld [vmem:[%s8685_s1 + $0xe8] sm:$0xff]  ;;  %v62_v41 = vld [vmem:[%s8685_s1 + $0xf8] sm:$0xff]  ;;  %v59_v43 = vld [vmem:[%s8685_s1 + $0xe0] sm:$0xff] }
   0xb   :  { %5737 = vmatpush1.bf16.msra.mxu1 %v5736_v26  ;;  %5707 = vmatprep.subr.bf16.mxu0 %v5706_v27  ;;  %v5710_v40 = vpack.c.bf16 %v60_v37, %v56_v36  ;;  %v5742_v44 = vpack.c.bf16 %v62_v41, %v58_v38  ;;  %v57_v45 = vld [vmem:[%s8685_s1 + $0xd0] sm:$0xff]  ;;  %v64_v47 = vld [vmem:[%s8685_s1 + $0x108] sm:$0xff]  ;;  %v66_v49 = vld [vmem:[%s8685_s1 + $0x118] sm:$0xff]  ;;  %v5712_v51 = vpack.c.bf16 %v59_v43, %v55_v42 }
   0xc   :  { %5739 = vmatprep.subr.bf16.mxu1 %v5738_v31  ;;  %v61_v46 = vld [vmem:[%s8685_s1 + $0xf0] sm:$0xff]  ;;  %v68_v48 = vld [vmem:[%s8685_s1 + $0x128] sm:$0xff]  ;;  %v70_v50 = vld [vmem:[%s8685_s1 + $0x138] sm:$0xff] }
   0xd   :  { %v5744_v52 = vpack.c.bf16 %v61_v46, %v57_v45  ;;  %v5714_v53 = vpack.c.bf16 %v68_v48, %v64_v47  ;;  %v63_v54 = vld [vmem:[%s8685_s1 + $0x100] sm:$0xff]  ;;  %v65_v56 = vld [vmem:[%s8685_s1 + $0x110] sm:$0xff]  ;;  %v5746_v57 = vpack.c.bf16 %v70_v50, %v66_v49  ;;  %v72_v59 = vld [vmem:[%s8685_s1 + $0x148] sm:$0xff] }
   0xe   :  { %5709 = vmatpush1.bf16.msra.mxu0 %v5708_v35  ;;  %v67_v55 = vld [vmem:[%s8685_s1 + $0x120] sm:$0xff]  ;;  %v69_v58 = vld [vmem:[%s8685_s1 + $0x130] sm:$0xff]  ;;  %v76_v60 = vld [vmem:[%s8685_s1 + $0x168] sm:$0xff] }
   0xf   :  { %5741 = vmatpush1.bf16.msra.mxu1 %v5740_v39  ;;  %5711 = vmatprep.subr.bf16.mxu0 %v5710_v40  ;;  %v74_v61 = vld [vmem:[%s8685_s1 + $0x158] sm:$0xff]  ;;  %v5716_v63 = vpack.c.bf16 %v67_v55, %v63_v54  ;;  %v5748_v0 = vpack.c.bf16 %v69_v58, %v65_v56  ;;  %v5718_v1 = vpack.c.bf16 %v76_v60, %v72_v59  ;;  %v71_v2 = vld [vmem:[%s8685_s1 + $0x140] sm:$0xff]  ;;  %v73_v5 = vld [vmem:[%s8685_s1 + $0x150] sm:$0xff]  ;;  %v8692_v40 = vmov 0.0|0.0  }
  0x10   :  { %5743 = vmatprep.subr.bf16.mxu1 %v5742_v44  ;;  %v78_v62 = vld [vmem:[%s8685_s1 + $0x178] sm:$0xff]  ;;  %v75_v4 = vld [vmem:[%s8685_s1 + $0x160] sm:$0xff]  ;;  %v77_v7 = vld [vmem:[%s8685_s1 + $0x170] sm:$0xff] }
  0x11   :  { %v5750_v6 = vpack.c.bf16 %v78_v62, %v74_v61  ;;  %v80_v8 = vld [vmem:[%s8685_s1 + $0x188] sm:$0xff]  ;;  %v82_v10 = vld [vmem:[%s8685_s1 + $0x198] sm:$0xff]  ;;  %v5720_v12 = vpack.c.bf16 %v75_v4, %v71_v2  ;;  %v5752_v13 = vpack.c.bf16 %v77_v7, %v73_v5  ;;  %v79_v15 = vld [vmem:[%s8685_s1 + $0x180] sm:$0xff] }
  0x12   :  { %5713 = vmatpush1.bf16.msra.mxu0 %v5712_v51  ;;  %v84_v9 = vld [vmem:[%s8685_s1 + $0x1a8] sm:$0xff]  ;;  %v86_v11 = vld [vmem:[%s8685_s1 + $0x1b8] sm:$0xff]  ;;  %v83_v16 = vld [vmem:[%s8685_s1 + $0x1a0] sm:$0xff] }
  0x13   :  { %5745 = vmatpush1.bf16.msra.mxu1 %v5744_v52  ;;  %5715 = vmatprep.subr.bf16.mxu0 %v5714_v53  ;;  %v5722_v14 = vpack.c.bf16 %v84_v9, %v80_v8  ;;  %v81_v17 = vld [vmem:[%s8685_s1 + $0x190] sm:$0xff]  ;;  %v5754_v18 = vpack.c.bf16 %v86_v11, %v82_v10  ;;  %v88_v20 = vld [vmem:[%s8685_s1 + $0x1c8] sm:$0xff]  ;;  %v90_v22 = vld [vmem:[%s8685_s1 + $0x1d8] sm:$0xff]  ;;  %v5724_v24 = vpack.c.bf16 %v83_v16, %v79_v15 }
  0x14   :  { %5747 = vmatprep.subr.bf16.mxu1 %v5746_v57  ;;  %v85_v19 = vld [vmem:[%s8685_s1 + $0x1b0] sm:$0xff]  ;;  %v92_v21 = vld [vmem:[%s8685_s1 + $0x1e8] sm:$0xff]  ;;  %v94_v23 = vld [vmem:[%s8685_s1 + $0x1f8] sm:$0xff] }
  0x15   :  { %v5756_v25 = vpack.c.bf16 %v85_v19, %v81_v17  ;;  %v5726_v26 = vpack.c.bf16 %v92_v21, %v88_v20  ;;  %v87_v27 = vld [vmem:[%s8685_s1 + $0x1c0] sm:$0xff]  ;;  %v5758_v29 = vpack.c.bf16 %v94_v23, %v90_v22  ;;  %v89_v30 = vld [vmem:[%s8685_s1 + $0x1d0] sm:$0xff]  ;;  %v477_v36 = vld [vmem:[%s8686_s2 + $0x8] sm:$0xff] }
  0x16   :  { %5717 = vmatpush1.bf16.msra.mxu0 %v5716_v63  ;;  %v91_v28 = vld [vmem:[%s8685_s1 + $0x1e0] sm:$0xff]  ;;  %v93_v31 = vld [vmem:[%s8685_s1 + $0x1f0] sm:$0xff]  ;;  %v478_v37 = vld [vmem:[%s8686_s2 + $0x28] sm:$0xff] }
  0x17   :  { %5749 = vmatpush1.bf16.msra.mxu1 %v5748_v0  ;;  %5719 = vmatprep.subr.bf16.mxu0 %v5718_v1  ;;  %v5728_v32 = vpack.c.bf16 %v91_v28, %v87_v27  ;;  %v5760_v33 = vpack.c.bf16 %v93_v31, %v89_v30  ;;  %v384_v34 = vld [vmem:[%s8686_s2] sm:$0xff]  ;;  %v6903_v41 = vpack.c.bf16 %v478_v37, %v477_v36  ;;  %v479_v44 = vld [vmem:[%s8686_s2 + $0x48] sm:$0xff]  ;;  %v25_v53 = vld [vmem:[%s8687_s0 + $0x10] sm:$0xff] }
  0x18   :  { %5751 = vmatprep.subr.bf16.mxu1 %v5750_v6  ;;  %v385_v35 = vld [vmem:[%s8686_s2 + $0x20] sm:$0xff]  ;;  %v480_v45 = vld [vmem:[%s8686_s2 + $0x68] sm:$0xff]  ;;  %v26_v60 = vld [vmem:[%s8687_s0 + $0x18] sm:$0xff] }
  0x19   :  { %v23_v38 = vld [vmem:[%s8687_s0] sm:$0xff]  ;;  %v6900_v39 = vpack.c.bf16 %v385_v35, %v384_v34  ;;  %v24_v46 = vld [vmem:[%s8687_s0 + $0x8] sm:$0xff]  ;;  %v6926_v48 = vpack.c.bf16 %v480_v45, %v479_v44  ;;  %v570_v28 = vld [vmem:[%s8686_s2 + $0x10] sm:$0xff] }
  0x1a   :  { %5721 = vmatpush1.bf16.msra.mxu0 %v5720_v12  ;;  %v386_v42 = vld [vmem:[%s8686_s2 + $0x40] sm:$0xff]  ;;  %v481_v51 = vld [vmem:[%s8686_s2 + $0x88] sm:$0xff]  ;;  %v658_v30 = vld [vmem:[%s8686_s2 + $0x18] sm:$0xff] }
  0x1b   :  { %5753 = vmatpush1.bf16.msra.mxu1 %v5752_v13  ;;  %5723 = vmatprep.subr.bf16.mxu0 %v5722_v14  ;;  %v387_v43 = vld [vmem:[%s8686_s2 + $0x60] sm:$0xff]  ;;  %v482_v52 = vld [vmem:[%s8686_s2 + $0xa8] sm:$0xff]  ;;  %v659_v31 = vld [vmem:[%s8686_s2 + $0x38] sm:$0xff] }
  0x1c   :  { %5755 = vmatprep.subr.bf16.mxu1 %v5754_v18  ;;  %v6922_v47 = vpack.c.bf16 %v387_v43, %v386_v42  ;;  %v388_v49 = vld [vmem:[%s8686_s2 + $0x80] sm:$0xff]  ;;  %v6951_v55 = vpack.c.bf16 %v482_v52, %v481_v51  ;;  %v483_v58 = vld [vmem:[%s8686_s2 + $0xc8] sm:$0xff]  ;;  %v29_v18 = vld [vmem:[%s8687_s0 + $0x30] sm:$0xff] }
  0x1d   :  { %v389_v50 = vld [vmem:[%s8686_s2 + $0xa0] sm:$0xff]  ;;  %v484_v59 = vld [vmem:[%s8686_s2 + $0xe8] sm:$0xff]  ;;  %v572_v34 = vld [vmem:[%s8686_s2 + $0x50] sm:$0xff] }
  0x1e   :  { %5725 = vmatpush1.bf16.msra.mxu0 %v5724_v24  ;;  %v6947_v54 = vpack.c.bf16 %v389_v50, %v388_v49  ;;  %v390_v56 = vld [vmem:[%s8686_s2 + $0xc0] sm:$0xff]  ;;  %v6976_v62 = vpack.c.bf16 %v484_v59, %v483_v58  ;;  %v485_v1 = vld [vmem:[%s8686_s2 + $0x108] sm:$0xff]  ;;  %v573_v35 = vld [vmem:[%s8686_s2 + $0x70] sm:$0xff] }
  0x1f   :  { %5757 = vmatpush1.bf16.msra.mxu1 %v5756_v25  ;;  %5727 = vmatprep.subr.bf16.mxu0 %v5726_v26  ;;  %v391_v57 = vld [vmem:[%s8686_s2 + $0xe0] sm:$0xff]  ;;  %v486_v2 = vld [vmem:[%s8686_s2 + $0x128] sm:$0xff]  ;;  %v30_v25 = vld [vmem:[%s8687_s0 + $0x38] sm:$0xff] }
  0x20   :  { %5759 = vmatprep.subr.bf16.mxu1 %v5758_v29  ;;  %v6972_v61 = vpack.c.bf16 %v391_v57, %v390_v56  ;;  %v392_v63 = vld [vmem:[%s8686_s2 + $0x100] sm:$0xff]  ;;  %v7001_v6 = vpack.c.bf16 %v486_v2, %v485_v1  ;;  %v487_v9 = vld [vmem:[%s8686_s2 + $0x148] sm:$0xff]  ;;  %v571_v29 = vld [vmem:[%s8686_s2 + $0x30] sm:$0xff] }
  0x21   :  { %v393_v0 = vld [vmem:[%s8686_s2 + $0x120] sm:$0xff]  ;;  %v488_v10 = vld [vmem:[%s8686_s2 + $0x168] sm:$0xff]  ;;  %v660_v36 = vld [vmem:[%s8686_s2 + $0x58] sm:$0xff] }
  0x22   :  { %5729 = vmatpush1.bf16.msra.mxu0 %v5728_v32  ;;  %v27_v4 = vld [vmem:[%s8687_s0 + $0x20] sm:$0xff]  ;;  %v6997_v5 = vpack.c.bf16 %v393_v0, %v392_v63  ;;  %v28_v11 = vld [vmem:[%s8687_s0 + $0x28] sm:$0xff]  ;;  %v7026_v13 = vpack.c.bf16 %v488_v10, %v487_v9  ;;  %v7094_v32 = vpack.c.bf16 %v571_v29, %v570_v28  ;;  %v661_v37 = vld [vmem:[%s8686_s2 + $0x78] sm:$0xff] }
  0x23   :  { %5761 = vmatpush1.bf16.msra.mxu1 %v5760_v33  ;;  %5762 = vmatprep.subr.bf16.mxu0 %v8692_v40  ;;  %v394_v7 = vld [vmem:[%s8686_s2 + $0x140] sm:$0xff]  ;;  %v489_v16 = vld [vmem:[%s8686_s2 + $0x188] sm:$0xff]  ;;  %v7099_v33 = vpack.c.bf16 %v659_v31, %v658_v30  ;;  %v7124_v42 = vpack.c.bf16 %v661_v37, %v660_v36  ;;  %v574_v43 = vld [vmem:[%s8686_s2 + $0x90] sm:$0xff] }
  0x24   :  { %5786 = vmatprep.subr.bf16.mxu1 %v8692_v40  ;;  %v395_v8 = vld [vmem:[%s8686_s2 + $0x160] sm:$0xff]  ;;  %v490_v17 = vld [vmem:[%s8686_s2 + $0x1a8] sm:$0xff]  ;;  %v575_v44 = vld [vmem:[%s8686_s2 + $0xb0] sm:$0xff] }
  0x25   :  { %182 = vmatmul.mubr.f32.vlgmr.msra.gmra.mrb[0].mxu0 %v23_v38  ;;  %v7022_v12 = vpack.c.bf16 %v395_v8, %v394_v7  ;;  %v396_v14 = vld [vmem:[%s8686_s2 + $0x180] sm:$0xff]  ;;  %v7051_v20 = vpack.c.bf16 %v490_v17, %v489_v16  ;;  %v491_v23 = vld [vmem:[%s8686_s2 + $0x1c8] sm:$0xff]  ;;  %v662_v45 = vld [vmem:[%s8686_s2 + $0x98] sm:$0xff]  ;;  %v7144_v49 = vpack.c.bf16 %v575_v44, %v574_v43 }
  0x26   :  { %295 = vmatmul.mubr.f32.vlgmr.msra.gmra.mrb[0].mxu1 %v23_v38  ;;  %5764 = vmatpush3.bf16.msra.mxu0 %v6900_v39  ;;  %v397_v15 = vld [vmem:[%s8686_s2 + $0x1a0] sm:$0xff]  ;;  %v492_v24 = vld [vmem:[%s8686_s2 + $0x1e8] sm:$0xff]  ;;  %v7120_v38 = vpack.c.bf16 %v573_v35, %v572_v34  ;;  %v576_v51 = vld [vmem:[%s8686_s2 + $0xd0] sm:$0xff] }
  0x27   :  { %5788 = vmatpush3.bf16.msra.mxu1 %v6903_v41  ;;  %187 = vmatprep.mubr.f32.mxu0 %v8690_v3  ;;  %v7047_v19 = vpack.c.bf16 %v397_v15, %v396_v14  ;;  %v398_v21 = vld [vmem:[%s8686_s2 + $0x1c0] sm:$0xff]  ;;  %v7076_v27 = vpack.c.bf16 %v492_v24, %v491_v23  ;;  %v577_v52 = vld [vmem:[%s8686_s2 + $0xf0] sm:$0xff]  ;;  %v665_v56 = vld [vmem:[%s8686_s2 + $0xf8] sm:$0xff] }
  0x28   :  { %300 = vmatprep.mubr.f32.mxu1 %v8690_v3  ;;  %5765 = vmatprep.subr.bf16.mxu0 %v8692_v40  ;;  %v399_v22 = vld [vmem:[%s8686_s2 + $0x1e0] sm:$0xff]  ;;  %v7164_v57 = vpack.c.bf16 %v577_v52, %v576_v51  ;;  %v578_v59 = vld [vmem:[%s8686_s2 + $0x110] sm:$0xff]  ;;  %v666_v63 = vld [vmem:[%s8686_s2 + $0x118] sm:$0xff] }
  0x29   :  { %188 = vmatmul.mubr.f32.gmra.mrb[2].mxu0 %v24_v46  ;;  %5789 = vmatprep.subr.bf16.mxu1 %v8692_v40  ;;  %v7072_v26 = vpack.c.bf16 %v399_v22, %v398_v21  ;;  %v667_v0 = vld [vmem:[%s8686_s2 + $0x138] sm:$0xff]  ;;  %v581_v7 = vld [vmem:[%s8686_s2 + $0x170] sm:$0xff] }
  0x2a   :  { %301 = vmatmul.mubr.f32.gmra.mrb[2].mxu1 %v24_v46  ;;  %5767 = vmatpush3.bf16.msra.mxu0 %v6922_v47  ;;  %v663_v46 = vld [vmem:[%s8686_s2 + $0xb8] sm:$0xff]  ;;  %v7188_v2 = vpack.c.bf16 %v667_v0, %v666_v63  ;;  %v582_v14 = vld [vmem:[%s8686_s2 + $0x190] sm:$0xff] }
  0x2b   :  { %5791 = vmatpush3.bf16.msra.mxu1 %v6926_v48  ;;  %193 = vmatprep.mubr.f32.mxu0 %v8690_v3  ;;  %v7148_v50 = vpack.c.bf16 %v663_v46, %v662_v45  ;;  %v668_v8 = vld [vmem:[%s8686_s2 + $0x158] sm:$0xff]  ;;  %v583_v15 = vld [vmem:[%s8686_s2 + $0x1b0] sm:$0xff] }
  0x2c   :  { %306 = vmatprep.mubr.f32.mxu1 %v8690_v3  ;;  %5768 = vmatprep.subr.bf16.mxu0 %v8692_v40  ;;  %v669_v9 = vld [vmem:[%s8686_s2 + $0x178] sm:$0xff]  ;;  %v584_v22 = vld [vmem:[%s8686_s2 + $0x1d0] sm:$0xff] }
  0x2d   :  { %194 = vmatmul.mubr.f32.gmra.mrb[4].mxu0 %v25_v53  ;;  %5792 = vmatprep.subr.bf16.mxu1 %v8692_v40  ;;  %v670_v16 = vld [vmem:[%s8686_s2 + $0x198] sm:$0xff]  ;;  %v585_v23 = vld [vmem:[%s8686_s2 + $0x1f0] sm:$0xff] }
  0x2e   :  { %307 = vmatmul.mubr.f32.gmra.mrb[4].mxu1 %v25_v53  ;;  %5770 = vmatpush3.bf16.msra.mxu0 %v6947_v54  ;;  %v664_v53 = vld [vmem:[%s8686_s2 + $0xd8] sm:$0xff]  ;;  %v7244_v28 = vpack.c.bf16 %v585_v23, %v584_v22 }
  0x2f   :  { %5794 = vmatpush3.bf16.msra.mxu1 %v6951_v55  ;;  %199 = vmatprep.mubr.f32.mxu0 %v8690_v3  ;;  %v7168_v58 = vpack.c.bf16 %v665_v56, %v664_v53  ;;  %v671_v17 = vld [vmem:[%s8686_s2 + $0x1b8] sm:$0xff] }
  0x30   :  { %312 = vmatprep.mubr.f32.mxu1 %v8690_v3  ;;  %5771 = vmatprep.subr.bf16.mxu0 %v8692_v40  ;;  %v7228_v21 = vpack.c.bf16 %v671_v17, %v670_v16  ;;  %v672_v24 = vld [vmem:[%s8686_s2 + $0x1d8] sm:$0xff] }
  0x31   :  { %200 = vmatmul.mubr.f32.gmra.mrb[6].mxu0 %v26_v60  ;;  %5795 = vmatprep.subr.bf16.mxu1 %v8692_v40 }
  0x32   :  { %313 = vmatmul.mubr.f32.gmra.mrb[6].mxu1 %v26_v60  ;;  %5773 = vmatpush3.bf16.msra.mxu0 %v6972_v61  ;;  %v579_v60 = vld [vmem:[%s8686_s2 + $0x130] sm:$0xff] }
  0x33   :  { %5797 = vmatpush3.bf16.msra.mxu1 %v6976_v62  ;;  %205 = vmatprep.mubr.f32.mxu0 %v8690_v3  ;;  %v7184_v1 = vpack.c.bf16 %v579_v60, %v578_v59 }
  0x34   :  { %318 = vmatprep.mubr.f32.mxu1 %v8690_v3  ;;  %5774 = vmatprep.subr.bf16.mxu0 %v8692_v40 }
  0x35   :  { %206 = vmatmul.mubr.f32.gmra.mrb[8].mxu0 %v27_v4  ;;  %5798 = vmatprep.subr.bf16.mxu1 %v8692_v40 }
  0x36   :  { %319 = vmatmul.mubr.f32.gmra.mrb[8].mxu1 %v27_v4  ;;  %5776 = vmatpush3.bf16.msra.mxu0 %v6997_v5  ;;  %v580_v4 = vld [vmem:[%s8686_s2 + $0x150] sm:$0xff] }
  0x37   :  { %5800 = vmatpush3.bf16.msra.mxu1 %v7001_v6  ;;  %211 = vmatprep.mubr.f32.mxu0 %v8690_v3  ;;  %v7204_v10 = vpack.c.bf16 %v581_v7, %v580_v4 }
  0x38   :  { %324 = vmatprep.mubr.f32.mxu1 %v8690_v3  ;;  %5777 = vmatprep.subr.bf16.mxu0 %v8692_v40 }
  0x39   :  { %212 = vmatmul.mubr.f32.gmra.mrb[10].mxu0 %v28_v11  ;;  %5801 = vmatprep.subr.bf16.mxu1 %v8692_v40 }
  0x3a   :  { %325 = vmatmul.mubr.f32.gmra.mrb[10].mxu1 %v28_v11  ;;  %5779 = vmatpush3.bf16.msra.mxu0 %v7022_v12  ;;  %v7208_v11 = vpack.c.bf16 %v669_v9, %v668_v8 }
  0x3b   :  { %5803 = vmatpush3.bf16.msra.mxu1 %v7026_v13  ;;  %217 = vmatprep.mubr.f32.mxu0 %v8690_v3 }
  0x3c   :  { %330 = vmatprep.mubr.f32.mxu1 %v8690_v3  ;;  %5780 = vmatprep.subr.bf16.mxu0 %v8692_v40 }
  0x3d   :  { %218 = vmatmul.mubr.f32.gmra.mrb[12].mxu0 %v29_v18  ;;  %5804 = vmatprep.subr.bf16.mxu1 %v8692_v40 }
  0x3e   :  { %331 = vmatmul.mubr.f32.gmra.mrb[12].mxu1 %v29_v18  ;;  %5782 = vmatpush3.bf16.msra.mxu0 %v7047_v19  ;;  %v7224_v18 = vpack.c.bf16 %v583_v15, %v582_v14 }
  0x3f   :  { %5806 = vmatpush3.bf16.msra.mxu1 %v7051_v20  ;;  %223 = vmatprep.mubr.f32.mxu0 %v8690_v3 }
  0x40   :  { %336 = vmatprep.mubr.f32.mxu1 %v8690_v3  ;;  %5783 = vmatprep.subr.bf16.mxu0 %v8692_v40 }
  0x41   :  { %224 = vmatmul.mubr.f32.gmra.mrb[14].mxu0 %v30_v25  ;;  %5807 = vmatprep.subr.bf16.mxu1 %v8692_v40 }
  0x42   :  { %337 = vmatmul.mubr.f32.gmra.mrb[14].mxu1 %v30_v25  ;;  %5785 = vmatpush3.bf16.msra.mxu0 %v7072_v26  ;;  %v673_v25 = vld [vmem:[%s8686_s2 + $0x1f8] sm:$0xff] }
  0x43   :  { %5809 = vmatpush3.bf16.msra.mxu1 %v7076_v27  ;;  %4610 = vmatprep.mubr.msk.f32.mxu0 %vm6664_vm0, %v8690_v3  ;;  %v7248_v29 = vpack.c.bf16 %v673_v25, %v672_v24 }
  0x44   :  { %4645 = vmatprep.mubr.msk.f32.mxu1 %vm6664_vm0, %v8690_v3  ;;  %5810 = vmatprep.subr.bf16.mxu0 %v8692_v40 }
  0x45   :  { %4611 = vmatmul.mubr.f32.vlgmr.msra.gmra.mrb[16].mxu0 %v8690_v3  ;;  %5834 = vmatprep.subr.bf16.mxu1 %v8692_v40 }
  0x46   :  { %4646 = vmatmul.mubr.f32.vlgmr.msra.gmra.mrb[16].mxu1 %v8690_v3  ;;  %5812 = vmatpush3.bf16.msra.mxu0 %v7094_v32 }
  0x47   :  { %5836 = vmatpush3.bf16.msra.mxu1 %v7099_v33  ;;  %5813 = vmatprep.subr.bf16.mxu0 %v8692_v40 }
  0x48   :  { %5837 = vmatprep.subr.bf16.mxu1 %v8692_v40  ;;  %4680 = vmatprep.mubr.msk.f32.mxu0 %vm6664_vm0, %v8690_v3 }
  0x49   :  { %4715 = vmatprep.mubr.msk.f32.mxu1 %vm6664_vm0, %v8690_v3 }
  0x4a   :  { %5815 = vmatpush3.bf16.msra.mxu0 %v7120_v38 }
  0x4b   :  { %5839 = vmatpush3.bf16.msra.mxu1 %v7124_v42  ;;  %5816 = vmatprep.subr.bf16.mxu0 %v8692_v40 }
  0x4c   :  { %5840 = vmatprep.subr.bf16.mxu1 %v8692_v40 }
  0x4e   :  { %5818 = vmatpush3.bf16.msra.mxu0 %v7144_v49 }
  0x4f   :  { %5842 = vmatpush3.bf16.msra.mxu1 %v7148_v50  ;;  %5819 = vmatprep.subr.bf16.mxu0 %v8692_v40 }
  0x50   :  { %5843 = vmatprep.subr.bf16.mxu1 %v8692_v40 }
  0x52   :  { %5821 = vmatpush3.bf16.msra.mxu0 %v7164_v57 }
  0x53   :  { %5845 = vmatpush3.bf16.msra.mxu1 %v7168_v58  ;;  %5822 = vmatprep.subr.bf16.mxu0 %v8692_v40 }
  0x54   :  { %5846 = vmatprep.subr.bf16.mxu1 %v8692_v40 }
  0x56   :  { %5824 = vmatpush3.bf16.msra.mxu0 %v7184_v1 }
  0x57   :  { %5848 = vmatpush3.bf16.msra.mxu1 %v7188_v2  ;;  %5825 = vmatprep.subr.bf16.mxu0 %v8692_v40 }
  0x58   :  { %5849 = vmatprep.subr.bf16.mxu1 %v8692_v40 }
  0x5a   :  { %5827 = vmatpush3.bf16.msra.mxu0 %v7204_v10 }
  0x5b   :  { %5851 = vmatpush3.bf16.msra.mxu1 %v7208_v11  ;;  %5828 = vmatprep.subr.bf16.mxu0 %v8692_v40 }
  0x5c   :  { %5852 = vmatprep.subr.bf16.mxu1 %v8692_v40 }
  0x5e   :  { %5830 = vmatpush3.bf16.msra.mxu0 %v7224_v18 }
  0x5f   :  { %5854 = vmatpush3.bf16.msra.mxu1 %v7228_v21  ;;  %5831 = vmatprep.subr.bf16.mxu0 %v8692_v40 }
  0x60   :  { %5855 = vmatprep.subr.bf16.mxu1 %v8692_v40 }
  0x62   :  { %5833 = vmatpush3.bf16.msra.mxu0 %v7244_v28 }
  0x63   :  { %5857 = vmatpush3.bf16.msra.mxu1 %v7248_v29  ;;  %5858 = vmatprep.subr.bf16.mxu0 %v8692_v40 }
  0x64   :  { %5882 = vmatprep.subr.bf16.mxu1 %v8692_v40 }
  0x65   :  { %4681 = vmatmul.mubr.f32.vlgmr.msra.gmra.mrb[18].mxu0 %v8690_v3 }
  0x66   :  { %4716 = vmatmul.mubr.f32.vlgmr.msra.gmra.mrb[18].mxu1 %v8690_v3  ;;  %5860 = vmatpush3.bf16.msra.mxu0 %v6900_v39  ;;  %v97_v39 = vlaneseq }
  0x67   :  { %5884 = vmatpush3.bf16.msra.mxu1 %v6903_v41  ;;  %5861 = vmatprep.subr.bf16.mxu0 %v8692_v40 }
  0x68   :  { %5885 = vmatprep.subr.bf16.mxu1 %v8692_v40  ;;  %4750 = vmatprep.mubr.msk.f32.mxu0 %vm6664_vm0, %v8690_v3  ;;  %v7293_v41 = vshrl.u32 %v97_v39, 7 }
  0x69   :  { %4785 = vmatprep.mubr.msk.f32.mxu1 %vm6664_vm0, %v8690_v3 }
  0x6a   :  { %5863 = vmatpush3.bf16.msra.mxu0 %v6922_v47  ;;  %v99_v47 = vsub.s32 0, %v7293_v41 }
  0x6b   :  { %5887 = vmatpush3.bf16.msra.mxu1 %v6926_v48  ;;  %5864 = vmatprep.subr.bf16.mxu0 %v8692_v40  ;;  %v95_v48 = vld [vmem:[%s8688_s3] sm:$0xf] }
  0x6c   :  { %5888 = vmatprep.subr.bf16.mxu1 %v8692_v40 }
  0x6e   :  { %5866 = vmatpush3.bf16.msra.mxu0 %v6947_v54 }
  0x6f   :  { %5890 = vmatpush3.bf16.msra.mxu1 %v6951_v55  ;;  %5867 = vmatprep.subr.bf16.mxu0 %v8692_v40  ;;  %v107_v55 = vsub.s32 2, %v7293_v41 }
  0x70   :  { %5891 = vmatprep.subr.bf16.mxu1 %v8692_v40 }
  0x72   :  { %5869 = vmatpush3.bf16.msra.mxu0 %v6972_v61  ;;  %v103_v61 = vsub.s32 1, %v7293_v41 }
  0x73   :  { %5893 = vmatpush3.bf16.msra.mxu1 %v6976_v62  ;;  %5870 = vmatprep.subr.bf16.mxu0 %v8692_v40 }
  0x74   :  { %5894 = vmatprep.subr.bf16.mxu1 %v8692_v40 }
  0x76   :  { %5872 = vmatpush3.bf16.msra.mxu0 %v6997_v5 }
  0x77   :  { %5896 = vmatpush3.bf16.msra.mxu1 %v7001_v6  ;;  %5873 = vmatprep.subr.bf16.mxu0 %v8692_v40  ;;  %v111_v6 = vsub.s32 3, %v7293_v41 }
  0x78   :  { %5897 = vmatprep.subr.bf16.mxu1 %v8692_v40 }
  0x7a   :  { %5875 = vmatpush3.bf16.msra.mxu0 %v7022_v12 }
  0x7b   :  { %5899 = vmatpush3.bf16.msra.mxu1 %v7026_v13  ;;  %5876 = vmatprep.subr.bf16.mxu0 %v8692_v40  ;;  %v100_v13 = vrot.slane %v95_v48, %v99_v47 }
  0x7c   :  { %5900 = vmatprep.subr.bf16.mxu1 %v8692_v40 }
  0x7e   :  { %5878 = vmatpush3.bf16.msra.mxu0 %v7047_v19  ;;  %v7310_v19 = vrot.slane %v95_v48, %v107_v55 }
  0x7f   :  { %5902 = vmatpush3.bf16.msra.mxu1 %v7051_v20  ;;  %5879 = vmatprep.subr.bf16.mxu0 %v8692_v40  ;;  %v104_v20 = vrot.slane %v95_v48, %v103_v61 }
  0x80   :  { %5903 = vmatprep.subr.bf16.mxu1 %v8692_v40 }
  0x82   :  { %5881 = vmatpush3.bf16.msra.mxu0 %v7072_v26 }
  0x83   :  { %5905 = vmatpush3.bf16.msra.mxu1 %v7076_v27  ;;  %5906 = vmatprep.subr.bf16.mxu0 %v8692_v40  ;;  %v7312_v27 = vrot.slane %v95_v48, %v111_v6 }
  0x84   :  { %5930 = vmatprep.subr.bf16.mxu1 %v8692_v40 }
  0xf8   :  { %v7299_v54 = vpop.f32.mrb[0].mxu0 }
  0xf9   :  { %v7303_v62 = vpop.f32.mrb[0].mxu1  ;;  %v7305_v5 = vpop.f32.mrb[1].mxu0 }
  0xfa   :  { %v7308_v12 = vpop.f32.mrb[1].mxu1 }
  0xfc   :  { %v189_v26 = vpop.f32.mrb[2].mxu0 }
  0xfd   :  { %v7314_v30 = vadd.f32 %v189_v26, %v100_v13  ;;  %v302_v31 = vpop.f32.mrb[2].mxu1  ;;  %v191_v34 = vpop.f32.mrb[3].mxu0 }
  0xfe   :  { %v7317_v35 = vadd.f32 %v302_v31, %v7310_v19  ;;  %v7319_v36 = vadd.f32 %v191_v34, %v104_v20  ;;  %v304_v37 = vpop.f32.mrb[3].mxu1 }
  0xff   :  { %v7322_v43 = vadd.f32 %v304_v37, %v7312_v27 }
 0x100   :  { %v195_v44 = vpop.f32.mrb[4].mxu0 }
 0x101   :  { %v7324_v45 = vadd.f32 %v195_v44, %v100_v13  ;;  %v308_v46 = vpop.f32.mrb[4].mxu1  ;;  %v197_v51 = vpop.f32.mrb[5].mxu0 }
 0x102   :  { %v7327_v52 = vadd.f32 %v308_v46, %v7310_v19  ;;  %v7329_v53 = vadd.f32 %v197_v51, %v104_v20  ;;  %v310_v56 = vpop.f32.mrb[5].mxu1 }
 0x103   :  { %v7332_v59 = vadd.f32 %v310_v56, %v7312_v27 }
 0x104   :  { %v201_v60 = vpop.f32.mrb[6].mxu0 }
 0x105   :  { %v7334_v63 = vadd.f32 %v201_v60, %v100_v13  ;;  %v314_v0 = vpop.f32.mrb[6].mxu1  ;;  %v203_v4 = vpop.f32.mrb[7].mxu0 }
 0x106   :  { %v7337_v7 = vadd.f32 %v314_v0, %v7310_v19  ;;  %v7339_v8 = vadd.f32 %v203_v4, %v104_v20  ;;  %v316_v9 = vpop.f32.mrb[7].mxu1 }
 0x107   :  { %v7342_v14 = vadd.f32 %v316_v9, %v7312_v27 }
 0x108   :  { %v207_v15 = vpop.f32.mrb[8].mxu0 }
 0x109   :  { %v7344_v16 = vadd.f32 %v207_v15, %v100_v13  ;;  %v320_v17 = vpop.f32.mrb[8].mxu1  ;;  %v209_v22 = vpop.f32.mrb[9].mxu0 }
 0x10a   :  { %v7347_v23 = vadd.f32 %v320_v17, %v7310_v19  ;;  %v7349_v24 = vadd.f32 %v209_v22, %v104_v20  ;;  %v322_v25 = vpop.f32.mrb[9].mxu1 }
 0x10b   :  { %v7352_v39 = vadd.f32 %v322_v25, %v7312_v27 }
 0x10c   :  { %v213_v47 = vpop.f32.mrb[10].mxu0 }
 0x10d   :  { %v7354_v48 = vadd.f32 %v213_v47, %v100_v13  ;;  %v326_v55 = vpop.f32.mrb[10].mxu1  ;;  %v215_v61 = vpop.f32.mrb[11].mxu0 }
 0x10e   :  { %v7357_v6 = vadd.f32 %v326_v55, %v7310_v19  ;;  %v7359_v26 = vadd.f32 %v215_v61, %v104_v20  ;;  %v328_v31 = vpop.f32.mrb[11].mxu1  ;;  %v184_v61 = vadd.f32 %v7299_v54, %v100_v13  ;;  %v297_v54 = vadd.f32 %v7303_v62, %v7310_v19 }
 0x10f   :  { %8694 = vst [vmem:[#allocation5_spill] sm:$0xff] %v7354_v48  ;;  %v7362_v34 = vadd.f32 %v328_v31, %v7312_v27 }
 0x110   :  { %8695 = vst [vmem:[#allocation6_spill] sm:$0xff] %v7357_v6  ;;  %8696 = vst [vmem:[#allocation7_spill] sm:$0xff] %v7359_v26  ;;  %v219_v37 = vpop.f32.mrb[12].mxu0 }
 0x111   :  { %8697 = vst [vmem:[#allocation8_spill] sm:$0xff] %v7362_v34  ;;  %v7364_v44 = vadd.f32 %v219_v37, %v100_v13  ;;  %v332_v46 = vpop.f32.mrb[12].mxu1  ;;  %v221_v51 = vpop.f32.mrb[13].mxu0  ;;  %v186_v37 = vadd.f32 %v7305_v5, %v104_v20  ;;  %v299_v5 = vadd.f32 %v7308_v12, %v7312_v27 }
 0x112   :  { %v7367_v56 = vadd.f32 %v332_v46, %v7310_v19  ;;  %v7369_v60 = vadd.f32 %v221_v51, %v104_v20  ;;  %v334_v0 = vpop.f32.mrb[13].mxu1 }
 0x113   :  { %8698 = vst [vmem:[#allocation9_spill] sm:$0xff] %v7364_v44  ;;  %v7372_v4 = vadd.f32 %v334_v0, %v7312_v27 }
 0x114   :  { %8699 = vst [vmem:[#allocation10_spill] sm:$0xff] %v7367_v56  ;;  %8700 = vst [vmem:[#allocation11_spill] sm:$0xff] %v7369_v60  ;;  %v225_v9 = vpop.f32.mrb[14].mxu0 }
 0x115   :  { %8701 = vst [vmem:[#allocation12_spill] sm:$0xff] %v7372_v4  ;;  %v7374_v15 = vadd.f32 %v225_v9, %v100_v13  ;;  %v338_v17 = vpop.f32.mrb[14].mxu1  ;;  %v227_v22 = vpop.f32.mrb[15].mxu0 }
 0x116   :  { %v7377_v25 = vadd.f32 %v338_v17, %v7310_v19  ;;  %v7379_v47 = vadd.f32 %v227_v22, %v104_v20  ;;  %v340_v55 = vpop.f32.mrb[15].mxu1 }
 0x117   :  { %8702 = vst [vmem:[#allocation13_spill] sm:$0xff] %v7374_v15  ;;  %v7383_v31 = vadd.f32 %v340_v55, %v7312_v27  ;;  %v6665_v27 = vmov 1966171168  }
 0x118   :  { %8703 = vst [vmem:[#allocation14_spill] sm:$0xff] %v7377_v25  ;;  %8704 = vst [vmem:[#allocation15_spill] sm:$0xff] %v7379_v47  ;;  %v466_v46 = vpop.f32.mrb[16].mxu0 }
 0x119   :  { %8705 = vst [vmem:[#allocation16_spill] sm:$0xff] %v7383_v31  ;;  %v470_v51 = vadd.f32 %v466_v46, %v184_v61  ;;  %v559_v0 = vpop.f32.mrb[16].mxu1  ;;  %v4612_v9 = vpop.f32.mrb[17].mxu0 }
 0x11a   :  { %v563_v3 = vadd.f32 %v559_v0, %v186_v37  ;;  %v4647_v40 = vpop.f32.mrb[17].mxu1 }
 0x11b   :  { %v3978_v4 = vmul.f32 -1.442695, %v470_v51 }
 0x11c   :  { %v3979_v15 = vmul.f32 -1.442695, %v563_v3 }
 0x11e   :  { %6534 = vpow2.f32 %v3979_v15 }
 0x11f   :  { %6536 = vpow2.f32 %v3978_v4 }
 0x128   :  { %v6535_v17 = vpop.eup %6534 }
 0x129   :  { %v6537_v22 = vpop.eup %6536  ;;  %v567_v25 = vadd.f32 1.0, %v6535_v17 }
 0x12a   :  { %v474_v47 = vadd.f32 1.0, %v6537_v22 }
 0x12b   :  { %6538 = vrcp.f32 %v567_v25  ;;  %v761_v25 = vunpack.c.l.s4 %v6665_v27 }
 0x12c   :  { %6540 = vrcp.f32 %v474_v47 }
 0x12d   :  { %v762_v47 = vunpack.c.0.s8 %v761_v25  ;;  %v1288_v25 = vld [vmem:[%s8686_s2 + $0xc0] sm:$0xff] }
 0x12f   :  { %v7394_v17 = vsub.s32 %v762_v47, %v7293_v41  ;;  %v8706_v41 = vmov 0.0|0.0   ;;  %v1289_v47 = vld [vmem:[%s8686_s2 + $0xe0] sm:$0xff] }
 0x135   :  { %v6539_v15 = vpop.eup %6538 }
 0x136   :  { %v6541_v37 = vpop.eup %6540  ;;  %v751_v51 = vmul.f32 0.0, %v6539_v15 }
 0x138   :  { %v652_v13 = vpop.f32.mrb[18].mxu0 }
 0x139   :  { %v656_v20 = vadd.f32 %v652_v13, %v297_v54  ;;  %v740_v55 = vpop.f32.mrb[18].mxu1  ;;  %v4682_v61 = vpop.f32.mrb[19].mxu0 }
 0x13a   :  { %v744_v3 = vadd.f32 %v740_v55, %v299_v5  ;;  %v4717_v40 = vpop.f32.mrb[19].mxu1 }
 0x13b   :  { %6542 = vtanh.f32 %v656_v20 }
 0x13c   :  { %v3980_v4 = vmul.f32 -1.442695, %v744_v3  ;;  %v8707_v3 = vmov 0.0  }
 0x13e   :  { %6544 = vpow2.f32 %v3980_v4 }
 0x145   :  { %v6543_v46 = vpop.eup %6542 }
 0x146   :  { %v752_v0 = vmul.f32 %v6543_v46, %v6541_v37 }
 0x148   :  { %v6545_v62 = vpop.eup %6544  ;;  %v7390_v19 = vadd.f32 %v752_v0, %v751_v51  ;;  %v1379_v0 = vld [vmem:[%s8686_s2 + $0x88] sm:$0xff] }
 0x149   :  { %v748_v12 = vadd.f32 1.0, %v6545_v62 }
 0x14a   :  { %6546 = vtanh.f32 %v7390_v19 }
 0x14b   :  { %6548 = vrcp.f32 %v748_v12  ;;  %v1380_v12 = vld [vmem:[%s8686_s2 + $0xa8] sm:$0xff] }
 0x14c   :  { %v7520_v27 = vpack.c.bf16 %v1380_v12, %v1379_v0  ;;  %v1390_v0 = vld [vmem:[%s8686_s2 + $0x1e8] sm:$0xff] }
 0x154   :  { %v6547_v9 = vpop.eup %6546 }
 0x155   :  { %v6549_v22 = vpop.eup %6548 }
 0x156   :  { %v755_v54 = vmul.f32 %v6549_v22, %v6547_v9  ;;  %v1381_v9 = vld [vmem:[%s8686_s2 + $0xc8] sm:$0xff]  ;;  %v7535_v22 = vpack.c.bf16 %v1289_v47, %v1288_v25 }
 0x158   :  { %v759_v5 = vcombine.high %v755_v54, %v755_v54  ;;  %v766_v13 = vrot.slane %v755_v54, %v7394_v17  ;;  %4751 = vmatmul.mubr.f32.vlgmr.msra.gmra.mrb[20].mxu0 %v755_v54  ;;  %4786 = vmatmul.mubr.f32.vlgmr.msra.gmra.mrb[20].mxu1 %v755_v54 }
 0x159   :  { %5908 = vmatpush3.bf16.msra.mxu0 %v7094_v32  ;;  %5932 = vmatpush3.bf16.msra.mxu1 %v7099_v33 }
 0x15a   :  { %v773_v20 = vrot.slane %v759_v5, %v7394_v17  ;;  %v774_v55 = vcombine.high %v766_v13, %v766_v13  ;;  %v782_v61 = vrot.slane %v766_v13, %v7394_v17  ;;  %3981 = vst.sshfl [vmem:[%s8689_s4] sm:$0x1 pattern:$0x73625140] %v766_v13  ;;  %5909 = vmatprep.subr.bf16.mxu0 %v8706_v41  ;;  %v1290_v13 = vld [vmem:[%s8686_s2 + $0x100] sm:$0xff] }
 0x15b   :  { %5933 = vmatprep.subr.bf16.mxu1 %v8706_v41  ;;  %4820 = vmatprep.mubr.msk.f32.mxu0 %vm6664_vm0, %v8707_v3 }
 0x15c   :  { %4855 = vmatprep.mubr.msk.f32.mxu1 %vm6664_vm0, %v8707_v3  ;;  %v775_v32 = vcombine.high %v773_v20, %v773_v20  ;;  %v789_v33 = vrot.slane %v773_v20, %v7394_v17  ;;  %v796_v40 = vrot.slane %v774_v55, %v7394_v17  ;;  %v804_v4 = vcombine.high %v782_v61, %v782_v61 }
 0x15d   :  { %3982 = vst.sshfl [vmem:[%s8689_s4 + $0x8] sm:$0x1 pattern:$0x73625140] %v774_v55  ;;  %5911 = vmatpush3.bf16.msra.mxu0 %v7120_v38  ;;  %5935 = vmatpush3.bf16.msra.mxu1 %v7124_v42  ;;  %v1282_v38 = vld [vmem:[%s8686_s2] sm:$0xff]  ;;  %v1383_v55 = vld [vmem:[%s8686_s2 + $0x108] sm:$0xff] }
 0x15e   :  { %3983 = vst.sshfl [vmem:[%s8689_s4 + $0x20] sm:$0x1 pattern:$0x73625140] %v773_v20  ;;  %v803_v15 = vrot.slane %v775_v32, %v7394_v17  ;;  %v805_v37 = vcombine.high %v789_v33, %v789_v33  ;;  %v806_v46 = vcombine.high %v796_v40, %v796_v40  ;;  %818 = vst [vmem:[%s8689_s4 + $0x10] sm:$0x1] %v804_v4  ;;  %5912 = vmatprep.subr.bf16.mxu0 %v8706_v41 }
 0x15f   :  { %3984 = vst.sshfl [vmem:[%s8689_s4 + $0x28] sm:$0x1 pattern:$0x73625140] %v775_v32  ;;  %5936 = vmatprep.subr.bf16.mxu1 %v8706_v41  ;;  %v1283_v42 = vld [vmem:[%s8686_s2 + $0x20] sm:$0xff]  ;;  %v1384_v32 = vld [vmem:[%s8686_s2 + $0x128] sm:$0xff] }
 0x160   :  { %v807_v51 = vcombine.high %v803_v15, %v803_v15  ;;  %819 = vst [vmem:[%s8689_s4 + $0x18] sm:$0x1] %v806_v46  ;;  %822 = vst [vmem:[%s8689_s4 + $0x30] sm:$0x1] %v805_v37  ;;  %v1291_v20 = vld [vmem:[%s8686_s2 + $0x120] sm:$0xff]  ;;  %v7560_v33 = vpack.c.bf16 %v1384_v32, %v1383_v55  ;;  %v1385_v15 = vld [vmem:[%s8686_s2 + $0x148] sm:$0xff] }
 0x161   :  { %5914 = vmatpush3.bf16.msra.mxu0 %v7144_v49  ;;  %5938 = vmatpush3.bf16.msra.mxu1 %v7148_v50  ;;  %v1375_v49 = vld [vmem:[%s8686_s2 + $0x8] sm:$0xff]  ;;  %v7475_v50 = vpack.c.bf16 %v1283_v42, %v1282_v38  ;;  %v7555_v61 = vpack.c.bf16 %v1291_v20, %v1290_v13  ;;  %v1292_v40 = vld [vmem:[%s8686_s2 + $0x140] sm:$0xff] }
 0x162   :  { %823 = vst [vmem:[%s8689_s4 + $0x38] sm:$0x1] %v807_v51  ;;  %5915 = vmatprep.subr.bf16.mxu0 %v8706_v41  ;;  %5939 = vmatprep.subr.bf16.mxu1 %v8706_v41  ;;  %v1293_v4 = vld [vmem:[%s8686_s2 + $0x160] sm:$0xff]  ;;  %v1386_v46 = vld [vmem:[%s8686_s2 + $0x168] sm:$0xff] }
 0x163   :  { %v7575_v37 = vpack.c.bf16 %v1293_v4, %v1292_v40  ;;  %v7580_v51 = vpack.c.bf16 %v1386_v46, %v1385_v15  ;;  %v1294_v38 = vld [vmem:[%s8686_s2 + $0x180] sm:$0xff] }
 0x164   :  { %v1295_v42 = vld [vmem:[%s8686_s2 + $0x1a0] sm:$0xff] }
 0x165   :  { %5917 = vmatpush3.bf16.msra.mxu0 %v7164_v57  ;;  %5941 = vmatpush3.bf16.msra.mxu1 %v7168_v58  ;;  %v1376_v57 = vld [vmem:[%s8686_s2 + $0x28] sm:$0xff] }
 0x166   :  { %5918 = vmatprep.subr.bf16.mxu0 %v8706_v41  ;;  %5942 = vmatprep.subr.bf16.mxu1 %v8706_v41  ;;  %v7480_v58 = vpack.c.bf16 %v1376_v57, %v1375_v49  ;;  %v1387_v49 = vld [vmem:[%s8686_s2 + $0x188] sm:$0xff]  ;;  %v7595_v57 = vpack.c.bf16 %v1295_v42, %v1294_v38 }
 0x169   :  { %5920 = vmatpush3.bf16.msra.mxu0 %v7184_v1  ;;  %5944 = vmatpush3.bf16.msra.mxu1 %v7188_v2  ;;  %v1284_v1 = vld [vmem:[%s8686_s2 + $0x40] sm:$0xff] }
 0x16a   :  { %5921 = vmatprep.subr.bf16.mxu0 %v8706_v41  ;;  %5945 = vmatprep.subr.bf16.mxu1 %v8706_v41  ;;  %v1285_v2 = vld [vmem:[%s8686_s2 + $0x60] sm:$0xff] }
 0x16d   :  { %5923 = vmatpush3.bf16.msra.mxu0 %v7204_v10  ;;  %5947 = vmatpush3.bf16.msra.mxu1 %v7208_v11  ;;  %v1377_v10 = vld [vmem:[%s8686_s2 + $0x48] sm:$0xff]  ;;  %v7495_v11 = vpack.c.bf16 %v1285_v2, %v1284_v1 }
 0x16e   :  { %5924 = vmatprep.subr.bf16.mxu0 %v8706_v41  ;;  %5948 = vmatprep.subr.bf16.mxu1 %v8706_v41  ;;  %v1388_v1 = vld [vmem:[%s8686_s2 + $0x1a8] sm:$0xff] }
 0x16f   :  { %v7600_v2 = vpack.c.bf16 %v1388_v1, %v1387_v49 }
 0x171   :  { %5926 = vmatpush3.bf16.msra.mxu0 %v7224_v18  ;;  %5950 = vmatpush3.bf16.msra.mxu1 %v7228_v21  ;;  %v1378_v18 = vld [vmem:[%s8686_s2 + $0x68] sm:$0xff] }
 0x172   :  { %5927 = vmatprep.subr.bf16.mxu0 %v8706_v41  ;;  %5951 = vmatprep.subr.bf16.mxu1 %v8706_v41  ;;  %v7500_v21 = vpack.c.bf16 %v1378_v18, %v1377_v10  ;;  %v1296_v10 = vld [vmem:[%s8686_s2 + $0x1c0] sm:$0xff] }
 0x173   :  { %v1297_v18 = vld [vmem:[%s8686_s2 + $0x1e0] sm:$0xff] }
 0x175   :  { %5929 = vmatpush3.bf16.msra.mxu0 %v7244_v28  ;;  %5953 = vmatpush3.bf16.msra.mxu1 %v7248_v29  ;;  %v1286_v28 = vld [vmem:[%s8686_s2 + $0x80] sm:$0xff] }
 0x176   :  { %5954 = vmatprep.subr.bf16.mxu0 %v8706_v41  ;;  %5978 = vmatprep.subr.bf16.mxu1 %v8706_v41  ;;  %v1287_v29 = vld [vmem:[%s8686_s2 + $0xa0] sm:$0xff] }
 0x177   :  { %v7515_v62 = vpack.c.bf16 %v1287_v29, %v1286_v28  ;;  %v1389_v28 = vld [vmem:[%s8686_s2 + $0x1c8] sm:$0xff]  ;;  %v7615_v29 = vpack.c.bf16 %v1297_v18, %v1296_v10 }
 0x178   :  { %4821 = vmatmul.mubr.f32.vlgmr.msra.gmra.mrb[22].mxu0 %v755_v54  ;;  %4856 = vmatmul.mubr.f32.vlgmr.msra.gmra.mrb[22].mxu1 %v755_v54  ;;  %v1382_v54 = vld [vmem:[%s8686_s2 + $0xe8] sm:$0xff]  ;;  %v7620_v12 = vpack.c.bf16 %v1390_v0, %v1389_v28 }
 0x179   :  { %4890 = vmatprep.mubr.msk.f32.mxu0 %vm6664_vm0, %v8707_v3  ;;  %4925 = vmatprep.mubr.msk.f32.mxu1 %vm6664_vm0, %v8707_v3  ;;  %v7540_v5 = vpack.c.bf16 %v1382_v54, %v1381_v9 }
 0x17a   :  { %5956 = vmatpush3.bf16.msra.mxu0 %v7475_v50  ;;  %5980 = vmatpush3.bf16.msra.mxu1 %v7480_v58 }
 0x17b   :  { %5957 = vmatprep.subr.bf16.mxu0 %v8706_v41  ;;  %5981 = vmatprep.subr.bf16.mxu1 %v8706_v41 }
 0x17e   :  { %5959 = vmatpush3.bf16.msra.mxu0 %v7495_v11  ;;  %5983 = vmatpush3.bf16.msra.mxu1 %v7500_v21 }
 0x17f   :  { %5960 = vmatprep.subr.bf16.mxu0 %v8706_v41  ;;  %5984 = vmatprep.subr.bf16.mxu1 %v8706_v41 }
 0x182   :  { %5962 = vmatpush3.bf16.msra.mxu0 %v7515_v62  ;;  %5986 = vmatpush3.bf16.msra.mxu1 %v7520_v27 }
 0x183   :  { %5963 = vmatprep.subr.bf16.mxu0 %v8706_v41  ;;  %5987 = vmatprep.subr.bf16.mxu1 %v8706_v41 }
 0x186   :  { %5965 = vmatpush3.bf16.msra.mxu0 %v7535_v22  ;;  %5989 = vmatpush3.bf16.msra.mxu1 %v7540_v5 }
 0x187   :  { %5966 = vmatprep.subr.bf16.mxu0 %v8706_v41  ;;  %5990 = vmatprep.subr.bf16.mxu1 %v8706_v41 }
 0x18a   :  { %5968 = vmatpush3.bf16.msra.mxu0 %v7555_v61  ;;  %5992 = vmatpush3.bf16.msra.mxu1 %v7560_v33 }
 0x18b   :  { %5969 = vmatprep.subr.bf16.mxu0 %v8706_v41  ;;  %5993 = vmatprep.subr.bf16.mxu1 %v8706_v41 }
 0x18e   :  { %5971 = vmatpush3.bf16.msra.mxu0 %v7575_v37  ;;  %5995 = vmatpush3.bf16.msra.mxu1 %v7580_v51 }
 0x18f   :  { %5972 = vmatprep.subr.bf16.mxu0 %v8706_v41  ;;  %5996 = vmatprep.subr.bf16.mxu1 %v8706_v41 }
 0x192   :  { %5974 = vmatpush3.bf16.msra.mxu0 %v7595_v57  ;;  %5998 = vmatpush3.bf16.msra.mxu1 %v7600_v2 }
 0x193   :  { %5975 = vmatprep.subr.bf16.mxu0 %v8706_v41  ;;  %5999 = vmatprep.subr.bf16.mxu1 %v8706_v41 }
 0x196   :  { %5977 = vmatpush3.bf16.msra.mxu0 %v7615_v29  ;;  %6001 = vmatpush3.bf16.msra.mxu1 %v7620_v12 }
 0x197   :  { %6002 = vmatprep.subr.bf16.mxu0 %v8706_v41  ;;  %6026 = vmatprep.subr.bf16.mxu1 %v8706_v41 }
 0x22b   :  { %v915_v25 = vpop.f32.mrb[20].mxu0  ;;  %v1008_v47 = vpop.f32.mrb[20].mxu1 }
 0x22c   :  { %v919_v9 = vadd.f32 %v915_v25, %v7314_v30  ;;  %v1012_v54 = vadd.f32 %v1008_v47, %v7319_v36  ;;  %v4752_v13 = vpop.f32.mrb[21].mxu0  ;;  %v4787_v20 = vpop.f32.mrb[21].mxu1 }
 0x22d   :  { %v1557_v20 = vld [vmem:[%s8686_s2 + $0x38] sm:$0xff] }
 0x22e   :  { %v3986_v55 = vmul.f32 -1.442695, %v1012_v54  ;;  %v3985_v32 = vmul.f32 -1.442695, %v919_v9 }
 0x230   :  { %6550 = vpow2.f32 %v3986_v55 }
 0x231   :  { %6552 = vpow2.f32 %v3985_v32 }
 0x23a   :  { %v6551_v40 = vpop.eup %6550 }
 0x23b   :  { %v6553_v4 = vpop.eup %6552  ;;  %v1016_v15 = vadd.f32 1.0, %v6551_v40 }
 0x23c   :  { %v923_v46 = vadd.f32 1.0, %v6553_v4 }
 0x23d   :  { %6554 = vrcp.f32 %v1016_v15  ;;  %v1470_v15 = vld [vmem:[%s8686_s2 + $0x50] sm:$0xff] }
 0x23e   :  { %6556 = vrcp.f32 %v923_v46 }
 0x247   :  { %v6555_v18 = vpop.eup %6554 }
 0x248   :  { %v6557_v28 = vpop.eup %6556  ;;  %v1200_v25 = vmul.f32 %v6555_v18, %v7390_v19  ;;  %v1556_v19 = vld [vmem:[%s8686_s2 + $0x18] sm:$0xff]  ;;  %v1472_v18 = vld [vmem:[%s8686_s2 + $0x90] sm:$0xff] }
 0x249   :  { %v7648_v4 = vpack.c.bf16 %v1557_v20, %v1556_v19 }
 0x24b   :  { %v1101_v38 = vpop.f32.mrb[22].mxu0  ;;  %v1189_v42 = vpop.f32.mrb[22].mxu1 }
 0x24c   :  { %v1105_v49 = vadd.f32 %v1101_v38, %v7317_v35  ;;  %v1193_v1 = vadd.f32 %v1189_v42, %v7322_v43  ;;  %v4822_v30 = vpop.f32.mrb[23].mxu0  ;;  %v4857_v10 = vpop.f32.mrb[23].mxu1  ;;  %v1468_v35 = vld [vmem:[%s8686_s2 + $0x10] sm:$0xff]  ;;  %v1558_v42 = vld [vmem:[%s8686_s2 + $0x58] sm:$0xff] }
 0x24d   :  { %v1469_v43 = vld [vmem:[%s8686_s2 + $0x30] sm:$0xff] }
 0x24e   :  { %6558 = vtanh.f32 %v1105_v49  ;;  %v3987_v36 = vmul.f32 -1.442695, %v1193_v1  ;;  %v7646_v40 = vpack.c.bf16 %v1469_v43, %v1468_v35  ;;  %v1471_v38 = vld [vmem:[%s8686_s2 + $0x70] sm:$0xff]  ;;  %v1559_v49 = vld [vmem:[%s8686_s2 + $0x78] sm:$0xff] }
 0x24f   :  { %v7672_v10 = vpack.c.bf16 %v1471_v38, %v1470_v15  ;;  %v1474_v15 = vld [vmem:[%s8686_s2 + $0xd0] sm:$0xff] }
 0x250   :  { %6560 = vpow2.f32 %v3987_v36  ;;  %v7674_v36 = vpack.c.bf16 %v1559_v49, %v1558_v42 }
 0x258   :  { %v6559_v0 = vpop.eup %6558 }
 0x259   :  { %v1201_v47 = vmul.f32 %v6559_v0, %v6557_v28 }
 0x25a   :  { %v6561_v9 = vpop.eup %6560 }
 0x25b   :  { %v7631_v54 = vadd.f32 %v1201_v47, %v1200_v25  ;;  %v1197_v13 = vadd.f32 1.0, %v6561_v9  ;;  %v1473_v47 = vld [vmem:[%s8686_s2 + $0xb0] sm:$0xff]  ;;  %v1560_v9 = vld [vmem:[%s8686_s2 + $0x98] sm:$0xff] }
 0x25d   :  { %6562 = vtanh.f32 %v7631_v54 }
 0x25e   :  { %6564 = vrcp.f32 %v1197_v13  ;;  %v1561_v13 = vld [vmem:[%s8686_s2 + $0xb8] sm:$0xff] }
 0x267   :  { %v6563_v55 = vpop.eup %6562 }
 0x268   :  { %v6565_v32 = vpop.eup %6564 }
 0x269   :  { %v7653_v46 = vmul.f32 %v6565_v32, %v6563_v55  ;;  %v7709_v55 = vpack.c.bf16 %v1473_v47, %v1472_v18  ;;  %v7711_v32 = vpack.c.bf16 %v1561_v13, %v1560_v9  ;;  %v1563_v18 = vld [vmem:[%s8686_s2 + $0xf8] sm:$0xff]  ;;  %v1476_v47 = vld [vmem:[%s8686_s2 + $0x110] sm:$0xff] }
 0x26a   :  { %v1477_v9 = vld [vmem:[%s8686_s2 + $0x130] sm:$0xff]  ;;  %v1564_v13 = vld [vmem:[%s8686_s2 + $0x118] sm:$0xff] }
 0x26b   :  { %v1208_v1 = vcombine.high %v7653_v46, %v7653_v46  ;;  %v1215_v30 = vrot.slane %v7653_v46, %v7394_v17  ;;  %4891 = vmatmul.mubr.f32.vlgmr.msra.gmra.mrb[24].mxu0 %v7653_v46  ;;  %4926 = vmatmul.mubr.f32.vlgmr.msra.gmra.mrb[24].mxu1 %v7653_v46 }
 0x26c   :  { %6004 = vmatpush3.bf16.msra.mxu0 %v7646_v40  ;;  %6028 = vmatpush3.bf16.msra.mxu1 %v7648_v4 }
 0x26d   :  { %v1222_v28 = vrot.slane %v1208_v1, %v7394_v17  ;;  %v1223_v0 = vcombine.high %v1215_v30, %v1215_v30  ;;  %v1231_v25 = vrot.slane %v1215_v30, %v7394_v17  ;;  %3988 = vst.sshfl [vmem:[%s8689_s4 + $0x1] sm:$0x1 pattern:$0x73625140] %v1215_v30  ;;  %6005 = vmatprep.subr.bf16.mxu0 %v8706_v41  ;;  %v1475_v1 = vld [vmem:[%s8686_s2 + $0xf0] sm:$0xff]  ;;  %v1562_v30 = vld [vmem:[%s8686_s2 + $0xd8] sm:$0xff] }
 0x26e   :  { %6029 = vmatprep.subr.bf16.mxu1 %v8706_v41  ;;  %4960 = vmatprep.mubr.msk.f32.mxu0 %vm6664_vm0, %v8707_v3 }
 0x26f   :  { %4995 = vmatprep.mubr.msk.f32.mxu1 %vm6664_vm0, %v8707_v3  ;;  %v1224_v35 = vcombine.high %v1222_v28, %v1222_v28  ;;  %v1238_v43 = vrot.slane %v1222_v28, %v7394_v17  ;;  %v1245_v19 = vrot.slane %v1223_v0, %v7394_v17  ;;  %v1253_v20 = vcombine.high %v1231_v25, %v1231_v25 }
 0x270   :  { %3989 = vst.sshfl [vmem:[%s8689_s4 + $0x9] sm:$0x1 pattern:$0x73625140] %v1223_v0  ;;  %6007 = vmatpush3.bf16.msra.mxu0 %v7672_v10  ;;  %6031 = vmatpush3.bf16.msra.mxu1 %v7674_v36  ;;  %v7742_v0 = vpack.c.bf16 %v1475_v1, %v1474_v15  ;;  %v7744_v25 = vpack.c.bf16 %v1563_v18, %v1562_v30  ;;  %v1479_v15 = vld [vmem:[%s8686_s2 + $0x170] sm:$0xff] }
 0x271   :  { %3990 = vst.sshfl [vmem:[%s8689_s4 + $0x21] sm:$0x1 pattern:$0x73625140] %v1222_v28  ;;  %v1252_v38 = vrot.slane %v1224_v35, %v7394_v17  ;;  %v1254_v42 = vcombine.high %v1238_v43, %v1238_v43  ;;  %v1255_v49 = vcombine.high %v1245_v19, %v1245_v19  ;;  %1267 = vst [vmem:[%s8689_s4 + $0x11] sm:$0x1] %v1253_v20  ;;  %6008 = vmatprep.subr.bf16.mxu0 %v8706_v41 }
 0x272   :  { %3991 = vst.sshfl [vmem:[%s8689_s4 + $0x29] sm:$0x1 pattern:$0x73625140] %v1224_v35  ;;  %6032 = vmatprep.subr.bf16.mxu1 %v8706_v41  ;;  %v1565_v35 = vld [vmem:[%s8686_s2 + $0x138] sm:$0xff]  ;;  %v7765_v43 = vpack.c.bf16 %v1477_v9, %v1476_v47  ;;  %v1478_v20 = vld [vmem:[%s8686_s2 + $0x150] sm:$0xff] }
 0x273   :  { %v1256_v28 = vcombine.high %v1252_v38, %v1252_v38  ;;  %1268 = vst [vmem:[%s8689_s4 + $0x19] sm:$0x1] %v1255_v49  ;;  %1271 = vst [vmem:[%s8689_s4 + $0x31] sm:$0x1] %v1254_v42  ;;  %v7767_v19 = vpack.c.bf16 %v1565_v35, %v1564_v13  ;;  %v1566_v38 = vld [vmem:[%s8686_s2 + $0x158] sm:$0xff]  ;;  %v7785_v49 = vpack.c.bf16 %v1479_v15, %v1478_v20  ;;  %v1480_v30 = vld [vmem:[%s8686_s2 + $0x190] sm:$0xff] }
 0x274   :  { %6010 = vmatpush3.bf16.msra.mxu0 %v7709_v55  ;;  %6034 = vmatpush3.bf16.msra.mxu1 %v7711_v32  ;;  %v1567_v42 = vld [vmem:[%s8686_s2 + $0x178] sm:$0xff]  ;;  %v1481_v18 = vld [vmem:[%s8686_s2 + $0x1b0] sm:$0xff] }
 0x275   :  { %1272 = vst [vmem:[%s8689_s4 + $0x39] sm:$0x1] %v1256_v28  ;;  %6011 = vmatprep.subr.bf16.mxu0 %v8706_v41  ;;  %6035 = vmatprep.subr.bf16.mxu1 %v8706_v41  ;;  %v7787_v1 = vpack.c.bf16 %v1567_v42, %v1566_v38  ;;  %v1568_v28 = vld [vmem:[%s8686_s2 + $0x198] sm:$0xff]  ;;  %v7805_v9 = vpack.c.bf16 %v1481_v18, %v1480_v30  ;;  %v1482_v35 = vld [vmem:[%s8686_s2 + $0x1d0] sm:$0xff] }
 0x276   :  { %v1569_v47 = vld [vmem:[%s8686_s2 + $0x1b8] sm:$0xff]  ;;  %v1483_v20 = vld [vmem:[%s8686_s2 + $0x1f0] sm:$0xff] }
 0x277   :  { %v7807_v13 = vpack.c.bf16 %v1569_v47, %v1568_v28  ;;  %v1570_v15 = vld [vmem:[%s8686_s2 + $0x1d8] sm:$0xff]  ;;  %v7825_v42 = vpack.c.bf16 %v1483_v20, %v1482_v35 }
 0x278   :  { %6013 = vmatpush3.bf16.msra.mxu0 %v7742_v0  ;;  %6037 = vmatpush3.bf16.msra.mxu1 %v7744_v25  ;;  %v1571_v38 = vld [vmem:[%s8686_s2 + $0x1f8] sm:$0xff] }
 0x279   :  { %6014 = vmatprep.subr.bf16.mxu0 %v8706_v41  ;;  %6038 = vmatprep.subr.bf16.mxu1 %v8706_v41  ;;  %v7827_v30 = vpack.c.bf16 %v1571_v38, %v1570_v15 }
 0x27c   :  { %6016 = vmatpush3.bf16.msra.mxu0 %v7765_v43  ;;  %6040 = vmatpush3.bf16.msra.mxu1 %v7767_v19 }
 0x27d   :  { %6017 = vmatprep.subr.bf16.mxu0 %v8706_v41  ;;  %6041 = vmatprep.subr.bf16.mxu1 %v8706_v41 }
 0x280   :  { %6019 = vmatpush3.bf16.msra.mxu0 %v7785_v49  ;;  %6043 = vmatpush3.bf16.msra.mxu1 %v7787_v1 }
 0x281   :  { %6020 = vmatprep.subr.bf16.mxu0 %v8706_v41  ;;  %6044 = vmatprep.subr.bf16.mxu1 %v8706_v41 }
 0x284   :  { %6022 = vmatpush3.bf16.msra.mxu0 %v7805_v9  ;;  %6046 = vmatpush3.bf16.msra.mxu1 %v7807_v13 }
 0x285   :  { %6023 = vmatprep.subr.bf16.mxu0 %v8706_v41  ;;  %6047 = vmatprep.subr.bf16.mxu1 %v8706_v41 }
 0x288   :  { %6025 = vmatpush3.bf16.msra.mxu0 %v7825_v42  ;;  %6049 = vmatpush3.bf16.msra.mxu1 %v7827_v30 }
 0x289   :  { %6050 = vmatprep.subr.bf16.mxu0 %v8706_v41  ;;  %6074 = vmatprep.subr.bf16.mxu1 %v8706_v41 }
 0x28b   :  { %4961 = vmatmul.mubr.f32.vlgmr.msra.gmra.mrb[26].mxu0 %v7653_v46  ;;  %4996 = vmatmul.mubr.f32.vlgmr.msra.gmra.mrb[26].mxu1 %v7653_v46 }
 0x28c   :  { %6052 = vmatpush3.bf16.msra.mxu0 %v7475_v50  ;;  %6076 = vmatpush3.bf16.msra.mxu1 %v7480_v58 }
 0x28d   :  { %6053 = vmatprep.subr.bf16.mxu0 %v8706_v41  ;;  %6077 = vmatprep.subr.bf16.mxu1 %v8706_v41 }
 0x28e   :  { %5030 = vmatprep.mubr.msk.f32.mxu0 %vm6664_vm0, %v8707_v3  ;;  %5065 = vmatprep.mubr.msk.f32.mxu1 %vm6664_vm0, %v8707_v3 }
 0x290   :  { %6055 = vmatpush3.bf16.msra.mxu0 %v7495_v11  ;;  %6079 = vmatpush3.bf16.msra.mxu1 %v7500_v21 }
 0x291   :  { %6056 = vmatprep.subr.bf16.mxu0 %v8706_v41  ;;  %6080 = vmatprep.subr.bf16.mxu1 %v8706_v41 }
 0x294   :  { %6058 = vmatpush3.bf16.msra.mxu0 %v7515_v62  ;;  %6082 = vmatpush3.bf16.msra.mxu1 %v7520_v27 }
 0x295   :  { %6059 = vmatprep.subr.bf16.mxu0 %v8706_v41  ;;  %6083 = vmatprep.subr.bf16.mxu1 %v8706_v41 }
 0x298   :  { %6061 = vmatpush3.bf16.msra.mxu0 %v7535_v22  ;;  %6085 = vmatpush3.bf16.msra.mxu1 %v7540_v5 }
 0x299   :  { %6062 = vmatprep.subr.bf16.mxu0 %v8706_v41  ;;  %6086 = vmatprep.subr.bf16.mxu1 %v8706_v41 }
 0x29c   :  { %6064 = vmatpush3.bf16.msra.mxu0 %v7555_v61  ;;  %6088 = vmatpush3.bf16.msra.mxu1 %v7560_v33 }
 0x29d   :  { %6065 = vmatprep.subr.bf16.mxu0 %v8706_v41  ;;  %6089 = vmatprep.subr.bf16.mxu1 %v8706_v41 }
 0x2a0   :  { %6067 = vmatpush3.bf16.msra.mxu0 %v7575_v37  ;;  %6091 = vmatpush3.bf16.msra.mxu1 %v7580_v51 }
 0x2a1   :  { %6068 = vmatprep.subr.bf16.mxu0 %v8706_v41  ;;  %6092 = vmatprep.subr.bf16.mxu1 %v8706_v41 }
 0x2a4   :  { %6070 = vmatpush3.bf16.msra.mxu0 %v7595_v57  ;;  %6094 = vmatpush3.bf16.msra.mxu1 %v7600_v2 }
 0x2a5   :  { %6071 = vmatprep.subr.bf16.mxu0 %v8706_v41  ;;  %6095 = vmatprep.subr.bf16.mxu1 %v8706_v41 }
 0x2a8   :  { %6073 = vmatpush3.bf16.msra.mxu0 %v7615_v29  ;;  %6097 = vmatpush3.bf16.msra.mxu1 %v7620_v12 }
 0x2a9   :  { %6098 = vmatprep.subr.bf16.mxu0 %v8706_v41  ;;  %6122 = vmatprep.subr.bf16.mxu1 %v8706_v41 }
 0x33e   :  { %v1364_v46 = vpop.f32.mrb[24].mxu0  ;;  %v1457_v18 = vpop.f32.mrb[24].mxu1 }
 0x33f   :  { %v1368_v28 = vadd.f32 %v1364_v46, %v7324_v45  ;;  %v1461_v47 = vadd.f32 %v1457_v18, %v7329_v53  ;;  %v4892_v35 = vpop.f32.mrb[25].mxu0  ;;  %v4927_v20 = vpop.f32.mrb[25].mxu1 }
 0x341   :  { %v3993_v15 = vmul.f32 -1.442695, %v1461_v47  ;;  %v3992_v38 = vmul.f32 -1.442695, %v1368_v28 }
 0x343   :  { %6566 = vpow2.f32 %v3993_v15 }
 0x344   :  { %6568 = vpow2.f32 %v3992_v38 }
 0x34d   :  { %v6567_v31 = vpop.eup %6566 }
 0x34e   :  { %v6569_v56 = vpop.eup %6568  ;;  %v1465_v60 = vadd.f32 1.0, %v6567_v31 }
 0x34f   :  { %v1372_v44 = vadd.f32 1.0, %v6569_v56 }
 0x350   :  { %6570 = vrcp.f32 %v1465_v60 }
 0x351   :  { %6572 = vrcp.f32 %v1372_v44 }
 0x35a   :  { %v6571_v18 = vpop.eup %6570 }
 0x35b   :  { %v6573_v28 = vpop.eup %6572  ;;  %v1649_v35 = vmul.f32 %v6571_v18, %v7631_v54 }
 0x35e   :  { %v1550_v34 = vpop.f32.mrb[26].mxu0  ;;  %v1638_v6 = vpop.f32.mrb[26].mxu1 }
 0x35f   :  { %v1554_v26 = vadd.f32 %v1550_v34, %v7327_v52  ;;  %v1642_v48 = vadd.f32 %v1638_v6, %v7332_v59  ;;  %v4962_v45 = vpop.f32.mrb[27].mxu0  ;;  %v4997_v46 = vpop.f32.mrb[27].mxu1 }
 0x361   :  { %6574 = vtanh.f32 %v1554_v26  ;;  %v3994_v53 = vmul.f32 -1.442695, %v1642_v48 }
 0x363   :  { %6576 = vpow2.f32 %v3994_v53 }
 0x36b   :  { %v6575_v47 = vpop.eup %6574 }
 0x36c   :  { %v1650_v31 = vmul.f32 %v6575_v47, %v6573_v28 }
 0x36d   :  { %v6577_v56 = vpop.eup %6576 }
 0x36e   :  { %v7878_v20 = vadd.f32 %v1650_v31, %v1649_v35  ;;  %v1646_v60 = vadd.f32 1.0, %v6577_v56 }
 0x370   :  { %6578 = vtanh.f32 %v7878_v20 }
 0x371   :  { %6580 = vrcp.f32 %v1646_v60 }
 0x37a   :  { %v6579_v52 = vpop.eup %6578 }
 0x37b   :  { %v6581_v59 = vpop.eup %6580 }
 0x37c   :  { %v1653_v6 = vmul.f32 %v6581_v59, %v6579_v52 }
 0x37e   :  { %v1657_v34 = vcombine.high %v1653_v6, %v1653_v6  ;;  %v1664_v48 = vrot.slane %v1653_v6, %v7394_v17  ;;  %5031 = vmatmul.mubr.f32.vlgmr.msra.gmra.mrb[28].mxu0 %v1653_v6  ;;  %5066 = vmatmul.mubr.f32.vlgmr.msra.gmra.mrb[28].mxu1 %v1653_v6 }
 0x37f   :  { %6100 = vmatpush3.bf16.msra.mxu0 %v7646_v40  ;;  %6124 = vmatpush3.bf16.msra.mxu1 %v7648_v4 }
 0x380   :  { %v1671_v26 = vrot.slane %v1657_v34, %v7394_v17  ;;  %v1672_v44 = vcombine.high %v1664_v48, %v1664_v48  ;;  %v1680_v54 = vrot.slane %v1664_v48, %v7394_v17  ;;  %3995 = vst.sshfl [vmem:[%s8689_s4 + $0x2] sm:$0x1 pattern:$0x73625140] %v1664_v48  ;;  %6101 = vmatprep.subr.bf16.mxu0 %v8706_v41 }
 0x381   :  { %6125 = vmatprep.subr.bf16.mxu1 %v8706_v41  ;;  %5100 = vmatprep.mubr.msk.f32.mxu0 %vm6664_vm0, %v8707_v3 }
 0x382   :  { %5135 = vmatprep.mubr.msk.f32.mxu1 %vm6664_vm0, %v8707_v3  ;;  %v1673_v15 = vcombine.high %v1671_v26, %v1671_v26  ;;  %v1687_v38 = vrot.slane %v1671_v26, %v7394_v17  ;;  %v1694_v45 = vrot.slane %v1672_v44, %v7394_v17  ;;  %v1702_v46 = vcombine.high %v1680_v54, %v1680_v54 }
 0x383   :  { %3996 = vst.sshfl [vmem:[%s8689_s4 + $0xa] sm:$0x1 pattern:$0x73625140] %v1672_v44  ;;  %6103 = vmatpush3.bf16.msra.mxu0 %v7672_v10  ;;  %6127 = vmatpush3.bf16.msra.mxu1 %v7674_v36 }
 0x384   :  { %3997 = vst.sshfl [vmem:[%s8689_s4 + $0x22] sm:$0x1 pattern:$0x73625140] %v1671_v26  ;;  %v1701_v53 = vrot.slane %v1673_v15, %v7394_v17  ;;  %v1703_v18 = vcombine.high %v1687_v38, %v1687_v38  ;;  %v1704_v28 = vcombine.high %v1694_v45, %v1694_v45  ;;  %1716 = vst [vmem:[%s8689_s4 + $0x12] sm:$0x1] %v1702_v46  ;;  %6104 = vmatprep.subr.bf16.mxu0 %v8706_v41 }
 0x385   :  { %3998 = vst.sshfl [vmem:[%s8689_s4 + $0x2a] sm:$0x1 pattern:$0x73625140] %v1673_v15  ;;  %6128 = vmatprep.subr.bf16.mxu1 %v8706_v41 }
 0x386   :  { %v1705_v47 = vcombine.high %v1701_v53, %v1701_v53  ;;  %1717 = vst [vmem:[%s8689_s4 + $0x1a] sm:$0x1] %v1704_v28  ;;  %1720 = vst [vmem:[%s8689_s4 + $0x32] sm:$0x1] %v1703_v18 }
 0x387   :  { %6106 = vmatpush3.bf16.msra.mxu0 %v7709_v55  ;;  %6130 = vmatpush3.bf16.msra.mxu1 %v7711_v32 }
 0x388   :  { %1721 = vst [vmem:[%s8689_s4 + $0x3a] sm:$0x1] %v1705_v47  ;;  %6107 = vmatprep.subr.bf16.mxu0 %v8706_v41  ;;  %6131 = vmatprep.subr.bf16.mxu1 %v8706_v41 }
 0x38b   :  { %6109 = vmatpush3.bf16.msra.mxu0 %v7742_v0  ;;  %6133 = vmatpush3.bf16.msra.mxu1 %v7744_v25 }
 0x38c   :  { %6110 = vmatprep.subr.bf16.mxu0 %v8706_v41  ;;  %6134 = vmatprep.subr.bf16.mxu1 %v8706_v41 }
 0x38f   :  { %6112 = vmatpush3.bf16.msra.mxu0 %v7765_v43  ;;  %6136 = vmatpush3.bf16.msra.mxu1 %v7767_v19 }
 0x390   :  { %6113 = vmatprep.subr.bf16.mxu0 %v8706_v41  ;;  %6137 = vmatprep.subr.bf16.mxu1 %v8706_v41 }
 0x393   :  { %6115 = vmatpush3.bf16.msra.mxu0 %v7785_v49  ;;  %6139 = vmatpush3.bf16.msra.mxu1 %v7787_v1 }
 0x394   :  { %6116 = vmatprep.subr.bf16.mxu0 %v8706_v41  ;;  %6140 = vmatprep.subr.bf16.mxu1 %v8706_v41 }
 0x397   :  { %6118 = vmatpush3.bf16.msra.mxu0 %v7805_v9  ;;  %6142 = vmatpush3.bf16.msra.mxu1 %v7807_v13 }
 0x398   :  { %6119 = vmatprep.subr.bf16.mxu0 %v8706_v41  ;;  %6143 = vmatprep.subr.bf16.mxu1 %v8706_v41 }
 0x39b   :  { %6121 = vmatpush3.bf16.msra.mxu0 %v7825_v42  ;;  %6145 = vmatpush3.bf16.msra.mxu1 %v7827_v30 }
 0x39c   :  { %6146 = vmatprep.subr.bf16.mxu0 %v8706_v41  ;;  %6170 = vmatprep.subr.bf16.mxu1 %v8706_v41 }
 0x39e   :  { %5101 = vmatmul.mubr.f32.vlgmr.msra.gmra.mrb[30].mxu0 %v1653_v6  ;;  %5136 = vmatmul.mubr.f32.vlgmr.msra.gmra.mrb[30].mxu1 %v1653_v6 }
 0x39f   :  { %6148 = vmatpush3.bf16.msra.mxu0 %v7475_v50  ;;  %6172 = vmatpush3.bf16.msra.mxu1 %v7480_v58 }
 0x3a0   :  { %6149 = vmatprep.subr.bf16.mxu0 %v8706_v41  ;;  %6173 = vmatprep.subr.bf16.mxu1 %v8706_v41 }
 0x3a1   :  { %5170 = vmatprep.mubr.msk.f32.mxu0 %vm6664_vm0, %v8707_v3  ;;  %5205 = vmatprep.mubr.msk.f32.mxu1 %vm6664_vm0, %v8707_v3 }
 0x3a3   :  { %6151 = vmatpush3.bf16.msra.mxu0 %v7495_v11  ;;  %6175 = vmatpush3.bf16.msra.mxu1 %v7500_v21 }
 0x3a4   :  { %6152 = vmatprep.subr.bf16.mxu0 %v8706_v41  ;;  %6176 = vmatprep.subr.bf16.mxu1 %v8706_v41 }
 0x3a7   :  { %6154 = vmatpush3.bf16.msra.mxu0 %v7515_v62  ;;  %6178 = vmatpush3.bf16.msra.mxu1 %v7520_v27 }
 0x3a8   :  { %6155 = vmatprep.subr.bf16.mxu0 %v8706_v41  ;;  %6179 = vmatprep.subr.bf16.mxu1 %v8706_v41 }
 0x3ab   :  { %6157 = vmatpush3.bf16.msra.mxu0 %v7535_v22  ;;  %6181 = vmatpush3.bf16.msra.mxu1 %v7540_v5 }
 0x3ac   :  { %6158 = vmatprep.subr.bf16.mxu0 %v8706_v41  ;;  %6182 = vmatprep.subr.bf16.mxu1 %v8706_v41 }
 0x3af   :  { %6160 = vmatpush3.bf16.msra.mxu0 %v7555_v61  ;;  %6184 = vmatpush3.bf16.msra.mxu1 %v7560_v33 }
 0x3b0   :  { %6161 = vmatprep.subr.bf16.mxu0 %v8706_v41  ;;  %6185 = vmatprep.subr.bf16.mxu1 %v8706_v41 }
 0x3b3   :  { %6163 = vmatpush3.bf16.msra.mxu0 %v7575_v37  ;;  %6187 = vmatpush3.bf16.msra.mxu1 %v7580_v51 }
 0x3b4   :  { %6164 = vmatprep.subr.bf16.mxu0 %v8706_v41  ;;  %6188 = vmatprep.subr.bf16.mxu1 %v8706_v41 }
 0x3b7   :  { %6166 = vmatpush3.bf16.msra.mxu0 %v7595_v57  ;;  %6190 = vmatpush3.bf16.msra.mxu1 %v7600_v2 }
 0x3b8   :  { %6167 = vmatprep.subr.bf16.mxu0 %v8706_v41  ;;  %6191 = vmatprep.subr.bf16.mxu1 %v8706_v41 }
 0x3bb   :  { %6169 = vmatpush3.bf16.msra.mxu0 %v7615_v29  ;;  %6193 = vmatpush3.bf16.msra.mxu1 %v7620_v12 }
 0x3bc   :  { %6194 = vmatprep.subr.bf16.mxu0 %v8706_v41  ;;  %6218 = vmatprep.subr.bf16.mxu1 %v8706_v41 }
 0x451   :  { %v1813_v50 = vpop.f32.mrb[28].mxu0  ;;  %v1906_v58 = vpop.f32.mrb[28].mxu1 }
 0x452   :  { %v1817_v11 = vadd.f32 %v1813_v50, %v7334_v63  ;;  %v1910_v21 = vadd.f32 %v1906_v58, %v7339_v8  ;;  %v5032_v62 = vpop.f32.mrb[29].mxu0  ;;  %v5067_v27 = vpop.f32.mrb[29].mxu1  ;;  %v2726_v50 = vld [vmem:[%s8686_s2 + $0x88] sm:$0xff] }
 0x453   :  { %v2635_v62 = vld [vmem:[%s8686_s2 + $0xc0] sm:$0xff] }
 0x454   :  { %v4000_v22 = vmul.f32 -1.442695, %v1910_v21  ;;  %v3999_v5 = vmul.f32 -1.442695, %v1817_v11  ;;  %v2727_v11 = vld [vmem:[%s8686_s2 + $0xa8] sm:$0xff]  ;;  %v2636_v27 = vld [vmem:[%s8686_s2 + $0xe0] sm:$0xff] }
 0x455   :  { %v8115_v21 = vpack.c.bf16 %v2727_v11, %v2726_v50 }
 0x456   :  { %6582 = vpow2.f32 %v4000_v22  ;;  %v2728_v22 = vld [vmem:[%s8686_s2 + $0xc8] sm:$0xff] }
 0x457   :  { %6584 = vpow2.f32 %v3999_v5  ;;  %v8130_v5 = vpack.c.bf16 %v2636_v27, %v2635_v62 }
 0x460   :  { %v6583_v61 = vpop.eup %6582 }
 0x461   :  { %v6585_v33 = vpop.eup %6584  ;;  %v1914_v37 = vadd.f32 1.0, %v6583_v61  ;;  %v2729_v61 = vld [vmem:[%s8686_s2 + $0xe8] sm:$0xff] }
 0x462   :  { %v1821_v51 = vadd.f32 1.0, %v6585_v33  ;;  %v8135_v33 = vpack.c.bf16 %v2729_v61, %v2728_v22 }
 0x463   :  { %6586 = vrcp.f32 %v1914_v37  ;;  %v2637_v37 = vld [vmem:[%s8686_s2 + $0x100] sm:$0xff] }
 0x464   :  { %6588 = vrcp.f32 %v1821_v51  ;;  %v2638_v51 = vld [vmem:[%s8686_s2 + $0x120] sm:$0xff] }
 0x46d   :  { %v6587_v31 = vpop.eup %6586 }
 0x46e   :  { %v6589_v56 = vpop.eup %6588  ;;  %v2098_v52 = vmul.f32 %v6587_v31, %v7878_v20 }
 0x471   :  { %v1999_v57 = vpop.f32.mrb[30].mxu0  ;;  %v2087_v2 = vpop.f32.mrb[30].mxu1 }
 0x472   :  { %v2003_v29 = vadd.f32 %v1999_v57, %v7337_v7  ;;  %v2091_v12 = vadd.f32 %v2087_v2, %v7342_v14  ;;  %v5102_v63 = vpop.f32.mrb[31].mxu0  ;;  %v5137_v35 = vpop.f32.mrb[31].mxu1  ;;  %v2730_v57 = vld [vmem:[%s8686_s2 + $0x108] sm:$0xff]  ;;  %v8150_v2 = vpack.c.bf16 %v2638_v51, %v2637_v37  ;;  %v2904_v51 = vld [vmem:[%s8686_s2 + $0x38] sm:$0xff] }
 0x473   :  { %v2639_v63 = vld [vmem:[%s8686_s2 + $0x140] sm:$0xff] }
 0x474   :  { %6590 = vtanh.f32 %v2003_v29  ;;  %v4001_v8 = vmul.f32 -1.442695, %v2091_v12  ;;  %v2731_v29 = vld [vmem:[%s8686_s2 + $0x128] sm:$0xff]  ;;  %v2640_v35 = vld [vmem:[%s8686_s2 + $0x160] sm:$0xff] }
 0x475   :  { %v8155_v12 = vpack.c.bf16 %v2731_v29, %v2730_v57  ;;  %v8170_v31 = vpack.c.bf16 %v2640_v35, %v2639_v63 }
 0x476   :  { %6592 = vpow2.f32 %v4001_v8  ;;  %v2732_v8 = vld [vmem:[%s8686_s2 + $0x148] sm:$0xff] }
 0x47e   :  { %v6591_v60 = vpop.eup %6590 }
 0x47f   :  { %v2099_v59 = vmul.f32 %v6591_v60, %v6589_v56  ;;  %v2733_v56 = vld [vmem:[%s8686_s2 + $0x168] sm:$0xff] }
 0x480   :  { %v6593_v6 = vpop.eup %6592  ;;  %v8175_v60 = vpack.c.bf16 %v2733_v56, %v2732_v8  ;;  %v2817_v8 = vld [vmem:[%s8686_s2 + $0x50] sm:$0xff] }
 0x481   :  { %v7988_v34 = vadd.f32 %v2099_v59, %v2098_v52  ;;  %v2095_v48 = vadd.f32 1.0, %v6593_v6  ;;  %v2641_v52 = vld [vmem:[%s8686_s2 + $0x180] sm:$0xff]  ;;  %v2734_v6 = vld [vmem:[%s8686_s2 + $0x188] sm:$0xff] }
 0x482   :  { %v2642_v59 = vld [vmem:[%s8686_s2 + $0x1a0] sm:$0xff] }
 0x483   :  { %6594 = vtanh.f32 %v7988_v34 }
 0x484   :  { %6596 = vrcp.f32 %v2095_v48  ;;  %v8190_v48 = vpack.c.bf16 %v2642_v59, %v2641_v52  ;;  %v2818_v52 = vld [vmem:[%s8686_s2 + $0x70] sm:$0xff]  ;;  %v2905_v59 = vld [vmem:[%s8686_s2 + $0x58] sm:$0xff] }
 0x48d   :  { %v6595_v7 = vpop.eup %6594 }
 0x48e   :  { %v6597_v14 = vpop.eup %6596 }
 0x48f   :  { %v2102_v26 = vmul.f32 %v6597_v14, %v6595_v7  ;;  %v2735_v7 = vld [vmem:[%s8686_s2 + $0x1a8] sm:$0xff] }
 0x490   :  { %v8195_v14 = vpack.c.bf16 %v2735_v7, %v2734_v6  ;;  %v2906_v6 = vld [vmem:[%s8686_s2 + $0x78] sm:$0xff] }
 0x491   :  { %v2106_v44 = vcombine.high %v2102_v26, %v2102_v26  ;;  %v2113_v54 = vrot.slane %v2102_v26, %v7394_v17  ;;  %5171 = vmatmul.mubr.f32.vlgmr.msra.gmra.mrb[32].mxu0 %v2102_v26  ;;  %5206 = vmatmul.mubr.f32.vlgmr.msra.gmra.mrb[32].mxu1 %v2102_v26 }
 0x492   :  { %6196 = vmatpush3.bf16.msra.mxu0 %v7646_v40  ;;  %6220 = vmatpush3.bf16.msra.mxu1 %v7648_v4 }
 0x493   :  { %v2120_v20 = vrot.slane %v2106_v44, %v7394_v17  ;;  %v2121_v15 = vcombine.high %v2113_v54, %v2113_v54  ;;  %v2129_v38 = vrot.slane %v2113_v54, %v7394_v17  ;;  %4002 = vst.sshfl [vmem:[%s8689_s4 + $0x3] sm:$0x1 pattern:$0x73625140] %v2113_v54  ;;  %6197 = vmatprep.subr.bf16.mxu0 %v8706_v41  ;;  %v2644_v44 = vld [vmem:[%s8686_s2 + $0x1e0] sm:$0xff]  ;;  %v2736_v54 = vld [vmem:[%s8686_s2 + $0x1c8] sm:$0xff] }
 0x494   :  { %6221 = vmatprep.subr.bf16.mxu1 %v8706_v41  ;;  %5240 = vmatprep.mubr.msk.f32.mxu0 %vm6664_vm0, %v8707_v3 }
 0x495   :  { %5275 = vmatprep.mubr.msk.f32.mxu1 %vm6664_vm0, %v8707_v3  ;;  %v2122_v40 = vcombine.high %v2120_v20, %v2120_v20  ;;  %v2136_v4 = vrot.slane %v2120_v20, %v7394_v17  ;;  %v2143_v45 = vrot.slane %v2121_v15, %v7394_v17  ;;  %v2151_v46 = vcombine.high %v2129_v38, %v2129_v38 }
 0x496   :  { %4003 = vst.sshfl [vmem:[%s8689_s4 + $0xb] sm:$0x1 pattern:$0x73625140] %v2121_v15  ;;  %6199 = vmatpush3.bf16.msra.mxu0 %v7672_v10  ;;  %6223 = vmatpush3.bf16.msra.mxu1 %v7674_v36  ;;  %v2629_v10 = vld [vmem:[%s8686_s2] sm:$0xff]  ;;  %v2737_v15 = vld [vmem:[%s8686_s2 + $0x1e8] sm:$0xff] }
 0x497   :  { %4004 = vst.sshfl [vmem:[%s8689_s4 + $0x23] sm:$0x1 pattern:$0x73625140] %v2120_v20  ;;  %v2150_v53 = vrot.slane %v2122_v40, %v7394_v17  ;;  %v2152_v18 = vcombine.high %v2136_v4, %v2136_v4  ;;  %v2153_v28 = vcombine.high %v2143_v45, %v2143_v45  ;;  %2165 = vst [vmem:[%s8689_s4 + $0x13] sm:$0x1] %v2151_v46  ;;  %6200 = vmatprep.subr.bf16.mxu0 %v8706_v41 }
 0x498   :  { %4005 = vst.sshfl [vmem:[%s8689_s4 + $0x2b] sm:$0x1 pattern:$0x73625140] %v2122_v40  ;;  %6224 = vmatprep.subr.bf16.mxu1 %v8706_v41  ;;  %v2630_v36 = vld [vmem:[%s8686_s2 + $0x20] sm:$0xff]  ;;  %v8215_v38 = vpack.c.bf16 %v2737_v15, %v2736_v54  ;;  %v8269_v54 = vpack.c.bf16 %v2906_v6, %v2905_v59  ;;  %v2819_v15 = vld [vmem:[%s8686_s2 + $0x90] sm:$0xff] }
 0x499   :  { %v2154_v47 = vcombine.high %v2150_v53, %v2150_v53  ;;  %2166 = vst [vmem:[%s8689_s4 + $0x1b] sm:$0x1] %v2153_v28  ;;  %2169 = vst [vmem:[%s8689_s4 + $0x33] sm:$0x1] %v2152_v18  ;;  %v2827_v59 = vld [vmem:[%s8686_s2 + $0x190] sm:$0xff] }
 0x49a   :  { %6202 = vmatpush3.bf16.msra.mxu0 %v7709_v55  ;;  %6226 = vmatpush3.bf16.msra.mxu1 %v7711_v32  ;;  %v2722_v55 = vld [vmem:[%s8686_s2 + $0x8] sm:$0xff]  ;;  %v8070_v32 = vpack.c.bf16 %v2630_v36, %v2629_v10  ;;  %v2828_v6 = vld [vmem:[%s8686_s2 + $0x1b0] sm:$0xff] }
 0x49b   :  { %2170 = vst [vmem:[%s8689_s4 + $0x3b] sm:$0x1] %v2154_v47  ;;  %6203 = vmatprep.subr.bf16.mxu0 %v8706_v41  ;;  %6227 = vmatprep.subr.bf16.mxu1 %v8706_v41 }
 0x49e   :  { %6205 = vmatpush3.bf16.msra.mxu0 %v7742_v0  ;;  %6229 = vmatpush3.bf16.msra.mxu1 %v7744_v25  ;;  %v2723_v0 = vld [vmem:[%s8686_s2 + $0x28] sm:$0xff] }
 0x49f   :  { %6206 = vmatprep.subr.bf16.mxu0 %v8706_v41  ;;  %6230 = vmatprep.subr.bf16.mxu1 %v8706_v41  ;;  %v8075_v25 = vpack.c.bf16 %v2723_v0, %v2722_v55 }
 0x4a2   :  { %6208 = vmatpush3.bf16.msra.mxu0 %v7765_v43  ;;  %6232 = vmatpush3.bf16.msra.mxu1 %v7767_v19  ;;  %v2631_v43 = vld [vmem:[%s8686_s2 + $0x40] sm:$0xff] }
 0x4a3   :  { %6209 = vmatprep.subr.bf16.mxu0 %v8706_v41  ;;  %6233 = vmatprep.subr.bf16.mxu1 %v8706_v41  ;;  %v2632_v19 = vld [vmem:[%s8686_s2 + $0x60] sm:$0xff] }
 0x4a6   :  { %6211 = vmatpush3.bf16.msra.mxu0 %v7785_v49  ;;  %6235 = vmatpush3.bf16.msra.mxu1 %v7787_v1  ;;  %v2724_v49 = vld [vmem:[%s8686_s2 + $0x48] sm:$0xff]  ;;  %v8090_v1 = vpack.c.bf16 %v2632_v19, %v2631_v43 }
 0x4a7   :  { %6212 = vmatprep.subr.bf16.mxu0 %v8706_v41  ;;  %6236 = vmatprep.subr.bf16.mxu1 %v8706_v41 }
 0x4aa   :  { %6214 = vmatpush3.bf16.msra.mxu0 %v7805_v9  ;;  %6238 = vmatpush3.bf16.msra.mxu1 %v7807_v13  ;;  %v2725_v9 = vld [vmem:[%s8686_s2 + $0x68] sm:$0xff] }
 0x4ab   :  { %6215 = vmatprep.subr.bf16.mxu0 %v8706_v41  ;;  %6239 = vmatprep.subr.bf16.mxu1 %v8706_v41  ;;  %v8095_v13 = vpack.c.bf16 %v2725_v9, %v2724_v49 }
 0x4ae   :  { %6217 = vmatpush3.bf16.msra.mxu0 %v7825_v42  ;;  %6241 = vmatpush3.bf16.msra.mxu1 %v7827_v30  ;;  %v2633_v42 = vld [vmem:[%s8686_s2 + $0x80] sm:$0xff] }
 0x4af   :  { %6242 = vmatprep.subr.bf16.mxu0 %v8706_v41  ;;  %6266 = vmatprep.subr.bf16.mxu1 %v8706_v41  ;;  %v2634_v30 = vld [vmem:[%s8686_s2 + $0xa0] sm:$0xff] }
 0x4b0   :  { %v8110_v58 = vpack.c.bf16 %v2634_v30, %v2633_v42 }
 0x4b1   :  { %5241 = vmatmul.mubr.f32.vlgmr.msra.gmra.mrb[34].mxu0 %v2102_v26  ;;  %5276 = vmatmul.mubr.f32.vlgmr.msra.gmra.mrb[34].mxu1 %v2102_v26  ;;  %v2643_v26 = vld [vmem:[%s8686_s2 + $0x1c0] sm:$0xff] }
 0x4b2   :  { %5310 = vmatprep.mubr.msk.f32.mxu0 %vm6664_vm0, %v8707_v3  ;;  %5345 = vmatprep.mubr.msk.f32.mxu1 %vm6664_vm0, %v8707_v3  ;;  %v8210_v20 = vpack.c.bf16 %v2644_v44, %v2643_v26  ;;  %v8267_v44 = vpack.c.bf16 %v2818_v52, %v2817_v8 }
 0x4b3   :  { %6244 = vmatpush3.bf16.msra.mxu0 %v8070_v32  ;;  %6268 = vmatpush3.bf16.msra.mxu1 %v8075_v25 }
 0x4b4   :  { %6245 = vmatprep.subr.bf16.mxu0 %v8706_v41  ;;  %6269 = vmatprep.subr.bf16.mxu1 %v8706_v41 }
 0x4b7   :  { %6247 = vmatpush3.bf16.msra.mxu0 %v8090_v1  ;;  %6271 = vmatpush3.bf16.msra.mxu1 %v8095_v13 }
 0x4b8   :  { %6248 = vmatprep.subr.bf16.mxu0 %v8706_v41  ;;  %6272 = vmatprep.subr.bf16.mxu1 %v8706_v41 }
 0x4bb   :  { %6250 = vmatpush3.bf16.msra.mxu0 %v8110_v58  ;;  %6274 = vmatpush3.bf16.msra.mxu1 %v8115_v21 }
 0x4bc   :  { %6251 = vmatprep.subr.bf16.mxu0 %v8706_v41  ;;  %6275 = vmatprep.subr.bf16.mxu1 %v8706_v41 }
 0x4bf   :  { %6253 = vmatpush3.bf16.msra.mxu0 %v8130_v5  ;;  %6277 = vmatpush3.bf16.msra.mxu1 %v8135_v33 }
 0x4c0   :  { %6254 = vmatprep.subr.bf16.mxu0 %v8706_v41  ;;  %6278 = vmatprep.subr.bf16.mxu1 %v8706_v41 }
 0x4c3   :  { %6256 = vmatpush3.bf16.msra.mxu0 %v8150_v2  ;;  %6280 = vmatpush3.bf16.msra.mxu1 %v8155_v12 }
 0x4c4   :  { %6257 = vmatprep.subr.bf16.mxu0 %v8706_v41  ;;  %6281 = vmatprep.subr.bf16.mxu1 %v8706_v41 }
 0x4c7   :  { %6259 = vmatpush3.bf16.msra.mxu0 %v8170_v31  ;;  %6283 = vmatpush3.bf16.msra.mxu1 %v8175_v60 }
 0x4c8   :  { %6260 = vmatprep.subr.bf16.mxu0 %v8706_v41  ;;  %6284 = vmatprep.subr.bf16.mxu1 %v8706_v41 }
 0x4cb   :  { %6262 = vmatpush3.bf16.msra.mxu0 %v8190_v48  ;;  %6286 = vmatpush3.bf16.msra.mxu1 %v8195_v14 }
 0x4cc   :  { %6263 = vmatprep.subr.bf16.mxu0 %v8706_v41  ;;  %6287 = vmatprep.subr.bf16.mxu1 %v8706_v41 }
 0x4cf   :  { %6265 = vmatpush3.bf16.msra.mxu0 %v8210_v20  ;;  %6289 = vmatpush3.bf16.msra.mxu1 %v8215_v38 }
 0x4d0   :  { %6290 = vmatprep.subr.bf16.mxu0 %v8706_v41  ;;  %6314 = vmatprep.subr.bf16.mxu1 %v8706_v41 }
 0x564   :  { %v2262_v40 = vpop.f32.mrb[32].mxu0  ;;  %v2355_v4 = vpop.f32.mrb[32].mxu1 }
 0x565   :  { %v2266_v45 = vadd.f32 %v2262_v40, %v7344_v16  ;;  %v2359_v46 = vadd.f32 %v2355_v4, %v7349_v24  ;;  %v5172_v53 = vpop.f32.mrb[33].mxu0  ;;  %v5207_v18 = vpop.f32.mrb[33].mxu1 }
 0x566   :  { %v2907_v53 = vld [vmem:[%s8686_s2 + $0x98] sm:$0xff] }
 0x567   :  { %v4007_v28 = vmul.f32 -1.442695, %v2359_v46  ;;  %v4006_v47 = vmul.f32 -1.442695, %v2266_v45  ;;  %v2820_v46 = vld [vmem:[%s8686_s2 + $0xb0] sm:$0xff]  ;;  %v2908_v18 = vld [vmem:[%s8686_s2 + $0xb8] sm:$0xff] }
 0x569   :  { %6598 = vpow2.f32 %v4007_v28 }
 0x56a   :  { %6600 = vpow2.f32 %v4006_v47 }
 0x573   :  { %v6599_v10 = vpop.eup %6598 }
 0x574   :  { %v6601_v36 = vpop.eup %6600  ;;  %v2363_v55 = vadd.f32 1.0, %v6599_v10 }
 0x575   :  { %v2270_v0 = vadd.f32 1.0, %v6601_v36 }
 0x576   :  { %6602 = vrcp.f32 %v2363_v55  ;;  %v8304_v55 = vpack.c.bf16 %v2820_v46, %v2819_v15  ;;  %v8400_v15 = vpack.c.bf16 %v2828_v6, %v2827_v59  ;;  %v2917_v46 = vld [vmem:[%s8686_s2 + $0x1d8] sm:$0xff] }
 0x577   :  { %6604 = vrcp.f32 %v2270_v0  ;;  %v8306_v0 = vpack.c.bf16 %v2908_v18, %v2907_v53  ;;  %v2918_v53 = vld [vmem:[%s8686_s2 + $0x1f8] sm:$0xff] }
 0x580   :  { %v6603_v30 = vpop.eup %6602 }
 0x581   :  { %v6605_v50 = vpop.eup %6604  ;;  %v2547_v62 = vmul.f32 %v6603_v30, %v7988_v34  ;;  %v2903_v34 = vld [vmem:[%s8686_s2 + $0x18] sm:$0xff] }
 0x582   :  { %v8243_v35 = vpack.c.bf16 %v2904_v51, %v2903_v34  ;;  %v2825_v34 = vld [vmem:[%s8686_s2 + $0x150] sm:$0xff] }
 0x583   :  { %v2826_v51 = vld [vmem:[%s8686_s2 + $0x170] sm:$0xff] }
 0x584   :  { %v2448_v43 = vpop.f32.mrb[34].mxu0  ;;  %v2536_v19 = vpop.f32.mrb[34].mxu1  ;;  %v8380_v8 = vpack.c.bf16 %v2826_v51, %v2825_v34  ;;  %v8710_v34 = vld [vmem:[#allocation6_spill] sm:$0xff] }
 0x585   :  { %v2452_v49 = vadd.f32 %v2448_v43, %v7347_v23  ;;  %v2540_v9 = vadd.f32 %v2536_v19, %v7352_v39  ;;  %v5242_v16 = vpop.f32.mrb[35].mxu0  ;;  %v5277_v42 = vpop.f32.mrb[35].mxu1  ;;  %v2815_v23 = vld [vmem:[%s8686_s2 + $0x10] sm:$0xff] }
 0x586   :  { %v2816_v39 = vld [vmem:[%s8686_s2 + $0x30] sm:$0xff]  ;;  %v2909_v42 = vld [vmem:[%s8686_s2 + $0xd8] sm:$0xff] }
 0x587   :  { %6606 = vtanh.f32 %v2452_v49  ;;  %v4008_v24 = vmul.f32 -1.442695, %v2540_v9  ;;  %v8241_v63 = vpack.c.bf16 %v2816_v39, %v2815_v23  ;;  %v2821_v43 = vld [vmem:[%s8686_s2 + $0xd0] sm:$0xff] }
 0x588   :  { %v2822_v16 = vld [vmem:[%s8686_s2 + $0xf0] sm:$0xff] }
 0x589   :  { %6608 = vpow2.f32 %v4008_v24  ;;  %v2910_v24 = vld [vmem:[%s8686_s2 + $0xf8] sm:$0xff] }
 0x591   :  { %v6607_v11 = vpop.eup %6606 }
 0x592   :  { %v2548_v27 = vmul.f32 %v6607_v11, %v6605_v50  ;;  %v8337_v50 = vpack.c.bf16 %v2822_v16, %v2821_v43  ;;  %v8339_v11 = vpack.c.bf16 %v2910_v24, %v2909_v42  ;;  %v8709_v43 = vld [vmem:[#allocation7_spill] sm:$0xff] }
 0x593   :  { %v6609_v22 = vpop.eup %6608 }
 0x594   :  { %v8226_v61 = vadd.f32 %v2548_v27, %v2547_v62  ;;  %v2544_v37 = vadd.f32 1.0, %v6609_v22  ;;  %v2823_v62 = vld [vmem:[%s8686_s2 + $0x110] sm:$0xff]  ;;  %v2911_v22 = vld [vmem:[%s8686_s2 + $0x118] sm:$0xff] }
 0x595   :  { %v2824_v27 = vld [vmem:[%s8686_s2 + $0x130] sm:$0xff] }
 0x596   :  { %6610 = vtanh.f32 %v8226_v61  ;;  %v8360_v23 = vpack.c.bf16 %v2824_v27, %v2823_v62 }
 0x597   :  { %6612 = vrcp.f32 %v2544_v37  ;;  %v2912_v37 = vld [vmem:[%s8686_s2 + $0x138] sm:$0xff] }
 0x598   :  { %v8362_v39 = vpack.c.bf16 %v2912_v37, %v2911_v22 }
 0x5a0   :  { %v6611_v57 = vpop.eup %6610 }
 0x5a1   :  { %v6613_v29 = vpop.eup %6612 }
 0x5a2   :  { %v8248_v56 = vmul.f32 %v6613_v29, %v6611_v57  ;;  %v2913_v57 = vld [vmem:[%s8686_s2 + $0x158] sm:$0xff] }
 0x5a3   :  { %v2914_v29 = vld [vmem:[%s8686_s2 + $0x178] sm:$0xff] }
 0x5a4   :  { %v2555_v7 = vcombine.high %v8248_v56, %v8248_v56  ;;  %v2562_v26 = vrot.slane %v8248_v56, %v7394_v17  ;;  %5311 = vmatmul.mubr.f32.vlgmr.msra.gmra.mrb[36].mxu0 %v8248_v56  ;;  %5346 = vmatmul.mubr.f32.vlgmr.msra.gmra.mrb[36].mxu1 %v8248_v56  ;;  %v8382_v52 = vpack.c.bf16 %v2914_v29, %v2913_v57  ;;  %v8711_v57 = vld [vmem:[#allocation8_spill] sm:$0xff] }
 0x5a5   :  { %6292 = vmatpush3.bf16.msra.mxu0 %v8241_v63  ;;  %6316 = vmatpush3.bf16.msra.mxu1 %v8243_v35 }
 0x5a6   :  { %v2569_v40 = vrot.slane %v2555_v7, %v7394_v17  ;;  %v2570_v4 = vcombine.high %v2562_v26, %v2562_v26  ;;  %v2578_v45 = vrot.slane %v2562_v26, %v7394_v17  ;;  %4009 = vst.sshfl [vmem:[%s8689_s4 + $0x4] sm:$0x1 pattern:$0x73625140] %v2562_v26  ;;  %6293 = vmatprep.subr.bf16.mxu0 %v8706_v41  ;;  %v2915_v7 = vld [vmem:[%s8686_s2 + $0x198] sm:$0xff] }
 0x5a7   :  { %6317 = vmatprep.subr.bf16.mxu1 %v8706_v41  ;;  %5380 = vmatprep.mubr.msk.f32.mxu0 %vm6664_vm0, %v8707_v3  ;;  %v2916_v26 = vld [vmem:[%s8686_s2 + $0x1b8] sm:$0xff] }
 0x5a8   :  { %5415 = vmatprep.mubr.msk.f32.mxu1 %vm6664_vm0, %v8707_v3  ;;  %v2571_v28 = vcombine.high %v2569_v40, %v2569_v40  ;;  %v2585_v47 = vrot.slane %v2569_v40, %v7394_v17  ;;  %v2592_v10 = vrot.slane %v2570_v4, %v7394_v17  ;;  %v2600_v36 = vcombine.high %v2578_v45, %v2578_v45  ;;  %v2830_v45 = vld [vmem:[%s8686_s2 + $0x1f0] sm:$0xff] }
 0x5a9   :  { %4010 = vst.sshfl [vmem:[%s8689_s4 + $0xc] sm:$0x1 pattern:$0x73625140] %v2570_v4  ;;  %6295 = vmatpush3.bf16.msra.mxu0 %v8267_v44  ;;  %6319 = vmatpush3.bf16.msra.mxu1 %v8269_v54  ;;  %v2829_v4 = vld [vmem:[%s8686_s2 + $0x1d0] sm:$0xff] }
 0x5aa   :  { %4011 = vst.sshfl [vmem:[%s8689_s4 + $0x24] sm:$0x1 pattern:$0x73625140] %v2569_v40  ;;  %v2599_v19 = vrot.slane %v2571_v28, %v7394_v17  ;;  %v2601_v49 = vcombine.high %v2585_v47, %v2585_v47  ;;  %v2602_v9 = vcombine.high %v2592_v10, %v2592_v10  ;;  %2614 = vst [vmem:[%s8689_s4 + $0x14] sm:$0x1] %v2600_v36  ;;  %6296 = vmatprep.subr.bf16.mxu0 %v8706_v41 }
 0x5ab   :  { %4012 = vst.sshfl [vmem:[%s8689_s4 + $0x2c] sm:$0x1 pattern:$0x73625140] %v2571_v28  ;;  %6320 = vmatprep.subr.bf16.mxu1 %v8706_v41  ;;  %v8402_v40 = vpack.c.bf16 %v2916_v26, %v2915_v7  ;;  %v8420_v18 = vpack.c.bf16 %v2830_v45, %v2829_v4  ;;  %v8422_v28 = vpack.c.bf16 %v2918_v53, %v2917_v46  ;;  %v8708_v10 = vld [vmem:[#allocation5_spill] sm:$0xff] }
 0x5ac   :  { %v2603_v30 = vcombine.high %v2599_v19, %v2599_v19  ;;  %2615 = vst [vmem:[%s8689_s4 + $0x1c] sm:$0x1] %v2602_v9  ;;  %2618 = vst [vmem:[%s8689_s4 + $0x34] sm:$0x1] %v2601_v49 }
 0x5ad   :  { %6298 = vmatpush3.bf16.msra.mxu0 %v8304_v55  ;;  %6322 = vmatpush3.bf16.msra.mxu1 %v8306_v0 }
 0x5ae   :  { %2619 = vst [vmem:[%s8689_s4 + $0x3c] sm:$0x1] %v2603_v30  ;;  %6299 = vmatprep.subr.bf16.mxu0 %v8706_v41  ;;  %6323 = vmatprep.subr.bf16.mxu1 %v8706_v41 }
 0x5b1   :  { %6301 = vmatpush3.bf16.msra.mxu0 %v8337_v50  ;;  %6325 = vmatpush3.bf16.msra.mxu1 %v8339_v11 }
 0x5b2   :  { %6302 = vmatprep.subr.bf16.mxu0 %v8706_v41  ;;  %6326 = vmatprep.subr.bf16.mxu1 %v8706_v41 }
 0x5b5   :  { %6304 = vmatpush3.bf16.msra.mxu0 %v8360_v23  ;;  %6328 = vmatpush3.bf16.msra.mxu1 %v8362_v39 }
 0x5b6   :  { %6305 = vmatprep.subr.bf16.mxu0 %v8706_v41  ;;  %6329 = vmatprep.subr.bf16.mxu1 %v8706_v41 }
 0x5b9   :  { %6307 = vmatpush3.bf16.msra.mxu0 %v8380_v8  ;;  %6331 = vmatpush3.bf16.msra.mxu1 %v8382_v52 }
 0x5ba   :  { %6308 = vmatprep.subr.bf16.mxu0 %v8706_v41  ;;  %6332 = vmatprep.subr.bf16.mxu1 %v8706_v41 }
 0x5bd   :  { %6310 = vmatpush3.bf16.msra.mxu0 %v8400_v15  ;;  %6334 = vmatpush3.bf16.msra.mxu1 %v8402_v40 }
 0x5be   :  { %6311 = vmatprep.subr.bf16.mxu0 %v8706_v41  ;;  %6335 = vmatprep.subr.bf16.mxu1 %v8706_v41 }
 0x5c1   :  { %6313 = vmatpush3.bf16.msra.mxu0 %v8420_v18  ;;  %6337 = vmatpush3.bf16.msra.mxu1 %v8422_v28 }
 0x5c2   :  { %6338 = vmatprep.subr.bf16.mxu0 %v8706_v41  ;;  %6362 = vmatprep.subr.bf16.mxu1 %v8706_v41 }
 0x5c4   :  { %5381 = vmatmul.mubr.f32.vlgmr.msra.gmra.mrb[38].mxu0 %v8248_v56  ;;  %5416 = vmatmul.mubr.f32.vlgmr.msra.gmra.mrb[38].mxu1 %v8248_v56 }
 0x5c5   :  { %6340 = vmatpush3.bf16.msra.mxu0 %v8070_v32  ;;  %6364 = vmatpush3.bf16.msra.mxu1 %v8075_v25 }
 0x5c6   :  { %6341 = vmatprep.subr.bf16.mxu0 %v8706_v41  ;;  %6365 = vmatprep.subr.bf16.mxu1 %v8706_v41 }
 0x5c7   :  { %5450 = vmatprep.mubr.msk.f32.mxu0 %vm6664_vm0, %v8707_v3  ;;  %5485 = vmatprep.mubr.msk.f32.mxu1 %vm6664_vm0, %v8707_v3 }
 0x5c9   :  { %6343 = vmatpush3.bf16.msra.mxu0 %v8090_v1  ;;  %6367 = vmatpush3.bf16.msra.mxu1 %v8095_v13 }
 0x5ca   :  { %6344 = vmatprep.subr.bf16.mxu0 %v8706_v41  ;;  %6368 = vmatprep.subr.bf16.mxu1 %v8706_v41 }
 0x5cd   :  { %6346 = vmatpush3.bf16.msra.mxu0 %v8110_v58  ;;  %6370 = vmatpush3.bf16.msra.mxu1 %v8115_v21 }
 0x5ce   :  { %6347 = vmatprep.subr.bf16.mxu0 %v8706_v41  ;;  %6371 = vmatprep.subr.bf16.mxu1 %v8706_v41 }
 0x5d1   :  { %6349 = vmatpush3.bf16.msra.mxu0 %v8130_v5  ;;  %6373 = vmatpush3.bf16.msra.mxu1 %v8135_v33 }
 0x5d2   :  { %6350 = vmatprep.subr.bf16.mxu0 %v8706_v41  ;;  %6374 = vmatprep.subr.bf16.mxu1 %v8706_v41 }
 0x5d5   :  { %6352 = vmatpush3.bf16.msra.mxu0 %v8150_v2  ;;  %6376 = vmatpush3.bf16.msra.mxu1 %v8155_v12 }
 0x5d6   :  { %6353 = vmatprep.subr.bf16.mxu0 %v8706_v41  ;;  %6377 = vmatprep.subr.bf16.mxu1 %v8706_v41 }
 0x5d9   :  { %6355 = vmatpush3.bf16.msra.mxu0 %v8170_v31  ;;  %6379 = vmatpush3.bf16.msra.mxu1 %v8175_v60 }
 0x5da   :  { %6356 = vmatprep.subr.bf16.mxu0 %v8706_v41  ;;  %6380 = vmatprep.subr.bf16.mxu1 %v8706_v41 }
 0x5dd   :  { %6358 = vmatpush3.bf16.msra.mxu0 %v8190_v48  ;;  %6382 = vmatpush3.bf16.msra.mxu1 %v8195_v14 }
 0x5de   :  { %6359 = vmatprep.subr.bf16.mxu0 %v8706_v41  ;;  %6383 = vmatprep.subr.bf16.mxu1 %v8706_v41 }
 0x5e1   :  { %6361 = vmatpush3.bf16.msra.mxu0 %v8210_v20  ;;  %6385 = vmatpush3.bf16.msra.mxu1 %v8215_v38 }
 0x5e2   :  { %6386 = vmatprep.subr.bf16.mxu0 %v8706_v41  ;;  %6410 = vmatprep.subr.bf16.mxu1 %v8706_v41 }
 0x677   :  { %v2711_v56 = vpop.f32.mrb[36].mxu0  ;;  %v2804_v47 = vpop.f32.mrb[36].mxu1 }
 0x678   :  { %v2715_v36 = vadd.f32 %v2711_v56, %v8708_v10  ;;  %v2808_v19 = vadd.f32 %v2804_v47, %v8709_v43  ;;  %v5312_v49 = vpop.f32.mrb[37].mxu0  ;;  %v5347_v9 = vpop.f32.mrb[37].mxu1 }
 0x67a   :  { %v4014_v16 = vmul.f32 -1.442695, %v2808_v19  ;;  %v4013_v42 = vmul.f32 -1.442695, %v2715_v36 }
 0x67c   :  { %6614 = vpow2.f32 %v4014_v16 }
 0x67d   :  { %6616 = vpow2.f32 %v4013_v42 }
 0x686   :  { %v6615_v24 = vpop.eup %6614 }
 0x687   :  { %v6617_v30 = vpop.eup %6616  ;;  %v2812_v62 = vadd.f32 1.0, %v6615_v24 }
 0x688   :  { %v2719_v27 = vadd.f32 1.0, %v6617_v30 }
 0x689   :  { %6618 = vrcp.f32 %v2812_v62 }
 0x68a   :  { %6620 = vrcp.f32 %v2719_v27 }
 0x693   :  { %v6619_v26 = vpop.eup %6618 }
 0x694   :  { %v6621_v4 = vpop.eup %6620  ;;  %v2996_v46 = vmul.f32 %v6619_v26, %v8226_v61 }
 0x697   :  { %v2897_v22 = vpop.f32.mrb[38].mxu0  ;;  %v2985_v37 = vpop.f32.mrb[38].mxu1 }
 0x698   :  { %v2901_v51 = vadd.f32 %v2897_v22, %v8710_v34  ;;  %v2989_v29 = vadd.f32 %v2985_v37, %v8711_v57  ;;  %v5382_v59 = vpop.f32.mrb[39].mxu0  ;;  %v5417_v6 = vpop.f32.mrb[39].mxu1  ;;  %v8714_v57 = vld [vmem:[#allocation10_spill] sm:$0xff] }
 0x699   :  { %v8715_v59 = vld [vmem:[#allocation12_spill] sm:$0xff] }
 0x69a   :  { %6622 = vtanh.f32 %v2901_v51  ;;  %v4015_v7 = vmul.f32 -1.442695, %v2989_v29 }
 0x69c   :  { %6624 = vpow2.f32 %v4015_v7 }
 0x6a4   :  { %v6623_v45 = vpop.eup %6622 }
 0x6a5   :  { %v2997_v53 = vmul.f32 %v6623_v45, %v6621_v4 }
 0x6a6   :  { %v6625_v56 = vpop.eup %6624 }
 0x6a7   :  { %v8473_v47 = vadd.f32 %v2997_v53, %v2996_v46  ;;  %v2993_v10 = vadd.f32 1.0, %v6625_v56 }
 0x6a9   :  { %6626 = vtanh.f32 %v8473_v47 }
 0x6aa   :  { %6628 = vrcp.f32 %v2993_v10 }
 0x6b3   :  { %v6627_v36 = vpop.eup %6626 }
 0x6b4   :  { %v6629_v43 = vpop.eup %6628 }
 0x6b5   :  { %v3000_v19 = vmul.f32 %v6629_v43, %v6627_v36 }
 0x6b7   :  { %v3004_v49 = vcombine.high %v3000_v19, %v3000_v19  ;;  %v3011_v9 = vrot.slane %v3000_v19, %v7394_v17  ;;  %5451 = vmatmul.mubr.f32.vlgmr.msra.gmra.mrb[40].mxu0 %v3000_v19  ;;  %5486 = vmatmul.mubr.f32.vlgmr.msra.gmra.mrb[40].mxu1 %v3000_v19 }
 0x6b8   :  { %6388 = vmatpush3.bf16.msra.mxu0 %v8241_v63  ;;  %6412 = vmatpush3.bf16.msra.mxu1 %v8243_v35 }
 0x6b9   :  { %v3018_v61 = vrot.slane %v3004_v49, %v7394_v17  ;;  %v3019_v16 = vcombine.high %v3011_v9, %v3011_v9  ;;  %v3027_v42 = vrot.slane %v3011_v9, %v7394_v17  ;;  %4016 = vst.sshfl [vmem:[%s8689_s4 + $0x5] sm:$0x1 pattern:$0x73625140] %v3011_v9  ;;  %6389 = vmatprep.subr.bf16.mxu0 %v8706_v41 }
 0x6ba   :  { %6413 = vmatprep.subr.bf16.mxu1 %v8706_v41  ;;  %5520 = vmatprep.mubr.msk.f32.mxu0 %vm6664_vm0, %v8707_v3 }
 0x6bb   :  { %5555 = vmatprep.mubr.msk.f32.mxu1 %vm6664_vm0, %v8707_v3  ;;  %v3020_v24 = vcombine.high %v3018_v61, %v3018_v61  ;;  %v3034_v30 = vrot.slane %v3018_v61, %v7394_v17  ;;  %v3041_v62 = vrot.slane %v3019_v16, %v7394_v17  ;;  %v3049_v27 = vcombine.high %v3027_v42, %v3027_v42 }
 0x6bc   :  { %4017 = vst.sshfl [vmem:[%s8689_s4 + $0xd] sm:$0x1 pattern:$0x73625140] %v3019_v16  ;;  %6391 = vmatpush3.bf16.msra.mxu0 %v8267_v44  ;;  %6415 = vmatpush3.bf16.msra.mxu1 %v8269_v54 }
 0x6bd   :  { %4018 = vst.sshfl [vmem:[%s8689_s4 + $0x25] sm:$0x1 pattern:$0x73625140] %v3018_v61  ;;  %v3048_v22 = vrot.slane %v3020_v24, %v7394_v17  ;;  %v3050_v37 = vcombine.high %v3034_v30, %v3034_v30  ;;  %v3051_v34 = vcombine.high %v3041_v62, %v3041_v62  ;;  %3063 = vst [vmem:[%s8689_s4 + $0x15] sm:$0x1] %v3049_v27  ;;  %6392 = vmatprep.subr.bf16.mxu0 %v8706_v41 }
 0x6be   :  { %4019 = vst.sshfl [vmem:[%s8689_s4 + $0x2d] sm:$0x1 pattern:$0x73625140] %v3020_v24  ;;  %6416 = vmatprep.subr.bf16.mxu1 %v8706_v41 }
 0x6bf   :  { %v3052_v51 = vcombine.high %v3048_v22, %v3048_v22  ;;  %3064 = vst [vmem:[%s8689_s4 + $0x1d] sm:$0x1] %v3051_v34  ;;  %3067 = vst [vmem:[%s8689_s4 + $0x35] sm:$0x1] %v3050_v37 }
 0x6c0   :  { %6394 = vmatpush3.bf16.msra.mxu0 %v8304_v55  ;;  %6418 = vmatpush3.bf16.msra.mxu1 %v8306_v0 }
 0x6c1   :  { %3068 = vst [vmem:[%s8689_s4 + $0x3d] sm:$0x1] %v3052_v51  ;;  %6395 = vmatprep.subr.bf16.mxu0 %v8706_v41  ;;  %6419 = vmatprep.subr.bf16.mxu1 %v8706_v41 }
 0x6c4   :  { %6397 = vmatpush3.bf16.msra.mxu0 %v8337_v50  ;;  %6421 = vmatpush3.bf16.msra.mxu1 %v8339_v11 }
 0x6c5   :  { %6398 = vmatprep.subr.bf16.mxu0 %v8706_v41  ;;  %6422 = vmatprep.subr.bf16.mxu1 %v8706_v41 }
 0x6c8   :  { %6400 = vmatpush3.bf16.msra.mxu0 %v8360_v23  ;;  %6424 = vmatpush3.bf16.msra.mxu1 %v8362_v39 }
 0x6c9   :  { %6401 = vmatprep.subr.bf16.mxu0 %v8706_v41  ;;  %6425 = vmatprep.subr.bf16.mxu1 %v8706_v41 }
 0x6cc   :  { %6403 = vmatpush3.bf16.msra.mxu0 %v8380_v8  ;;  %6427 = vmatpush3.bf16.msra.mxu1 %v8382_v52 }
 0x6cd   :  { %6404 = vmatprep.subr.bf16.mxu0 %v8706_v41  ;;  %6428 = vmatprep.subr.bf16.mxu1 %v8706_v41 }
 0x6d0   :  { %6406 = vmatpush3.bf16.msra.mxu0 %v8400_v15  ;;  %6430 = vmatpush3.bf16.msra.mxu1 %v8402_v40 }
 0x6d1   :  { %6407 = vmatprep.subr.bf16.mxu0 %v8706_v41  ;;  %6431 = vmatprep.subr.bf16.mxu1 %v8706_v41 }
 0x6d4   :  { %6409 = vmatpush3.bf16.msra.mxu0 %v8420_v18  ;;  %6433 = vmatpush3.bf16.msra.mxu1 %v8422_v28 }
 0x6d5   :  { %6434 = vmatprep.subr.bf16.mxu0 %v8706_v41  ;;  %6458 = vmatprep.subr.bf16.mxu1 %v8706_v41 }
 0x6d7   :  { %5521 = vmatmul.mubr.f32.vlgmr.msra.gmra.mrb[42].mxu0 %v3000_v19  ;;  %5556 = vmatmul.mubr.f32.vlgmr.msra.gmra.mrb[42].mxu1 %v3000_v19 }
 0x6d8   :  { %6436 = vmatpush3.bf16.msra.mxu0 %v8070_v32  ;;  %6460 = vmatpush3.bf16.msra.mxu1 %v8075_v25 }
 0x6d9   :  { %6437 = vmatprep.subr.bf16.mxu0 %v8706_v41  ;;  %6461 = vmatprep.subr.bf16.mxu1 %v8706_v41 }
 0x6da   :  { %5590 = vmatprep.mubr.msk.f32.mxu0 %vm6664_vm0, %v8707_v3  ;;  %5625 = vmatprep.mubr.msk.f32.mxu1 %vm6664_vm0, %v8707_v3 }
 0x6dc   :  { %6439 = vmatpush3.bf16.msra.mxu0 %v8090_v1  ;;  %6463 = vmatpush3.bf16.msra.mxu1 %v8095_v13  ;;  %v8712_v1 = vld [vmem:[#allocation9_spill] sm:$0xff] }
 0x6dd   :  { %6440 = vmatprep.subr.bf16.mxu0 %v8706_v41  ;;  %6464 = vmatprep.subr.bf16.mxu1 %v8706_v41 }
 0x6e0   :  { %6442 = vmatpush3.bf16.msra.mxu0 %v8110_v58  ;;  %6466 = vmatpush3.bf16.msra.mxu1 %v8115_v21  ;;  %v8713_v58 = vld [vmem:[#allocation11_spill] sm:$0xff] }
 0x6e1   :  { %6443 = vmatprep.subr.bf16.mxu0 %v8706_v41  ;;  %6467 = vmatprep.subr.bf16.mxu1 %v8706_v41 }
 0x6e4   :  { %6445 = vmatpush3.bf16.msra.mxu0 %v8130_v5  ;;  %6469 = vmatpush3.bf16.msra.mxu1 %v8135_v33 }
 0x6e5   :  { %6446 = vmatprep.subr.bf16.mxu0 %v8706_v41  ;;  %6470 = vmatprep.subr.bf16.mxu1 %v8706_v41 }
 0x6e8   :  { %6448 = vmatpush3.bf16.msra.mxu0 %v8150_v2  ;;  %6472 = vmatpush3.bf16.msra.mxu1 %v8155_v12 }
 0x6e9   :  { %6449 = vmatprep.subr.bf16.mxu0 %v8706_v41  ;;  %6473 = vmatprep.subr.bf16.mxu1 %v8706_v41 }
 0x6ec   :  { %6451 = vmatpush3.bf16.msra.mxu0 %v8170_v31  ;;  %6475 = vmatpush3.bf16.msra.mxu1 %v8175_v60 }
 0x6ed   :  { %6452 = vmatprep.subr.bf16.mxu0 %v8706_v41  ;;  %6476 = vmatprep.subr.bf16.mxu1 %v8706_v41 }
 0x6f0   :  { %6454 = vmatpush3.bf16.msra.mxu0 %v8190_v48  ;;  %6478 = vmatpush3.bf16.msra.mxu1 %v8195_v14 }
 0x6f1   :  { %6455 = vmatprep.subr.bf16.mxu0 %v8706_v41  ;;  %6479 = vmatprep.subr.bf16.mxu1 %v8706_v41 }
 0x6f4   :  { %6457 = vmatpush3.bf16.msra.mxu0 %v8210_v20  ;;  %6481 = vmatpush3.bf16.msra.mxu1 %v8215_v38 }
 0x6f5   :  { %6482 = vmatprep.subr.bf16.mxu0 %v8706_v41  ;;  %6506 = vmatprep.subr.bf16.mxu1 %v8706_v41 }
 0x78a   :  { %v3160_v32 = vpop.f32.mrb[40].mxu0  ;;  %v3253_v25 = vpop.f32.mrb[40].mxu1 }
 0x78b   :  { %v3164_v13 = vadd.f32 %v3160_v32, %v8712_v1  ;;  %v3257_v21 = vadd.f32 %v3253_v25, %v8713_v58  ;;  %v5452_v5 = vpop.f32.mrb[41].mxu0  ;;  %v5487_v33 = vpop.f32.mrb[41].mxu1  ;;  %v8718_v32 = vld [vmem:[#allocation14_spill] sm:$0xff]  ;;  %v8719_v1 = vld [vmem:[#allocation16_spill] sm:$0xff] }
 0x78d   :  { %v4021_v2 = vmul.f32 -1.442695, %v3257_v21  ;;  %v4020_v12 = vmul.f32 -1.442695, %v3164_v13 }
 0x78f   :  { %6630 = vpow2.f32 %v4021_v2 }
 0x790   :  { %6632 = vpow2.f32 %v4020_v12 }
 0x799   :  { %v6631_v31 = vpop.eup %6630 }
 0x79a   :  { %v6633_v60 = vpop.eup %6632  ;;  %v3261_v48 = vadd.f32 1.0, %v6631_v31 }
 0x79b   :  { %v3168_v14 = vadd.f32 1.0, %v6633_v60 }
 0x79c   :  { %6634 = vrcp.f32 %v3261_v48 }
 0x79d   :  { %6636 = vrcp.f32 %v3168_v14 }
 0x7a6   :  { %v6635_v45 = vpop.eup %6634 }
 0x7a7   :  { %v6637_v46 = vpop.eup %6636  ;;  %v3445_v56 = vmul.f32 %v6635_v45, %v8473_v47 }
 0x7aa   :  { %v3346_v20 = vpop.f32.mrb[42].mxu0  ;;  %v3434_v38 = vpop.f32.mrb[42].mxu1 }
 0x7ab   :  { %v3350_v29 = vadd.f32 %v3346_v20, %v8714_v57  ;;  %v3438_v6 = vadd.f32 %v3434_v38, %v8715_v59  ;;  %v5522_v7 = vpop.f32.mrb[43].mxu0  ;;  %v5557_v26 = vpop.f32.mrb[43].mxu1 }
 0x7ad   :  { %6638 = vtanh.f32 %v3350_v29  ;;  %v4022_v4 = vmul.f32 -1.442695, %v3438_v6 }
 0x7af   :  { %6640 = vpow2.f32 %v4022_v4 }
 0x7b7   :  { %v6639_v53 = vpop.eup %6638 }
 0x7b8   :  { %v3446_v10 = vmul.f32 %v6639_v53, %v6637_v46 }
 0x7b9   :  { %v6641_v36 = vpop.eup %6640 }
 0x7ba   :  { %v8583_v43 = vadd.f32 %v3446_v10, %v3445_v56  ;;  %v3442_v19 = vadd.f32 1.0, %v6641_v36 }
 0x7bc   :  { %6642 = vtanh.f32 %v8583_v43 }
 0x7bd   :  { %6644 = vrcp.f32 %v3442_v19 }
 0x7c6   :  { %v6643_v49 = vpop.eup %6642 }
 0x7c7   :  { %v6645_v9 = vpop.eup %6644 }
 0x7c8   :  { %v3449_v61 = vmul.f32 %v6645_v9, %v6643_v49 }
 0x7ca   :  { %v3453_v16 = vcombine.high %v3449_v61, %v3449_v61  ;;  %v3460_v42 = vrot.slane %v3449_v61, %v7394_v17  ;;  %5591 = vmatmul.mubr.f32.vlgmr.msra.gmra.mrb[44].mxu0 %v3449_v61  ;;  %5626 = vmatmul.mubr.f32.vlgmr.msra.gmra.mrb[44].mxu1 %v3449_v61 }
 0x7cb   :  { %6484 = vmatpush3.bf16.msra.mxu0 %v8241_v63  ;;  %6508 = vmatpush3.bf16.msra.mxu1 %v8243_v35 }
 0x7cc   :  { %v3467_v47 = vrot.slane %v3453_v16, %v7394_v17  ;;  %v3468_v24 = vcombine.high %v3460_v42, %v3460_v42  ;;  %v3476_v30 = vrot.slane %v3460_v42, %v7394_v17  ;;  %4023 = vst.sshfl [vmem:[%s8689_s4 + $0x6] sm:$0x1 pattern:$0x73625140] %v3460_v42  ;;  %6485 = vmatprep.subr.bf16.mxu0 %v8706_v41 }
 0x7cd   :  { %6509 = vmatprep.subr.bf16.mxu1 %v8706_v41  ;;  %5660 = vmatprep.mubr.msk.f32.mxu0 %vm6664_vm0, %v8707_v3 }
 0x7ce   :  { %5695 = vmatprep.mubr.msk.f32.mxu1 %vm6664_vm0, %v8707_v3  ;;  %v3469_v63 = vcombine.high %v3467_v47, %v3467_v47  ;;  %v3483_v35 = vrot.slane %v3467_v47, %v7394_v17  ;;  %v3490_v62 = vrot.slane %v3468_v24, %v7394_v17  ;;  %v3498_v27 = vcombine.high %v3476_v30, %v3476_v30 }
 0x7cf   :  { %4024 = vst.sshfl [vmem:[%s8689_s4 + $0xe] sm:$0x1 pattern:$0x73625140] %v3468_v24  ;;  %6487 = vmatpush3.bf16.msra.mxu0 %v8267_v44  ;;  %6511 = vmatpush3.bf16.msra.mxu1 %v8269_v54 }
 0x7d0   :  { %4025 = vst.sshfl [vmem:[%s8689_s4 + $0x26] sm:$0x1 pattern:$0x73625140] %v3467_v47  ;;  %v3497_v3 = vrot.slane %v3469_v63, %v7394_v17  ;;  %v3499_v22 = vcombine.high %v3483_v35, %v3483_v35  ;;  %v3500_v37 = vcombine.high %v3490_v62, %v3490_v62  ;;  %3512 = vst [vmem:[%s8689_s4 + $0x16] sm:$0x1] %v3498_v27  ;;  %6488 = vmatprep.subr.bf16.mxu0 %v8706_v41 }
 0x7d1   :  { %4026 = vst.sshfl [vmem:[%s8689_s4 + $0x2e] sm:$0x1 pattern:$0x73625140] %v3469_v63  ;;  %6512 = vmatprep.subr.bf16.mxu1 %v8706_v41 }
 0x7d2   :  { %v3501_v34 = vcombine.high %v3497_v3, %v3497_v3  ;;  %3513 = vst [vmem:[%s8689_s4 + $0x1e] sm:$0x1] %v3500_v37  ;;  %3516 = vst [vmem:[%s8689_s4 + $0x36] sm:$0x1] %v3499_v22 }
 0x7d3   :  { %6490 = vmatpush3.bf16.msra.mxu0 %v8304_v55  ;;  %6514 = vmatpush3.bf16.msra.mxu1 %v8306_v0  ;;  %v8716_v55 = vld [vmem:[#allocation13_spill] sm:$0xff] }
 0x7d4   :  { %3517 = vst [vmem:[%s8689_s4 + $0x3e] sm:$0x1] %v3501_v34  ;;  %6491 = vmatprep.subr.bf16.mxu0 %v8706_v41  ;;  %6515 = vmatprep.subr.bf16.mxu1 %v8706_v41 }
 0x7d7   :  { %6493 = vmatpush3.bf16.msra.mxu0 %v8337_v50  ;;  %6517 = vmatpush3.bf16.msra.mxu1 %v8339_v11  ;;  %v8717_v50 = vld [vmem:[#allocation15_spill] sm:$0xff] }
 0x7d8   :  { %6494 = vmatprep.subr.bf16.mxu0 %v8706_v41  ;;  %6518 = vmatprep.subr.bf16.mxu1 %v8706_v41 }
 0x7db   :  { %6496 = vmatpush3.bf16.msra.mxu0 %v8360_v23  ;;  %6520 = vmatpush3.bf16.msra.mxu1 %v8362_v39 }
 0x7dc   :  { %6497 = vmatprep.subr.bf16.mxu0 %v8706_v41  ;;  %6521 = vmatprep.subr.bf16.mxu1 %v8706_v41 }
 0x7df   :  { %6499 = vmatpush3.bf16.msra.mxu0 %v8380_v8  ;;  %6523 = vmatpush3.bf16.msra.mxu1 %v8382_v52 }
 0x7e0   :  { %6500 = vmatprep.subr.bf16.mxu0 %v8706_v41  ;;  %6524 = vmatprep.subr.bf16.mxu1 %v8706_v41 }
 0x7e3   :  { %6502 = vmatpush3.bf16.msra.mxu0 %v8400_v15  ;;  %6526 = vmatpush3.bf16.msra.mxu1 %v8402_v40 }
 0x7e4   :  { %6503 = vmatprep.subr.bf16.mxu0 %v8706_v41  ;;  %6527 = vmatprep.subr.bf16.mxu1 %v8706_v41 }
 0x7e7   :  { %6505 = vmatpush3.bf16.msra.mxu0 %v8420_v18  ;;  %6529 = vmatpush3.bf16.msra.mxu1 %v8422_v28 }
 0x7ea   :  { %5661 = vmatmul.mubr.f32.vlgmr.msra.gmra.mrb[46].mxu0 %v3449_v61  ;;  %5696 = vmatmul.mubr.f32.vlgmr.msra.gmra.mrb[46].mxu1 %v3449_v61 }
 0x89d   :  { %v3609_v44 = vpop.f32.mrb[44].mxu0  ;;  %v3702_v54 = vpop.f32.mrb[44].mxu1 }
 0x89e   :  { %v3613_v0 = vadd.f32 %v3609_v44, %v8716_v55  ;;  %v3706_v11 = vadd.f32 %v3702_v54, %v8717_v50  ;;  %v5592_v23 = vpop.f32.mrb[45].mxu0  ;;  %v5627_v39 = vpop.f32.mrb[45].mxu1 }
 0x8a0   :  { %v4028_v8 = vmul.f32 -1.442695, %v3706_v11  ;;  %v4027_v52 = vmul.f32 -1.442695, %v3613_v0 }
 0x8a2   :  { %6646 = vpow2.f32 %v4028_v8 }
 0x8a3   :  { %6648 = vpow2.f32 %v4027_v52 }
 0x8ac   :  { %v6647_v15 = vpop.eup %6646 }
 0x8ad   :  { %v6649_v41 = vpop.eup %6648  ;;  %v3710_v40 = vadd.f32 1.0, %v6647_v15 }
 0x8ae   :  { %v3617_v18 = vadd.f32 1.0, %v6649_v41 }
 0x8af   :  { %6650 = vrcp.f32 %v3710_v40 }
 0x8b0   :  { %6652 = vrcp.f32 %v3617_v18 }
 0x8b9   :  { %v6651_v33 = vpop.eup %6650 }
 0x8ba   :  { %v6653_v2 = vpop.eup %6652  ;;  %v3894_v31 = vmul.f32 %v6651_v33, %v8583_v43 }
 0x8bd   :  { %v3795_v51 = vpop.f32.mrb[46].mxu0  ;;  %v3883_v28 = vpop.f32.mrb[46].mxu1 }
 0x8be   :  { %v3799_v25 = vadd.f32 %v3795_v51, %v8718_v32  ;;  %v3887_v13 = vadd.f32 %v3883_v28, %v8719_v1  ;;  %v5662_v58 = vpop.f32.mrb[47].mxu0  ;;  %v5697_v21 = vpop.f32.mrb[47].mxu1 }
 0x8c0   :  { %6654 = vtanh.f32 %v3799_v25  ;;  %v4029_v5 = vmul.f32 -1.442695, %v3887_v13 }
 0x8c2   :  { %6656 = vpow2.f32 %v4029_v5 }
 0x8ca   :  { %v6655_v12 = vpop.eup %6654 }
 0x8cb   :  { %v3895_v60 = vmul.f32 %v6655_v12, %v6653_v2 }
 0x8cc   :  { %v6657_v48 = vpop.eup %6656 }
 0x8cd   :  { %v3896_v14 = vadd.f32 %v3895_v60, %v3894_v31  ;;  %v3891_v20 = vadd.f32 1.0, %v6657_v48 }
 0x8cf   :  { %6658 = vtanh.f32 %v3896_v14 }
 0x8d0   :  { %6660 = vrcp.f32 %v3891_v20 }
 0x8d9   :  { %v6659_v38 = vpop.eup %6658 }
 0x8da   :  { %v6661_v57 = vpop.eup %6660 }
 0x8db   :  { %v3898_v29 = vmul.f32 %v6661_v57, %v6659_v38 }
 0x8dd   :  { %v3902_v59 = vcombine.high %v3898_v29, %v3898_v29  ;;  %v3909_v6 = vrot.slane %v3898_v29, %v7394_v17 }
 0x8df   :  { %v3916_v7 = vrot.slane %v3902_v59, %v7394_v17  ;;  %v3917_v26 = vcombine.high %v3909_v6, %v3909_v6  ;;  %v3925_v4 = vrot.slane %v3909_v6, %v7394_v17  ;;  %4030 = vst.sshfl [vmem:[%s8689_s4 + $0x7] sm:$0x1 pattern:$0x73625140] %v3909_v6 }
 0x8e1   :  { %v3918_v45 = vcombine.high %v3916_v7, %v3916_v7  ;;  %v3932_v46 = vrot.slane %v3916_v7, %v7394_v17  ;;  %v3939_v53 = vrot.slane %v3917_v26, %v7394_v17  ;;  %v3947_v56 = vcombine.high %v3925_v4, %v3925_v4  ;;  %4031 = vst.sshfl [vmem:[%s8689_s4 + $0xf] sm:$0x1 pattern:$0x73625140] %v3917_v26 }
 0x8e2   :  { %4032 = vst.sshfl [vmem:[%s8689_s4 + $0x27] sm:$0x1 pattern:$0x73625140] %v3916_v7 }
 0x8e3   :  { %v3946_v10 = vrot.slane %v3918_v45, %v7394_v17  ;;  %v3948_v36 = vcombine.high %v3932_v46, %v3932_v46  ;;  %v3949_v43 = vcombine.high %v3939_v53, %v3939_v53  ;;  %3961 = vst [vmem:[%s8689_s4 + $0x17] sm:$0x1] %v3947_v56  ;;  %4033 = vst.sshfl [vmem:[%s8689_s4 + $0x2f] sm:$0x1 pattern:$0x73625140] %v3918_v45 }
 0x8e5   :  { %v3950_v19 = vcombine.high %v3946_v10, %v3946_v10  ;;  %3962 = vst [vmem:[%s8689_s4 + $0x1f] sm:$0x1] %v3949_v43  ;;  %3965 = vst [vmem:[%s8689_s4 + $0x37] sm:$0x1] %v3948_v36 }
 0x8e7   :  { %3966 = vst [vmem:[%s8689_s4 + $0x3f] sm:$0x1] %v3950_v19 }

</bundles_post_ra>
